<compile_context>
chip_gen: v6e
topology: v6e:2x2x1
jax: 0.10.0
libtpu: 0.0.40
codegen_flags: <defaults>
</compile_context>

<pallas_src>
import jax
import jax.numpy as jnp
from jax import lax
from jax.experimental import pallas as pl
from jax.experimental.pallas import tpu as pltpu


# ---- problem sizes (small, consistent with the module defaults scaled down) ----
B = 2            # batch
IN_CH = 3        # in_channel
IMG = 64         # img_size (small stand-in for 224)
PATCH = 16       # patch_size (module default)
EMBED = 192      # embed_dim (module default)
GRID = IMG // PATCH
NUM_PATCHES = GRID * GRID          # 16
K = IN_CH * PATCH * PATCH          # 768  (flattened patch length)

_TM_MAX = 1024   # rows per grid step at production sizes (multiple of 8 sublanes)


def patch_embed_kernel(x_ref, w_ref, b_ref, o_ref):
    """x_ref: (tm, K) patch rows, w_ref: (K, D), b_ref: (1, D), o_ref: (tm, D).

    One fused MXU matmul + bias add.  LayerNorm is Identity for the module
    defaults, so there is nothing else to do.
    """
    o_ref[...] = (
        jnp.dot(
            x_ref[...],
            w_ref[...],
            preferred_element_type=jnp.float32,
            precision=lax.Precision.HIGHEST,
        )
        + b_ref[...]
    ).astype(o_ref.dtype)


def patch_embed_forward(x, w, b):
    """x: (B, C, H, W) f32, w: (D, C, ph, pw) torch-layout conv weight, b: (D,)."""
    Bx, Cx, H, W = x.shape
    D, _, ph, pw = w.shape
    gh, gw = H // ph, W // pw
    P = gh * gw
    Kx = Cx * ph * pw
    M = Bx * P

    # im2col in the wrapper (pure layout, one XLA transpose op):
    # (B, C, gh, ph, gw, pw) -> (B, gh, gw, C, ph, pw) -> (B*P, C*ph*pw)
    # TODO(synk): fuse this relayout into the pallas_call (review item).  The
    # (C, ph, gw, pw) -> (P, K) shuffle moves data between lanes and sublanes
    # with pw=16 < 128 lanes; Mosaic's reshape/transpose lowering for these
    # non-native tile shapes is not robust enough to rely on here, so the
    # relayout stays as a single XLA transpose feeding the kernel.
    patches = (
        x.reshape(Bx, Cx, gh, ph, gw, pw)
        .transpose(0, 2, 4, 1, 3, 5)
        .reshape(M, Kx)
    )
    # conv weight (D, C, ph, pw) -> matmul weight (C*ph*pw, D); bias -> (1, D)
    wm = w.reshape(D, Kx).T
    bm = b.reshape(1, D)

    # M-axis tiling: single step at small sizes, _TM_MAX-row tiles at
    # production patch counts (review: biggest VMEM-fitting tile, "parallel").
    # Per-step VMEM budget (f32): 2*tm*K*4 + K*D*4 + 2*tm*D*4; for tm=1024,
    # K=768, D=192 that is ~8.5 MiB, well inside v7x's 64 MiB physical /
    # 32 MiB default-scoped VMEM.  Re-derive (and set vmem_limit_bytes) if
    # embed_dim grows (e.g. 768/1024).
    if M <= _TM_MAX:
        tm = M
        m_pad = M
    else:
        tm = _TM_MAX
        m_pad = pl.cdiv(M, tm) * tm
        if m_pad != M:
            patches = jnp.pad(patches, ((0, m_pad - M), (0, 0)))
    grid = (m_pad // tm,)

    def build(single_buffer_params):
        # Weight/bias block index is constant across the grid -> fetched once;
        # Buffered(1) drops their second pipeline buffer (VMEM headroom).
        wb_kwargs = (
            dict(pipeline_mode=pl.Buffered(1)) if single_buffer_params else {}
        )
        x_spec = pl.BlockSpec((tm, Kx), lambda i: (i, 0))
        w_spec = pl.BlockSpec((Kx, D), lambda i: (0, 0), **wb_kwargs)
        b_spec = pl.BlockSpec((1, D), lambda i: (0, 0), **wb_kwargs)
        o_spec = pl.BlockSpec((tm, D), lambda i: (i, 0))
        return pl.pallas_call(
            patch_embed_kernel,
            out_shape=jax.ShapeDtypeStruct((m_pad, D), x.dtype),
            grid_spec=pltpu.PrefetchScalarGridSpec(
                num_scalar_prefetch=0,
                grid=grid,
                in_specs=[x_spec, w_spec, b_spec],
                out_specs=o_spec,
            ),
            compiler_params=pltpu.CompilerParams(
                dimension_semantics=("parallel",),
            ),
        )

    try:
        out = build(True)(patches, wm, bm)
    except Exception:
        # pl.Buffered(1) not accepted by this jax version -> default buffering.
        out = build(False)(patches, wm, bm)

    return out[:M].reshape(Bx, P, D)


def patch_embed_reference(x, w, b, *, patch):
    """Pure-JAX reference mirroring the PyTorch forward exactly."""
    y = lax.conv_general_dilated(
        x, w,
        window_strides=(patch, patch),
        padding="VALID",
        dimension_numbers=("NCHW", "OIHW", "NCHW"),
        precision=lax.Precision.HIGHEST,
    )
    y = y + b[None, :, None, None]
    Bx, D, gh, gw = y.shape
    return y.reshape(Bx, D, gh * gw).transpose(0, 2, 1)   # flatten(2).transpose(1,2)


if __name__ == "__main__":
    key = jax.random.PRNGKey(0)
    kx, kw, kb = jax.random.split(key, 3)
    x = jax.random.normal(kx, (B, IN_CH, IMG, IMG), jnp.float32)
    w = jax.random.normal(kw, (EMBED, IN_CH, PATCH, PATCH), jnp.float32) * 0.02
    b = jax.random.normal(kb, (EMBED,), jnp.float32) * 0.02

    out = patch_embed_forward(x, w, b)
    out = jax.block_until_ready(out)

    ref = patch_embed_reference(x, w, b, patch=PATCH)
    assert out.shape == (B, NUM_PATCHES, EMBED), out.shape
    assert jnp.allclose(out, ref, atol=1e-4, rtol=1e-4), "mismatch vs reference"
    print("KERNEL_OK")
</pallas_src>

<mosaic_0001>
module attributes {stable_mosaic.version = 11 : i64} {
  func.func @patch_embed_kernel(%arg0: i32, %arg1: memref<32x768xf32, #tpu.memory_space<vmem>>, %arg2: memref<768x192xf32, #tpu.memory_space<vmem>>, %arg3: memref<1x192xf32, #tpu.memory_space<vmem>>, %arg4: memref<32x192xf32, #tpu.memory_space<vmem>>) attributes {dimension_semantics = [#tpu.dimension_semantics<parallel>], iteration_bounds = array<i64: 1>, scalar_prefetch = 0 : i64, scratch_operands = 0 : i64, tpu.core_type = #tpu.core_type<tc>, window_params = [{transform_indices = @transform_0, window_bounds = array<i64: 32, 768>}, {pipeline_mode = #tpu.pipeline_mode<synchronous>, transform_indices = @transform_1, window_bounds = array<i64: 768, 192>}, {pipeline_mode = #tpu.pipeline_mode<synchronous>, transform_indices = @transform_2, window_bounds = array<i64: 1, 192>}, {transform_indices = @transform_3, window_bounds = array<i64: 32, 192>}]} {
    %c0 = arith.constant 0 : index
    %c0_0 = arith.constant 0 : index
    %0 = vector.load %arg1[%c0, %c0_0] : memref<32x768xf32, #tpu.memory_space<vmem>>, vector<32x768xf32>
    %c0_1 = arith.constant 0 : index
    %c0_2 = arith.constant 0 : index
    %1 = vector.load %arg2[%c0_1, %c0_2] : memref<768x192xf32, #tpu.memory_space<vmem>>, vector<768x192xf32>
    %cst = arith.constant dense<0.000000e+00> : vector<32x192xf32>
    %2 = tpu.matmul %0, %1, %cst {dimension_numbers = #tpu.dot_dimension_numbers<[1], [0], [0], [1], [0, 0, 1, 1], [], []>, precision = #tpu.contract_precision<fp32>} : vector<32x768xf32>, vector<768x192xf32>, vector<32x192xf32> -> vector<32x192xf32>
    %c0_3 = arith.constant 0 : index
    %c0_4 = arith.constant 0 : index
    %3 = vector.load %arg3[%c0_3, %c0_4] : memref<1x192xf32, #tpu.memory_space<vmem>>, vector<1x192xf32>
    %4 = vector.broadcast %3 : vector<1x192xf32> to vector<32x192xf32>
    %5 = arith.addf %2, %4 : vector<32x192xf32>
    %c0_5 = arith.constant 0 : index
    %c0_6 = arith.constant 0 : index
    %6 = vector.load %arg4[%c0_5, %c0_6] : memref<32x192xf32, #tpu.memory_space<vmem>>, vector<32x192xf32>
    tpu.vector_store %arg4[%c0_5, %c0_6], %5 {strides = array<i32>} : memref<32x192xf32, #tpu.memory_space<vmem>>, vector<32x192xf32>,
    return
  }
  func.func @transform_0(%arg0: i32) -> (i32, i32) {
    %c0_i32 = arith.constant 0 : i32
    %c0_i32_0 = arith.constant 0 : i32
    return %arg0, %c0_i32 : i32, i32
  }
  func.func @transform_1(%arg0: i32) -> (i32, i32) {
    %c0_i32 = arith.constant 0 : i32
    %c0_i32_0 = arith.constant 0 : i32
    %c0_i32_1 = arith.constant 0 : i32
    return %c0_i32, %c0_i32_0 : i32, i32
  }
  func.func @transform_2(%arg0: i32) -> (i32, i32) {
    %c0_i32 = arith.constant 0 : i32
    %c0_i32_0 = arith.constant 0 : i32
    %c0_i32_1 = arith.constant 0 : i32
    return %c0_i32, %c0_i32_0 : i32, i32
  }
  func.func @transform_3(%arg0: i32) -> (i32, i32) {
    %c0_i32 = arith.constant 0 : i32
    %c0_i32_0 = arith.constant 0 : i32
    return %arg0, %c0_i32 : i32, i32
  }
}

module attributes {stable_mosaic.version = 11 : i64} {
  func.func @patch_embed_kernel(%arg0: i32, %arg1: memref<32x768xf32, #tpu.memory_space<vmem>>, %arg2: memref<768x192xf32, #tpu.memory_space<vmem>>, %arg3: memref<1x192xf32, #tpu.memory_space<vmem>>, %arg4: memref<32x192xf32, #tpu.memory_space<vmem>>) attributes {dimension_semantics = [#tpu.dimension_semantics<parallel>], iteration_bounds = array<i64: 1>, scalar_prefetch = 0 : i64, scratch_operands = 0 : i64, tpu.core_type = #tpu.core_type<tc>, window_params = [{transform_indices = @transform_0, window_bounds = array<i64: 32, 768>}, {pipeline_mode = #tpu.pipeline_mode<synchronous>, transform_indices = @transform_1, window_bounds = array<i64: 768, 192>}, {pipeline_mode = #tpu.pipeline_mode<synchronous>, transform_indices = @transform_2, window_bounds = array<i64: 1, 192>}, {transform_indices = @transform_3, window_bounds = array<i64: 32, 192>}]} {
    %c0 = arith.constant 0 : index
    %c0_0 = arith.constant 0 : index
    %0 = vector.load %arg1[%c0, %c0_0] : memref<32x768xf32, #tpu.memory_space<vmem>>, vector<32x768xf32>
    %c0_1 = arith.constant 0 : index
    %c0_2 = arith.constant 0 : index
    %1 = vector.load %arg2[%c0_1, %c0_2] : memref<768x192xf32, #tpu.memory_space<vmem>>, vector<768x192xf32>
    %cst = arith.constant dense<0.000000e+00> : vector<32x192xf32>
    %2 = tpu.matmul %0, %1, %cst {dimension_numbers = #tpu.dot_dimension_numbers<[1], [0], [0], [1], [0, 0, 1, 1], [], []>, precision = #tpu.contract_precision<fp32>} : vector<32x768xf32>, vector<768x192xf32>, vector<32x192xf32> -> vector<32x192xf32>
    %c0_3 = arith.constant 0 : index
    %c0_4 = arith.constant 0 : index
    %3 = vector.load %arg3[%c0_3, %c0_4] : memref<1x192xf32, #tpu.memory_space<vmem>>, vector<1x192xf32>
    %4 = vector.broadcast %3 : vector<1x192xf32> to vector<32x192xf32>
    %5 = arith.addf %2, %4 : vector<32x192xf32>
    %c0_5 = arith.constant 0 : index
    %c0_6 = arith.constant 0 : index
    %6 = vector.load %arg4[%c0_5, %c0_6] : memref<32x192xf32, #tpu.memory_space<vmem>>, vector<32x192xf32>
    tpu.vector_store %arg4[%c0_5, %c0_6], %5 {strides = array<i32>} : memref<32x192xf32, #tpu.memory_space<vmem>>, vector<32x192xf32>,
    return
  }
  func.func @transform_0(%arg0: i32) -> (i32, i32) {
    %c0_i32 = arith.constant 0 : i32
    %c0_i32_0 = arith.constant 0 : i32
    return %arg0, %c0_i32 : i32, i32
  }
  func.func @transform_1(%arg0: i32) -> (i32, i32) {
    %c0_i32 = arith.constant 0 : i32
    %c0_i32_0 = arith.constant 0 : i32
    %c0_i32_1 = arith.constant 0 : i32
    return %c0_i32, %c0_i32_0 : i32, i32
  }
  func.func @transform_2(%arg0: i32) -> (i32, i32) {
    %c0_i32 = arith.constant 0 : i32
    %c0_i32_0 = arith.constant 0 : i32
    %c0_i32_1 = arith.constant 0 : i32
    return %c0_i32, %c0_i32_0 : i32, i32
  }
  func.func @transform_3(%arg0: i32) -> (i32, i32) {
    %c0_i32 = arith.constant 0 : i32
    %c0_i32_0 = arith.constant 0 : i32
    return %arg0, %c0_i32 : i32, i32
  }
}

</mosaic_0001>

<bundles_post_ra>
// kernel: tpu_custom_call.1
= control target key start
LH: loop header
LB: loop body
LE: loop exit
PB: predicated region body
PF: predicated region fallthrough
CT: control target
= control target key end

     0   :  { %s9707_s0 = inlined_call_operand.vmem [shape: f32[32,768], index: 0, kind: input, shape index: {}]   ;;  %s9708_s1 = inlined_call_operand.vmem [shape: f32[768,192], index: 1, kind: input, shape index: {}]   ;;  %s9709_s2 = inlined_call_operand.vmem [shape: f32[1,192], index: 2, kind: input, shape index: {}]   ;;  %s9710_s3 = inlined_call_operand.hbm [shape: f32[32,192], index: 3, kind: output, shape index: {}]  }
   0x1   :  { %v70_v0 = vld [vmem:[%s9708_s1 + $0xf8] sm:$0xff]  ;;  %v69_v1 = vld [vmem:[%s9708_s1 + $0xf0] sm:$0xff]  ;;  %v68_v2 = vld [vmem:[%s9708_s1 + $0xe8] sm:$0xff] }
   0x2   :  { %v4735_v3 = vand.u32 4294901760, %v70_v0  ;;  %v4737_v4 = vand.u32 4294901760, %v69_v1  ;;  %v4739_v5 = vand.u32 4294901760, %v68_v2  ;;  %v67_v6 = vld [vmem:[%s9708_s1 + $0xe0] sm:$0xff]  ;;  %v66_v7 = vld [vmem:[%s9708_s1 + $0xd8] sm:$0xff]  ;;  %v65_v8 = vld [vmem:[%s9708_s1 + $0xd0] sm:$0xff] }
   0x3   :  { %v4750_v9 = vand.u32 4294901760, %v67_v6  ;;  %v4752_v10 = vand.u32 4294901760, %v66_v7  ;;  %v4754_v11 = vand.u32 4294901760, %v65_v8  ;;  %v64_v12 = vld [vmem:[%s9708_s1 + $0xc8] sm:$0xff]  ;;  %v63_v13 = vld [vmem:[%s9708_s1 + $0xc0] sm:$0xff]  ;;  %v62_v14 = vld [vmem:[%s9708_s1 + $0xb8] sm:$0xff] }
   0x4   :  { %244 = vmatprep.subr.mxu0 %v4735_v3  ;;  %v4766_v15 = vand.u32 4294901760, %v64_v12  ;;  %v4768_v16 = vand.u32 4294901760, %v63_v13  ;;  %v4770_v17 = vand.u32 4294901760, %v62_v14  ;;  %v4773_v18 = vsub.f32 %v70_v0, %v4735_v3  ;;  %v4778_v19 = vld [vmem:[%s9708_s1 + $0xb0] sm:$0xff]  ;;  %v4783_v20 = vld [vmem:[%s9708_s1 + $0xa8] sm:$0xff]  ;;  %v4788_v21 = vld [vmem:[%s9708_s1 + $0xa0] sm:$0xff] }
   0x5   :  { %246 = vmatpush1.msra.mxu0 %v4737_v4  ;;  %v4792_v22 = vand.u32 4294901760, %v4778_v19  ;;  %v4795_v23 = vsub.f32 %v69_v1, %v4737_v4  ;;  %v4798_v24 = vand.u32 4294901760, %v4783_v20  ;;  %v4801_v25 = vsub.f32 %v68_v2, %v4739_v5  ;;  %v4806_v26 = vld [vmem:[%s9708_s1 + $0x98] sm:$0xff]  ;;  %v4811_v27 = vld [vmem:[%s9708_s1 + $0x90] sm:$0xff]  ;;  %v4816_v28 = vld [vmem:[%s9708_s1 + $0x88] sm:$0xff] }
   0x6   :  { %10419 = vst [vmem:[#allocation5_spill] sm:$0xff] %v4766_v15  ;;  %10420 = vst [vmem:[#allocation6_spill] sm:$0xff] %v4768_v16  ;;  %248 = vmatprep.subr.mxu0 %v4739_v5  ;;  %v9724_v29 = vand.u32 4294901760, %v4773_v18  ;;  %v4821_v30 = vand.u32 4294901760, %v4788_v21  ;;  %v4824_v31 = vsub.f32 %v67_v6, %v4750_v9  ;;  %v4827_v32 = vand.u32 4294901760, %v4806_v26  ;;  %v4841_v37 = vld [vmem:[%s9708_s1 + $0x80] sm:$0xff] }
   0x7   :  { %10421 = vst [vmem:[#allocation7_spill] sm:$0xff] %v4770_v17  ;;  %10422 = vst [vmem:[#allocation8_spill] sm:$0xff] %v4792_v22  ;;  %250 = vmatpush1.msra.mxu0 %v4750_v9  ;;  %v9723_v33 = vand.u32 4294901760, %v4795_v23  ;;  %v9721_v34 = vand.u32 4294901760, %v4801_v25  ;;  %v4833_v35 = vsub.f32 %v66_v7, %v4752_v10  ;;  %v4836_v36 = vand.u32 4294901760, %v4811_v27  ;;  %v4868_v46 = vld [vmem:[%s9708_s1 + $0x78] sm:$0xff] }
   0x8   :  { %10423 = vst [vmem:[#allocation9_spill] sm:$0xff] %v4798_v24  ;;  %10424 = vst [vmem:[#allocation10_spill] sm:$0xff] %v4821_v30  ;;  %252 = vmatprep.subr.mxu0 %v4752_v10  ;;  %v439_v38 = vsub.f32 %v4773_v18, %v9724_v29  ;;  %v9720_v39 = vand.u32 4294901760, %v4824_v31  ;;  %v4849_v40 = vsub.f32 %v65_v8, %v4754_v11  ;;  %v4852_v41 = vand.u32 4294901760, %v4816_v28  ;;  %v4881_v51 = vld [vmem:[%s9708_s1 + $0x70] sm:$0xff]  ;;  %v4891_v56 = vld [vmem:[%s9708_s1 + $0x68] sm:$0xff] }
   0x9   :  { %10425 = vst [vmem:[#allocation11_spill] sm:$0xff] %v4827_v32  ;;  %10426 = vst [vmem:[#allocation12_spill] sm:$0xff] %v4836_v36  ;;  %254 = vmatpush1.msra.mxu0 %v4754_v11  ;;  %v445_v42 = vsub.f32 %v4795_v23, %v9723_v33  ;;  %v451_v43 = vsub.f32 %v4801_v25, %v9721_v34  ;;  %v9718_v44 = vand.u32 4294901760, %v4833_v35  ;;  %v4876_v50 = vand.u32 4294901760, %v4841_v37  ;;  %v4906_v61 = vld [vmem:[%s9708_s1 + $0x60] sm:$0xff]  ;;  %v4921_v2 = vld [vmem:[%s9708_s1 + $0x58] sm:$0xff] }
   0xa   :  { %10427 = vst [vmem:[#allocation13_spill] sm:$0xff] %v4852_v41  ;;  %v4863_v45 = vsub.f32 %v64_v12, %v4766_v15  ;;  %256 = vmatprep.subr.mxu0 %v4766_v15  ;;  %v440_v47 = vand.u32 4294901760, %v439_v38  ;;  %v457_v48 = vsub.f32 %v4824_v31, %v9720_v39  ;;  %v9716_v49 = vand.u32 4294901760, %v4849_v40  ;;  %v5057_v33 = vld [vmem:[%s9708_s1 + $0x18] sm:$0xff] }
   0xb   :  { %10428 = vst [vmem:[#allocation14_spill] sm:$0xff] %v4876_v50  ;;  %258 = vmatpush1.msra.mxu0 %v4768_v16  ;;  %v446_v52 = vand.u32 4294901760, %v445_v42  ;;  %v452_v53 = vand.u32 4294901760, %v451_v43  ;;  %v463_v54 = vsub.f32 %v4833_v35, %v9718_v44  ;;  %v4898_v59 = vsub.f32 %v63_v13, %v4768_v16  ;;  %v4935_v13 = vld [vmem:[%s9708_s1 + $0x50] sm:$0xff]  ;;  %v5030_v44 = vld [vmem:[%s9708_s1 + $0x28] sm:$0xff] }
   0xc   :  { %v9715_v55 = vand.u32 4294901760, %v4863_v45  ;;  %260 = vmatprep.subr.mxu0 %v4770_v17  ;;  %441 = vmatprep.subr.mxu1 %v440_v47  ;;  %v458_v57 = vand.u32 4294901760, %v457_v48  ;;  %v469_v58 = vsub.f32 %v4849_v40, %v9716_v49  ;;  %v4901_v60 = vand.u32 4294901760, %v4868_v46  ;;  %v5014_v49 = vld [vmem:[%s9708_s1 + $0x30] sm:$0xff] }
   0xd   :  { %262 = vmatpush1.msra.mxu0 %v4792_v22  ;;  %447 = vmatpush1.msra.mxu1 %v446_v52  ;;  %v464_v62 = vand.u32 4294901760, %v463_v54  ;;  %v4913_v0 = vsub.f32 %v62_v14, %v4770_v17  ;;  %v4916_v1 = vand.u32 4294901760, %v4881_v51  ;;  %v9713_v7 = vand.u32 4294901760, %v4898_v59 }
   0xe   :  { %10429 = vst [vmem:[#allocation15_spill] sm:$0xff] %v4901_v60  ;;  %v475_v63 = vsub.f32 %v4863_v45, %v9715_v55  ;;  %264 = vmatprep.subr.mxu0 %v4798_v24  ;;  %453 = vmatprep.subr.mxu1 %v452_v53  ;;  %v470_v6 = vand.u32 4294901760, %v469_v58  ;;  %v4927_v8 = vsub.f32 %v4778_v19, %v4792_v22  ;;  %v4930_v12 = vand.u32 4294901760, %v4891_v56 }
   0xf   :  { %10430 = vst [vmem:[#allocation16_spill] sm:$0xff] %v4916_v1  ;;  %266 = vmatpush1.msra.mxu0 %v4821_v30  ;;  %459 = vmatpush1.msra.mxu1 %v458_v57  ;;  %v9711_v38 = vand.u32 4294901760, %v4913_v0  ;;  %v4941_v42 = vsub.f32 %v4783_v20, %v4798_v24  ;;  %v4944_v19 = vand.u32 4294901760, %v4906_v61  ;;  %v481_v43 = vsub.f32 %v4898_v59, %v9713_v7  ;;  %v4961_v20 = vld [vmem:[%s9708_s1 + $0x48] sm:$0xff] }
  0x10   :  { %10431 = vst [vmem:[#allocation17_spill] sm:$0xff] %v4930_v12  ;;  %v476_v14 = vand.u32 4294901760, %v475_v63  ;;  %268 = vmatprep.subr.mxu0 %v4827_v32  ;;  %465 = vmatprep.subr.mxu1 %v464_v62  ;;  %v9712_v47 = vand.u32 4294901760, %v4927_v8  ;;  %v4953_v48 = vsub.f32 %v4788_v21, %v4821_v30  ;;  %v4956_v52 = vand.u32 4294901760, %v4921_v2 }
  0x11   :  { %10432 = vst [vmem:[#allocation18_spill] sm:$0xff] %v4944_v19  ;;  %270 = vmatpush1.msra.mxu0 %v4836_v36  ;;  %471 = vmatpush1.msra.mxu1 %v470_v6  ;;  %v487_v53 = vsub.f32 %v4913_v0, %v9711_v38  ;;  %v9714_v54 = vand.u32 4294901760, %v4941_v42  ;;  %v4970_v21 = vsub.f32 %v4806_v26, %v4827_v32  ;;  %v4973_v57 = vand.u32 4294901760, %v4935_v13  ;;  %v4987_v26 = vld [vmem:[%s9708_s1 + $0x40] sm:$0xff] }
  0x12   :  { %10433 = vst [vmem:[#allocation19_spill] sm:$0xff] %v4956_v52  ;;  %272 = vmatprep.subr.mxu0 %v4852_v41  ;;  %477 = vmatprep.subr.mxu1 %v476_v14  ;;  %v482_v58 = vand.u32 4294901760, %v481_v43  ;;  %v493_v62 = vsub.f32 %v4927_v8, %v9712_v47  ;;  %v9717_v63 = vand.u32 4294901760, %v4953_v48  ;;  %v4982_v6 = vsub.f32 %v4811_v27, %v4836_v36  ;;  %v5000_v27 = vld [vmem:[%s9708_s1 + $0x38] sm:$0xff] }
  0x13   :  { %10434 = vst [vmem:[#allocation20_spill] sm:$0xff] %v4973_v57  ;;  %274 = vmatpush1.msra.mxu0 %v4876_v50  ;;  %v488_v38 = vand.u32 4294901760, %v487_v53  ;;  %v499_v14 = vsub.f32 %v4941_v42, %v9714_v54  ;;  %v9719_v43 = vand.u32 4294901760, %v4970_v21  ;;  %v4995_v47 = vand.u32 4294901760, %v4961_v20 }
  0x14   :  { %483 = vmatpush1.msra.mxu1 %v482_v58  ;;  %276 = vmatprep.subr.mxu0 %v4901_v60  ;;  %v494_v7 = vand.u32 4294901760, %v493_v62  ;;  %v505_v53 = vsub.f32 %v4953_v48, %v9717_v63  ;;  %v9722_v54 = vand.u32 4294901760, %v4982_v6  ;;  %v5009_v55 = vsub.f32 %v4816_v28, %v4852_v41 }
  0x15   :  { %10435 = vst [vmem:[#allocation21_spill] sm:$0xff] %v4995_v47  ;;  %489 = vmatprep.subr.mxu1 %v488_v38  ;;  %278 = vmatpush1.msra.mxu0 %v4916_v1  ;;  %v500_v58 = vand.u32 4294901760, %v499_v14  ;;  %v511_v62 = vsub.f32 %v4970_v21, %v9719_v43  ;;  %v5021_v63 = vand.u32 4294901760, %v4987_v26  ;;  %v5025_v28 = vsub.f32 %v4841_v37, %v4876_v50  ;;  %v5043_v37 = vld [vmem:[%s9708_s1 + $0x20] sm:$0xff] }
  0x16   :  { %10436 = vst [vmem:[#allocation22_spill] sm:$0xff] %v5009_v55  ;;  %495 = vmatpush1.msra.mxu1 %v494_v7  ;;  %280 = vmatprep.subr.mxu0 %v4930_v12  ;;  %v506_v38 = vand.u32 4294901760, %v505_v53  ;;  %v517_v14 = vsub.f32 %v4982_v6, %v9722_v54  ;;  %v9727_v43 = vand.u32 4294901760, %v5009_v55  ;;  %v5038_v39 = vand.u32 4294901760, %v5000_v27 }
  0x17   :  { %10437 = vst [vmem:[#allocation23_spill] sm:$0xff] %v5021_v63  ;;  %10438 = vst [vmem:[#allocation24_spill] sm:$0xff] %v5025_v28  ;;  %501 = vmatprep.subr.mxu1 %v500_v58  ;;  %282 = vmatpush1.msra.mxu0 %v4944_v19  ;;  %v512_v7 = vand.u32 4294901760, %v511_v62  ;;  %v9728_v53 = vand.u32 4294901760, %v5025_v28  ;;  %v5049_v34 = vsub.f32 %v4868_v46, %v4901_v60  ;;  %v5052_v54 = vand.u32 4294901760, %v5014_v49 }
  0x18   :  { %10439 = vst [vmem:[#allocation25_spill] sm:$0xff] %v5038_v39  ;;  %507 = vmatpush1.msra.mxu1 %v506_v38  ;;  %284 = vmatprep.subr.mxu0 %v4956_v52  ;;  %v518_v58 = vand.u32 4294901760, %v517_v14  ;;  %v523_v62 = vsub.f32 %v5009_v55, %v9727_v43  ;;  %v5065_v46 = vsub.f32 %v4881_v51, %v4916_v1  ;;  %v5068_v29 = vand.u32 4294901760, %v5030_v44  ;;  %v5085_v51 = vld [vmem:[%s9708_s1 + $0x10] sm:$0xff] }
  0x19   :  { %10440 = vst [vmem:[#allocation26_spill] sm:$0xff] %v5049_v34  ;;  %10441 = vst [vmem:[#allocation27_spill] sm:$0xff] %v5052_v54  ;;  %513 = vmatprep.subr.mxu1 %v512_v7  ;;  %286 = vmatpush1.msra.mxu0 %v4973_v57  ;;  %v529_v38 = vsub.f32 %v5025_v28, %v9728_v53  ;;  %v5077_v60 = vsub.f32 %v4891_v56, %v4930_v12  ;;  %v5080_v43 = vand.u32 4294901760, %v5043_v37 }
  0x1a   :  { %10442 = vst [vmem:[#allocation28_spill] sm:$0xff] %v5065_v46  ;;  %10443 = vst [vmem:[#allocation29_spill] sm:$0xff] %v5068_v29 }
  0x1b   :  { %10444 = vst [vmem:[#allocation30_spill] sm:$0xff] %v5077_v60  ;;  %10445 = vst [vmem:[#allocation31_spill] sm:$0xff] %v5080_v43 }
  0x1c   :  { %8 = vsyncpa [#allocation3], 0  ;;  %519 = vmatpush1.msra.mxu1 %v518_v58  ;;  %288 = vmatprep.subr.mxu0 %v4995_v47  ;;  %v524_v7 = vand.u32 4294901760, %v523_v62  ;;  %v5091_v14 = vsub.f32 %v4906_v61, %v4944_v19  ;;  %v5094_v56 = vand.u32 4294901760, %v5057_v33  ;;  %v5099_v12 = vld [vmem:[%s9708_s1 + $0x8] sm:$0xff]  ;;  %v530_v58 = vand.u32 4294901760, %v529_v38 }
  0x1d   :  { %290 = vmatpush1.msra.mxu0 %v5021_v63  ;;  %v10448_v1 = vand.u32 4294901760, %v5049_v34  ;;  %v9745_v53 = vand.u32 4294901760, %v5077_v60  ;;  %v5108_v61 = vsub.f32 %v4921_v2, %v4956_v52  ;;  %v10450_v19 = vand.u32 4294901760, %v5065_v46  ;;  %v5125_v2 = vld [vmem:[%s9708_s1] sm:$0xff]  ;;  %v5152_v41 = vld [vmem:[%s9708_s1 + $0x1f0] sm:$0xff]  ;;  %v5168_v36 = vld [vmem:[%s9708_s1 + $0x1e8] sm:$0xff] }
  0x1e   :  { %10446 = vst [vmem:[#allocation32_spill] sm:$0xff] %v5091_v14  ;;  %10447 = vst [vmem:[#allocation33_spill] sm:$0xff] %v5094_v56  ;;  %525 = vmatprep.subr.mxu1 %v524_v7  ;;  %292 = vmatprep.subr.mxu0 %v5038_v39  ;;  %v5116_v38 = vand.u32 4294901760, %v5085_v51  ;;  %v5133_v52 = vand.u32 4294901760, %v5099_v12  ;;  %vm4654_vm0 = vcmask 523264  }
  0x1f   :  { %v535_v62 = vsub.f32 %v5049_v34, %v10448_v1  ;;  %10449 = vst [vmem:[#allocation34_spill] sm:$0xff] %v5108_v61  ;;  %v541_v50 = vsub.f32 %v5065_v46, %v10450_v19  ;;  %v5120_v1 = vsub.f32 %v4935_v13, %v4973_v57  ;;  %531 = vmatpush1.msra.mxu1 %v530_v58  ;;  %v5138_v13 = vld [vmem:[%s9708_s1 + $0x1f8] sm:$0xff]  ;;  %v10454_v58 = vand.u32 4294901760, %v5091_v14 }
  0x20   :  { %10451 = vst [vmem:[#allocation35_spill] sm:$0xff] %v5116_v38  ;;  %294 = vmatpush1.msra.mxu0 %v5052_v54  ;;  %v547_v19 = vsub.f32 %v5077_v60, %v9745_v53  ;;  %10453 = vst [vmem:[#allocation37_spill] sm:$0xff] %v5133_v52  ;;  %v5147_v53 = vsub.f32 %v4961_v20, %v4995_v47  ;;  %v5163_v20 = vsub.f32 %v4987_v26, %v5021_v63  ;;  %v5181_v26 = vld [vmem:[%s9708_s1 + $0x1e0] sm:$0xff]  ;;  %v5195_v47 = vld [vmem:[%s9708_s1 + $0x1d8] sm:$0xff] }
  0x21   :  { %10452 = vst [vmem:[#allocation36_spill] sm:$0xff] %v5120_v1  ;;  %v536_v7 = vand.u32 4294901760, %v535_v62  ;;  %v542_v57 = vand.u32 4294901760, %v541_v50  ;;  %296 = vmatprep.subr.mxu0 %v5068_v29  ;;  %v553_v62 = vsub.f32 %v5091_v14, %v10454_v58  ;;  %v10456_v50 = vand.u32 4294901760, %v5108_v61 }
  0x22   :  { %10455 = vst [vmem:[#allocation38_spill] sm:$0xff] %v5147_v53  ;;  %v548_v32 = vand.u32 4294901760, %v547_v19  ;;  %298 = vmatpush1.msra.mxu0 %v5080_v43  ;;  %v5159_v58 = vand.u32 4294901760, %v5125_v2  ;;  %10458 = vst [vmem:[#allocation40_spill] sm:$0xff] %v5163_v20  ;;  %v10459_v19 = vand.u32 4294901760, %v5120_v1  ;;  %v5215_v14 = vsub.f32 %v5030_v44, %v5068_v29  ;;  %v5237_v29 = vld [vmem:[%s9708_s1 + $0x1c8] sm:$0xff] }
  0x23   :  { %537 = vmatprep.subr.mxu1 %v536_v7  ;;  %v559_v30 = vsub.f32 %v5108_v61, %v10456_v50  ;;  %v554_v7 = vand.u32 4294901760, %v553_v62  ;;  %300 = vmatprep.subr.mxu0 %v5094_v56  ;;  %v5176_v61 = vand.u32 4294901760, %v5138_v13  ;;  %v5187_v62 = vsub.f32 %v5000_v27, %v5038_v39 }
  0x24   :  { %10457 = vst [vmem:[#allocation39_spill] sm:$0xff] %v5159_v58  ;;  %543 = vmatpush1.msra.mxu1 %v542_v57  ;;  %v565_v50 = vsub.f32 %v5120_v1, %v10459_v19  ;;  %302 = vmatpush1.msra.mxu0 %v5116_v38  ;;  %v5190_v19 = vand.u32 4294901760, %v5152_v41  ;;  %v5203_v27 = vsub.f32 %v5014_v49, %v5052_v54  ;;  %v5206_v57 = vand.u32 4294901760, %v5168_v36  ;;  %v5223_v49 = vld [vmem:[%s9708_s1 + $0x1d0] sm:$0xff] }
  0x25   :  { %10460 = vst [vmem:[#allocation41_spill] sm:$0xff] %v5176_v61  ;;  %549 = vmatprep.subr.mxu1 %v548_v32  ;;  %v560_v63 = vand.u32 4294901760, %v559_v30  ;;  %10461 = vst [vmem:[#allocation42_spill] sm:$0xff] %v5187_v62  ;;  %304 = vmatprep.subr.mxu0 %v5133_v52  ;;  %v10463_v30 = vand.u32 4294901760, %v5147_v53  ;;  %v10466_v39 = vand.u32 4294901760, %v5163_v20  ;;  %v5232_v44 = vand.u32 4294901760, %v5195_v47 }
  0x26   :  { %10462 = vst [vmem:[#allocation43_spill] sm:$0xff] %v5190_v19  ;;  %555 = vmatpush1.msra.mxu1 %v554_v7  ;;  %v566_v1 = vand.u32 4294901760, %v565_v50  ;;  %10464 = vst [vmem:[#allocation44_spill] sm:$0xff] %v5203_v27  ;;  %306 = vmatpush1.msra.mxu0 %v5159_v58  ;;  %v5229_v50 = vsub.f32 %v5043_v37, %v5080_v43  ;;  %v5246_v37 = vsub.f32 %v5057_v33, %v5094_v56  ;;  %v5263_v33 = vld [vmem:[%s9708_s1 + $0x1c0] sm:$0xff] }
  0x27   :  { %v571_v32 = vsub.f32 %v5147_v53, %v10463_v30  ;;  %10465 = vst [vmem:[#allocation45_spill] sm:$0xff] %v5206_v57  ;;  %561 = vmatprep.subr.mxu1 %v560_v63  ;;  %v577_v7 = vsub.f32 %v5163_v20, %v10466_v39  ;;  %10467 = vst [vmem:[#allocation46_spill] sm:$0xff] %v5215_v14  ;;  %v5218_v30 = vand.u32 4294901760, %v5181_v26  ;;  %308 = vmatprep.subr.mxu0 %v5176_v61 }
  0x28   :  { %567 = vmatpush1.msra.mxu1 %v566_v1  ;;  %10469 = vst [vmem:[#allocation48_spill] sm:$0xff] %v5229_v50  ;;  %10470 = vst [vmem:[#allocation49_spill] sm:$0xff] %v5232_v44  ;;  %v10471_v1 = vand.u32 4294901760, %v5187_v62  ;;  %310 = vmatpush2.msra.mxu0 %v5190_v19  ;;  %v9776_v39 = vand.u32 4294901760, %v5215_v14  ;;  %v10473_v43 = vand.u32 4294901760, %v5203_v27  ;;  %v5254_v53 = vand.u32 4294901760, %v5223_v49 }
  0x29   :  { %10468 = vst [vmem:[#allocation47_spill] sm:$0xff] %v5218_v30  ;;  %v572_v63 = vand.u32 4294901760, %v571_v32  ;;  %v578_v54 = vand.u32 4294901760, %v577_v7  ;;  %10472 = vst [vmem:[#allocation50_spill] sm:$0xff] %v5246_v37  ;;  %312 = vmatprep.subr.mxu0 %v5206_v57  ;;  %v5271_v56 = vand.u32 4294901760, %v5237_v29  ;;  %v5285_v7 = vsub.f32 %v5099_v12, %v5133_v52  ;;  %v5333_v52 = vld [vmem:[%s9708_s1 + $0x198] sm:$0xff] }
  0x2a   :  { %v583_v32 = vsub.f32 %v5187_v62, %v10471_v1  ;;  %v589_v20 = vsub.f32 %v5203_v27, %v10473_v43  ;;  %10474 = vst [vmem:[#allocation51_spill] sm:$0xff] %v5254_v53  ;;  %v5258_v1 = vsub.f32 %v5085_v51, %v5116_v38  ;;  %v595_v43 = vsub.f32 %v5215_v14, %v9776_v39  ;;  %v5276_v51 = vld [vmem:[%s9708_s1 + $0x1b8] sm:$0xff]  ;;  %v5290_v14 = vld [vmem:[%s9708_s1 + $0x1b0] sm:$0xff]  ;;  %v5306_v39 = vld [vmem:[%s9708_s1 + $0x1a8] sm:$0xff] }
  0x2b   :  { %573 = vmatprep.subr.mxu1 %v572_v63  ;;  %314 = vmatpush2.msra.mxu0 %v5218_v30  ;;  %10476 = vst [vmem:[#allocation53_spill] sm:$0xff] %v5271_v56  ;;  %10478 = vst [vmem:[#allocation54_spill] sm:$0xff] %v5285_v7  ;;  %v5301_v12 = vsub.f32 %v5125_v2, %v5159_v58  ;;  %v5319_v2 = vld [vmem:[%s9708_s1 + $0x1a0] sm:$0xff] }
  0x2c   :  { %10475 = vst [vmem:[#allocation52_spill] sm:$0xff] %v5258_v1  ;;  %579 = vmatpush1.msra.mxu1 %v578_v54  ;;  %v584_v63 = vand.u32 4294901760, %v583_v32  ;;  %v590_v38 = vand.u32 4294901760, %v589_v20  ;;  %v10477_v54 = vand.u32 4294901760, %v5229_v50  ;;  %316 = vmatprep.subr.mxu0 %v5232_v44  ;;  %v596_v27 = vand.u32 4294901760, %v595_v43 }
  0x2d   :  { %v10479_v20 = vand.u32 4294901760, %v5246_v37  ;;  %318 = vmatpush2.msra.mxu0 %v5254_v53  ;;  %10481 = vst [vmem:[#allocation56_spill] sm:$0xff] %v5301_v12  ;;  %v10482_v43 = vand.u32 4294901760, %v5258_v1 }
  0x2e   :  { %v601_v32 = vsub.f32 %v5229_v50, %v10477_v54  ;;  %585 = vmatprep.subr.mxu1 %v584_v63  ;;  %v5297_v54 = vand.u32 4294901760, %v5263_v33  ;;  %320 = vmatprep.subr.mxu0 %v5271_v56 }
  0x2f   :  { %v607_v62 = vsub.f32 %v5246_v37, %v10479_v20  ;;  %591 = vmatpush1.msra.mxu1 %v590_v38  ;;  %v613_v20 = vsub.f32 %v5258_v1, %v10482_v43  ;;  %v5314_v37 = vand.u32 4294901760, %v5276_v51  ;;  %v5328_v43 = vand.u32 4294901760, %v5290_v14 }
  0x30   :  { %10480 = vst [vmem:[#allocation55_spill] sm:$0xff] %v5297_v54  ;;  %v602_v63 = vand.u32 4294901760, %v601_v32  ;;  %597 = vmatprep.subr.mxu1 %v596_v27  ;;  %322 = vmatpush2.msra.mxu0 %v5297_v54  ;;  %v5325_v32 = vsub.f32 %v5138_v13, %v5176_v61  ;;  %v5341_v13 = vsub.f32 %v5152_v41, %v5190_v19  ;;  %v5344_v38 = vand.u32 4294901760, %v5306_v39  ;;  %v5361_v41 = vld [vmem:[%s9708_s1 + $0x190] sm:$0xff] }
  0x31   :  { %10483 = vst [vmem:[#allocation57_spill] sm:$0xff] %v5314_v37  ;;  %v608_v58 = vand.u32 4294901760, %v607_v62  ;;  %10485 = vst [vmem:[#allocation59_spill] sm:$0xff] %v5328_v43  ;;  %v614_v1 = vand.u32 4294901760, %v613_v20  ;;  %v10486_v62 = vand.u32 4294901760, %v5285_v7  ;;  %324 = vmatprep.subr.mxu0 %v5314_v37  ;;  %v10489_v61 = vand.u32 4294901760, %v5301_v12 }
  0x32   :  { %10484 = vst [vmem:[#allocation58_spill] sm:$0xff] %v5325_v32  ;;  %603 = vmatpush1.msra.mxu1 %v602_v63  ;;  %10487 = vst [vmem:[#allocation60_spill] sm:$0xff] %v5341_v13  ;;  %326 = vmatpush2.msra.mxu0 %v5328_v43  ;;  %v5353_v20 = vsub.f32 %v5168_v36, %v5206_v57  ;;  %v5367_v63 = vsub.f32 %v5181_v26, %v5218_v30  ;;  %v5370_v36 = vand.u32 4294901760, %v5333_v52  ;;  %v5375_v57 = vld [vmem:[%s9708_s1 + $0x188] sm:$0xff] }
  0x33   :  { %v619_v27 = vsub.f32 %v5285_v7, %v10486_v62  ;;  %10488 = vst [vmem:[#allocation61_spill] sm:$0xff] %v5344_v38  ;;  %609 = vmatprep.subr.mxu1 %v608_v58  ;;  %v625_v50 = vsub.f32 %v5301_v12, %v10489_v61  ;;  %v5356_v62 = vand.u32 4294901760, %v5319_v2  ;;  %328 = vmatprep.subr.mxu0 %v5344_v38  ;;  %v10496_v30 = vand.u32 4294901760, %v5341_v13  ;;  %v5427_v7 = vld [vmem:[%s9708_s1 + $0x170] sm:$0xff] }
  0x34   :  { %10490 = vst [vmem:[#allocation62_spill] sm:$0xff] %v5353_v20  ;;  %615 = vmatpush1.msra.mxu1 %v614_v1  ;;  %10492 = vst [vmem:[#allocation64_spill] sm:$0xff] %v5367_v63  ;;  %v10494_v1 = vand.u32 4294901760, %v5325_v32  ;;  %v9811_v61 = vand.u32 4294901760, %v5353_v20  ;;  %v5384_v26 = vsub.f32 %v5195_v47, %v5232_v44  ;;  %v5401_v47 = vld [vmem:[%s9708_s1 + $0x180] sm:$0xff]  ;;  %v5408_v44 = vand.u32 4294901760, %v5375_v57 }
  0x35   :  { %10491 = vst [vmem:[#allocation63_spill] sm:$0xff] %v5356_v62  ;;  %v620_v58 = vand.u32 4294901760, %v619_v27  ;;  %10493 = vst [vmem:[#allocation65_spill] sm:$0xff] %v5370_v36  ;;  %v626_v19 = vand.u32 4294901760, %v625_v50  ;;  %330 = vmatpush2.msra.mxu0 %v5356_v62  ;;  %v637_v12 = vsub.f32 %v5341_v13, %v10496_v30  ;;  %v5392_v50 = vand.u32 4294901760, %v5361_v41 }
  0x36   :  { %v631_v27 = vsub.f32 %v5325_v32, %v10494_v1  ;;  %10495 = vst [vmem:[#allocation66_spill] sm:$0xff] %v5384_v26  ;;  %332 = vmatprep.subr.mxu0 %v5370_v36  ;;  %v5396_v1 = vsub.f32 %v5223_v49, %v5254_v53  ;;  %v643_v30 = vsub.f32 %v5353_v20, %v9811_v61  ;;  %10499 = vst [vmem:[#allocation69_spill] sm:$0xff] %v5408_v44  ;;  %v5413_v49 = vld [vmem:[%s9708_s1 + $0x178] sm:$0xff] }
  0x37   :  { %621 = vmatprep.subr.mxu1 %v620_v58  ;;  %10497 = vst [vmem:[#allocation67_spill] sm:$0xff] %v5392_v50  ;;  %v638_v53 = vand.u32 4294901760, %v637_v12  ;;  %v10500_v13 = vand.u32 4294901760, %v5367_v63  ;;  %334 = vmatpush2.msra.mxu0 %v5392_v50  ;;  %v5422_v61 = vsub.f32 %v5237_v29, %v5271_v56  ;;  %v10502_v12 = vand.u32 4294901760, %v5384_v26  ;;  %v5469_v56 = vld [vmem:[%s9708_s1 + $0x158] sm:$0xff] }
  0x38   :  { %10498 = vst [vmem:[#allocation68_spill] sm:$0xff] %v5396_v1  ;;  %627 = vmatpush1.msra.mxu1 %v626_v19  ;;  %v632_v58 = vand.u32 4294901760, %v631_v27  ;;  %v644_v20 = vand.u32 4294901760, %v643_v30  ;;  %336 = vmatprep.subr.mxu0 %v5408_v44  ;;  %v5438_v29 = vsub.f32 %v5263_v33, %v5297_v54  ;;  %v5443_v27 = vld [vmem:[%s9708_s1 + $0x168] sm:$0xff]  ;;  %v10505_v30 = vand.u32 4294901760, %v5396_v1  ;;  %v5455_v33 = vld [vmem:[%s9708_s1 + $0x160] sm:$0xff] }
  0x39   :  { %v649_v19 = vsub.f32 %v5367_v63, %v10500_v13  ;;  %10501 = vst [vmem:[#allocation70_spill] sm:$0xff] %v5422_v61  ;;  %v655_v32 = vsub.f32 %v5384_v26, %v10502_v12  ;;  %v5434_v13 = vand.u32 4294901760, %v5401_v47  ;;  %v5450_v26 = vand.u32 4294901760, %v5413_v49 }
  0x3a   :  { %633 = vmatprep.subr.mxu1 %v632_v58  ;;  %10504 = vst [vmem:[#allocation72_spill] sm:$0xff] %v5438_v29  ;;  %v661_v12 = vsub.f32 %v5396_v1, %v10505_v30  ;;  %v5464_v30 = vand.u32 4294901760, %v5427_v7 }
  0x3b   :  { %10503 = vst [vmem:[#allocation71_spill] sm:$0xff] %v5434_v13  ;;  %639 = vmatpush2.msra.mxu1 %v638_v53  ;;  %v650_v58 = vand.u32 4294901760, %v649_v19  ;;  %10506 = vst [vmem:[#allocation73_spill] sm:$0xff] %v5450_v26  ;;  %v656_v54 = vand.u32 4294901760, %v655_v32  ;;  %338 = vmatpush2.msra.mxu0 %v5434_v13  ;;  %v5461_v19 = vsub.f32 %v5276_v51, %v5314_v37  ;;  %v10509_v32 = vand.u32 4294901760, %v5422_v61 }
  0x3c   :  { %645 = vmatprep.subr.mxu1 %v644_v20  ;;  %10508 = vst [vmem:[#allocation75_spill] sm:$0xff] %v5464_v30  ;;  %v662_v1 = vand.u32 4294901760, %v661_v12  ;;  %340 = vmatprep.subr.mxu0 %v5450_v26  ;;  %v5477_v51 = vsub.f32 %v5290_v14, %v5328_v43  ;;  %v5480_v53 = vand.u32 4294901760, %v5443_v27  ;;  %v10512_v37 = vand.u32 4294901760, %v5438_v29  ;;  %v5497_v14 = vld [vmem:[%s9708_s1 + $0x150] sm:$0xff] }
  0x3d   :  { %10507 = vst [vmem:[#allocation74_spill] sm:$0xff] %v5461_v19  ;;  %651 = vmatpush2.msra.mxu1 %v650_v58  ;;  %v667_v20 = vsub.f32 %v5422_v61, %v10509_v32  ;;  %342 = vmatpush2.msra.mxu0 %v5464_v30  ;;  %v5489_v12 = vsub.f32 %v5306_v39, %v5344_v38  ;;  %v5492_v32 = vand.u32 4294901760, %v5455_v33  ;;  %v5506_v39 = vand.u32 4294901760, %v5469_v56  ;;  %v5511_v38 = vld [vmem:[%s9708_s1 + $0x148] sm:$0xff]  ;;  %v5563_v61 = vld [vmem:[%s9708_s1 + $0x130] sm:$0xff] }
  0x3e   :  { %10510 = vst [vmem:[#allocation76_spill] sm:$0xff] %v5477_v51  ;;  %10511 = vst [vmem:[#allocation77_spill] sm:$0xff] %v5480_v53  ;;  %657 = vmatprep.subr.mxu1 %v656_v54  ;;  %v673_v63 = vsub.f32 %v5438_v29, %v10512_v37  ;;  %344 = vmatprep.subr.mxu0 %v5480_v53  ;;  %v5503_v58 = vsub.f32 %v5319_v2, %v5356_v62  ;;  %v10519_v62 = vand.u32 4294901760, %v5477_v51 }
  0x3f   :  { %10513 = vst [vmem:[#allocation78_spill] sm:$0xff] %v5489_v12  ;;  %10514 = vst [vmem:[#allocation79_spill] sm:$0xff] %v5492_v32  ;;  %663 = vmatpush2.msra.mxu1 %v662_v1  ;;  %v668_v54 = vand.u32 4294901760, %v667_v20  ;;  %v10517_v1 = vand.u32 4294901760, %v5461_v19  ;;  %v9844_v37 = vand.u32 4294901760, %v5489_v12  ;;  %346 = vmatpush2.msra.mxu0 %v5492_v32  ;;  %v5520_v2 = vsub.f32 %v5333_v52, %v5370_v36  ;;  %v5537_v52 = vld [vmem:[%s9708_s1 + $0x140] sm:$0xff] }
  0x40   :  { %10515 = vst [vmem:[#allocation80_spill] sm:$0xff] %v5503_v58  ;;  %10516 = vst [vmem:[#allocation81_spill] sm:$0xff] %v5506_v39  ;;  %v674_v43 = vand.u32 4294901760, %v673_v63  ;;  %v685_v29 = vsub.f32 %v5477_v51, %v10519_v62  ;;  %348 = vmatprep.subr.mxu0 %v5506_v39  ;;  %v5528_v63 = vand.u32 4294901760, %v5497_v14  ;;  %v5544_v36 = vand.u32 4294901760, %v5511_v38 }
  0x41   :  { %v679_v20 = vsub.f32 %v5461_v19, %v10517_v1  ;;  %10518 = vst [vmem:[#allocation82_spill] sm:$0xff] %v5520_v2  ;;  %669 = vmatprep.subr.mxu1 %v668_v54  ;;  %v5532_v1 = vsub.f32 %v5361_v41, %v5392_v50  ;;  %v691_v62 = vsub.f32 %v5489_v12, %v9844_v37  ;;  %v5549_v41 = vld [vmem:[%s9708_s1 + $0x138] sm:$0xff]  ;;  %v10523_v51 = vand.u32 4294901760, %v5503_v58 }
  0x42   :  { %10520 = vst [vmem:[#allocation83_spill] sm:$0xff] %v5528_v63  ;;  %675 = vmatpush2.msra.mxu1 %v674_v43  ;;  %10522 = vst [vmem:[#allocation85_spill] sm:$0xff] %v5544_v36  ;;  %v686_v50 = vand.u32 4294901760, %v685_v29  ;;  %350 = vmatpush2.msra.mxu0 %v5528_v63  ;;  %v5558_v37 = vsub.f32 %v5375_v57, %v5408_v44  ;;  %v10525_v29 = vand.u32 4294901760, %v5520_v2  ;;  %v5605_v44 = vld [vmem:[%s9708_s1 + $0x118] sm:$0xff] }
  0x43   :  { %10521 = vst [vmem:[#allocation84_spill] sm:$0xff] %v5532_v1  ;;  %v680_v54 = vand.u32 4294901760, %v679_v20  ;;  %v697_v43 = vsub.f32 %v5503_v58, %v10523_v51  ;;  %v692_v12 = vand.u32 4294901760, %v691_v62  ;;  %352 = vmatprep.subr.mxu0 %v5544_v36  ;;  %v5570_v51 = vand.u32 4294901760, %v5537_v52  ;;  %v5579_v20 = vld [vmem:[%s9708_s1 + $0x128] sm:$0xff] }
  0x44   :  { %10524 = vst [vmem:[#allocation86_spill] sm:$0xff] %v5558_v37  ;;  %v703_v19 = vsub.f32 %v5520_v2, %v10525_v29  ;;  %v5574_v57 = vsub.f32 %v5401_v47, %v5434_v13  ;;  %v10528_v62 = vand.u32 4294901760, %v5532_v1  ;;  %v5586_v2 = vand.u32 4294901760, %v5549_v41  ;;  %v5591_v47 = vld [vmem:[%s9708_s1 + $0x120] sm:$0xff] }
  0x45   :  { %681 = vmatprep.subr.mxu1 %v680_v54  ;;  %10526 = vst [vmem:[#allocation87_spill] sm:$0xff] %v5570_v51  ;;  %v698_v54 = vand.u32 4294901760, %v697_v43  ;;  %354 = vmatpush2.msra.mxu0 %v5570_v51  ;;  %v5597_v43 = vsub.f32 %v5413_v49, %v5450_v26  ;;  %v5613_v49 = vsub.f32 %v5427_v7, %v5464_v30  ;;  %v5633_v7 = vld [vmem:[%s9708_s1 + $0x110] sm:$0xff] }
  0x46   :  { %10527 = vst [vmem:[#allocation88_spill] sm:$0xff] %v5574_v57  ;;  %687 = vmatpush2.msra.mxu1 %v686_v50  ;;  %v709_v29 = vsub.f32 %v5532_v1, %v10528_v62  ;;  %10529 = vst [vmem:[#allocation89_spill] sm:$0xff] %v5586_v2  ;;  %v704_v13 = vand.u32 4294901760, %v703_v19  ;;  %v5600_v62 = vand.u32 4294901760, %v5563_v61  ;;  %v10531_v19 = vand.u32 4294901760, %v5558_v37  ;;  %356 = vmatprep.subr.mxu0 %v5586_v2 }
  0x47   :  { %693 = vmatprep.subr.mxu1 %v692_v12  ;;  %10530 = vst [vmem:[#allocation90_spill] sm:$0xff] %v5597_v43  ;;  %10532 = vst [vmem:[#allocation91_spill] sm:$0xff] %v5613_v49  ;;  %v5616_v50 = vand.u32 4294901760, %v5579_v20  ;;  %v10534_v26 = vand.u32 4294901760, %v5574_v57 }
  0x48   :  { %699 = vmatpush2.msra.mxu1 %v698_v54  ;;  %v710_v1 = vand.u32 4294901760, %v709_v29  ;;  %v715_v12 = vsub.f32 %v5558_v37, %v10531_v19  ;;  %358 = vmatpush2.msra.mxu0 %v5600_v62  ;;  %v5625_v29 = vsub.f32 %v5443_v27, %v5480_v53  ;;  %v5628_v19 = vand.u32 4294901760, %v5591_v47  ;;  %v5647_v53 = vld [vmem:[%s9708_s1 + $0x108] sm:$0xff] }
  0x49   :  { %10533 = vst [vmem:[#allocation92_spill] sm:$0xff] %v5616_v50  ;;  %705 = vmatprep.subr.mxu1 %v704_v13  ;;  %v721_v58 = vsub.f32 %v5574_v57, %v10534_v26  ;;  %360 = vmatprep.subr.mxu0 %v5616_v50  ;;  %v5639_v54 = vsub.f32 %v5455_v33, %v5492_v32  ;;  %v5642_v27 = vand.u32 4294901760, %v5605_v44  ;;  %v10541_v32 = vand.u32 4294901760, %v5613_v49 }
  0x4a   :  { %10535 = vst [vmem:[#allocation93_spill] sm:$0xff] %v5625_v29  ;;  %10536 = vst [vmem:[#allocation94_spill] sm:$0xff] %v5628_v19  ;;  %711 = vmatpush2.msra.mxu1 %v710_v1  ;;  %v716_v13 = vand.u32 4294901760, %v715_v12  ;;  %v10539_v1 = vand.u32 4294901760, %v5597_v43  ;;  %v9879_v26 = vand.u32 4294901760, %v5625_v29  ;;  %362 = vmatpush2.msra.mxu0 %v5628_v19  ;;  %v5656_v33 = vsub.f32 %v5469_v56, %v5506_v39  ;;  %v5673_v56 = vld [vmem:[%s9708_s1 + $0x100] sm:$0xff] }
  0x4b   :  { %10537 = vst [vmem:[#allocation95_spill] sm:$0xff] %v5639_v54  ;;  %10538 = vst [vmem:[#allocation96_spill] sm:$0xff] %v5642_v27  ;;  %v722_v30 = vand.u32 4294901760, %v721_v58  ;;  %v733_v57 = vsub.f32 %v5613_v49, %v10541_v32  ;;  %364 = vmatprep.subr.mxu0 %v5642_v27  ;;  %v5664_v58 = vand.u32 4294901760, %v5633_v7  ;;  %v5680_v39 = vand.u32 4294901760, %v5647_v53 }
  0x4c   :  { %v727_v12 = vsub.f32 %v5597_v43, %v10539_v1  ;;  %10540 = vst [vmem:[#allocation97_spill] sm:$0xff] %v5656_v33  ;;  %717 = vmatprep.subr.mxu1 %v716_v13  ;;  %v5668_v1 = vsub.f32 %v5497_v14, %v5528_v63  ;;  %v739_v32 = vsub.f32 %v5625_v29, %v9879_v26  ;;  %v16_v14 = vld [vmem:[%s9707_s0 + $0x8] sm:$0xff]  ;;  %v10542_v49 = vand.u32 4294901760, %v5639_v54  ;;  %v15_v26 = vld [vmem:[%s9707_s0] sm:$0xff] }
  0x4d   :  { %723 = vmatpush2.msra.mxu1 %v722_v30  ;;  %v734_v63 = vand.u32 4294901760, %v733_v57  ;;  %366 = vmatpush2.msra.mxu0 %v5664_v58  ;;  %v10544_v57 = vand.u32 4294901760, %v5656_v33  ;;  %v5706_v30 = vsub.f32 %v5537_v52, %v5570_v51  ;;  %v5718_v52 = vsub.f32 %v5549_v41, %v5586_v2 }
  0x4e   :  { %v728_v13 = vand.u32 4294901760, %v727_v12  ;;  %v745_v43 = vsub.f32 %v5639_v54, %v10542_v49  ;;  %v5692_v12 = vsub.f32 %v5511_v38, %v5544_v36  ;;  %v740_v37 = vand.u32 4294901760, %v739_v32  ;;  %368 = vmatprep.subr.mxu0 %v5680_v39 }
  0x4f   :  { %v751_v29 = vsub.f32 %v5656_v33, %v10544_v57  ;;  %v5702_v49 = vand.u32 4294901760, %v5673_v56  ;;  %v10545_v36 = vand.u32 4294901760, %v5668_v1  ;;  %v5712_v54 = vand.u32 4294901760, %v16_v14 }
  0x50   :  { %10543 = vst [vmem:[#allocation98_spill] sm:$0xff] %v5692_v12  ;;  %729 = vmatprep.subr.mxu1 %v728_v13  ;;  %v746_v38 = vand.u32 4294901760, %v745_v43  ;;  %v9891_v32 = vand.u32 4294901760, %v5692_v12  ;;  %v9890_v33 = vand.u32 4294901760, %v5706_v30 }
  0x51   :  { %735 = vmatpush2.msra.mxu1 %v734_v63  ;;  %v757_v13 = vsub.f32 %v5668_v1, %v10545_v36  ;;  %10546 = vst [vmem:[#allocation99_spill] sm:$0xff] %v5712_v54  ;;  %v752_v57 = vand.u32 4294901760, %v751_v29  ;;  %370 = vmatpush2.msra.mxu0 %v5702_v49  ;;  %v5720_v63 = vand.u32 4294901760, %v15_v26  ;;  %v5726_v51 = vsub.f32 %v16_v14, %v5712_v54 }
  0x52   :  { %741 = vmatprep.subr.mxu1 %v740_v37  ;;  %v763_v36 = vsub.f32 %v5692_v12, %v9891_v32  ;;  %855 = vmatprep.subr.mxu0 %v4773_v18  ;;  %v5731_v37 = vsub.f32 %v5563_v61, %v5600_v62  ;;  %v769_v41 = vsub.f32 %v5706_v30, %v9890_v33  ;;  %v9894_v29 = vand.u32 4294901760, %v5718_v52 }
  0x53   :  { %10547 = vst [vmem:[#allocation100_spill] sm:$0xff] %v5720_v63  ;;  %747 = vmatpush2.msra.mxu1 %v746_v38  ;;  %v758_v43 = vand.u32 4294901760, %v757_v13  ;;  %v5738_v38 = vsub.f32 %v15_v26, %v5720_v63  ;;  %v5742_v14 = vsub.f32 %v5579_v20, %v5616_v50  ;;  %821 = vmatprep.mubr.f32.mxu1 %v5712_v54  ;;  %v9895_v61 = vand.u32 4294901760, %v5726_v51 }
  0x54   :  { %753 = vmatprep.subr.mxu1 %v752_v57  ;;  %v764_v13 = vand.u32 4294901760, %v763_v36  ;;  %v9898_v57 = vand.u32 4294901760, %v5731_v37  ;;  %v5749_v33 = vsub.f32 %v5591_v47, %v5628_v19  ;;  %v770_v32 = vand.u32 4294901760, %v769_v41 }
  0x55   :  { %759 = vmatpush2.msra.mxu1 %v758_v43  ;;  %v775_v26 = vsub.f32 %v5718_v52, %v9894_v29  ;;  %v9903_v20 = vand.u32 4294901760, %v5738_v38  ;;  %v9904_v50 = vand.u32 4294901760, %v5742_v14  ;;  %v374_v43 = vsub.f32 %v5726_v51, %v9895_v61 }
  0x56   :  { %765 = vmatprep.subr.mxu1 %v764_v13  ;;  %v781_v36 = vsub.f32 %v5731_v37, %v9898_v57  ;;  %v5765_v41 = vsub.f32 %v5605_v44, %v5642_v27  ;;  %v5775_v54 = vsub.f32 %v5633_v7, %v5664_v58  ;;  %v10548_v19 = vand.u32 4294901760, %v5749_v33 }
  0x57   :  { %771 = vmatpush2.msra.mxu1 %v770_v32  ;;  %v776_v29 = vand.u32 4294901760, %v775_v26  ;;  %v380_v13 = vsub.f32 %v5738_v38, %v9903_v20  ;;  %v787_v61 = vsub.f32 %v5742_v14, %v9904_v50  ;;  %v375_v57 = vand.u32 4294901760, %v374_v43 }
  0x58   :  { %v782_v47 = vand.u32 4294901760, %v781_v36  ;;  %v793_v44 = vsub.f32 %v5749_v33, %v10548_v19  ;;  %v9908_v32 = vand.u32 4294901760, %v5765_v41  ;;  %v9907_v20 = vand.u32 4294901760, %v5775_v54 }
  0x59   :  { %777 = vmatprep.subr.mxu1 %v776_v29  ;;  %v381_v26 = vand.u32 4294901760, %v380_v13  ;;  %v788_v27 = vand.u32 4294901760, %v787_v61  ;;  %v5784_v50 = vsub.f32 %v5647_v53, %v5680_v39  ;;  %376 = vmatprep.mubr.f32.mxu0 %v375_v57  ;;  %v5791_v19 = vsub.f32 %v5673_v56, %v5702_v49 }
  0x5a   :  { %783 = vmatpush2.msra.mxu1 %v782_v47  ;;  %v794_v7 = vand.u32 4294901760, %v793_v44  ;;  %v799_v43 = vsub.f32 %v5765_v41, %v9908_v32  ;;  %v805_v29 = vsub.f32 %v5775_v54, %v9907_v20  ;;  %v10549_v44 = vld [vmem:[#allocation32_spill] sm:$0xff]  ;;  %v10563_v32 = vld [vmem:[#allocation46_spill] sm:$0xff] }
  0x5b   :  { %382 = vmatmul.mubr.f32.vlgmr.msra.gmra.mxu0 %v381_v26  ;;  %789 = vmatprep.subr.mxu1 %v788_v27  ;;  %v9906_v53 = vand.u32 4294901760, %v5784_v50  ;;  %v9905_v57 = vand.u32 4294901760, %v5791_v19  ;;  %v10550_v26 = vld [vmem:[#allocation10_spill] sm:$0xff]  ;;  %v10562_v20 = vld [vmem:[#allocation16_spill] sm:$0xff] }
  0x5c   :  { %858 = vmatpush1.msra.mxu0 %v4795_v23  ;;  %795 = vmatpush2.msra.mxu1 %v794_v7  ;;  %v800_v61 = vand.u32 4294901760, %v799_v43  ;;  %v806_v36 = vand.u32 4294901760, %v805_v29  ;;  %v10551_v7 = vld [vmem:[#allocation34_spill] sm:$0xff]  ;;  %v10552_v43 = vld [vmem:[#allocation11_spill] sm:$0xff]  ;;  %v10553_v29 = vld [vmem:[#allocation36_spill] sm:$0xff] }
  0x5d   :  { %861 = vmatprep.subr.mxu0 %v4801_v25  ;;  %v811_v56 = vsub.f32 %v5784_v50, %v9906_v53  ;;  %v817_v27 = vsub.f32 %v5791_v19, %v9905_v57  ;;  %v10560_v57 = vld [vmem:[#allocation15_spill] sm:$0xff]  ;;  %v10561_v53 = vld [vmem:[#allocation44_spill] sm:$0xff] }
  0x5e   :  { %864 = vmatpush1.msra.mxu0 %v4824_v31  ;;  %801 = vmatprep.subr.mxu1 %v800_v61  ;;  %v10554_v61 = vld [vmem:[#allocation12_spill] sm:$0xff] }
  0x5f   :  { %867 = vmatprep.subr.mxu0 %v4833_v35  ;;  %807 = vmatpush2.msra.mxu1 %v806_v36  ;;  %v812_v47 = vand.u32 4294901760, %v811_v56  ;;  %v818_v13 = vand.u32 4294901760, %v817_v27  ;;  %v10555_v36 = vld [vmem:[#allocation38_spill] sm:$0xff]  ;;  %v10556_v56 = vld [vmem:[#allocation13_spill] sm:$0xff]  ;;  %v10557_v27 = vld [vmem:[#allocation40_spill] sm:$0xff] }
  0x60   :  { %870 = vmatpush1.msra.mxu0 %v4849_v40 }
  0x61   :  { %813 = vmatprep.subr.mxu1 %v812_v47  ;;  %873 = vmatprep.subr.mxu0 %v4863_v45  ;;  %v10558_v47 = vld [vmem:[#allocation14_spill] sm:$0xff] }
  0x62   :  { %819 = vmatpush2.msra.mxu1 %v818_v13  ;;  %876 = vmatpush1.msra.mxu0 %v4898_v59  ;;  %v10559_v13 = vld [vmem:[#allocation42_spill] sm:$0xff] }
  0x63   :  { %823 = vmatmul.mubr.f32.vlgmr.msra.gmra.mxu1 %v5720_v63  ;;  %879 = vmatprep.subr.mxu0 %v4913_v0  ;;  %v10564_v63 = vld [vmem:[#allocation17_spill] sm:$0xff] }
  0x64   :  { %1087 = vmatprep.subr.mxu1 %v4735_v3  ;;  %882 = vmatpush1.msra.mxu0 %v4927_v8 }
  0x65   :  { %1089 = vmatpush1.msra.mxu1 %v4737_v4  ;;  %885 = vmatprep.subr.mxu0 %v4941_v42 }
  0x66   :  { %1091 = vmatprep.subr.mxu1 %v4739_v5  ;;  %888 = vmatpush1.msra.mxu0 %v4953_v48 }
  0x67   :  { %1093 = vmatpush1.msra.mxu1 %v4750_v9  ;;  %891 = vmatprep.subr.mxu0 %v4970_v21 }
  0x68   :  { %1095 = vmatprep.subr.mxu1 %v4752_v10  ;;  %894 = vmatpush1.msra.mxu0 %v4982_v6 }
  0x69   :  { %1097 = vmatpush1.msra.mxu1 %v4754_v11  ;;  %897 = vmatprep.subr.mxu0 %v5009_v55  ;;  %v10620_v55 = vld [vmem:[#allocation61_spill] sm:$0xff] }
  0x6a   :  { %1099 = vmatprep.subr.mxu1 %v4766_v15  ;;  %900 = vmatpush1.msra.mxu0 %v5025_v28  ;;  %v10612_v28 = vld [vmem:[#allocation55_spill] sm:$0xff] }
  0x6b   :  { %1101 = vmatpush1.msra.mxu1 %v4768_v16  ;;  %903 = vmatprep.subr.mxu0 %v5049_v34  ;;  %v10608_v34 = vld [vmem:[#allocation51_spill] sm:$0xff]  ;;  %v10609_v16 = vld [vmem:[#allocation86_spill] sm:$0xff] }
  0x6c   :  { %1103 = vmatprep.subr.mxu1 %v4770_v17  ;;  %906 = vmatpush1.msra.mxu0 %v5065_v46  ;;  %v10604_v46 = vld [vmem:[#allocation82_spill] sm:$0xff]  ;;  %v10606_v17 = vld [vmem:[#allocation84_spill] sm:$0xff] }
  0x6d   :  { %1105 = vmatpush1.msra.mxu1 %v4792_v22  ;;  %909 = vmatprep.subr.mxu0 %v5077_v60  ;;  %v10599_v60 = vld [vmem:[#allocation78_spill] sm:$0xff]  ;;  %v10603_v22 = vld [vmem:[#allocation47_spill] sm:$0xff] }
  0x6e   :  { %1107 = vmatprep.subr.mxu1 %v4798_v24  ;;  %912 = vmatpush1.msra.mxu0 %v10549_v44  ;;  %v10592_v44 = vld [vmem:[#allocation37_spill] sm:$0xff]  ;;  %v10597_v24 = vld [vmem:[#allocation76_spill] sm:$0xff] }
  0x6f   :  { %1109 = vmatpush1.msra.mxu1 %v10550_v26  ;;  %915 = vmatprep.subr.mxu0 %v10551_v7 }
  0x70   :  { %1111 = vmatprep.subr.mxu1 %v10552_v43  ;;  %918 = vmatpush1.msra.mxu0 %v10553_v29  ;;  %v10580_v29 = vld [vmem:[#allocation27_spill] sm:$0xff]  ;;  %v10583_v43 = vld [vmem:[#allocation64_spill] sm:$0xff] }
  0x71   :  { %1113 = vmatpush1.msra.mxu1 %v10554_v61  ;;  %921 = vmatprep.subr.mxu0 %v10555_v36  ;;  %v10565_v61 = vld [vmem:[#allocation48_spill] sm:$0xff]  ;;  %v10566_v36 = vld [vmem:[#allocation18_spill] sm:$0xff] }
  0x72   :  { %1115 = vmatprep.subr.mxu1 %v10556_v56  ;;  %924 = vmatpush1.msra.mxu0 %v10557_v27  ;;  %v10567_v56 = vld [vmem:[#allocation50_spill] sm:$0xff] }
  0x73   :  { %1117 = vmatpush1.msra.mxu1 %v10558_v47  ;;  %927 = vmatprep.subr.mxu0 %v10559_v13  ;;  %v22_v13 = vld [vmem:[%s9707_s0 + $0x38] sm:$0xff]  ;;  %v10568_v47 = vld [vmem:[#allocation19_spill] sm:$0xff]  ;;  %v10576_v27 = vld [vmem:[#allocation58_spill] sm:$0xff] }
  0x74   :  { %1119 = vmatprep.subr.mxu1 %v10560_v57  ;;  %930 = vmatpush1.msra.mxu0 %v10561_v53  ;;  %v10569_v57 = vld [vmem:[#allocation52_spill] sm:$0xff] }
  0x75   :  { %1121 = vmatpush1.msra.mxu1 %v10562_v20  ;;  %933 = vmatprep.subr.mxu0 %v10563_v32  ;;  %v10570_v53 = vld [vmem:[#allocation20_spill] sm:$0xff]  ;;  %v10571_v20 = vld [vmem:[#allocation54_spill] sm:$0xff]  ;;  %v10575_v32 = vld [vmem:[#allocation23_spill] sm:$0xff] }
  0x76   :  { %1123 = vmatprep.subr.mxu1 %v10564_v63  ;;  %936 = vmatpush1.msra.mxu0 %v10565_v61  ;;  %v21_v61 = vld [vmem:[%s9707_s0 + $0x30] sm:$0xff]  ;;  %v10572_v63 = vld [vmem:[#allocation21_spill] sm:$0xff] }
  0x77   :  { %1125 = vmatpush1.msra.mxu1 %v10566_v36  ;;  %939 = vmatprep.subr.mxu0 %v10567_v56  ;;  %v10573_v36 = vld [vmem:[#allocation56_spill] sm:$0xff]  ;;  %v5865_v56 = vand.u32 4294901760, %v22_v13 }
  0x78   :  { %1127 = vmatprep.subr.mxu1 %v10568_v47  ;;  %942 = vmatpush1.msra.mxu0 %v10569_v57  ;;  %v10577_v47 = vld [vmem:[#allocation25_spill] sm:$0xff]  ;;  %v10578_v57 = vld [vmem:[#allocation60_spill] sm:$0xff] }
  0x79   :  { %1129 = vmatpush1.msra.mxu1 %v10570_v53  ;;  %945 = vmatprep.subr.mxu0 %v10571_v20  ;;  %10574 = vst [vmem:[#allocation101_spill] sm:$0xff] %v5865_v56  ;;  %v5871_v53 = vand.u32 4294901760, %v21_v61  ;;  %v28_v20 = vld [vmem:[%s9707_s0 + $0x68] sm:$0xff] }
  0x7a   :  { %1131 = vmatprep.subr.mxu1 %v10572_v63  ;;  %948 = vmatpush1.msra.mxu0 %v10573_v36  ;;  %v10581_v63 = vld [vmem:[#allocation62_spill] sm:$0xff]  ;;  %v10582_v36 = vld [vmem:[#allocation29_spill] sm:$0xff]  ;;  %v5888_v7 = vand.u32 4294901760, %v28_v20 }
  0x7b   :  { %1133 = vmatpush1.msra.mxu1 %v10575_v32  ;;  %951 = vmatprep.subr.mxu0 %v10576_v27  ;;  %10579 = vst [vmem:[#allocation102_spill] sm:$0xff] %v5871_v53  ;;  %v5881_v27 = vsub.f32 %v22_v13, %v5865_v56  ;;  %v10585_v32 = vld [vmem:[#allocation66_spill] sm:$0xff] }
  0x7c   :  { %1135 = vmatprep.subr.mxu1 %v10577_v47  ;;  %954 = vmatpush2.msra.mxu0 %v10578_v57  ;;  %v27_v57 = vld [vmem:[%s9707_s0 + $0x60] sm:$0xff]  ;;  %v10584_v47 = vld [vmem:[#allocation31_spill] sm:$0xff]  ;;  %10586 = vst [vmem:[#allocation103_spill] sm:$0xff] %v5888_v7  ;;  %v10590_v13 = vld [vmem:[#allocation70_spill] sm:$0xff] }
  0x7d   :  { %1137 = vmatpush1.msra.mxu1 %v10580_v29  ;;  %957 = vmatprep.subr.mxu0 %v10581_v63  ;;  %v10587_v29 = vld [vmem:[#allocation33_spill] sm:$0xff]  ;;  %v10588_v63 = vld [vmem:[#allocation68_spill] sm:$0xff]  ;;  %v5897_v26 = vand.u32 4294901760, %v27_v57 }
  0x7e   :  { %1139 = vmatprep.subr.mxu1 %v10582_v36  ;;  %960 = vmatpush2.msra.mxu0 %v10583_v43  ;;  %v5893_v36 = vsub.f32 %v21_v61, %v5871_v53  ;;  %v10589_v43 = vld [vmem:[#allocation35_spill] sm:$0xff]  ;;  %v10595_v61 = vld [vmem:[#allocation74_spill] sm:$0xff] }
  0x7f   :  { %1141 = vmatpush1.msra.mxu1 %v10584_v47  ;;  %963 = vmatprep.subr.mxu0 %v10585_v32  ;;  %10591 = vst [vmem:[#allocation104_spill] sm:$0xff] %v5897_v26  ;;  %v10593_v47 = vld [vmem:[#allocation72_spill] sm:$0xff]  ;;  %v33_v32 = vld [vmem:[%s9707_s0 + $0x90] sm:$0xff] }
  0x80   :  { %1143 = vmatprep.subr.mxu1 %v10587_v29  ;;  %966 = vmatpush2.msra.mxu0 %v10588_v63  ;;  %v34_v29 = vld [vmem:[%s9707_s0 + $0x98] sm:$0xff]  ;;  %v10594_v63 = vld [vmem:[#allocation39_spill] sm:$0xff] }
  0x81   :  { %1145 = vmatpush1.msra.mxu1 %v10589_v43  ;;  %969 = vmatprep.subr.mxu0 %v10590_v13  ;;  %v5908_v43 = vsub.f32 %v28_v20, %v5888_v7  ;;  %v10596_v13 = vld [vmem:[#allocation41_spill] sm:$0xff] }
  0x82   :  { %1147 = vmatprep.subr.mxu1 %v10592_v44  ;;  %972 = vmatpush2.msra.mxu0 %v10593_v47  ;;  %v10598_v47 = vld [vmem:[#allocation43_spill] sm:$0xff]  ;;  %v10600_v20 = vld [vmem:[#allocation45_spill] sm:$0xff] }
  0x83   :  { %1149 = vmatpush1.msra.mxu1 %v10594_v63  ;;  %975 = vmatprep.subr.mxu0 %v10595_v61  ;;  %v5919_v63 = vsub.f32 %v27_v57, %v5897_v26  ;;  %v5921_v61 = vand.u32 4294901760, %v34_v29  ;;  %v10605_v57 = vld [vmem:[#allocation49_spill] sm:$0xff] }
  0x84   :  { %1151 = vmatprep.subr.mxu1 %v10596_v13  ;;  %978 = vmatpush2.msra.mxu0 %v10597_v24  ;;  %v10601_v13 = vld [vmem:[#allocation80_spill] sm:$0xff]  ;;  %v10602_v24 = vand.u32 4294901760, %v5881_v27 }
  0x85   :  { %1153 = vmatpush2.msra.mxu1 %v10598_v47  ;;  %981 = vmatprep.subr.mxu0 %v10599_v60  ;;  %v5931_v60 = vand.u32 4294901760, %v33_v32  ;;  %v10610_v47 = vld [vmem:[#allocation53_spill] sm:$0xff] }
  0x86   :  { %1155 = vmatprep.subr.mxu1 %v10600_v20  ;;  %984 = vmatpush2.msra.mxu0 %v10601_v13  ;;  %v390_v44 = vsub.f32 %v5881_v27, %v10602_v24  ;;  %v10607_v20 = vand.u32 4294901760, %v5893_v36  ;;  %v10615_v24 = vld [vmem:[#allocation57_spill] sm:$0xff] }
  0x87   :  { %1157 = vmatpush2.msra.mxu1 %v10603_v22  ;;  %987 = vmatprep.subr.mxu0 %v10604_v46  ;;  %v5942_v46 = vsub.f32 %v34_v29, %v5921_v61  ;;  %v10611_v22 = vld [vmem:[#allocation88_spill] sm:$0xff]  ;;  %v10616_v29 = vld [vmem:[#allocation91_spill] sm:$0xff] }
  0x88   :  { %1159 = vmatprep.subr.mxu1 %v10605_v57  ;;  %990 = vmatpush2.msra.mxu0 %v10606_v17  ;;  %v396_v13 = vsub.f32 %v5893_v36, %v10607_v20  ;;  %v391_v57 = vand.u32 4294901760, %v390_v44  ;;  %v10613_v17 = vld [vmem:[#allocation90_spill] sm:$0xff]  ;;  %v10614_v20 = vand.u32 4294901760, %v5908_v43  ;;  %v10619_v44 = vand.u32 4294901760, %v5919_v63 }
  0x89   :  { %1161 = vmatpush2.msra.mxu1 %v10608_v34  ;;  %993 = vmatprep.subr.mxu0 %v10609_v16  ;;  %v5952_v16 = vsub.f32 %v33_v32, %v5931_v60  ;;  %v10621_v32 = vld [vmem:[#allocation95_spill] sm:$0xff] }
  0x8a   :  { %1163 = vmatprep.subr.mxu1 %v10610_v47  ;;  %996 = vmatpush2.msra.mxu0 %v10611_v22  ;;  %v406_v34 = vsub.f32 %v5908_v43, %v10614_v20  ;;  %v397_v15 = vand.u32 4294901760, %v396_v13  ;;  %v10617_v47 = vld [vmem:[#allocation59_spill] sm:$0xff]  ;;  %v10618_v22 = vld [vmem:[#allocation93_spill] sm:$0xff] }
  0x8b   :  { %1165 = vmatpush2.msra.mxu1 %v10612_v28  ;;  %999 = vmatprep.subr.mxu0 %v10613_v17  ;;  %v412_v17 = vsub.f32 %v5919_v63, %v10619_v44  ;;  %v9921_v28 = vand.u32 4294901760, %v5942_v46  ;;  %v10622_v20 = vld [vmem:[#allocation63_spill] sm:$0xff]  ;;  %v9923_v13 = vand.u32 4294901760, %v5952_v16 }
  0x8c   :  { %1167 = vmatprep.subr.mxu1 %v10615_v24  ;;  %1002 = vmatpush2.msra.mxu0 %v10616_v29  ;;  %v407_v24 = vand.u32 4294901760, %v406_v34  ;;  %v10627_v34 = vld [vmem:[#allocation71_spill] sm:$0xff] }
  0x8d   :  { %1169 = vmatpush2.msra.mxu1 %v10617_v47  ;;  %1005 = vmatprep.subr.mxu0 %v10618_v22  ;;  %v10623_v47 = vld [vmem:[#allocation97_spill] sm:$0xff]  ;;  %v413_v44 = vand.u32 4294901760, %v412_v17 }
  0x8e   :  { %1171 = vmatprep.subr.mxu1 %v10620_v55  ;;  %392 = vmatprep.mubr.f32.mxu0 %v391_v57  ;;  %v10624_v22 = vld [vmem:[#allocation65_spill] sm:$0xff]  ;;  %v422_v55 = vsub.f32 %v5942_v46, %v9921_v28  ;;  %v10625_v57 = vld [vmem:[#allocation67_spill] sm:$0xff] }
  0x8f   :  { %1008 = vmatpush2.msra.mxu0 %v10621_v32  ;;  %1173 = vmatpush2.msra.mxu1 %v10622_v20  ;;  %v10626_v20 = vld [vmem:[#allocation69_spill] sm:$0xff] }
  0x90   :  { %398 = vmatmul.mubr.f32.gmra.mxu0 %v397_v15  ;;  %1011 = vmatprep.subr.mxu0 %v10623_v47  ;;  %v428_v15 = vsub.f32 %v5952_v16, %v9923_v13  ;;  %v423_v17 = vand.u32 4294901760, %v422_v55  ;;  %v10628_v28 = vld [vmem:[#allocation73_spill] sm:$0xff] }
  0x91   :  { %1175 = vmatprep.subr.mxu1 %v10624_v22  ;;  %1014 = vmatpush2.msra.mxu0 %v5668_v1  ;;  %v10630_v13 = vld [vmem:[#allocation77_spill] sm:$0xff] }
  0x92   :  { %1177 = vmatpush2.msra.mxu1 %v10625_v57  ;;  %1017 = vmatprep.subr.mxu0 %v5692_v12  ;;  %v10629_v12 = vld [vmem:[#allocation75_spill] sm:$0xff]  ;;  %v10632_v55 = vld [vmem:[#allocation81_spill] sm:$0xff] }
  0x93   :  { %1179 = vmatprep.subr.mxu1 %v10626_v20  ;;  %408 = vmatprep.mubr.f32.mxu0 %v407_v24  ;;  %v429_v24 = vand.u32 4294901760, %v428_v15  ;;  %v10634_v15 = vld [vmem:[#allocation85_spill] sm:$0xff] }
  0x94   :  { %1020 = vmatpush2.msra.mxu0 %v5706_v30  ;;  %1181 = vmatpush2.msra.mxu1 %v10627_v34 }
  0x95   :  { %414 = vmatmul.mubr.f32.gmra.mxu0 %v413_v44  ;;  %1023 = vmatprep.subr.mxu0 %v5718_v52  ;;  %v10631_v44 = vld [vmem:[#allocation79_spill] sm:$0xff] }
  0x96   :  { %1183 = vmatprep.subr.mxu1 %v10628_v28  ;;  %1026 = vmatpush2.msra.mxu0 %v5731_v37 }
  0x97   :  { %1185 = vmatpush2.msra.mxu1 %v10629_v12  ;;  %829 = vmatprep.mubr.f32.mxu1 %v5865_v56  ;;  %v10633_v56 = vld [vmem:[#allocation83_spill] sm:$0xff] }
  0x98   :  { %1029 = vmatprep.subr.mxu0 %v5742_v14  ;;  %1187 = vmatprep.subr.mxu1 %v10630_v13 }
  0x99   :  { %424 = vmatprep.mubr.f32.mxu0 %v423_v17  ;;  %831 = vmatmul.mubr.f32.gmra.mxu1 %v5871_v53  ;;  %v10635_v17 = vld [vmem:[#allocation87_spill] sm:$0xff]  ;;  %v10639_v53 = vand.u32 4294901760, %v4801_v25  ;;  %v10644_v25 = vand.u32 4294901760, %v4849_v40  ;;  %v10649_v40 = vand.u32 4294901760, %v4913_v0  ;;  %v10653_v0 = vand.u32 4294901760, %v4953_v48  ;;  %v10659_v48 = vld [vmem:[#allocation5_spill] sm:$0xff] }
  0x9a   :  { %1032 = vmatpush2.msra.mxu0 %v5749_v33  ;;  %1189 = vmatpush2.msra.mxu1 %v10631_v44 }
  0x9b   :  { %430 = vmatmul.mubr.f32.gmra.mxu0 %v429_v24  ;;  %1035 = vmatprep.subr.mxu0 %v5765_v41  ;;  %v10636_v24 = vand.u32 4294901760, %v4773_v18  ;;  %v10641_v18 = vand.u32 4294901760, %v4824_v31  ;;  %v10646_v31 = vand.u32 4294901760, %v5726_v51 }
  0x9c   :  { %1191 = vmatprep.subr.mxu1 %v10632_v55  ;;  %1038 = vmatpush2.msra.mxu0 %v5775_v54 }
  0x9d   :  { %1193 = vmatpush2.msra.mxu1 %v10633_v56  ;;  %837 = vmatprep.mubr.f32.mxu1 %v5888_v7  ;;  %v10637_v7 = vand.u32 4294901760, %v4795_v23  ;;  %v10642_v23 = vld [vmem:[#allocation96_spill] sm:$0xff] }
  0x9e   :  { %1041 = vmatprep.subr.mxu0 %v5784_v50  ;;  %1195 = vmatprep.subr.mxu1 %v10634_v15 }
  0x9f   :  { %839 = vmatmul.mubr.f32.gmra.mxu1 %v5897_v26  ;;  %1044 = vmatpush2.msra.mxu0 %v5791_v19  ;;  %v10638_v26 = vld [vmem:[#allocation92_spill] sm:$0xff] }
  0xa0   :  { %1047 = vmatprep.mubr.f32.mxu0 %v5726_v51  ;;  %1197 = vmatpush2.msra.mxu1 %v10635_v17  ;;  %v10651_v51 = vand.u32 4294901760, %v4941_v42 }
  0xa1   :  { %1050 = vmatmul.mubr.f32.vlgmr.msra.gmra.mxu0 %v5738_v38  ;;  %1199 = vmatprep.subr.mxu1 %v5586_v2  ;;  %v10640_v2 = vld [vmem:[#allocation94_spill] sm:$0xff] }
  0xa2   :  { %1266 = vmatprep.subr.mxu0 %v10636_v24  ;;  %1201 = vmatpush2.msra.mxu1 %v5600_v62  ;;  %v10648_v24 = vand.u32 4294901760, %v5738_v38  ;;  %v10661_v38 = vld [vmem:[#allocation24_spill] sm:$0xff] }
  0xa3   :  { %1270 = vmatpush1.msra.mxu0 %v10637_v7  ;;  %845 = vmatprep.mubr.f32.mxu1 %v5921_v61  ;;  %v10643_v7 = vand.u32 4294901760, %v4833_v35  ;;  %v10647_v35 = vand.u32 4294901760, %v4898_v59  ;;  %v10652_v59 = vand.u32 4294901760, %v5881_v27 }
  0xa4   :  { %1203 = vmatprep.subr.mxu1 %v10638_v26  ;;  %1274 = vmatprep.subr.mxu0 %v10639_v53  ;;  %v10645_v53 = vand.u32 4294901760, %v4863_v45  ;;  %v10650_v45 = vand.u32 4294901760, %v4927_v8  ;;  %v10657_v8 = vld [vmem:[#allocation22_spill] sm:$0xff] }
  0xa5   :  { %847 = vmatmul.mubr.f32.gmra.mxu1 %v5931_v60  ;;  %1057 = vmatprep.mubr.f32.mxu0 %v5881_v27  ;;  %v10658_v42 = vand.u32 4294901760, %v10657_v8 }
  0xa6   :  { %1205 = vmatpush2.msra.mxu1 %v10640_v2  ;;  %1278 = vmatpush1.msra.mxu0 %v10641_v18  ;;  %v10668_v18 = vld [vmem:[#allocation28_spill] sm:$0xff] }
  0xa7   :  { %1060 = vmatmul.mubr.f32.gmra.mxu0 %v5893_v36  ;;  %1207 = vmatprep.subr.mxu1 %v10642_v23 }
  0xa8   :  { %1282 = vmatprep.subr.mxu0 %v10643_v7  ;;  %1209 = vmatpush2.msra.mxu1 %v5664_v58  ;;  %v10669_v7 = vand.u32 4294901760, %v10668_v18 }
  0xa9   :  { %1286 = vmatpush1.msra.mxu0 %v10644_v25  ;;  %1211 = vmatprep.subr.mxu1 %v5680_v39  ;;  %v10670_v25 = vld [vmem:[#allocation8_spill] sm:$0xff] }
  0xaa   :  { %1290 = vmatprep.subr.mxu0 %v10645_v53  ;;  %1067 = vmatprep.mubr.f32.mxu0 %v5908_v43 }
  0xab   :  { %1213 = vmatpush2.msra.mxu1 %v5702_v49  ;;  %1217 = vmatprep.mubr.f32.mxu1 %v10646_v31  ;;  %v10673_v31 = vld [vmem:[#allocation9_spill] sm:$0xff] }
  0xac   :  { %1294 = vmatpush1.msra.mxu0 %v10647_v35  ;;  %1221 = vmatmul.mubr.f32.vlgmr.msra.gmra.mxu1 %v10648_v24  ;;  %v10674_v35 = vand.u32 4294901760, %v5942_v46 }
  0xad   :  { %1070 = vmatmul.mubr.f32.gmra.mxu0 %v5919_v63  ;;  %1298 = vmatprep.subr.mxu0 %v10649_v40  ;;  %v10677_v40 = vld [vmem:[#allocation10_spill] sm:$0xff] }
  0xae   :  { %1553 = vmatprep.subr.mxu1 %v4735_v3  ;;  %1302 = vmatpush1.msra.mxu0 %v10650_v45  ;;  %v10654_v3 = vand.u32 4294901760, %v5893_v36  ;;  %v10662_v36 = vand.u32 4294901760, %v10661_v38  ;;  %v10678_v45 = vand.u32 4294901760, %v5952_v16  ;;  %v10691_v38 = vld [vmem:[#allocation42_spill] sm:$0xff] }
  0xaf   :  { %1555 = vmatpush1.msra.mxu1 %v4737_v4  ;;  %1306 = vmatprep.subr.mxu0 %v10651_v51  ;;  %v10655_v4 = vand.u32 4294901760, %v4970_v21  ;;  %v10663_v21 = vld [vmem:[#allocation6_spill] sm:$0xff] }
  0xb0   :  { %1557 = vmatprep.subr.mxu1 %v4739_v5  ;;  %1077 = vmatprep.mubr.f32.mxu0 %v5942_v46  ;;  %v10656_v5 = vand.u32 4294901760, %v4982_v6  ;;  %v10665_v6 = vld [vmem:[#allocation26_spill] sm:$0xff] }
  0xb1   :  { %1229 = vmatprep.mubr.f32.mxu1 %v10652_v59  ;;  %1310 = vmatpush1.msra.mxu0 %v10653_v0  ;;  %v10666_v27 = vand.u32 4294901760, %v10665_v6  ;;  %v10679_v51 = vld [vmem:[#allocation34_spill] sm:$0xff]  ;;  %v10681_v0 = vld [vmem:[#allocation11_spill] sm:$0xff] }
  0xb2   :  { %1559 = vmatpush1.msra.mxu1 %v4750_v9  ;;  %1080 = vmatmul.mubr.f32.gmra.mxu0 %v5952_v16  ;;  %v10660_v9 = vand.u32 4294901760, %v5908_v43  ;;  %v10671_v43 = vld [vmem:[#allocation30_spill] sm:$0xff]  ;;  %v10680_v59 = vand.u32 4294901760, %v10679_v51 }
  0xb3   :  { %1233 = vmatmul.mubr.f32.gmra.mxu1 %v10654_v3  ;;  %1314 = vmatprep.subr.mxu0 %v10655_v4  ;;  %v10672_v53 = vand.u32 4294901760, %v10671_v43  ;;  %v10682_v3 = vld [vmem:[#allocation36_spill] sm:$0xff]  ;;  %v10685_v46 = vld [vmem:[#allocation38_spill] sm:$0xff] }
  0xb4   :  { %1561 = vmatprep.subr.mxu1 %v4752_v10  ;;  %1318 = vmatpush1.msra.mxu0 %v10656_v5  ;;  %v10664_v10 = vand.u32 4294901760, %v5919_v63  ;;  %v10675_v63 = vld [vmem:[#allocation32_spill] sm:$0xff]  ;;  %v10683_v4 = vand.u32 4294901760, %v10682_v3  ;;  %v10686_v8 = vand.u32 4294901760, %v10685_v46  ;;  %v10690_v16 = vld [vmem:[#allocation14_spill] sm:$0xff] }
  0xb5   :  { %1563 = vmatpush1.msra.mxu1 %v4754_v11  ;;  %1322 = vmatprep.subr.mxu0 %v10658_v42  ;;  %v10667_v11 = vld [vmem:[#allocation7_spill] sm:$0xff]  ;;  %v10676_v24 = vand.u32 4294901760, %v10675_v63  ;;  %v10684_v5 = vld [vmem:[#allocation12_spill] sm:$0xff]  ;;  %v10687_v42 = vld [vmem:[#allocation13_spill] sm:$0xff] }
  0xb6   :  { %1565 = vmatprep.subr.mxu1 %v10659_v48  ;;  %1241 = vmatprep.mubr.f32.mxu1 %v10660_v9  ;;  %v10688_v48 = vld [vmem:[#allocation40_spill] sm:$0xff]  ;;  %v10705_v63 = vld [vmem:[#allocation19_spill] sm:$0xff]  ;;  %v10709_v51 = vld [vmem:[#allocation54_spill] sm:$0xff] }
  0xb7   :  { %1326 = vmatpush1.msra.mxu0 %v10662_v36  ;;  %1567 = vmatpush1.msra.mxu1 %v10663_v21  ;;  %v10689_v9 = vand.u32 4294901760, %v10688_v48  ;;  %v10692_v36 = vand.u32 4294901760, %v10691_v38  ;;  %v10693_v21 = vld [vmem:[#allocation15_spill] sm:$0xff]  ;;  %v10712_v3 = vld [vmem:[#allocation56_spill] sm:$0xff]  ;;  %v10715_v46 = vld [vmem:[#allocation58_spill] sm:$0xff] }
  0xb8   :  { %1245 = vmatmul.mubr.f32.gmra.mxu1 %v10664_v10  ;;  %1330 = vmatprep.subr.mxu0 %v10666_v27  ;;  %v10694_v10 = vld [vmem:[#allocation44_spill] sm:$0xff]  ;;  %v10721_v38 = vld [vmem:[#allocation62_spill] sm:$0xff] }
  0xb9   :  { %1569 = vmatprep.subr.mxu1 %v10667_v11  ;;  %1334 = vmatpush1.msra.mxu0 %v10669_v7  ;;  %v10695_v6 = vand.u32 4294901760, %v10694_v10  ;;  %v10696_v27 = vld [vmem:[#allocation16_spill] sm:$0xff]  ;;  %v10697_v11 = vld [vmem:[#allocation46_spill] sm:$0xff]  ;;  %v10699_v7 = vld [vmem:[#allocation17_spill] sm:$0xff] }
  0xba   :  { %1571 = vmatpush1.msra.mxu1 %v10670_v25  ;;  %1338 = vmatprep.subr.mxu0 %v10672_v53  ;;  %v10698_v18 = vand.u32 4294901760, %v10697_v11  ;;  %v10700_v25 = vld [vmem:[#allocation48_spill] sm:$0xff]  ;;  %v10702_v53 = vld [vmem:[#allocation18_spill] sm:$0xff] }
  0xbb   :  { %1573 = vmatprep.subr.mxu1 %v10673_v31  ;;  %1253 = vmatprep.mubr.f32.mxu1 %v10674_v35  ;;  %v10701_v43 = vand.u32 4294901760, %v10700_v25  ;;  %v10703_v31 = vld [vmem:[#allocation50_spill] sm:$0xff]  ;;  %v10718_v48 = vld [vmem:[#allocation60_spill] sm:$0xff] }
  0xbc   :  { %1342 = vmatpush1.msra.mxu0 %v10676_v24  ;;  %1575 = vmatpush1.msra.mxu1 %v10677_v40  ;;  %v10704_v35 = vand.u32 4294901760, %v10703_v31  ;;  %v10706_v24 = vld [vmem:[#allocation52_spill] sm:$0xff]  ;;  %v10727_v11 = vld [vmem:[#allocation66_spill] sm:$0xff] }
  0xbd   :  { %1257 = vmatmul.mubr.f32.gmra.mxu1 %v10678_v45  ;;  %1346 = vmatprep.subr.mxu0 %v10680_v59  ;;  %v10707_v40 = vand.u32 4294901760, %v10706_v24  ;;  %v10708_v45 = vld [vmem:[#allocation20_spill] sm:$0xff]  ;;  %v10710_v59 = vand.u32 4294901760, %v10709_v51  ;;  %v10733_v31 = vld [vmem:[#allocation70_spill] sm:$0xff]  ;;  %v10735_v24 = vld [vmem:[#allocation37_spill] sm:$0xff] }
  0xbe   :  { %1577 = vmatprep.subr.mxu1 %v10681_v0  ;;  %1350 = vmatpush1.msra.mxu0 %v10683_v4  ;;  %v10711_v0 = vld [vmem:[#allocation21_spill] sm:$0xff]  ;;  %v10713_v4 = vand.u32 4294901760, %v10712_v3  ;;  %v10724_v10 = vld [vmem:[#allocation64_spill] sm:$0xff]  ;;  %v10738_v51 = vld [vmem:[#allocation39_spill] sm:$0xff] }
  0xbf   :  { %1579 = vmatpush1.msra.mxu1 %v10684_v5  ;;  %1354 = vmatprep.subr.mxu0 %v10686_v8  ;;  %v10714_v5 = vld [vmem:[#allocation23_spill] sm:$0xff]  ;;  %v10716_v8 = vand.u32 4294901760, %v10715_v46  ;;  %v10730_v25 = vld [vmem:[#allocation68_spill] sm:$0xff] }
  0xc0   :  { %1581 = vmatprep.subr.mxu1 %v10687_v42  ;;  %1358 = vmatpush1.msra.mxu0 %v10689_v9  ;;  %v10717_v42 = vld [vmem:[#allocation25_spill] sm:$0xff]  ;;  %v10719_v9 = vand.u32 4294901760, %v10718_v48  ;;  %v133_v3 = vld [vmem:[%s9708_s1 + $0x2f0] sm:$0xff] }
  0xc1   :  { %1583 = vmatpush1.msra.mxu1 %v10690_v16  ;;  %1362 = vmatprep.subr.mxu0 %v10692_v36  ;;  %v10720_v16 = vld [vmem:[#allocation27_spill] sm:$0xff]  ;;  %v10722_v36 = vand.u32 4294901760, %v10721_v38  ;;  %v131_v48 = vld [vmem:[%s9708_s1 + $0x2e0] sm:$0xff] }
  0xc2   :  { %1585 = vmatprep.subr.mxu1 %v10693_v21  ;;  %1366 = vmatpush1.msra.mxu0 %v10695_v6  ;;  %v10723_v21 = vld [vmem:[#allocation29_spill] sm:$0xff]  ;;  %v10725_v6 = vand.u32 4294901760, %v10724_v10  ;;  %v10749_v10 = vld [vmem:[#allocation80_spill] sm:$0xff] }
  0xc3   :  { %1587 = vmatpush1.msra.mxu1 %v10696_v27  ;;  %1370 = vmatprep.subr.mxu0 %v10698_v18  ;;  %v10726_v27 = vld [vmem:[#allocation31_spill] sm:$0xff]  ;;  %v10728_v18 = vand.u32 4294901760, %v10727_v11 }
  0xc4   :  { %1589 = vmatprep.subr.mxu1 %v10699_v7  ;;  %1374 = vmatpush1.msra.mxu0 %v10701_v43  ;;  %v10729_v7 = vld [vmem:[#allocation33_spill] sm:$0xff]  ;;  %v10731_v43 = vand.u32 4294901760, %v10730_v25  ;;  %v129_v11 = vld [vmem:[%s9708_s1 + $0x2d0] sm:$0xff] }
  0xc5   :  { %1591 = vmatpush1.msra.mxu1 %v10702_v53  ;;  %1378 = vmatprep.subr.mxu0 %v10704_v35  ;;  %v10732_v53 = vld [vmem:[#allocation35_spill] sm:$0xff]  ;;  %v10734_v35 = vand.u32 4294901760, %v10733_v31  ;;  %v10757_v31 = vld [vmem:[#allocation49_spill] sm:$0xff] }
  0xc6   :  { %1593 = vmatprep.subr.mxu1 %v10705_v63  ;;  %1382 = vmatpush1.msra.mxu0 %v10707_v40  ;;  %v134_v63 = vld [vmem:[%s9708_s1 + $0x2f8] sm:$0xff] }
  0xc7   :  { %1595 = vmatpush1.msra.mxu1 %v10708_v45  ;;  %1386 = vmatprep.subr.mxu0 %v10710_v59  ;;  %v10736_v40 = vld [vmem:[#allocation72_spill] sm:$0xff]  ;;  %v10739_v59 = vld [vmem:[#allocation74_spill] sm:$0xff] }
  0xc8   :  { %1597 = vmatprep.subr.mxu1 %v10711_v0  ;;  %1390 = vmatpush1.msra.mxu0 %v10713_v4  ;;  %v10737_v45 = vand.u32 4294901760, %v10736_v40  ;;  %v10740_v0 = vand.u32 4294901760, %v10739_v59  ;;  %v10741_v4 = vld [vmem:[#allocation41_spill] sm:$0xff]  ;;  %v10762_v59 = vld [vmem:[#allocation51_spill] sm:$0xff] }
  0xc9   :  { %1599 = vmatpush1.msra.mxu1 %v10714_v5  ;;  %1394 = vmatprep.subr.mxu0 %v10716_v8  ;;  %v10742_v5 = vld [vmem:[#allocation76_spill] sm:$0xff]  ;;  %v6157_v8 = vand.u32 4294901760, %v134_v63 }
  0xca   :  { %1601 = vmatprep.subr.mxu1 %v10717_v42  ;;  %1398 = vmatpush2.msra.mxu0 %v10719_v9  ;;  %v10743_v46 = vand.u32 4294901760, %v10742_v5  ;;  %v132_v42 = vld [vmem:[%s9708_s1 + $0x2e8] sm:$0xff]  ;;  %v10745_v9 = vld [vmem:[#allocation43_spill] sm:$0xff]  ;;  %v6200_v5 = vand.u32 4294901760, %v129_v11 }
  0xcb   :  { %1603 = vmatpush1.msra.mxu1 %v10720_v16  ;;  %1402 = vmatprep.subr.mxu0 %v10722_v36  ;;  %10744 = vst [vmem:[#allocation91_spill] sm:$0xff] %v6157_v8  ;;  %v10746_v16 = vld [vmem:[#allocation78_spill] sm:$0xff]  ;;  %v130_v36 = vld [vmem:[%s9708_s1 + $0x2d8] sm:$0xff] }
  0xcc   :  { %1605 = vmatprep.subr.mxu1 %v10723_v21  ;;  %1406 = vmatpush2.msra.mxu0 %v10725_v6  ;;  %v10747_v38 = vand.u32 4294901760, %v10746_v16  ;;  %v10748_v21 = vld [vmem:[#allocation45_spill] sm:$0xff]  ;;  %v10750_v6 = vand.u32 4294901760, %v10749_v10  ;;  %v6189_v40 = vand.u32 4294901760, %v130_v36  ;;  %10765 = vst [vmem:[#allocation71_spill] sm:$0xff] %v6200_v5  ;;  %v10767_v16 = vld [vmem:[#allocation88_spill] sm:$0xff] }
  0xcd   :  { %1607 = vmatpush1.msra.mxu1 %v10726_v27  ;;  %1410 = vmatprep.subr.mxu0 %v10728_v18  ;;  %v6174_v27 = vand.u32 4294901760, %v133_v3  ;;  %v10752_v18 = vld [vmem:[#allocation47_spill] sm:$0xff] }
  0xce   :  { %1609 = vmatprep.subr.mxu1 %v10729_v7  ;;  %1414 = vmatpush2.msra.mxu0 %v10731_v43  ;;  %v10753_v7 = vld [vmem:[#allocation82_spill] sm:$0xff]  ;;  %v6182_v43 = vand.u32 4294901760, %v132_v42  ;;  %10760 = vst [vmem:[#allocation67_spill] sm:$0xff] %v6189_v40  ;;  %v10770_v10 = vld [vmem:[#allocation55_spill] sm:$0xff] }
  0xcf   :  { %1611 = vmatpush1.msra.mxu1 %v10732_v53  ;;  %1418 = vmatprep.subr.mxu0 %v10734_v35  ;;  %10751 = vst [vmem:[#allocation95_spill] sm:$0xff] %v6174_v27  ;;  %v10754_v25 = vand.u32 4294901760, %v10753_v7  ;;  %v6184_v53 = vand.u32 4294901760, %v131_v48  ;;  %v10758_v35 = vld [vmem:[#allocation84_spill] sm:$0xff] }
  0xd0   :  { %1613 = vmatprep.subr.mxu1 %v10735_v24  ;;  %1422 = vmatpush2.msra.mxu0 %v10737_v45  ;;  %10755 = vst [vmem:[#allocation97_spill] sm:$0xff] %v6182_v43  ;;  %v10759_v24 = vand.u32 4294901760, %v10758_v35  ;;  %v128_v45 = vld [vmem:[%s9708_s1 + $0x2c8] sm:$0xff]  ;;  %v10776_v35 = vld [vmem:[#allocation57_spill] sm:$0xff] }
  0xd1   :  { %1615 = vmatpush1.msra.mxu1 %v10738_v51  ;;  %1426 = vmatprep.subr.mxu0 %v10740_v0  ;;  %10756 = vst [vmem:[#allocation65_spill] sm:$0xff] %v6184_v53  ;;  %v6195_v51 = vsub.f32 %v134_v63, %v6157_v8  ;;  %v10763_v0 = vld [vmem:[#allocation86_spill] sm:$0xff]  ;;  %v126_v63 = vld [vmem:[%s9708_s1 + $0x2b8] sm:$0xff]  ;;  %v6218_v7 = vsub.f32 %v131_v48, %v6184_v53 }
  0xd2   :  { %1617 = vmatprep.subr.mxu1 %v10741_v4  ;;  %1430 = vmatpush2.msra.mxu0 %v10743_v46  ;;  %v10764_v4 = vand.u32 4294901760, %v10763_v0  ;;  %v127_v46 = vld [vmem:[%s9708_s1 + $0x2c0] sm:$0xff]  ;;  %v6235_v48 = vsub.f32 %v130_v36, %v6189_v40 }
  0xd3   :  { %1619 = vmatpush2.msra.mxu1 %v10745_v9  ;;  %1434 = vmatprep.subr.mxu0 %v10747_v38  ;;  %10761 = vst [vmem:[#allocation69_spill] sm:$0xff] %v6195_v51  ;;  %v10766_v9 = vld [vmem:[#allocation53_spill] sm:$0xff]  ;;  %v10768_v38 = vand.u32 4294901760, %v10767_v16  ;;  %10773 = vst [vmem:[#allocation75_spill] sm:$0xff] %v6218_v7  ;;  %v9933_v0 = vand.u32 4294901760, %v6195_v51 }
  0xd4   :  { %1621 = vmatprep.subr.mxu1 %v10748_v21  ;;  %1438 = vmatpush2.msra.mxu0 %v10750_v6  ;;  %v6209_v21 = vsub.f32 %v133_v3, %v6174_v27  ;;  %v10771_v6 = vld [vmem:[#allocation90_spill] sm:$0xff]  ;;  %v6226_v3 = vsub.f32 %v132_v42, %v6182_v43  ;;  %10779 = vst [vmem:[#allocation83_spill] sm:$0xff] %v6235_v48 }
  0xd5   :  { %1623 = vmatpush2.msra.mxu1 %v10752_v18  ;;  %1442 = vmatprep.subr.mxu0 %v10754_v25  ;;  %v10772_v18 = vand.u32 4294901760, %v10771_v6  ;;  %v6220_v25 = vand.u32 4294901760, %v128_v45  ;;  %v6241_v42 = vsub.f32 %v129_v11, %v6200_v5  ;;  %v123_v11 = vld [vmem:[%s9708_s1 + $0x2a0] sm:$0xff] }
  0xd6   :  { %1625 = vmatprep.subr.mxu1 %v10757_v31  ;;  %1446 = vmatpush2.msra.mxu0 %v10759_v24  ;;  %10769 = vst [vmem:[#allocation73_spill] sm:$0xff] %v6209_v21  ;;  %v125_v31 = vld [vmem:[%s9708_s1 + $0x2b0] sm:$0xff]  ;;  %10775 = vst [vmem:[#allocation79_spill] sm:$0xff] %v6226_v3  ;;  %v10777_v24 = vand.u32 4294901760, %v10616_v29  ;;  %v10786_v29 = vand.u32 4294901760, %v10621_v32  ;;  %v9936_v36 = vand.u32 4294901760, %v6209_v21 }
  0xd7   :  { %1627 = vmatpush2.msra.mxu1 %v10762_v59  ;;  %1450 = vmatprep.subr.mxu0 %v10764_v4  ;;  %10774 = vst [vmem:[#allocation77_spill] sm:$0xff] %v6220_v25  ;;  %v6231_v59 = vand.u32 4294901760, %v127_v46  ;;  %v10780_v4 = vld [vmem:[#allocation59_spill] sm:$0xff]  ;;  %10783 = vst [vmem:[#allocation85_spill] sm:$0xff] %v6241_v42  ;;  %v6248_v6 = vand.u32 4294901760, %v125_v31  ;;  %v9935_v32 = vand.u32 4294901760, %v6226_v3 }
  0xd8   :  { %1629 = vmatprep.subr.mxu1 %v10766_v9  ;;  %1454 = vmatpush2.msra.mxu0 %v10768_v38  ;;  %v10781_v9 = vld [vmem:[#allocation93_spill] sm:$0xff]  ;;  %v6243_v38 = vand.u32 4294901760, %v126_v63 }
  0xd9   :  { %1631 = vmatpush2.msra.mxu1 %v10770_v10  ;;  %1458 = vmatprep.subr.mxu0 %v10772_v18  ;;  %10778 = vst [vmem:[#allocation81_spill] sm:$0xff] %v6231_v59  ;;  %v10782_v16 = vand.u32 4294901760, %v10781_v9  ;;  %v10785_v10 = vld [vmem:[#allocation61_spill] sm:$0xff]  ;;  %10787 = vst [vmem:[#allocation92_spill] sm:$0xff] %v6248_v6  ;;  %v124_v18 = vld [vmem:[%s9708_s1 + $0x2a8] sm:$0xff]  ;;  %v6263_v9 = vsub.f32 %v128_v45, %v6220_v25  ;;  %v9937_v45 = vand.u32 4294901760, %v6235_v48 }
  0xda   :  { %1633 = vmatprep.subr.mxu1 %v10776_v35  ;;  %1462 = vmatpush2.msra.mxu0 %v10777_v24  ;;  %10784 = vst [vmem:[#allocation87_spill] sm:$0xff] %v6243_v38  ;;  %v10788_v35 = vld [vmem:[#allocation63_spill] sm:$0xff]  ;;  %v10789_v24 = vand.u32 4294901760, %v10623_v47  ;;  %v6274_v47 = vsub.f32 %v6195_v51, %v9933_v0  ;;  %v6292_v0 = vsub.f32 %v126_v63, %v6243_v38 }
  0xdb   :  { %1635 = vmatpush2.msra.mxu1 %v10780_v4  ;;  %1466 = vmatprep.subr.mxu0 %v10782_v16  ;;  %v9934_v4 = vand.u32 4294901760, %v6218_v7  ;;  %10790 = vst [vmem:[#allocation94_spill] sm:$0xff] %v6263_v9  ;;  %v10791_v16 = vand.u32 4294901760, %v5668_v1  ;;  %v6283_v1 = vand.u32 4294901760, %v124_v18 }
  0xdc   :  { %1637 = vmatprep.subr.mxu1 %v10785_v10  ;;  %1470 = vmatpush2.msra.mxu0 %v10786_v29  ;;  %v6269_v10 = vsub.f32 %v127_v46, %v6231_v59  ;;  %v122_v29 = vld [vmem:[%s9708_s1 + $0x298] sm:$0xff]  ;;  %v6285_v46 = vand.u32 4294901760, %v123_v11  ;;  %10797 = vst [vmem:[#allocation24_spill] sm:$0xff] %v6292_v0 }
  0xdd   :  { %1639 = vmatpush2.msra.mxu1 %v10788_v35  ;;  %1474 = vmatprep.subr.mxu0 %v10789_v24  ;;  %10795 = vst [vmem:[#allocation22_spill] sm:$0xff] %v6283_v1  ;;  %v121_v24 = vld [vmem:[%s9708_s1 + $0x290] sm:$0xff]  ;;  %v6318_v63 = vand.u32 4294901760, %v122_v29 }
  0xde   :  { %1641 = vmatprep.subr.mxu1 %v10624_v22  ;;  %1478 = vmatpush2.msra.mxu0 %v10791_v16  ;;  %10792 = vst [vmem:[#allocation96_spill] sm:$0xff] %v6269_v10  ;;  %v10793_v22 = vld [vmem:[#allocation98_spill] sm:$0xff]  ;;  %10796 = vst [vmem:[#allocation5_spill] sm:$0xff] %v6285_v46  ;;  %v10800_v16 = vand.u32 4294901760, %v5718_v52  ;;  %v119_v52 = vld [vmem:[%s9708_s1 + $0x280] sm:$0xff] }
  0xdf   :  { %1643 = vmatpush2.msra.mxu1 %v10625_v57  ;;  %v10794_v35 = vand.u32 4294901760, %v10793_v22  ;;  %v10798_v57 = vand.u32 4294901760, %v5706_v30  ;;  %v6298_v22 = vsub.f32 %v125_v31, %v6248_v6  ;;  %v6316_v30 = vsub.f32 %v6218_v7, %v9934_v4  ;;  %10801 = vst [vmem:[#allocation26_spill] sm:$0xff] %v6318_v63  ;;  %v120_v31 = vld [vmem:[%s9708_s1 + $0x288] sm:$0xff] }
  0xe0   :  { %1645 = vmatprep.subr.mxu1 %v10626_v20  ;;  %v6311_v20 = vsub.f32 %v6226_v3, %v9935_v32  ;;  %v6334_v4 = vsub.f32 %v6235_v48, %v9937_v45  ;;  %v6336_v32 = vand.u32 4294901760, %v121_v24  ;;  %v118_v45 = vld [vmem:[%s9708_s1 + $0x278] sm:$0xff] }
  0xe1   :  { %1482 = vmatprep.subr.mxu0 %v10794_v35  ;;  %10799 = vst [vmem:[#allocation6_spill] sm:$0xff] %v6298_v22  ;;  %v6303_v35 = vsub.f32 %v6209_v21, %v9936_v36  ;;  %1647 = vmatpush2.msra.mxu1 %v10627_v34  ;;  %v10804_v34 = vand.u32 4294901760, %v5742_v14  ;;  %v6355_v36 = vsub.f32 %v124_v18, %v6283_v1  ;;  %v117_v14 = vld [vmem:[%s9708_s1 + $0x270] sm:$0xff]  ;;  %v6394_v18 = vand.u32 4294901760, %v118_v45  ;;  %v10844_v21 = vld [vmem:[#allocation102_spill] sm:$0xff] }
  0xe2   :  { %1486 = vmatpush2.msra.mxu0 %v10798_v57  ;;  %1649 = vmatprep.subr.mxu1 %v10628_v28  ;;  %10803 = vst [vmem:[#allocation7_spill] sm:$0xff] %v6336_v32  ;;  %v6343_v28 = vsub.f32 %v123_v11, %v6285_v46  ;;  %v6361_v11 = vand.u32 4294901760, %v120_v31  ;;  %v10811_v57 = vand.u32 4294901760, %v5765_v41  ;;  %v10814_v41 = vand.u32 4294901760, %v5775_v54  ;;  %v115_v54 = vld [vmem:[%s9708_s1 + $0x260] sm:$0xff] }
  0xe3   :  { %1490 = vmatprep.subr.mxu0 %v10800_v16  ;;  %v10802_v16 = vand.u32 4294901760, %v5731_v37  ;;  %1651 = vmatpush2.msra.mxu1 %v10629_v12  ;;  %v10806_v37 = vand.u32 4294901760, %v6241_v42  ;;  %10807 = vst [vmem:[#allocation8_spill] sm:$0xff] %v6355_v36  ;;  %v10808_v12 = vand.u32 4294901760, %v5749_v33  ;;  %v10812_v33 = vand.u32 4294901760, %v6263_v9  ;;  %10817 = vst [vmem:[#allocation34_spill] sm:$0xff] %v6394_v18 }
  0xe4   :  { %10805 = vst [vmem:[#allocation28_spill] sm:$0xff] %v6343_v28  ;;  %1653 = vmatprep.subr.mxu1 %v10630_v13  ;;  %10809 = vst [vmem:[#allocation30_spill] sm:$0xff] %v6361_v11  ;;  %v10833_v48 = vand.u32 4294901760, %v6343_v28 }
  0xe5   :  { %1494 = vmatpush2.msra.mxu0 %v10802_v16  ;;  %v6348_v16 = vsub.f32 %v6241_v42, %v10806_v37  ;;  %1655 = vmatpush2.msra.mxu1 %v10631_v44  ;;  %v6380_v37 = vsub.f32 %v122_v29, %v6318_v63  ;;  %v116_v29 = vld [vmem:[%s9708_s1 + $0x268] sm:$0xff]  ;;  %v6433_v44 = vsub.f32 %v120_v31, %v6361_v11 }
  0xe6   :  { %1498 = vmatprep.subr.mxu0 %v10804_v34  ;;  %v6363_v34 = vand.u32 4294901760, %v119_v52  ;;  %1657 = vmatprep.subr.mxu1 %v10632_v55  ;;  %v10818_v55 = vand.u32 4294901760, %v5784_v50  ;;  %v10820_v50 = vand.u32 4294901760, %v5791_v19  ;;  %v6453_v19 = vsub.f32 %v118_v45, %v6394_v18  ;;  %v111_v45 = vld [vmem:[%s9708_s1 + $0x240] sm:$0xff] }
  0xe7   :  { %1502 = vmatpush2.msra.mxu0 %v10808_v12  ;;  %v6374_v12 = vsub.f32 %v6263_v9, %v10812_v33  ;;  %10813 = vst [vmem:[#allocation32_spill] sm:$0xff] %v6380_v37  ;;  %v10816_v33 = vand.u32 4294901760, %v6269_v10  ;;  %1659 = vmatpush2.msra.mxu1 %v10633_v56  ;;  %v114_v9 = vld [vmem:[%s9708_s1 + $0x258] sm:$0xff]  ;;  %10824 = vst [vmem:[#allocation12_spill] sm:$0xff] %v6433_v44  ;;  %v6466_v7 = vsub.f32 %v6343_v28, %v10833_v48  ;;  %v109_v48 = vld [vmem:[%s9708_s1 + $0x230] sm:$0xff] }
  0xe8   :  { %10810 = vst [vmem:[#allocation9_spill] sm:$0xff] %v6363_v34  ;;  %1506 = vmatprep.subr.mxu0 %v10811_v57  ;;  %v6387_v57 = vsub.f32 %v121_v24, %v6336_v32  ;;  %1661 = vmatprep.subr.mxu1 %v10634_v15  ;;  %v6420_v56 = vsub.f32 %v119_v52, %v6363_v34  ;;  %v10825_v15 = vld [vmem:[#allocation99_spill] sm:$0xff]  ;;  %v6438_v52 = vand.u32 4294901760, %v116_v29  ;;  %v6446_v31 = vand.u32 4294901760, %v114_v9  ;;  %v110_v28 = vld [vmem:[%s9708_s1 + $0x238] sm:$0xff] }
  0xe9   :  { %1510 = vmatpush2.msra.mxu0 %v10814_v41  ;;  %v6392_v13 = vsub.f32 %v6269_v10, %v10816_v33  ;;  %v10819_v41 = vand.u32 4294901760, %v6292_v0  ;;  %v113_v10 = vld [vmem:[%s9708_s1 + $0x250] sm:$0xff]  ;;  %1520 = vmatprep.mubr.f32.mxu0 %v10825_v15  ;;  %10831 = vst [vmem:[#allocation14_spill] sm:$0xff] %v6453_v19 }
  0xea   :  { %10815 = vst [vmem:[#allocation10_spill] sm:$0xff] %v6387_v57  ;;  %1514 = vmatprep.subr.mxu0 %v10818_v55  ;;  %10821 = vst [vmem:[#allocation11_spill] sm:$0xff] %v6420_v56  ;;  %v6422_v55 = vand.u32 4294901760, %v117_v14  ;;  %1663 = vmatpush2.msra.mxu1 %v10635_v17  ;;  %v112_v17 = vld [vmem:[%s9708_s1 + $0x248] sm:$0xff]  ;;  %v6468_v3 = vand.u32 4294901760, %v113_v10 }
  0xeb   :  { %v6409_v33 = vsub.f32 %v6292_v0, %v10819_v41  ;;  %1518 = vmatpush2.msra.mxu0 %v10820_v50  ;;  %v10823_v41 = vand.u32 4294901760, %v6298_v22  ;;  %10826 = vst [vmem:[#allocation38_spill] sm:$0xff] %v6438_v52  ;;  %v6440_v50 = vand.u32 4294901760, %v115_v54  ;;  %v10829_v0 = vld [vmem:[#allocation89_spill] sm:$0xff]  ;;  %10830 = vst [vmem:[#allocation40_spill] sm:$0xff] %v6446_v31  ;;  %1681 = vmatprep.mubr.f32.mxu1 %v10825_v15 }
  0xec   :  { %10822 = vst [vmem:[#allocation36_spill] sm:$0xff] %v6422_v55  ;;  %1665 = vmatprep.subr.mxu1 %v10829_v0  ;;  %1714 = vmatprep.subr.mxu0 %v6157_v8  ;;  %v10832_v0 = vand.u32 4294901760, %v6355_v36  ;;  %10834 = vst [vmem:[#allocation42_spill] sm:$0xff] %v6468_v3  ;;  %v6513_v8 = vsub.f32 %v114_v9, %v6446_v31  ;;  %v10847_v9 = vand.u32 4294901760, %v6433_v44 }
  0xed   :  { %v6427_v24 = vsub.f32 %v6298_v22, %v10823_v41  ;;  %10827 = vst [vmem:[#allocation13_spill] sm:$0xff] %v6440_v50  ;;  %v10828_v22 = vld [vmem:[#allocation100_spill] sm:$0xff]  ;;  %1667 = vmatpush2.msra.mxu1 %v5600_v62  ;;  %v6476_v62 = vsub.f32 %v117_v14, %v6422_v55  ;;  %v6500_v41 = vsub.f32 %v116_v29, %v6438_v52  ;;  %v6536_v29 = vand.u32 4294901760, %v109_v48 }
  0xee   :  { %1522 = vmatmul.mubr.f32.vlgmr.msra.gmra.mxu0 %v10828_v22  ;;  %v6461_v42 = vsub.f32 %v6355_v36, %v10832_v0  ;;  %1669 = vmatprep.subr.mxu1 %v10638_v26  ;;  %v10836_v36 = vld [vmem:[#allocation101_spill] sm:$0xff]  ;;  %v10838_v26 = vand.u32 4294901760, %v6380_v37  ;;  %v6494_v0 = vand.u32 4294901760, %v112_v17  ;;  %10843 = vst [vmem:[#allocation48_spill] sm:$0xff] %v6513_v8 }
  0xef   :  { %1716 = vmatpush1.msra.mxu0 %v6174_v27  ;;  %10835 = vst [vmem:[#allocation15_spill] sm:$0xff] %v6476_v62  ;;  %1528 = vmatprep.mubr.f32.mxu0 %v10836_v36  ;;  %v6487_v27 = vsub.f32 %v115_v54, %v6440_v50  ;;  %10840 = vst [vmem:[#allocation46_spill] sm:$0xff] %v6500_v41  ;;  %v10841_v54 = vand.u32 4294901760, %v6387_v57 }
  0xf0   :  { %1718 = vmatprep.subr.mxu0 %v6182_v43  ;;  %v6492_v14 = vsub.f32 %v6380_v37, %v10838_v26  ;;  %10839 = vst [vmem:[#allocation16_spill] sm:$0xff] %v6494_v0  ;;  %1671 = vmatpush2.msra.mxu1 %v10640_v2  ;;  %v6509_v26 = vand.u32 4294901760, %v111_v45  ;;  %v6529_v37 = vsub.f32 %v6433_v44, %v10847_v9  ;;  %10849 = vst [vmem:[#allocation19_spill] sm:$0xff] %v6536_v29  ;;  %v10851_v44 = vld [vmem:[#allocation103_spill] sm:$0xff] }
  0xf1   :  { %10837 = vst [vmem:[#allocation44_spill] sm:$0xff] %v6487_v27  ;;  %1720 = vmatpush1.msra.mxu0 %v6184_v53  ;;  %v6507_v43 = vsub.f32 %v6387_v57, %v10841_v54  ;;  %1673 = vmatprep.subr.mxu1 %v10642_v23  ;;  %v6520_v53 = vsub.f32 %v113_v10, %v6468_v3  ;;  %v6522_v54 = vand.u32 4294901760, %v110_v28  ;;  %v10848_v23 = vand.u32 4294901760, %v6420_v56  ;;  %v108_v57 = vld [vmem:[%s9708_s1 + $0x228] sm:$0xff] }
  0xf2   :  { %10842 = vst [vmem:[#allocation17_spill] sm:$0xff] %v6509_v26  ;;  %1530 = vmatmul.mubr.f32.gmra.mxu0 %v10844_v21  ;;  %1722 = vmatprep.subr.mxu0 %v6189_v40  ;;  %v6551_v10 = vsub.f32 %v112_v17, %v6494_v0  ;;  %v6557_v51 = vsub.f32 %v111_v45, %v6509_v26  ;;  %v105_v45 = vld [vmem:[%s9708_s1 + $0x210] sm:$0xff] }
  0xf3   :  { %10845 = vst [vmem:[#allocation18_spill] sm:$0xff] %v6520_v53  ;;  %10846 = vst [vmem:[#allocation50_spill] sm:$0xff] %v6522_v54  ;;  %1675 = vmatpush2.msra.mxu1 %v5664_v58  ;;  %v6534_v2 = vsub.f32 %v6420_v56, %v10848_v23  ;;  %v107_v58 = vld [vmem:[%s9708_s1 + $0x220] sm:$0xff]  ;;  %1724 = vmatpush1.msra.mxu0 %v6200_v5  ;;  %v106_v56 = vld [vmem:[%s9708_s1 + $0x218] sm:$0xff]  ;;  %v6570_v23 = vand.u32 4294901760, %v108_v57  ;;  %v6586_v17 = vsub.f32 %v109_v48, %v6536_v29 }
  0xf4   :  { %1677 = vmatprep.subr.mxu1 %v5680_v39  ;;  %10850 = vst [vmem:[#allocation52_spill] sm:$0xff] %v6551_v10  ;;  %1726 = vmatprep.subr.mxu0 %v6220_v25  ;;  %10852 = vst [vmem:[#allocation20_spill] sm:$0xff] %v6557_v51  ;;  %v10853_v39 = vand.u32 4294901760, %v6453_v19  ;;  %v6572_v40 = vand.u32 4294901760, %v107_v58  ;;  %v10858_v25 = vand.u32 4294901760, %v6476_v62  ;;  %v6605_v48 = vand.u32 4294901760, %v106_v56 }
  0xf5   :  { %1536 = vmatprep.mubr.f32.mxu0 %v10851_v44  ;;  %1679 = vmatpush2.msra.mxu1 %v5702_v49  ;;  %10854 = vst [vmem:[#allocation54_spill] sm:$0xff] %v6570_v23  ;;  %10857 = vst [vmem:[#allocation23_spill] sm:$0xff] %v6586_v17  ;;  %v10861_v49 = vand.u32 4294901760, %v6487_v27  ;;  %v10866_v29 = vand.u32 4294901760, %v6303_v35  ;;  %v10870_v35 = vand.u32 4294901760, %v6311_v20  ;;  %v10873_v20 = vand.u32 4294901760, %v6551_v10 }
  0xf6   :  { %v6562_v9 = vsub.f32 %v6453_v19, %v10853_v39  ;;  %10855 = vst [vmem:[#allocation21_spill] sm:$0xff] %v6572_v40  ;;  %v6579_v19 = vsub.f32 %v110_v28, %v6522_v54  ;;  %1728 = vmatpush1.msra.mxu0 %v6231_v59  ;;  %1683 = vmatmul.mubr.f32.vlgmr.msra.gmra.mxu1 %v10828_v22  ;;  %v10859_v39 = vld [vmem:[#allocation104_spill] sm:$0xff]  ;;  %v10860_v28 = vand.u32 4294901760, %v6500_v41  ;;  %10862 = vst [vmem:[#allocation58_spill] sm:$0xff] %v6605_v48 }
  0xf7   :  { %v6591_v5 = vsub.f32 %v6476_v62, %v10858_v25  ;;  %1538 = vmatmul.mubr.f32.gmra.mxu0 %v10859_v39  ;;  %1730 = vmatprep.subr.mxu0 %v6243_v38  ;;  %v6603_v15 = vsub.f32 %v6487_v27, %v10861_v49  ;;  %v104_v25 = vld [vmem:[%s9708_s1 + $0x208] sm:$0xff]  ;;  %v103_v38 = vld [vmem:[%s9708_s1 + $0x200] sm:$0xff]  ;;  %v10864_v27 = vand.u32 4294901760, %v6513_v8  ;;  %v6623_v59 = vand.u32 4294901760, %v105_v45 }
  0xf8   :  { %10856 = vst [vmem:[#allocation56_spill] sm:$0xff] %v6579_v19  ;;  %v6598_v22 = vsub.f32 %v6500_v41, %v10860_v28  ;;  %v10863_v28 = vand.u32 4294901760, %v6274_v47  ;;  %1732 = vmatpush1.msra.mxu0 %v6248_v6  ;;  %v6630_v47 = vsub.f32 %v107_v58, %v6572_v40  ;;  %v6642_v62 = vsub.f32 %v108_v57, %v6570_v23  ;;  %v164_v57 = vld [vmem:[%s9708_s1 + $0x3e8] sm:$0xff] }
  0xf9   :  { %v6621_v41 = vsub.f32 %v6513_v8, %v10864_v27  ;;  %10865 = vst [vmem:[#allocation25_spill] sm:$0xff] %v6623_v59  ;;  %1734 = vmatprep.subr.mxu0 %v6283_v1  ;;  %v165_v8 = vld [vmem:[%s9708_s1 + $0x3f0] sm:$0xff]  ;;  %1544 = vmatprep.mubr.f32.mxu0 %v5921_v61  ;;  %v6648_v58 = vand.u32 4294901760, %v104_v25  ;;  %v6666_v1 = vsub.f32 %v106_v56, %v6605_v48  ;;  %v163_v56 = vld [vmem:[%s9708_s1 + $0x3e0] sm:$0xff]  ;;  %v10880_v6 = vand.u32 4294901760, %v6334_v4 }
  0xfa   :  { %1911 = vmatprep.subr.mxu1 %v10863_v28  ;;  %10867 = vst [vmem:[#allocation60_spill] sm:$0xff] %v6630_v47  ;;  %v10868_v28 = vand.u32 4294901760, %v6520_v53  ;;  %10869 = vst [vmem:[#allocation27_spill] sm:$0xff] %v6642_v62  ;;  %1689 = vmatprep.mubr.f32.mxu1 %v10836_v36  ;;  %v10875_v36 = vand.u32 4294901760, %v6316_v30  ;;  %v161_v30 = vld [vmem:[%s9708_s1 + $0x3d0] sm:$0xff]  ;;  %v6724_v4 = vand.u32 4294901760, %v163_v56 }
  0xfb   :  { %1917 = vmatpush1.msra.mxu1 %v10866_v29  ;;  %10871 = vst [vmem:[#allocation62_spill] sm:$0xff] %v6648_v58  ;;  %1736 = vmatpush1.msra.mxu0 %v6285_v46  ;;  %v166_v29 = vld [vmem:[%s9708_s1 + $0x3f8] sm:$0xff]  ;;  %10874 = vst [vmem:[#allocation64_spill] sm:$0xff] %v6666_v1  ;;  %v6718_v46 = vsub.f32 %v104_v25, %v6648_v58  ;;  %v10888_v25 = vand.u32 4294901760, %v6374_v12  ;;  %v10892_v12 = vand.u32 4294901760, %v6642_v62 }
  0xfc   :  { %v6635_v49 = vsub.f32 %v6520_v53, %v10868_v28  ;;  %1923 = vmatprep.subr.mxu1 %v10870_v35  ;;  %v6650_v28 = vand.u32 4294901760, %v103_v38  ;;  %v6660_v35 = vsub.f32 %v6551_v10, %v10873_v20  ;;  %1546 = vmatmul.mubr.f32.gmra.mxu0 %v5931_v60  ;;  %v6673_v53 = vsub.f32 %v105_v45, %v6623_v59 }
  0xfd   :  { %1929 = vmatpush1.msra.mxu1 %v10875_v36  ;;  %v10877_v20 = vand.u32 4294901760, %v6557_v51  ;;  %v6680_v10 = vand.u32 4294901760, %v165_v8  ;;  %1738 = vmatprep.subr.mxu0 %v6318_v63  ;;  %v10879_v36 = vand.u32 4294901760, %v6579_v19  ;;  %v6707_v45 = vand.u32 4294901760, %v166_v29  ;;  %10884 = vst [vmem:[#allocation35_spill] sm:$0xff] %v6718_v46  ;;  %10886 = vst [vmem:[#allocation70_spill] sm:$0xff] %v6724_v4 }
  0xfe   :  { %10872 = vst [vmem:[#allocation29_spill] sm:$0xff] %v6650_v28  ;;  %10876 = vst [vmem:[#allocation31_spill] sm:$0xff] %v6673_v53  ;;  %1691 = vmatmul.mubr.f32.gmra.mxu1 %v10844_v21  ;;  %1935 = vmatprep.subr.mxu1 %v10880_v6  ;;  %v6705_v21 = vsub.f32 %v103_v38, %v6650_v28  ;;  %v10885_v6 = vand.u32 4294901760, %v6348_v16  ;;  %v6739_v38 = vand.u32 4294901760, %v164_v57 }
  0xff   :  { %v6678_v27 = vsub.f32 %v6557_v51, %v10877_v20  ;;  %10878 = vst [vmem:[#allocation66_spill] sm:$0xff] %v6680_v10  ;;  %v6694_v20 = vsub.f32 %v6579_v19, %v10879_v36  ;;  %1740 = vmatpush1.msra.mxu0 %v6336_v32  ;;  %10882 = vst [vmem:[#allocation68_spill] sm:$0xff] %v6707_v45  ;;  %v10883_v36 = vand.u32 4294901760, %v6586_v17  ;;  %v162_v51 = vld [vmem:[%s9708_s1 + $0x3d8] sm:$0xff]  ;;  %1697 = vmatprep.mubr.f32.mxu1 %v10851_v44  ;;  %v160_v32 = vld [vmem:[%s9708_s1 + $0x3c8] sm:$0xff] }
 0x100   :  { %10881 = vst [vmem:[#allocation33_spill] sm:$0xff] %v6705_v21  ;;  %1941 = vmatpush1.msra.mxu1 %v10885_v6  ;;  %1742 = vmatprep.subr.mxu0 %v6361_v11  ;;  %v6737_v6 = vsub.f32 %v165_v8, %v6680_v10  ;;  %10890 = vst [vmem:[#allocation39_spill] sm:$0xff] %v6739_v38  ;;  %v10891_v11 = vand.u32 4294901760, %v6392_v13  ;;  %v6749_v44 = vsub.f32 %v6642_v62, %v10892_v12 }
 0x101   :  { %v6712_v19 = vsub.f32 %v6586_v17, %v10883_v36  ;;  %v6727_v36 = vand.u32 4294901760, %v161_v30  ;;  %v159_v17 = vld [vmem:[%s9708_s1 + $0x3c0] sm:$0xff]  ;;  %1947 = vmatprep.subr.mxu1 %v10888_v25  ;;  %1744 = vmatpush1.msra.mxu0 %v6363_v34  ;;  %v10893_v25 = vand.u32 4294901760, %v6630_v47  ;;  %v6756_v16 = vand.u32 4294901760, %v162_v51 }
 0x102   :  { %10889 = vst [vmem:[#allocation72_spill] sm:$0xff] %v6737_v6  ;;  %1953 = vmatpush1.msra.mxu1 %v10891_v11  ;;  %1746 = vmatprep.subr.mxu0 %v6394_v18  ;;  %v6765_v12 = vand.u32 4294901760, %v159_v17  ;;  %v6768_v63 = vsub.f32 %v166_v29, %v6707_v45  ;;  %v10899_v11 = vand.u32 4294901760, %v6666_v1  ;;  %v6803_v62 = vsub.f32 %v164_v57, %v6739_v38 }
 0x103   :  { %10887 = vst [vmem:[#allocation37_spill] sm:$0xff] %v6727_v36  ;;  %v6754_v8 = vsub.f32 %v6630_v47, %v10893_v25  ;;  %10894 = vst [vmem:[#allocation74_spill] sm:$0xff] %v6756_v16  ;;  %1699 = vmatmul.mubr.f32.gmra.mxu1 %v10859_v39  ;;  %v157_v25 = vld [vmem:[%s9708_s1 + $0x3b0] sm:$0xff]  ;;  %v10897_v47 = vand.u32 4294901760, %v6409_v33  ;;  %1748 = vmatpush1.msra.mxu0 %v6422_v55  ;;  %v6777_v39 = vsub.f32 %v163_v56, %v6724_v4  ;;  %v158_v33 = vld [vmem:[%s9708_s1 + $0x3b8] sm:$0xff] }
 0x104   :  { %10895 = vst [vmem:[#allocation41_spill] sm:$0xff] %v6765_v12  ;;  %10896 = vst [vmem:[#allocation76_spill] sm:$0xff] %v6768_v63  ;;  %v6782_v13 = vsub.f32 %v6666_v1, %v10899_v11  ;;  %v6785_v29 = vsub.f32 %v161_v30, %v6727_v36  ;;  %1750 = vmatprep.subr.mxu0 %v6438_v52  ;;  %v10902_v56 = vand.u32 4294901760, %v6673_v53  ;;  %v6799_v11 = vand.u32 4294901760, %v160_v32  ;;  %v155_v1 = vld [vmem:[%s9708_s1 + $0x3a0] sm:$0xff] }
 0x105   :  { %1959 = vmatprep.subr.mxu1 %v10897_v47  ;;  %10898 = vst [vmem:[#allocation43_spill] sm:$0xff] %v6777_v39  ;;  %v10901_v47 = vand.u32 4294901760, %v6427_v24  ;;  %10904 = vst [vmem:[#allocation80_spill] sm:$0xff] %v6803_v62  ;;  %v10905_v24 = vand.u32 4294901760, %v6461_v42  ;;  %1705 = vmatprep.mubr.f32.mxu1 %v5921_v61  ;;  %v6816_v30 = vsub.f32 %v162_v51, %v6756_v16  ;;  %v10908_v57 = vand.u32 4294901760, %v6466_v7  ;;  %v156_v51 = vld [vmem:[%s9708_s1 + $0x3a8] sm:$0xff] }
 0x106   :  { %10900 = vst [vmem:[#allocation78_spill] sm:$0xff] %v6785_v29  ;;  %v6797_v55 = vsub.f32 %v6673_v53, %v10902_v56  ;;  %10903 = vst [vmem:[#allocation45_spill] sm:$0xff] %v6799_v11  ;;  %v6813_v53 = vand.u32 4294901760, %v157_v25  ;;  %1752 = vmatpush1.msra.mxu0 %v6440_v50  ;;  %v10909_v52 = vand.u32 4294901760, %v6718_v46  ;;  %v6827_v61 = vsub.f32 %v159_v17, %v6765_v12 }
 0x107   :  { %1965 = vmatpush1.msra.mxu1 %v10901_v47  ;;  %10907 = vst [vmem:[#allocation82_spill] sm:$0xff] %v6816_v30  ;;  %1754 = vmatprep.subr.mxu0 %v6446_v31  ;;  %v6843_v17 = vand.u32 4294901760, %v155_v1  ;;  %v10914_v56 = vand.u32 4294901760, %v6492_v14  ;;  %v10916_v14 = vand.u32 4294901760, %v6507_v43  ;;  %v10920_v47 = vand.u32 4294901760, %v6529_v37 }
 0x108   :  { %1971 = vmatprep.subr.mxu1 %v10905_v24  ;;  %10906 = vst [vmem:[#allocation47_spill] sm:$0xff] %v6813_v53  ;;  %v6824_v42 = vsub.f32 %v6718_v46, %v10909_v52  ;;  %10910 = vst [vmem:[#allocation49_spill] sm:$0xff] %v6827_v61  ;;  %v6829_v24 = vand.u32 4294901760, %v158_v33  ;;  %1707 = vmatmul.mubr.f32.gmra.mxu1 %v5931_v60  ;;  %v10912_v52 = vand.u32 4294901760, %v6705_v21  ;;  %v10915_v46 = vand.u32 4294901760, %v6737_v6 }
 0x109   :  { %1977 = vmatpush1.msra.mxu1 %v10908_v57  ;;  %10913 = vst [vmem:[#allocation51_spill] sm:$0xff] %v6843_v17  ;;  %1756 = vmatpush1.msra.mxu0 %v6468_v3  ;;  %v6866_v60 = vand.u32 4294901760, %v156_v51  ;;  %v10923_v37 = vand.u32 4294901760, %v6534_v2  ;;  %v6896_v43 = vsub.f32 %v155_v1, %v6843_v17  ;;  %v10927_v2 = vand.u32 4294901760, %v6562_v9  ;;  %v149_v9 = vld [vmem:[%s9708_s1 + $0x370] sm:$0xff] }
 0x10a   :  { %10911 = vst [vmem:[#allocation84_spill] sm:$0xff] %v6829_v24  ;;  %v6841_v57 = vsub.f32 %v6705_v21, %v10912_v52  ;;  %1983 = vmatprep.subr.mxu1 %v10914_v56  ;;  %v6853_v7 = vsub.f32 %v6737_v6, %v10915_v46  ;;  %v153_v52 = vld [vmem:[%s9708_s1 + $0x390] sm:$0xff]  ;;  %1758 = vmatprep.subr.mxu0 %v6494_v0  ;;  %v154_v46 = vld [vmem:[%s9708_s1 + $0x398] sm:$0xff]  ;;  %v151_v21 = vld [vmem:[%s9708_s1 + $0x380] sm:$0xff]  ;;  %v10929_v1 = vand.u32 4294901760, %v6803_v62  ;;  %v10939_v0 = vand.u32 4294901760, %v6603_v15 }
 0x10b   :  { %1989 = vmatpush1.msra.mxu1 %v10916_v14  ;;  %v6864_v56 = vsub.f32 %v157_v25, %v6813_v53  ;;  %10918 = vst [vmem:[#allocation53_spill] sm:$0xff] %v6866_v60  ;;  %v6873_v6 = vsub.f32 %v160_v32, %v6799_v11  ;;  %1760 = vmatpush1.msra.mxu0 %v6509_v26  ;;  %v10921_v25 = vand.u32 4294901760, %v6768_v63  ;;  %10924 = vst [vmem:[#allocation90_spill] sm:$0xff] %v6896_v43 }
 0x10c   :  { %1995 = vmatprep.subr.mxu1 %v10920_v47  ;;  %v6889_v32 = vsub.f32 %v158_v33, %v6829_v24  ;;  %1762 = vmatprep.subr.mxu0 %v6522_v54  ;;  %v6903_v26 = vand.u32 4294901760, %v153_v52  ;;  %v152_v33 = vld [vmem:[%s9708_s1 + $0x388] sm:$0xff]  ;;  %v6915_v31 = vsub.f32 %v6803_v62, %v10929_v1  ;;  %v10933_v47 = vand.u32 4294901760, %v6816_v30 }
 0x10d   :  { %10917 = vst [vmem:[#allocation86_spill] sm:$0xff] %v6864_v56  ;;  %10919 = vst [vmem:[#allocation88_spill] sm:$0xff] %v6873_v6  ;;  %v6882_v14 = vsub.f32 %v6768_v63, %v10921_v25  ;;  %2001 = vmatpush1.msra.mxu1 %v10923_v37  ;;  %v10925_v25 = vand.u32 4294901760, %v6777_v39  ;;  %v10928_v37 = vld [vmem:[#allocation19_spill] sm:$0xff]  ;;  %v10938_v62 = vand.u32 4294901760, %v6827_v61 }
 0x10e   :  { %10922 = vst [vmem:[#allocation55_spill] sm:$0xff] %v6889_v32  ;;  %10926 = vst [vmem:[#allocation57_spill] sm:$0xff] %v6903_v26  ;;  %2007 = vmatprep.subr.mxu1 %v10927_v2  ;;  %1764 = vmatpush1.msra.mxu0 %v10928_v37  ;;  %v10932_v2 = vand.u32 4294901760, %v6591_v5  ;;  %v6933_v1 = vsub.f32 %v6816_v30, %v10933_v47  ;;  %v6936_v37 = vand.u32 4294901760, %v151_v21  ;;  %v10936_v5 = vand.u32 4294901760, %v6598_v22 }
 0x10f   :  { %v6901_v63 = vsub.f32 %v6777_v39, %v10925_v25  ;;  %v6917_v25 = vand.u32 4294901760, %v154_v46  ;;  %v10931_v39 = vand.u32 4294901760, %v6785_v29  ;;  %1766 = vmatprep.subr.mxu0 %v6570_v23  ;;  %v6948_v47 = vand.u32 4294901760, %v152_v33  ;;  %v7011_v23 = vld [vmem:[%s9708_s1 + $0x358] sm:$0xff] }
 0x110   :  { %2013 = vmatpush1.msra.mxu1 %v10932_v2  ;;  %10934 = vst [vmem:[#allocation93_spill] sm:$0xff] %v6936_v37  ;;  %1768 = vmatpush1.msra.mxu0 %v6572_v40  ;;  %v6953_v30 = vsub.f32 %v6827_v61, %v10938_v62  ;;  %v10942_v40 = vand.u32 4294901760, %v6621_v41  ;;  %v10945_v2 = vand.u32 4294901760, %v6635_v49  ;;  %v10946_v41 = vand.u32 4294901760, %v6873_v6  ;;  %v145_v49 = vld [vmem:[%s9708_s1 + $0x350] sm:$0xff] }
 0x111   :  { %10930 = vst [vmem:[#allocation59_spill] sm:$0xff] %v6917_v25  ;;  %v6922_v54 = vsub.f32 %v6785_v29, %v10931_v39  ;;  %v150_v39 = vld [vmem:[%s9708_s1 + $0x378] sm:$0xff]  ;;  %v6942_v29 = vsub.f32 %v156_v51, %v6866_v60  ;;  %2019 = vmatprep.subr.mxu1 %v10936_v5  ;;  %10937 = vst [vmem:[#allocation63_spill] sm:$0xff] %v6948_v47  ;;  %1770 = vmatprep.subr.mxu0 %v6605_v48  ;;  %v6963_v5 = vand.u32 4294901760, %v149_v9 }
 0x112   :  { %2025 = vmatpush1.msra.mxu1 %v10939_v0  ;;  %v6961_v51 = vsub.f32 %v153_v52, %v6903_v26  ;;  %1772 = vmatpush1.msra.mxu0 %v6623_v59  ;;  %v6971_v15 = vand.u32 4294901760, %v150_v39  ;;  %v147_v52 = vld [vmem:[%s9708_s1 + $0x360] sm:$0xff]  ;;  %v6977_v22 = vsub.f32 %v154_v46, %v6917_v25  ;;  %v6986_v0 = vsub.f32 %v6873_v6, %v10946_v41  ;;  %v148_v46 = vld [vmem:[%s9708_s1 + $0x368] sm:$0xff] }
 0x113   :  { %10935 = vst [vmem:[#allocation61_spill] sm:$0xff] %v6942_v29  ;;  %10941 = vst [vmem:[#allocation99_spill] sm:$0xff] %v6963_v5  ;;  %2031 = vmatprep.subr.mxu1 %v10942_v40  ;;  %1774 = vmatprep.subr.mxu0 %v6648_v58  ;;  %v6989_v62 = vsub.f32 %v151_v21, %v6936_v37  ;;  %v10949_v21 = vand.u32 4294901760, %v6889_v32  ;;  %v233_v58 = vlaneseq  ;;  %v10952_v41 = vand.u32 4294901760, %v6864_v56 }
 0x114   :  { %10940 = vst [vmem:[#allocation98_spill] sm:$0xff] %v6961_v51  ;;  %10943 = vst [vmem:[#allocation100_spill] sm:$0xff] %v6971_v15  ;;  %2037 = vmatpush1.msra.mxu1 %v10945_v2  ;;  %v10948_v2 = vand.u32 4294901760, %v6660_v35  ;;  %1776 = vmatpush1.msra.mxu0 %v6650_v28  ;;  %v10950_v35 = vand.u32 4294901760, %v6678_v27  ;;  %v7024_v61 = vand.u32 4294901760, %v147_v52  ;;  %v143_v27 = vld [vmem:[%s9708_s1 + $0x340] sm:$0xff] }
 0x115   :  { %10944 = vst [vmem:[#allocation89_spill] sm:$0xff] %v6977_v22  ;;  %10947 = vst [vmem:[#allocation101_spill] sm:$0xff] %v6989_v62  ;;  %v7005_v40 = vsub.f32 %v6889_v32, %v10949_v21  ;;  %1778 = vmatprep.subr.mxu0 %v6707_v45  ;;  %v7022_v21 = vsub.f32 %v6864_v56, %v10952_v41  ;;  %v7027_v32 = vsub.f32 %v152_v33, %v6948_v47  ;;  %v7056_v45 = vld [vmem:[%s9708_s1 + $0x348] sm:$0xff] }
 0x116   :  { %2043 = vmatprep.subr.mxu1 %v10948_v2  ;;  %v7017_v2 = vsub.f32 %v149_v9, %v6963_v5  ;;  %10953 = vst [vmem:[#allocation103_spill] sm:$0xff] %v7024_v61  ;;  %1780 = vmatpush2.msra.mxu0 %v6680_v10  ;;  %v7035_v9 = vand.u32 4294901760, %v148_v46  ;;  %v7038_v41 = vand.u32 4294901760, %v145_v49  ;;  %v10957_v33 = vand.u32 4294901760, %v6712_v19 }
 0x117   :  { %2049 = vmatpush1.msra.mxu1 %v10950_v35  ;;  %10954 = vst [vmem:[#allocation104_spill] sm:$0xff] %v7027_v32  ;;  %v10955_v35 = vand.u32 4294901760, %v6694_v20  ;;  %1782 = vmatprep.subr.mxu0 %v6739_v38  ;;  %v10958_v20 = vand.u32 4294901760, %v6942_v29  ;;  %v7051_v10 = vand.u32 4294901760, %v7011_v23  ;;  %v7059_v19 = vsub.f32 %v150_v39, %v6971_v15 }
 0x118   :  { %10951 = vst [vmem:[#allocation102_spill] sm:$0xff] %v7017_v2  ;;  %10956 = vst [vmem:[#allocation105_spill] sm:$0xff] %v7035_v9  ;;  %1784 = vmatpush2.msra.mxu0 %v6724_v4  ;;  %v7070_v38 = vand.u32 4294901760, %v143_v27  ;;  %v7075_v39 = vshrl.u32 %v233_v58, 7  ;;  %v7082_v28 = vsub.f32 %v147_v52, %v7024_v61  ;;  %v10966_v58 = vand.u32 4294901760, %v6977_v22 }
 0x119   :  { %2055 = vmatprep.subr.mxu1 %v10955_v35  ;;  %v7048_v35 = vsub.f32 %v6942_v29, %v10958_v20  ;;  %10959 = vst [vmem:[#allocation106_spill] sm:$0xff] %v7059_v19  ;;  %v10961_v20 = vand.u32 4294901760, %v6896_v43  ;;  %v141_v29 = vld [vmem:[%s9708_s1 + $0x330] sm:$0xff]  ;;  %1786 = vmatprep.subr.mxu0 %v6756_v16  ;;  %v10968_v52 = vand.u32 4294901760, %v6961_v51  ;;  %v7103_v4 = vand.u32 4294901760, %v7056_v45 }
 0x11a   :  { %2061 = vmatpush1.msra.mxu1 %v10957_v33  ;;  %v10960_v33 = vand.u32 4294901760, %v6749_v44  ;;  %10962 = vst [vmem:[#allocation107_spill] sm:$0xff] %v7070_v38  ;;  %v10963_v44 = vand.u32 4294901760, %v6754_v8  ;;  %10964 = vst [vmem:[#allocation108_spill] sm:$0xff] %v7082_v28  ;;  %1788 = vmatpush2.msra.mxu0 %v6727_v36  ;;  %v7092_v8 = vsub.f32 %v6977_v22, %v10966_v58  ;;  %v235_v36 = vsub.s32 0, %v7075_v39 }
 0x11b   :  { %v7068_v56 = vsub.f32 %v6896_v43, %v10961_v20  ;;  %v10965_v43 = vand.u32 4294901760, %v6782_v13  ;;  %v7108_v13 = vld [vmem:[%s9708_s1 + $0x338] sm:$0xff]  ;;  %1790 = vmatprep.subr.mxu0 %v6799_v11  ;;  %v7118_v20 = vand.u32 4294901760, %v141_v29  ;;  %v7134_v58 = vsub.f32 %v148_v46, %v7035_v9 }
 0x11c   :  { %2067 = vmatprep.subr.mxu1 %v10960_v33  ;;  %v7100_v33 = vsub.f32 %v6961_v51, %v10968_v52  ;;  %v10971_v51 = vand.u32 4294901760, %v6824_v42  ;;  %1792 = vmatpush2.msra.mxu0 %v6765_v12  ;;  %v10973_v42 = vand.u32 4294901760, %v6841_v57  ;;  %v10975_v16 = vand.u32 4294901760, %v6989_v62  ;;  %v18_v57 = vld [vmem:[%s9707_s0 + $0x18] sm:$0xff] }
 0x11d   :  { %2073 = vmatpush1.msra.mxu1 %v10963_v44  ;;  %v7095_v44 = vsub.f32 %v145_v49, %v7038_v41  ;;  %v10969_v49 = vand.u32 4294901760, %v6797_v55  ;;  %10970 = vst [vmem:[#allocation110_spill] sm:$0xff] %v7118_v20  ;;  %v7126_v55 = vsub.f32 %v143_v27, %v7070_v38  ;;  %10972 = vst [vmem:[#allocation111_spill] sm:$0xff] %v7134_v58  ;;  %1794 = vmatprep.subr.mxu0 %v6829_v24 }
 0x11e   :  { %2079 = vmatprep.subr.mxu1 %v10965_v43  ;;  %v139_v43 = vld [vmem:[%s9708_s1 + $0x320] sm:$0xff]  ;;  %v7148_v52 = vsub.f32 %v6989_v62, %v10975_v16  ;;  %v7151_v46 = vand.u32 4294901760, %v7108_v13  ;;  %1796 = vmatpush2.msra.mxu0 %v6813_v53  ;;  %v239_v11 = vsub.s32 1, %v7075_v39  ;;  %v10980_v22 = vand.u32 4294901760, %v7059_v19 }
 0x11f   :  { %10967 = vst [vmem:[#allocation109_spill] sm:$0xff] %v7095_v44  ;;  %2085 = vmatpush1.msra.mxu1 %v10969_v49  ;;  %v7131_v49 = vld [vmem:[%s9708_s1 + $0x328] sm:$0xff]  ;;  %v7153_v12 = vand.u32 4294901760, %v139_v43  ;;  %1798 = vmatprep.subr.mxu0 %v6866_v60  ;;  %v10982_v16 = vand.u32 4294901760, %v7017_v2  ;;  %v10983_v62 = vand.u32 4294901760, %v6915_v31  ;;  %v137_v60 = vld [vmem:[%s9708_s1 + $0x310] sm:$0xff] }
 0x120   :  { %2091 = vmatprep.subr.mxu1 %v10971_v51  ;;  %v10974_v51 = vand.u32 4294901760, %v7027_v32  ;;  %10976 = vst [vmem:[#allocation112_spill] sm:$0xff] %v7151_v46  ;;  %v7185_v39 = vand.u32 4294901760, %v7131_v49  ;;  %1800 = vmatpush2.msra.mxu0 %v6843_v17  ;;  %v7206_v53 = vand.u32 4294901760, %v18_v57 }
 0x121   :  { %2097 = vmatpush1.msra.mxu1 %v10973_v42  ;;  %10977 = vst [vmem:[#allocation113_spill] sm:$0xff] %v7153_v12  ;;  %v231_v42 = vld [vmem:[%s9709_s2] sm:$0x3]  ;;  %v7182_v24 = vsub.f32 %v7017_v2, %v10982_v16  ;;  %v7201_v16 = vsub.f32 %v7011_v23, %v7051_v10  ;;  %1802 = vmatprep.subr.mxu0 %v6917_v25 }
 0x122   :  { %v7143_v27 = vsub.f32 %v7027_v32, %v10974_v51  ;;  %v10978_v51 = vand.u32 4294901760, %v6882_v14  ;;  %v10979_v32 = vand.u32 4294901760, %v6853_v7  ;;  %v7174_v14 = vsub.f32 %v7059_v19, %v10980_v22  ;;  %v17_v7 = vld [vmem:[%s9707_s0 + $0x10] sm:$0xff]  ;;  %v7197_v22 = vld [vmem:[%s9708_s1 + $0x318] sm:$0xff]  ;;  %10985 = vst [vmem:[#allocation116_spill] sm:$0xff] %v7206_v53  ;;  %1804 = vmatpush2.msra.mxu0 %v6903_v26  ;;  %2291 = vmatprep.mubr.f32.mxu1 %v7206_v53 }
 0x123   :  { %10984 = vst [vmem:[#allocation115_spill] sm:$0xff] %v7201_v16  ;;  %v7208_v31 = vrot.slane %v231_v42, %v235_v36  ;;  %v7216_v23 = vsub.f32 %v139_v43, %v7153_v12  ;;  %v10987_v19 = vand.u32 4294901760, %v6933_v1  ;;  %v10988_v36 = vand.u32 4294901760, %v7082_v28  ;;  %v24_v1 = vld [vmem:[%s9707_s0 + $0x48] sm:$0xff]  ;;  %1806 = vmatprep.subr.mxu0 %v6948_v47 }
 0x124   :  { %2103 = vmatprep.subr.mxu1 %v10978_v51  ;;  %v7177_v51 = vsub.f32 %v141_v29, %v7118_v20  ;;  %v7234_v43 = vsub.f32 %v7056_v45, %v7103_v4  ;;  %v7236_v17 = vand.u32 4294901760, %v17_v7  ;;  %v7249_v45 = vand.u32 4294901760, %v7197_v22  ;;  %1808 = vmatpush2.msra.mxu0 %v6936_v37 }
 0x125   :  { %2109 = vmatpush2.msra.mxu1 %v10979_v32  ;;  %v383_v32 = vpop.f32.mrf.mxu0  ;;  %v7251_v26 = vand.u32 4294901760, %v137_v60  ;;  %v7266_v2 = vsub.f32 %v18_v57, %v7206_v53  ;;  %v10995_v29 = vand.u32 4294901760, %v6953_v30  ;;  %1810 = vmatprep.subr.mxu0 %v6971_v15  ;;  %v7285_v57 = vsub.f32 %v7108_v13, %v7151_v46  ;;  %v11055_v53 = vld [vmem:[#allocation71_spill] sm:$0xff] }
 0x126   :  { %10981 = vst [vmem:[#allocation114_spill] sm:$0xff] %v7177_v51  ;;  %2115 = vmatprep.subr.mxu1 %v10983_v62  ;;  %v10986_v62 = vand.u32 4294901760, %v6901_v63  ;;  %v7225_v63 = vsub.f32 %v7082_v28, %v10988_v36  ;;  %10989 = vst [vmem:[#allocation117_spill] sm:$0xff] %v7234_v43  ;;  %v10991_v36 = vand.u32 4294901760, %v6922_v54  ;;  %v10993_v28 = vand.u32 4294901760, %v6986_v0  ;;  %1812 = vmatpush2.msra.mxu0 %v6963_v5 }
 0x127   :  { %10990 = vst [vmem:[#allocation118_spill] sm:$0xff] %v7236_v17  ;;  %10992 = vst [vmem:[#allocation119_spill] sm:$0xff] %v7251_v26  ;;  %v385_v25 = vpop.f32.mrf.mxu0  ;;  %v10994_v54 = vand.u32 4294901760, %v7134_v58  ;;  %v384_v0 = vadd.f32 %v383_v32, %v7208_v31  ;;  %v7287_v47 = vand.u32 4294901760, %v24_v1  ;;  %v10999_v32 = vand.u32 4294901760, %v7005_v40  ;;  %1814 = vmatprep.subr.mxu0 %v7035_v9 }
 0x128   :  { %2121 = vmatpush2.msra.mxu1 %v10986_v62  ;;  %v7230_v62 = vld [vmem:[%s9708_s1 + $0x308] sm:$0xff]  ;;  %v7302_v13 = vsub.f32 %v137_v60, %v7251_v26  ;;  %1816 = vmatpush2.msra.mxu0 %v7024_v61  ;;  %v11006_v5 = vand.u32 4294901760, %v7068_v56  ;;  %v11008_v56 = vand.u32 4294901760, %v7234_v43  ;;  %v7360_v61 = vsub.f32 %v7197_v22, %v7249_v45 }
 0x129   :  { %2127 = vmatprep.subr.mxu1 %v10987_v19  ;;  %v7241_v19 = vrot.slane %v231_v42, %v239_v11  ;;  %v7259_v11 = vsub.f32 %v7134_v58, %v10994_v54  ;;  %v10996_v54 = vand.u32 4294901760, %v7095_v44  ;;  %v7281_v37 = vand.u32 4294901760, %v7230_v62  ;;  %10998 = vst [vmem:[#allocation121_spill] sm:$0xff] %v7287_v47  ;;  %1818 = vmatprep.subr.mxu0 %v7051_v10 }
 0x12a   :  { %2133 = vmatpush2.msra.mxu1 %v10991_v36  ;;  %v135_v36 = vld [vmem:[%s9708_s1 + $0x300] sm:$0xff]  ;;  %1820 = vmatpush2.msra.mxu0 %v7038_v41 }
 0x12b   :  { %2139 = vmatprep.subr.mxu1 %v10993_v28  ;;  %v23_v28 = vld [vmem:[%s9707_s0 + $0x40] sm:$0xff]  ;;  %v7278_v42 = vsub.f32 %v7095_v44, %v10996_v54  ;;  %10997 = vst [vmem:[#allocation120_spill] sm:$0xff] %v7281_v37  ;;  %v7295_v54 = vsub.f32 %v17_v7, %v7236_v17  ;;  %v386_v15 = vadd.f32 %v385_v25, %v7241_v19  ;;  %v11000_v44 = vand.u32 4294901760, %v7022_v21  ;;  %v30_v7 = vld [vmem:[%s9707_s0 + $0x78] sm:$0xff] }
 0x12c   :  { %2145 = vmatpush2.msra.mxu1 %v10995_v29  ;;  %v7304_v40 = vand.u32 4294901760, %v135_v36  ;;  %v7307_v30 = vand.u32 4294901760, %v23_v28  ;;  %v824_v29 = vpop.f32.mrf.mxu1  ;;  %v11003_v25 = vand.u32 4294901760, %v7048_v35  ;;  %v11004_v21 = vand.u32 4294901760, %v7201_v16  ;;  %1822 = vmatprep.subr.mxu0 %v7103_v4 }
 0x12d   :  { %2151 = vmatprep.subr.mxu1 %v10999_v32  ;;  %v7321_v32 = vsub.f32 %v7131_v49, %v7185_v39  ;;  %v7323_v9 = vadd.f32 %v824_v29, %v384_v0  ;;  %v2210_v35 = vand.u32 4294901760, %v7259_v11  ;;  %v11007_v49 = vand.u32 4294901760, %v7092_v8  ;;  %1824 = vmatpush2.msra.mxu0 %v7070_v38 }
 0x12e   :  { %2157 = vmatpush2.msra.mxu1 %v11000_v44  ;;  %11001 = vst [vmem:[#allocation122_spill] sm:$0xff] %v7304_v40  ;;  %11002 = vst [vmem:[#allocation123_spill] sm:$0xff] %v7307_v30  ;;  %v2221_v60 = vsub.f32 %v7201_v16, %v11004_v21  ;;  %v7332_v21 = vsub.f32 %v24_v1, %v7287_v47  ;;  %v826_v44 = vpop.f32.mrf.mxu1  ;;  %v7341_v11 = vand.u32 4294901760, %v30_v7  ;;  %v11010_v29 = vand.u32 4294901760, %v7100_v33 }
 0x12f   :  { %2163 = vmatprep.subr.mxu1 %v11003_v25  ;;  %11005 = vst [vmem:[#allocation124_spill] sm:$0xff] %v7321_v32  ;;  %v2228_v25 = vand.u32 4294901760, %v7278_v42  ;;  %v29_v42 = vld [vmem:[%s9707_s0 + $0x70] sm:$0xff]  ;;  %v7346_v1 = vadd.f32 %v826_v44, %v386_v15  ;;  %v11011_v8 = vand.u32 4294901760, %v7126_v55  ;;  %v7356_v0 = vsub.f32 %v23_v28, %v7307_v30  ;;  %1826 = vmatprep.subr.mxu0 %v7151_v46 }
 0x130   :  { %2169 = vmatpush2.msra.mxu1 %v11006_v5  ;;  %v2233_v5 = vsub.f32 %v7234_v43, %v11008_v56  ;;  %11009 = vst [vmem:[#allocation125_spill] sm:$0xff] %v7341_v11  ;;  %v11012_v15 = vand.u32 4294901760, %v7143_v27  ;;  %v2222_v33 = vand.u32 4294901760, %v2221_v60  ;;  %v7366_v44 = vsub.f32 %v135_v36, %v7304_v40  ;;  %1828 = vmatpush2.msra.mxu0 %v7118_v20 }
 0x131   :  { %2175 = vmatprep.subr.mxu1 %v11007_v49  ;;  %v2239_v49 = vsub.f32 %v7126_v55, %v11011_v8  ;;  %v11015_v56 = vand.u32 4294901760, %v7148_v52  ;;  %v11016_v27 = vand.u32 4294901760, %v7285_v57  ;;  %v7381_v36 = vsub.f32 %v7230_v62, %v7281_v37  ;;  %1830 = vmatprep.subr.mxu0 %v7185_v39 }
 0x132   :  { %2181 = vmatpush2.msra.mxu1 %v11010_v29  ;;  %11013 = vst [vmem:[#allocation126_spill] sm:$0xff] %v7366_v44  ;;  %v11014_v29 = vand.u32 4294901760, %v7266_v2  ;;  %v11018_v52 = vand.u32 4294901760, %v7174_v14  ;;  %v7396_v62 = vsub.f32 %v30_v7, %v7341_v11  ;;  %v11020_v46 = vand.u32 4294901760, %v7182_v24  ;;  %1832 = vmatpush2.msra.mxu0 %v7153_v12 }
 0x133   :  { %2187 = vmatprep.subr.mxu1 %v11012_v15  ;;  %v2245_v22 = vsub.f32 %v7285_v57, %v11016_v27  ;;  %v7383_v15 = vand.u32 4294901760, %v29_v42  ;;  %v11019_v27 = vand.u32 4294901760, %v7295_v54  ;;  %v2240_v38 = vand.u32 4294901760, %v2239_v49  ;;  %1834 = vmatprep.subr.mxu0 %v7249_v45 }
 0x134   :  { %v1844_v8 = vsub.f32 %v7266_v2, %v11014_v29  ;;  %2193 = vmatpush2.msra.mxu1 %v11015_v56  ;;  %v36_v29 = vld [vmem:[%s9707_s0 + $0xa8] sm:$0xff]  ;;  %v2234_v56 = vand.u32 4294901760, %v2233_v5  ;;  %v11021_v14 = vand.u32 4294901760, %v7177_v51  ;;  %v11025_v5 = vand.u32 4294901760, %v7332_v21  ;;  %1836 = vmatpush2.msra.mxu0 %v7251_v26  ;;  %v11036_v26 = vld [vmem:[#allocation73_spill] sm:$0xff] }
 0x135   :  { %11017 = vst [vmem:[#allocation127_spill] sm:$0xff] %v7383_v15  ;;  %2199 = vmatprep.subr.mxu1 %v11018_v52  ;;  %v1850_v60 = vsub.f32 %v7295_v54, %v11019_v27  ;;  %v35_v27 = vld [vmem:[%s9707_s0 + $0xa0] sm:$0xff]  ;;  %v7414_v28 = vand.u32 4294901760, %v36_v29  ;;  %v2246_v20 = vand.u32 4294901760, %v2245_v22  ;;  %v7424_v12 = vsub.f32 %v29_v42, %v7383_v15  ;;  %1838 = vmatprep.subr.mxu0 %v7281_v37 }
 0x136   :  { %2205 = vmatpush2.msra.mxu1 %v11020_v46  ;;  %v2251_v52 = vsub.f32 %v7177_v51, %v11021_v14  ;;  %v1845_v24 = vand.u32 4294901760, %v1844_v8  ;;  %v11022_v46 = vand.u32 4294901760, %v7321_v32  ;;  %v11024_v14 = vand.u32 4294901760, %v7225_v63  ;;  %1840 = vmatpush2.msra.mxu0 %v7304_v40 }
 0x137   :  { %2211 = vmatprep.subr.mxu1 %v2210_v35  ;;  %11023 = vst [vmem:[#allocation128_spill] sm:$0xff] %v7414_v28  ;;  %v1860_v35 = vsub.f32 %v7332_v21, %v11025_v5  ;;  %v11026_v49 = vand.u32 4294901760, %v7216_v23  ;;  %v7431_v22 = vand.u32 4294901760, %v35_v27  ;;  %v11028_v8 = vand.u32 4294901760, %v7356_v0 }
 0x138   :  { %v2257_v7 = vsub.f32 %v7321_v32, %v11022_v46  ;;  %2217 = vmatpush2.msra.mxu1 %v11024_v14  ;;  %v1851_v46 = vand.u32 4294901760, %v1850_v60  ;;  %v2252_v5 = vand.u32 4294901760, %v2251_v52  ;;  %v11030_v14 = vand.u32 4294901760, %v7302_v13  ;;  %1846 = vmatprep.mubr.f32.mxu0 %v1845_v24 }
 0x139   :  { %2223 = vmatprep.subr.mxu1 %v2222_v33  ;;  %v2263_v63 = vsub.f32 %v7216_v23, %v11026_v49  ;;  %11027 = vst [vmem:[#allocation129_spill] sm:$0xff] %v7431_v22  ;;  %v1866_v42 = vsub.f32 %v7356_v0, %v11028_v8  ;;  %v11029_v33 = vand.u32 4294901760, %v7360_v61  ;;  %v7446_v52 = vsub.f32 %v36_v29, %v7414_v28  ;;  %v11034_v29 = vld [vmem:[#allocation69_spill] sm:$0xff] }
 0x13a   :  { %2229 = vmatpush2.msra.mxu1 %v2228_v25  ;;  %v2258_v49 = vand.u32 4294901760, %v2257_v7  ;;  %v2275_v25 = vsub.f32 %v7302_v13, %v11030_v14  ;;  %v1861_v8 = vand.u32 4294901760, %v1860_v35  ;;  %v11031_v37 = vand.u32 4294901760, %v7381_v36  ;;  %1852 = vmatmul.mubr.f32.vlgmr.msra.gmra.mxu0 %v1851_v46 }
 0x13b   :  { %v2269_v60 = vsub.f32 %v7360_v61, %v11029_v33  ;;  %2235 = vmatprep.subr.mxu1 %v2234_v56  ;;  %v2264_v56 = vand.u32 4294901760, %v2263_v63  ;;  %v11032_v7 = vand.u32 4294901760, %v7396_v62  ;;  %v7456_v14 = vsub.f32 %v35_v27, %v7431_v22  ;;  %2325 = vmatprep.subr.mxu0 %v11034_v29  ;;  %v11037_v63 = vld [vmem:[#allocation79_spill] sm:$0xff] }
 0x13c   :  { %2241 = vmatpush2.msra.mxu1 %v2240_v38  ;;  %v2281_v33 = vsub.f32 %v7381_v36, %v11031_v37  ;;  %v1867_v38 = vand.u32 4294901760, %v1866_v42  ;;  %v11035_v35 = vand.u32 4294901760, %v7366_v44  ;;  %2328 = vmatpush1.msra.mxu0 %v11036_v26  ;;  %v10146_v46 = vand.u32 4294901760, %v7446_v52  ;;  %v11039_v42 = vld [vmem:[#allocation75_spill] sm:$0xff] }
 0x13d   :  { %2247 = vmatprep.subr.mxu1 %v2246_v20  ;;  %v1876_v40 = vsub.f32 %v7396_v62, %v11032_v7  ;;  %11033 = vst [vmem:[#allocation130_spill] sm:$0xff] %v7456_v14  ;;  %v2270_v24 = vand.u32 4294901760, %v2269_v60  ;;  %v2276_v20 = vand.u32 4294901760, %v2275_v25  ;;  %2331 = vmatprep.subr.mxu0 %v11037_v63  ;;  %v11038_v7 = vand.u32 4294901760, %v7424_v12  ;;  %v11040_v25 = vld [vmem:[#allocation83_spill] sm:$0xff] }
 0x13e   :  { %2253 = vmatpush2.msra.mxu1 %v2252_v5  ;;  %v2287_v37 = vsub.f32 %v7366_v44, %v11035_v35  ;;  %1862 = vmatprep.mubr.f32.mxu0 %v1861_v8  ;;  %v2282_v27 = vand.u32 4294901760, %v2281_v33  ;;  %v10147_v35 = vand.u32 4294901760, %v7456_v14  ;;  %v1892_v8 = vsub.f32 %v7446_v52, %v10146_v46  ;;  %v11041_v33 = vld [vmem:[#allocation85_spill] sm:$0xff]  ;;  %v11048_v46 = vld [vmem:[#allocation8_spill] sm:$0xff] }
 0x13f   :  { %2259 = vmatprep.subr.mxu1 %v2258_v49  ;;  %v1882_v5 = vsub.f32 %v7424_v12, %v11038_v7  ;;  %2334 = vmatpush1.msra.mxu0 %v11039_v42  ;;  %v1877_v60 = vand.u32 4294901760, %v1876_v40 }
 0x140   :  { %2265 = vmatpush2.msra.mxu1 %v2264_v56  ;;  %1868 = vmatmul.mubr.f32.gmra.mxu0 %v1867_v38  ;;  %v2288_v49 = vand.u32 4294901760, %v2287_v37  ;;  %v11042_v56 = vld [vmem:[#allocation94_spill] sm:$0xff]  ;;  %v1898_v40 = vsub.f32 %v7456_v14, %v10147_v35  ;;  %v11043_v38 = vld [vmem:[#allocation96_spill] sm:$0xff] }
 0x141   :  { %2271 = vmatprep.subr.mxu1 %v2270_v24  ;;  %2337 = vmatprep.subr.mxu0 %v11040_v25  ;;  %v1883_v7 = vand.u32 4294901760, %v1882_v5  ;;  %v1893_v24 = vand.u32 4294901760, %v1892_v8  ;;  %v11044_v37 = vld [vmem:[#allocation24_spill] sm:$0xff]  ;;  %v11051_v8 = vld [vmem:[#allocation65_spill] sm:$0xff] }
 0x142   :  { %2277 = vmatpush2.msra.mxu1 %v2276_v20  ;;  %2340 = vmatpush1.msra.mxu0 %v11041_v33  ;;  %v11045_v20 = vld [vmem:[#allocation91_spill] sm:$0xff]  ;;  %v1899_v5 = vand.u32 4294901760, %v1898_v40  ;;  %v11050_v35 = vld [vmem:[#allocation28_spill] sm:$0xff]  ;;  %v11054_v40 = vld [vmem:[#allocation10_spill] sm:$0xff] }
 0x143   :  { %2283 = vmatprep.subr.mxu1 %v2282_v27  ;;  %2343 = vmatprep.subr.mxu0 %v11042_v56  ;;  %v11046_v27 = vld [vmem:[#allocation6_spill] sm:$0xff]  ;;  %v11056_v14 = vld [vmem:[#allocation12_spill] sm:$0xff] }
 0x144   :  { %1878 = vmatprep.mubr.f32.mxu0 %v1877_v60  ;;  %2289 = vmatpush2.msra.mxu1 %v2288_v49  ;;  %v11047_v60 = vld [vmem:[#allocation95_spill] sm:$0xff]  ;;  %v11049_v49 = vld [vmem:[#allocation97_spill] sm:$0xff] }
 0x145   :  { %2346 = vmatpush1.msra.mxu0 %v11043_v38  ;;  %2293 = vmatmul.mubr.f32.vlgmr.msra.gmra.mxu1 %v7236_v17  ;;  %v11053_v17 = vld [vmem:[#allocation67_spill] sm:$0xff] }
 0x146   :  { %1884 = vmatmul.mubr.f32.gmra.mxu0 %v1883_v7  ;;  %2349 = vmatprep.subr.mxu0 %v11044_v37  ;;  %v11052_v7 = vld [vmem:[#allocation32_spill] sm:$0xff] }
 0x147   :  { %2557 = vmatprep.subr.mxu1 %v11045_v20  ;;  %2352 = vmatpush1.msra.mxu0 %v11046_v27 }
 0x148   :  { %2559 = vmatpush1.msra.mxu1 %v11047_v60  ;;  %2355 = vmatprep.subr.mxu0 %v11048_v46 }
 0x149   :  { %2561 = vmatprep.subr.mxu1 %v11049_v49  ;;  %1894 = vmatprep.mubr.f32.mxu0 %v1893_v24  ;;  %v11057_v24 = vld [vmem:[#allocation77_spill] sm:$0xff] }
 0x14a   :  { %2299 = vmatprep.mubr.f32.mxu1 %v7287_v47  ;;  %2358 = vmatpush1.msra.mxu0 %v11050_v35  ;;  %v11058_v47 = vld [vmem:[#allocation11_spill] sm:$0xff] }
 0x14b   :  { %2563 = vmatpush1.msra.mxu1 %v11051_v8  ;;  %1900 = vmatmul.mubr.f32.gmra.mxu0 %v1899_v5  ;;  %v11059_v8 = vld [vmem:[#allocation81_spill] sm:$0xff]  ;;  %v11060_v5 = vld [vmem:[#allocation14_spill] sm:$0xff] }
 0x14c   :  { %2301 = vmatmul.mubr.f32.gmra.mxu1 %v7307_v30  ;;  %2361 = vmatprep.subr.mxu0 %v11052_v7  ;;  %v11061_v30 = vld [vmem:[#allocation87_spill] sm:$0xff]  ;;  %v11096_v7 = vld [vmem:[#allocation82_spill] sm:$0xff] }
 0x14d   :  { %2565 = vmatprep.subr.mxu1 %v11053_v17  ;;  %2364 = vmatpush1.msra.mxu0 %v11054_v40  ;;  %v11062_v17 = vld [vmem:[#allocation15_spill] sm:$0xff]  ;;  %v11063_v40 = vld [vmem:[#allocation92_spill] sm:$0xff] }
 0x14e   :  { %2567 = vmatpush1.msra.mxu1 %v11055_v53  ;;  %2367 = vmatprep.subr.mxu0 %v11056_v14  ;;  %v11064_v53 = vld [vmem:[#allocation46_spill] sm:$0xff] }
 0x14f   :  { %2569 = vmatprep.subr.mxu1 %v11057_v24  ;;  %2307 = vmatprep.mubr.f32.mxu1 %v7341_v11  ;;  %v11065_v14 = vld [vmem:[#allocation22_spill] sm:$0xff]  ;;  %v11066_v11 = vld [vmem:[#allocation44_spill] sm:$0xff] }
 0x150   :  { %2370 = vmatpush1.msra.mxu0 %v11058_v47  ;;  %2571 = vmatpush1.msra.mxu1 %v11059_v8  ;;  %v11067_v47 = vld [vmem:[#allocation5_spill] sm:$0xff]  ;;  %v11093_v24 = vld [vmem:[#allocation54_spill] sm:$0xff] }
 0x151   :  { %2309 = vmatmul.mubr.f32.gmra.mxu1 %v7383_v15  ;;  %2373 = vmatprep.subr.mxu0 %v11060_v5  ;;  %v11068_v15 = vld [vmem:[#allocation48_spill] sm:$0xff]  ;;  %v11069_v5 = vld [vmem:[#allocation26_spill] sm:$0xff] }
 0x152   :  { %2573 = vmatprep.subr.mxu1 %v11061_v30  ;;  %2376 = vmatpush1.msra.mxu0 %v11062_v17  ;;  %v11070_v30 = vld [vmem:[#allocation18_spill] sm:$0xff]  ;;  %v11071_v17 = vld [vmem:[#allocation7_spill] sm:$0xff] }
 0x153   :  { %2575 = vmatpush1.msra.mxu1 %v11063_v40  ;;  %2379 = vmatprep.subr.mxu0 %v11064_v53  ;;  %v11072_v40 = vld [vmem:[#allocation52_spill] sm:$0xff]  ;;  %v11073_v53 = vld [vmem:[#allocation30_spill] sm:$0xff] }
 0x154   :  { %2577 = vmatprep.subr.mxu1 %v11065_v14  ;;  %2315 = vmatprep.mubr.f32.mxu1 %v7414_v28  ;;  %v11074_v14 = vld [vmem:[#allocation20_spill] sm:$0xff]  ;;  %v399_v28 = vpop.f32.mrf.mxu0 }
 0x155   :  { %2382 = vmatpush1.msra.mxu0 %v11066_v11  ;;  %2579 = vmatpush1.msra.mxu1 %v11067_v47  ;;  %v11075_v47 = vld [vmem:[#allocation56_spill] sm:$0xff]  ;;  %v11089_v11 = vld [vmem:[#allocation50_spill] sm:$0xff] }
 0x156   :  { %2317 = vmatmul.mubr.f32.gmra.mxu1 %v7431_v22  ;;  %2385 = vmatprep.subr.mxu0 %v11068_v15  ;;  %v11076_v22 = vld [vmem:[#allocation23_spill] sm:$0xff]  ;;  %v11077_v15 = vld [vmem:[#allocation36_spill] sm:$0xff] }
 0x157   :  { %2581 = vmatprep.subr.mxu1 %v11069_v5  ;;  %2388 = vmatpush1.msra.mxu0 %v11070_v30  ;;  %v401_v5 = vpop.f32.mrf.mxu0  ;;  %v11078_v30 = vld [vmem:[#allocation27_spill] sm:$0xff] }
 0x158   :  { %2583 = vmatpush1.msra.mxu1 %v11071_v17  ;;  %2391 = vmatprep.subr.mxu0 %v11072_v40  ;;  %v11079_v17 = vld [vmem:[#allocation38_spill] sm:$0xff]  ;;  %v11080_v40 = vld [vmem:[#allocation60_spill] sm:$0xff] }
 0x159   :  { %2585 = vmatprep.subr.mxu1 %v11073_v53  ;;  %2394 = vmatpush1.msra.mxu0 %v11074_v14  ;;  %v11081_v14 = vld [vmem:[#allocation64_spill] sm:$0xff] }
 0x15a   :  { %2587 = vmatpush1.msra.mxu1 %v6363_v34  ;;  %2397 = vmatprep.subr.mxu0 %v11075_v47  ;;  %v415_v34 = vpop.f32.mrf.mxu0  ;;  %v11082_v53 = vld [vmem:[#allocation40_spill] sm:$0xff]  ;;  %v11083_v47 = vld [vmem:[#allocation31_spill] sm:$0xff] }
 0x15b   :  { %2589 = vmatprep.subr.mxu1 %v6394_v18  ;;  %2400 = vmatpush1.msra.mxu0 %v11076_v22  ;;  %v400_v22 = vadd.f32 %v399_v28, %v7208_v31  ;;  %v11085_v18 = vld [vmem:[#allocation16_spill] sm:$0xff] }
 0x15c   :  { %2591 = vmatpush1.msra.mxu1 %v11077_v15  ;;  %2403 = vmatprep.subr.mxu0 %v11078_v30  ;;  %v11084_v15 = vld [vmem:[#allocation35_spill] sm:$0xff]  ;;  %v417_v30 = vpop.f32.mrf.mxu0 }
 0x15d   :  { %2593 = vmatprep.subr.mxu1 %v11079_v17  ;;  %2406 = vmatpush1.msra.mxu0 %v11080_v40  ;;  %v11086_v17 = vld [vmem:[#allocation33_spill] sm:$0xff] }
 0x15e   :  { %2595 = vmatpush1.msra.mxu1 %v6440_v50  ;;  %2409 = vmatprep.subr.mxu0 %v11081_v14  ;;  %v402_v50 = vadd.f32 %v401_v5, %v7241_v19  ;;  %v11087_v40 = vld [vmem:[#allocation17_spill] sm:$0xff]  ;;  %v11088_v14 = vld [vmem:[#allocation76_spill] sm:$0xff]  ;;  %v431_v8 = vpop.f32.mrf.mxu0  ;;  %v416_v5 = vadd.f32 %v415_v34, %v7208_v31 }
 0x15f   :  { %2597 = vmatprep.subr.mxu1 %v11082_v53  ;;  %2412 = vmatpush1.msra.mxu0 %v11083_v47  ;;  %v832_v53 = vpop.f32.mrf.mxu1  ;;  %v11090_v47 = vld [vmem:[#allocation72_spill] sm:$0xff]  ;;  %v11099_v34 = vld [vmem:[#allocation49_spill] sm:$0xff] }
 0x160   :  { %2599 = vmatpush1.msra.mxu1 %v6468_v3  ;;  %2415 = vmatprep.subr.mxu0 %v11084_v15  ;;  %v833_v28 = vadd.f32 %v832_v53, %v400_v22  ;;  %v11091_v3 = vld [vmem:[#allocation19_spill] sm:$0xff]  ;;  %v11092_v15 = vld [vmem:[#allocation80_spill] sm:$0xff]  ;;  %v11097_v53 = vld [vmem:[#allocation78_spill] sm:$0xff]  ;;  %v418_v22 = vadd.f32 %v417_v30, %v7241_v19  ;;  %v432_v30 = vadd.f32 %v431_v8, %v7208_v31 }
 0x161   :  { %2601 = vmatprep.subr.mxu1 %v11085_v18  ;;  %2418 = vmatpush1.msra.mxu0 %v11086_v17  ;;  %v834_v18 = vpop.f32.mrf.mxu1  ;;  %v11094_v17 = vld [vmem:[#allocation43_spill] sm:$0xff]  ;;  %v11112_v8 = vld [vmem:[#allocation37_spill] sm:$0xff] }
 0x162   :  { %2603 = vmatpush1.msra.mxu1 %v11087_v40  ;;  %2421 = vmatprep.subr.mxu0 %v11088_v14  ;;  %v835_v40 = vadd.f32 %v834_v18, %v402_v50  ;;  %v11095_v14 = vld [vmem:[#allocation21_spill] sm:$0xff] }
 0x163   :  { %2605 = vmatprep.subr.mxu1 %v11089_v11  ;;  %2424 = vmatpush2.msra.mxu0 %v11090_v47  ;;  %v433_v11 = vpop.f32.mrf.mxu0  ;;  %v11100_v50 = vld [vmem:[#allocation29_spill] sm:$0xff] }
 0x164   :  { %2607 = vmatpush1.msra.mxu1 %v11091_v3  ;;  %2427 = vmatprep.subr.mxu0 %v11092_v15  ;;  %v11102_v15 = vld [vmem:[#allocation68_spill] sm:$0xff]  ;;  %v11104_v3 = vld [vmem:[#allocation66_spill] sm:$0xff] }
 0x165   :  { %2609 = vmatprep.subr.mxu1 %v11093_v24  ;;  %2430 = vmatpush2.msra.mxu0 %v11094_v17  ;;  %v840_v24 = vpop.f32.mrf.mxu1  ;;  %v11098_v17 = vld [vmem:[#allocation62_spill] sm:$0xff] }
 0x166   :  { %2611 = vmatpush1.msra.mxu1 %v11095_v14  ;;  %2433 = vmatprep.subr.mxu0 %v11096_v7  ;;  %v841_v18 = vadd.f32 %v840_v24, %v416_v5  ;;  %v11101_v7 = vld [vmem:[#allocation55_spill] sm:$0xff]  ;;  %v1051_v14 = vpop.f32.mrf.mxu0 }
 0x167   :  { %2613 = vmatprep.subr.mxu1 %v6605_v48  ;;  %2436 = vmatpush2.msra.mxu0 %v11097_v53  ;;  %v842_v48 = vpop.f32.mrf.mxu1  ;;  %v11103_v53 = vld [vmem:[#allocation86_spill] sm:$0xff]  ;;  %v11106_v5 = vld [vmem:[#allocation39_spill] sm:$0xff] }
 0x168   :  { %2615 = vmatpush1.msra.mxu1 %v6623_v59  ;;  %2439 = vmatprep.subr.mxu0 %v6873_v6  ;;  %v1052_v6 = vadd.f32 %v1051_v14, %v7323_v9  ;;  %v843_v59 = vadd.f32 %v842_v48, %v418_v22  ;;  %v1053_v24 = vpop.f32.mrf.mxu0  ;;  %v11110_v9 = vld [vmem:[#allocation74_spill] sm:$0xff]  ;;  %v11113_v22 = vld [vmem:[#allocation104_spill] sm:$0xff] }
 0x169   :  { %2617 = vmatprep.subr.mxu1 %v11098_v17  ;;  %2442 = vmatpush2.msra.mxu0 %v11099_v34  ;;  %v11105_v17 = vld [vmem:[#allocation61_spill] sm:$0xff]  ;;  %v11108_v34 = vld [vmem:[#allocation70_spill] sm:$0xff]  ;;  %v848_v31 = vpop.f32.mrf.mxu1 }
 0x16a   :  { %2619 = vmatpush1.msra.mxu1 %v11100_v50  ;;  %2445 = vmatprep.subr.mxu0 %v11101_v7  ;;  %v11107_v50 = vld [vmem:[#allocation90_spill] sm:$0xff]  ;;  %v434_v7 = vadd.f32 %v433_v11, %v7241_v19  ;;  %v849_v14 = vadd.f32 %v848_v31, %v432_v30  ;;  %v11115_v19 = vld [vmem:[#allocation101_spill] sm:$0xff] }
 0x16b   :  { %2621 = vmatprep.subr.mxu1 %v11102_v15  ;;  %2448 = vmatpush2.msra.mxu0 %v11103_v53  ;;  %v1054_v15 = vadd.f32 %v1053_v24, %v7346_v1  ;;  %v11109_v53 = vld [vmem:[#allocation89_spill] sm:$0xff]  ;;  %v11111_v48 = vld [vmem:[#allocation98_spill] sm:$0xff] }
 0x16c   :  { %2623 = vmatpush2.msra.mxu1 %v11104_v3  ;;  %2451 = vmatprep.subr.mxu0 %v11105_v17  ;;  %v11114_v17 = vld [vmem:[#allocation45_spill] sm:$0xff]  ;;  %v11119_v30 = vld [vmem:[#allocation102_spill] sm:$0xff] }
 0x16d   :  { %2625 = vmatprep.subr.mxu1 %v11106_v5  ;;  %2454 = vmatpush2.msra.mxu0 %v11107_v50  ;;  %v1061_v5 = vpop.f32.mrf.mxu0  ;;  %v850_v50 = vpop.f32.mrf.mxu1  ;;  %v11116_v24 = vld [vmem:[#allocation41_spill] sm:$0xff] }
 0x16e   :  { %2627 = vmatpush2.msra.mxu1 %v11108_v34  ;;  %2457 = vmatprep.subr.mxu0 %v11109_v53  ;;  %v1062_v11 = vadd.f32 %v1061_v5, %v833_v28  ;;  %v851_v1 = vadd.f32 %v850_v50, %v434_v7  ;;  %v11117_v53 = vld [vmem:[#allocation106_spill] sm:$0xff]  ;;  %v11118_v34 = vld [vmem:[#allocation84_spill] sm:$0xff]  ;;  %v11123_v7 = vld [vmem:[#allocation51_spill] sm:$0xff] }
 0x16f   :  { %2629 = vmatprep.subr.mxu1 %v11110_v9  ;;  %2460 = vmatpush2.msra.mxu0 %v11111_v48  ;;  %v1063_v9 = vpop.f32.mrf.mxu0  ;;  %v1222_v28 = vpop.f32.mrf.mxu1 }
 0x170   :  { %2631 = vmatpush2.msra.mxu1 %v11112_v8  ;;  %2463 = vmatprep.subr.mxu0 %v11113_v22  ;;  %v1064_v31 = vadd.f32 %v1063_v9, %v835_v40  ;;  %v11120_v8 = vld [vmem:[#allocation47_spill] sm:$0xff]  ;;  %v11121_v22 = vld [vmem:[#allocation53_spill] sm:$0xff]  ;;  %v7585_v5 = vadd.f32 %v1222_v28, %v1052_v6  ;;  %v11129_v28 = vld [vmem:[#allocation100_spill] sm:$0xff] }
 0x171   :  { %2633 = vmatprep.subr.mxu1 %v11114_v17  ;;  %2466 = vmatpush2.msra.mxu0 %v11115_v19  ;;  %v11122_v17 = vld [vmem:[#allocation108_spill] sm:$0xff]  ;;  %v1071_v50 = vpop.f32.mrf.mxu0  ;;  %v1224_v9 = vpop.f32.mrf.mxu1  ;;  %v11128_v6 = vld [vmem:[#allocation93_spill] sm:$0xff] }
 0x172   :  { %2635 = vmatpush2.msra.mxu1 %v11116_v24  ;;  %2469 = vmatprep.subr.mxu0 %v11117_v53  ;;  %v1072_v40 = vadd.f32 %v1071_v50, %v841_v18  ;;  %v11130_v50 = vld [vmem:[#allocation99_spill] sm:$0xff] }
 0x173   :  { %2637 = vmatprep.subr.mxu1 %v11118_v34  ;;  %2472 = vmatpush2.msra.mxu0 %v11119_v30  ;;  %v11124_v34 = vld [vmem:[#allocation59_spill] sm:$0xff]  ;;  %v11125_v30 = vld [vmem:[#allocation109_spill] sm:$0xff] }
 0x174   :  { %2639 = vmatpush2.msra.mxu1 %v11120_v8  ;;  %2475 = vmatprep.subr.mxu0 %v7134_v58  ;;  %v11126_v8 = vld [vmem:[#allocation57_spill] sm:$0xff]  ;;  %v11127_v58 = vld [vmem:[#allocation63_spill] sm:$0xff] }
 0x175   :  { %2641 = vmatprep.subr.mxu1 %v11121_v22  ;;  %2478 = vmatpush2.msra.mxu0 %v11122_v17  ;;  %v1073_v22 = vpop.f32.mrf.mxu0  ;;  %v7591_v17 = vadd.f32 %v1224_v9, %v1054_v15  ;;  %v1234_v9 = vpop.f32.mrf.mxu1 }
 0x176   :  { %2643 = vmatpush2.msra.mxu1 %v11123_v7  ;;  %2481 = vmatprep.subr.mxu0 %v7201_v16  ;;  %v1074_v16 = vadd.f32 %v1073_v22, %v843_v59  ;;  %v7603_v59 = vadd.f32 %v1234_v9, %v1062_v11  ;;  %v11133_v11 = vld [vmem:[#allocation107_spill] sm:$0xff]  ;;  %v11136_v9 = vld [vmem:[#allocation110_spill] sm:$0xff] }
 0x177   :  { %2645 = vmatprep.subr.mxu1 %v11124_v34  ;;  %2484 = vmatpush2.msra.mxu0 %v11125_v30  ;;  %v1081_v18 = vpop.f32.mrf.mxu0 }
 0x178   :  { %2647 = vmatpush2.msra.mxu1 %v11126_v8  ;;  %2487 = vmatprep.subr.mxu0 %v7234_v43  ;;  %v1082_v15 = vadd.f32 %v1081_v18, %v849_v14  ;;  %v11131_v43 = vld [vmem:[#allocation105_spill] sm:$0xff]  ;;  %v11134_v18 = vld [vmem:[#allocation112_spill] sm:$0xff] }
 0x179   :  { %2649 = vmatprep.subr.mxu1 %v11127_v58  ;;  %2490 = vmatpush2.msra.mxu0 %v7126_v55  ;;  %v1083_v22 = vpop.f32.mrf.mxu0 }
 0x17a   :  { %2651 = vmatpush2.msra.mxu1 %v11128_v6  ;;  %2493 = vmatprep.subr.mxu0 %v7285_v57  ;;  %v11132_v6 = vld [vmem:[#allocation103_spill] sm:$0xff] }
 0x17b   :  { %2653 = vmatprep.subr.mxu1 %v11129_v28  ;;  %2496 = vmatpush2.msra.mxu0 %v7177_v51  ;;  %v1084_v28 = vadd.f32 %v1083_v22, %v851_v1  ;;  %v1236_v51 = vpop.f32.mrf.mxu1 }
 0x17c   :  { %2655 = vmatpush2.msra.mxu1 %v11130_v50  ;;  %2499 = vmatprep.subr.mxu0 %v7321_v32  ;;  %v7609_v32 = vadd.f32 %v1236_v51, %v1064_v31  ;;  %v11135_v31 = vand.u32 4294901760, %v11034_v29  ;;  %v11140_v29 = vand.u32 4294901760, %v11039_v42  ;;  %v11145_v42 = vand.u32 4294901760, %v11042_v56 }
 0x17d   :  { %2657 = vmatprep.subr.mxu1 %v11131_v43  ;;  %2502 = vmatpush2.msra.mxu0 %v7216_v23  ;;  %v1246_v14 = vpop.f32.mrf.mxu1  ;;  %v11151_v56 = vand.u32 4294901760, %v11046_v27  ;;  %v11157_v27 = vand.u32 4294901760, %v7356_v0 }
 0x17e   :  { %2659 = vmatpush2.msra.mxu1 %v11132_v6  ;;  %2505 = vmatprep.subr.mxu0 %v7360_v61  ;;  %v7617_v1 = vadd.f32 %v1246_v14, %v1072_v40  ;;  %v11138_v40 = vand.u32 4294901760, %v11037_v63 }
 0x17f   :  { %2661 = vmatprep.subr.mxu1 %v7051_v10  ;;  %2508 = vmatpush2.msra.mxu0 %v7302_v13  ;;  %v1248_v51 = vpop.f32.mrf.mxu1 }
 0x180   :  { %2663 = vmatpush2.msra.mxu1 %v7038_v41  ;;  %2511 = vmatprep.subr.mxu0 %v7381_v36  ;;  %v7624_v22 = vadd.f32 %v1248_v51, %v1074_v16  ;;  %v11141_v16 = vand.u32 4294901760, %v11040_v25  ;;  %v11143_v51 = vand.u32 4294901760, %v11041_v33  ;;  %v11148_v25 = vand.u32 4294901760, %v11043_v38 }
 0x181   :  { %2665 = vmatprep.subr.mxu1 %v7103_v4  ;;  %2514 = vmatpush2.msra.mxu0 %v7366_v44  ;;  %v11137_v44 = vand.u32 4294901760, %v11036_v26  ;;  %v1258_v14 = vpop.f32.mrf.mxu1  ;;  %v11150_v33 = vand.u32 4294901760, %v11044_v37  ;;  %v11154_v38 = vand.u32 4294901760, %v11050_v35  ;;  %v11155_v37 = vld [vmem:[#allocation65_spill] sm:$0xff] }
 0x182   :  { %2517 = vmatprep.mubr.f32.mxu0 %v7266_v2  ;;  %2667 = vmatpush2.msra.mxu1 %v11133_v11 }
 0x183   :  { %2520 = vmatmul.mubr.f32.vlgmr.msra.gmra.mxu0 %v7295_v54  ;;  %2669 = vmatprep.subr.mxu1 %v11134_v18  ;;  %v11139_v18 = vld [vmem:[#allocation113_spill] sm:$0xff]  ;;  %v1260_v26 = vpop.f32.mrf.mxu1 }
 0x184   :  { %2736 = vmatprep.subr.mxu0 %v11135_v31  ;;  %2671 = vmatpush2.msra.mxu1 %v11136_v9  ;;  %v7635_v31 = vadd.f32 %v1258_v14, %v1082_v15  ;;  %v7642_v63 = vadd.f32 %v1260_v26, %v1084_v28  ;;  %v11146_v15 = vld [vmem:[#allocation122_spill] sm:$0xff]  ;;  %v11147_v14 = vand.u32 4294901760, %v7266_v2  ;;  %v11149_v28 = vand.u32 4294901760, %v7295_v54 }
 0x185   :  { %2740 = vmatpush1.msra.mxu0 %v11137_v44  ;;  %2673 = vmatprep.subr.mxu1 %v7185_v39  ;;  %v11142_v44 = vld [vmem:[#allocation119_spill] sm:$0xff]  ;;  %v11152_v2 = vand.u32 4294901760, %v11048_v46  ;;  %v11153_v54 = vand.u32 4294901760, %v7332_v21 }
 0x186   :  { %2744 = vmatprep.subr.mxu0 %v11138_v40  ;;  %2527 = vmatprep.mubr.f32.mxu0 %v7332_v21  ;;  %v11144_v40 = vld [vmem:[#allocation120_spill] sm:$0xff]  ;;  %v11163_v21 = vld [vmem:[#allocation71_spill] sm:$0xff] }
 0x187   :  { %2675 = vmatpush2.msra.mxu1 %v11139_v18  ;;  %2748 = vmatpush1.msra.mxu0 %v11140_v29  ;;  %v11160_v29 = vld [vmem:[#allocation67_spill] sm:$0xff] }
 0x188   :  { %2530 = vmatmul.mubr.f32.gmra.mxu0 %v7356_v0  ;;  %2677 = vmatprep.subr.mxu1 %v7249_v45  ;;  %v11168_v0 = vld [vmem:[#allocation11_spill] sm:$0xff] }
 0x189   :  { %2752 = vmatprep.subr.mxu0 %v11141_v16  ;;  %2679 = vmatpush2.msra.mxu1 %v11142_v44  ;;  %v11164_v16 = vld [vmem:[#allocation12_spill] sm:$0xff] }
 0x18a   :  { %2756 = vmatpush1.msra.mxu0 %v11143_v51  ;;  %2681 = vmatprep.subr.mxu1 %v11144_v40  ;;  %v11165_v35 = vand.u32 4294901760, %v11164_v16  ;;  %v11166_v51 = vld [vmem:[#allocation77_spill] sm:$0xff] }
 0x18b   :  { %2760 = vmatprep.subr.mxu0 %v11145_v42  ;;  %2537 = vmatprep.mubr.f32.mxu0 %v7396_v62  ;;  %v11167_v42 = vand.u32 4294901760, %v7396_v62  ;;  %v11178_v62 = vld [vmem:[#allocation46_spill] sm:$0xff] }
 0x18c   :  { %2683 = vmatpush2.msra.mxu1 %v11146_v15  ;;  %2687 = vmatprep.mubr.f32.mxu1 %v11147_v14  ;;  %v11169_v14 = vand.u32 4294901760, %v11168_v0  ;;  %v11191_v0 = vld [vmem:[#allocation7_spill] sm:$0xff] }
 0x18d   :  { %2764 = vmatpush1.msra.mxu0 %v11148_v25  ;;  %2691 = vmatmul.mubr.f32.vlgmr.msra.gmra.mxu1 %v11149_v28  ;;  %v11170_v25 = vld [vmem:[#allocation81_spill] sm:$0xff]  ;;  %v11171_v28 = vand.u32 4294901760, %v7424_v12 }
 0x18e   :  { %2540 = vmatmul.mubr.f32.gmra.mxu0 %v7424_v12  ;;  %2768 = vmatprep.subr.mxu0 %v11150_v33  ;;  %v11172_v33 = vld [vmem:[#allocation14_spill] sm:$0xff]  ;;  %v11182_v12 = vld [vmem:[#allocation44_spill] sm:$0xff] }
 0x18f   :  { %3023 = vmatprep.subr.mxu1 %v11045_v20  ;;  %2772 = vmatpush1.msra.mxu0 %v11151_v56  ;;  %v11156_v20 = vld [vmem:[#allocation130_spill] sm:$0xff]  ;;  %v11173_v56 = vand.u32 4294901760, %v11172_v33 }
 0x190   :  { %3025 = vmatpush1.msra.mxu1 %v11047_v60  ;;  %2776 = vmatprep.subr.mxu0 %v11152_v2  ;;  %v11158_v60 = vld [vmem:[#allocation32_spill] sm:$0xff]  ;;  %v11174_v2 = vld [vmem:[#allocation87_spill] sm:$0xff] }
 0x191   :  { %3027 = vmatprep.subr.mxu1 %v11049_v49  ;;  %2547 = vmatprep.mubr.f32.mxu0 %v7446_v52  ;;  %v11159_v46 = vand.u32 4294901760, %v11158_v60  ;;  %v11161_v49 = vld [vmem:[#allocation10_spill] sm:$0xff] }
 0x192   :  { %2699 = vmatprep.mubr.f32.mxu1 %v11153_v54  ;;  %2780 = vmatpush1.msra.mxu0 %v11154_v38  ;;  %v11162_v26 = vand.u32 4294901760, %v11161_v49  ;;  %v11175_v54 = vld [vmem:[#allocation15_spill] sm:$0xff]  ;;  %v11180_v60 = vld [vmem:[#allocation22_spill] sm:$0xff]  ;;  %v11184_v49 = vld [vmem:[#allocation5_spill] sm:$0xff] }
 0x193   :  { %3029 = vmatpush1.msra.mxu1 %v11155_v37  ;;  %2550 = vmatmul.mubr.f32.gmra.mxu0 %v11156_v20  ;;  %v11176_v38 = vand.u32 4294901760, %v11175_v54  ;;  %v11177_v37 = vld [vmem:[#allocation92_spill] sm:$0xff]  ;;  %v11200_v54 = vld [vmem:[#allocation34_spill] sm:$0xff] }
 0x194   :  { %2703 = vmatmul.mubr.f32.gmra.mxu1 %v11157_v27  ;;  %2784 = vmatprep.subr.mxu0 %v11159_v46  ;;  %v11179_v27 = vand.u32 4294901760, %v11178_v62  ;;  %v11181_v46 = vand.u32 4294901760, %v7446_v52  ;;  %v11192_v52 = vld [vmem:[#allocation52_spill] sm:$0xff] }
 0x195   :  { %3031 = vmatprep.subr.mxu1 %v11160_v29  ;;  %2788 = vmatpush1.msra.mxu0 %v11162_v26  ;;  %v11183_v29 = vand.u32 4294901760, %v11182_v12  ;;  %v11185_v26 = vand.u32 4294901760, %v11156_v20  ;;  %v11197_v20 = vld [vmem:[#allocation9_spill] sm:$0xff]  ;;  %v11203_v62 = vld [vmem:[#allocation36_spill] sm:$0xff] }
 0x196   :  { %3033 = vmatpush1.msra.mxu1 %v11163_v21  ;;  %2792 = vmatprep.subr.mxu0 %v11165_v35  ;;  %v11186_v21 = vld [vmem:[#allocation48_spill] sm:$0xff]  ;;  %v11188_v35 = vld [vmem:[#allocation26_spill] sm:$0xff] }
 0x197   :  { %3035 = vmatprep.subr.mxu1 %v11166_v51  ;;  %2711 = vmatprep.mubr.f32.mxu1 %v11167_v42  ;;  %v11187_v16 = vand.u32 4294901760, %v11186_v21  ;;  %v11189_v51 = vld [vmem:[#allocation18_spill] sm:$0xff]  ;;  %v11207_v12 = vld [vmem:[#allocation60_spill] sm:$0xff] }
 0x198   :  { %2796 = vmatpush1.msra.mxu0 %v11169_v14  ;;  %3037 = vmatpush1.msra.mxu1 %v11170_v25  ;;  %v11190_v42 = vand.u32 4294901760, %v11189_v51  ;;  %v11193_v14 = vand.u32 4294901760, %v11192_v52  ;;  %v11194_v25 = vld [vmem:[#allocation30_spill] sm:$0xff] }
 0x199   :  { %2715 = vmatmul.mubr.f32.gmra.mxu1 %v11171_v28  ;;  %2800 = vmatprep.subr.mxu0 %v11173_v56  ;;  %v11195_v28 = vld [vmem:[#allocation20_spill] sm:$0xff] }
 0x19a   :  { %3039 = vmatprep.subr.mxu1 %v11174_v2  ;;  %2804 = vmatpush1.msra.mxu0 %v11176_v38  ;;  %v11196_v33 = vand.u32 4294901760, %v11195_v28  ;;  %v11198_v56 = vld [vmem:[#allocation56_spill] sm:$0xff]  ;;  %v11201_v38 = vld [vmem:[#allocation23_spill] sm:$0xff] }
 0x19b   :  { %3041 = vmatpush1.msra.mxu1 %v11177_v37  ;;  %2808 = vmatprep.subr.mxu0 %v11179_v27  ;;  %v11199_v2 = vand.u32 4294901760, %v11198_v56  ;;  %v11202_v37 = vand.u32 4294901760, %v11201_v38  ;;  %v11204_v27 = vld [vmem:[#allocation27_spill] sm:$0xff] }
 0x19c   :  { %3043 = vmatprep.subr.mxu1 %v11180_v60  ;;  %2723 = vmatprep.mubr.f32.mxu1 %v11181_v46  ;;  %v11205_v60 = vand.u32 4294901760, %v11204_v27  ;;  %v11206_v46 = vld [vmem:[#allocation38_spill] sm:$0xff]  ;;  %v11226_v38 = vld [vmem:[#allocation19_spill] sm:$0xff] }
 0x19d   :  { %2812 = vmatpush1.msra.mxu0 %v11183_v29  ;;  %3045 = vmatpush1.msra.mxu1 %v11184_v49  ;;  %v11208_v29 = vand.u32 4294901760, %v11207_v12  ;;  %v11209_v49 = vld [vmem:[#allocation13_spill] sm:$0xff]  ;;  %v11229_v27 = vld [vmem:[#allocation54_spill] sm:$0xff] }
 0x19e   :  { %2727 = vmatmul.mubr.f32.gmra.mxu1 %v11185_v26  ;;  %2816 = vmatprep.subr.mxu0 %v11187_v16  ;;  %v11210_v26 = vld [vmem:[#allocation64_spill] sm:$0xff]  ;;  %v11232_v12 = vld [vmem:[#allocation21_spill] sm:$0xff] }
 0x19f   :  { %3047 = vmatprep.subr.mxu1 %v11188_v35  ;;  %2820 = vmatpush1.msra.mxu0 %v11190_v42  ;;  %v11211_v21 = vand.u32 4294901760, %v11210_v26  ;;  %v11212_v16 = vld [vmem:[#allocation40_spill] sm:$0xff]  ;;  %v11213_v35 = vld [vmem:[#allocation31_spill] sm:$0xff]  ;;  %v11215_v42 = vld [vmem:[#allocation42_spill] sm:$0xff] }
 0x1a0   :  { %3049 = vmatpush1.msra.mxu1 %v11191_v0  ;;  %2824 = vmatprep.subr.mxu0 %v11193_v14  ;;  %v11214_v51 = vand.u32 4294901760, %v11213_v35  ;;  %v11216_v0 = vld [vmem:[#allocation35_spill] sm:$0xff]  ;;  %v11218_v14 = vld [vmem:[#allocation16_spill] sm:$0xff]  ;;  %v11235_v26 = vld [vmem:[#allocation58_spill] sm:$0xff] }
 0x1a1   :  { %3051 = vmatprep.subr.mxu1 %v11194_v25  ;;  %2828 = vmatpush1.msra.mxu0 %v11196_v33  ;;  %v11217_v52 = vand.u32 4294901760, %v11216_v0  ;;  %v11219_v25 = vld [vmem:[#allocation33_spill] sm:$0xff]  ;;  %v197_v35 = vld [vmem:[%s9708_s1 + $0x4f0] sm:$0xff] }
 0x1a2   :  { %3053 = vmatpush1.msra.mxu1 %v11197_v20  ;;  %2832 = vmatprep.subr.mxu0 %v11199_v2  ;;  %v11220_v28 = vand.u32 4294901760, %v11219_v25  ;;  %v11221_v33 = vld [vmem:[#allocation17_spill] sm:$0xff]  ;;  %v11222_v20 = vld [vmem:[#allocation76_spill] sm:$0xff]  ;;  %v11224_v2 = vld [vmem:[#allocation50_spill] sm:$0xff] }
 0x1a3   :  { %3055 = vmatprep.subr.mxu1 %v11200_v54  ;;  %2836 = vmatpush1.msra.mxu0 %v11202_v37  ;;  %v11223_v56 = vand.u32 4294901760, %v11222_v20  ;;  %v11225_v54 = vand.u32 4294901760, %v11090_v47  ;;  %v11227_v37 = vld [vmem:[#allocation80_spill] sm:$0xff]  ;;  %v11242_v25 = vld [vmem:[#allocation49_spill] sm:$0xff]  ;;  %v11245_v20 = vld [vmem:[#allocation55_spill] sm:$0xff] }
 0x1a4   :  { %3057 = vmatpush1.msra.mxu1 %v11203_v62  ;;  %2840 = vmatprep.subr.mxu0 %v11205_v60  ;;  %v11228_v62 = vand.u32 4294901760, %v11227_v37  ;;  %v11230_v60 = vld [vmem:[#allocation43_spill] sm:$0xff]  ;;  %v11250_v37 = vld [vmem:[#allocation86_spill] sm:$0xff] }
 0x1a5   :  { %3059 = vmatprep.subr.mxu1 %v11206_v46  ;;  %2844 = vmatpush1.msra.mxu0 %v11208_v29  ;;  %v11231_v46 = vand.u32 4294901760, %v11230_v60  ;;  %v11233_v29 = vld [vmem:[#allocation82_spill] sm:$0xff] }
 0x1a6   :  { %3061 = vmatpush1.msra.mxu1 %v11209_v49  ;;  %2848 = vmatprep.subr.mxu0 %v11211_v21  ;;  %v11234_v49 = vand.u32 4294901760, %v11233_v29  ;;  %v11236_v21 = vld [vmem:[#allocation78_spill] sm:$0xff] }
 0x1a7   :  { %3063 = vmatprep.subr.mxu1 %v11212_v16  ;;  %2852 = vmatpush1.msra.mxu0 %v11214_v51  ;;  %v11237_v47 = vand.u32 4294901760, %v11236_v21  ;;  %v198_v16 = vld [vmem:[%s9708_s1 + $0x4f8] sm:$0xff]  ;;  %v11238_v51 = vld [vmem:[#allocation25_spill] sm:$0xff]  ;;  %v11256_v21 = vld [vmem:[#allocation90_spill] sm:$0xff] }
 0x1a8   :  { %3065 = vmatpush1.msra.mxu1 %v11215_v42  ;;  %2856 = vmatprep.subr.mxu0 %v11217_v52  ;;  %v11239_v42 = vld [vmem:[#allocation88_spill] sm:$0xff]  ;;  %v196_v52 = vld [vmem:[%s9708_s1 + $0x4e8] sm:$0xff] }
 0x1a9   :  { %3067 = vmatprep.subr.mxu1 %v11218_v14  ;;  %2860 = vmatpush1.msra.mxu0 %v11220_v28  ;;  %v11240_v0 = vand.u32 4294901760, %v11239_v42  ;;  %v11241_v14 = vld [vmem:[#allocation62_spill] sm:$0xff]  ;;  %v11243_v28 = vand.u32 4294901760, %v11242_v25  ;;  %v7786_v60 = vand.u32 4294901760, %v196_v52  ;;  %v194_v42 = vld [vmem:[%s9708_s1 + $0x4d8] sm:$0xff] }
 0x1aa   :  { %3069 = vmatpush1.msra.mxu1 %v11221_v33  ;;  %2864 = vmatprep.subr.mxu0 %v11223_v56  ;;  %v11244_v33 = vld [vmem:[#allocation29_spill] sm:$0xff]  ;;  %v11246_v56 = vand.u32 4294901760, %v11245_v20  ;;  %v11261_v20 = vld [vmem:[#allocation74_spill] sm:$0xff] }
 0x1ab   :  { %3071 = vmatprep.subr.mxu1 %v11224_v2  ;;  %2868 = vmatpush2.msra.mxu0 %v11225_v54  ;;  %v7779_v2 = vand.u32 4294901760, %v198_v16  ;;  %v7781_v54 = vand.u32 4294901760, %v197_v35  ;;  %11252 = vst [vmem:[#allocation79_spill] sm:$0xff] %v7786_v60 }
 0x1ac   :  { %3073 = vmatpush1.msra.mxu1 %v11226_v38  ;;  %2872 = vmatprep.subr.mxu0 %v11228_v62  ;;  %v11249_v38 = vld [vmem:[#allocation68_spill] sm:$0xff]  ;;  %v11251_v62 = vand.u32 4294901760, %v11250_v37  ;;  %v7820_v37 = vsub.f32 %v196_v52, %v7786_v60 }
 0x1ad   :  { %3075 = vmatprep.subr.mxu1 %v11229_v27  ;;  %2876 = vmatpush2.msra.mxu0 %v11231_v46  ;;  %11247 = vst [vmem:[#allocation69_spill] sm:$0xff] %v7779_v2  ;;  %11248 = vst [vmem:[#allocation73_spill] sm:$0xff] %v7781_v54  ;;  %v11253_v46 = vld [vmem:[#allocation61_spill] sm:$0xff] }
 0x1ae   :  { %3077 = vmatpush1.msra.mxu1 %v11232_v12  ;;  %2880 = vmatprep.subr.mxu0 %v11234_v49  ;;  %v1523_v27 = vpop.f32.mrf.mxu0  ;;  %v11254_v12 = vand.u32 4294901760, %v11253_v46  ;;  %v195_v49 = vld [vmem:[%s9708_s1 + $0x4e0] sm:$0xff]  ;;  %11264 = vst [vmem:[#allocation83_spill] sm:$0xff] %v7820_v37  ;;  %v7825_v46 = vand.u32 4294901760, %v194_v42 }
 0x1af   :  { %3079 = vmatprep.subr.mxu1 %v11235_v26  ;;  %2884 = vmatpush2.msra.mxu0 %v11237_v47  ;;  %v1524_v29 = vadd.f32 %v1523_v27, %v7585_v5  ;;  %v11255_v26 = vld [vmem:[#allocation39_spill] sm:$0xff]  ;;  %v11257_v47 = vand.u32 4294901760, %v11256_v21  ;;  %v7805_v5 = vsub.f32 %v197_v35, %v7781_v54  ;;  %v11265_v35 = vld [vmem:[#allocation37_spill] sm:$0xff]  ;;  %v11272_v21 = vand.u32 4294901760, %v11117_v53 }
 0x1b0   :  { %3081 = vmatpush1.msra.mxu1 %v11238_v51  ;;  %2888 = vmatprep.subr.mxu0 %v11240_v0  ;;  %v1525_v51 = vpop.f32.mrf.mxu0  ;;  %v11259_v0 = vld [vmem:[#allocation89_spill] sm:$0xff]  ;;  %11268 = vst [vmem:[#allocation85_spill] sm:$0xff] %v7825_v46 }
 0x1b1   :  { %3083 = vmatprep.subr.mxu1 %v11241_v14  ;;  %2892 = vmatpush2.msra.mxu0 %v11243_v28  ;;  %v11260_v14 = vand.u32 4294901760, %v11259_v0  ;;  %v1526_v25 = vadd.f32 %v1525_v51, %v7591_v17  ;;  %v193_v28 = vld [vmem:[%s9708_s1 + $0x4d0] sm:$0xff]  ;;  %v11266_v17 = vld [vmem:[#allocation104_spill] sm:$0xff]  ;;  %v191_v51 = vld [vmem:[%s9708_s1 + $0x4c0] sm:$0xff] }
 0x1b2   :  { %3085 = vmatpush1.msra.mxu1 %v11244_v33  ;;  %2896 = vmatprep.subr.mxu0 %v11246_v56  ;;  %v7812_v33 = vsub.f32 %v198_v16, %v7779_v2  ;;  %v11262_v56 = vand.u32 4294901760, %v11111_v48  ;;  %v1531_v27 = vpop.f32.mrf.mxu0  ;;  %v192_v16 = vld [vmem:[%s9708_s1 + $0x4c8] sm:$0xff]  ;;  %v11270_v48 = vand.u32 4294901760, %v11115_v19  ;;  %v190_v19 = vld [vmem:[%s9708_s1 + $0x4b8] sm:$0xff] }
 0x1b3   :  { %3087 = vmatprep.subr.mxu1 %v11249_v38  ;;  %2900 = vmatpush2.msra.mxu0 %v11251_v62  ;;  %v7817_v38 = vand.u32 4294901760, %v195_v49  ;;  %v11267_v62 = vand.u32 4294901760, %v11266_v17  ;;  %v7834_v52 = vadd.f32 %v1531_v27, %v7603_v59  ;;  %v10179_v59 = vand.u32 4294901760, %v7805_v5  ;;  %v11273_v0 = vld [vmem:[#allocation84_spill] sm:$0xff]  ;;  %v11279_v27 = vld [vmem:[#allocation111_spill] sm:$0xff] }
 0x1b4   :  { %3089 = vmatpush2.msra.mxu1 %v11104_v3  ;;  %2904 = vmatprep.subr.mxu0 %v11254_v12  ;;  %v11258_v3 = vld [vmem:[#allocation70_spill] sm:$0xff]  ;;  %v11269_v12 = vld [vmem:[#allocation45_spill] sm:$0xff]  ;;  %v10180_v17 = vand.u32 4294901760, %v7820_v37 }
 0x1b5   :  { %3091 = vmatprep.subr.mxu1 %v11255_v26  ;;  %2908 = vmatpush2.msra.mxu0 %v11257_v47  ;;  %11263 = vst [vmem:[#allocation75_spill] sm:$0xff] %v7817_v38  ;;  %v7836_v26 = vand.u32 4294901760, %v193_v28  ;;  %v1533_v47 = vpop.f32.mrf.mxu0  ;;  %v7853_v53 = vsub.f32 %v195_v49, %v7817_v38  ;;  %v11282_v49 = vld [vmem:[#allocation53_spill] sm:$0xff] }
 0x1b6   :  { %3093 = vmatpush2.msra.mxu1 %v11258_v3  ;;  %2912 = vmatprep.subr.mxu0 %v11260_v14  ;;  %v10181_v3 = vand.u32 4294901760, %v7812_v33  ;;  %v11274_v14 = vld [vmem:[#allocation102_spill] sm:$0xff] }
 0x1b7   :  { %3095 = vmatprep.subr.mxu1 %v11261_v20  ;;  %2916 = vmatpush2.msra.mxu0 %v11262_v56  ;;  %11271 = vst [vmem:[#allocation94_spill] sm:$0xff] %v7836_v26  ;;  %11276 = vst [vmem:[#allocation96_spill] sm:$0xff] %v7853_v53  ;;  %v7856_v20 = vadd.f32 %v1533_v47, %v7609_v32  ;;  %v7858_v56 = vand.u32 4294901760, %v192_v16  ;;  %v11283_v32 = vld [vmem:[#allocation108_spill] sm:$0xff]  ;;  %v7874_v47 = vsub.f32 %v193_v28, %v7836_v26 }
 0x1b8   :  { %3097 = vmatpush2.msra.mxu1 %v11265_v35  ;;  %2920 = vmatprep.subr.mxu0 %v11267_v62  ;;  %v189_v35 = vld [vmem:[%s9708_s1 + $0x4b0] sm:$0xff] }
 0x1b9   :  { %3099 = vmatprep.subr.mxu1 %v11269_v12  ;;  %2924 = vmatpush2.msra.mxu0 %v11270_v48  ;;  %11277 = vst [vmem:[#allocation24_spill] sm:$0xff] %v7858_v56  ;;  %v11278_v62 = vld [vmem:[#allocation47_spill] sm:$0xff]  ;;  %v11280_v12 = vand.u32 4294901760, %v11279_v27  ;;  %v7868_v48 = vsub.f32 %v194_v42, %v7825_v46  ;;  %11285 = vst [vmem:[#allocation6_spill] sm:$0xff] %v7874_v47  ;;  %v1539_v42 = vpop.f32.mrf.mxu0  ;;  %v7890_v28 = vand.u32 4294901760, %v189_v35 }
 0x1ba   :  { %3101 = vmatpush2.msra.mxu1 %v11116_v24  ;;  %2928 = vmatprep.subr.mxu0 %v11272_v21  ;;  %v11275_v24 = vand.u32 4294901760, %v11274_v14  ;;  %v11284_v21 = vand.u32 4294901760, %v11283_v32  ;;  %v1684_v14 = vpop.f32.mrf.mxu1  ;;  %v7895_v32 = vsub.f32 %v7805_v5, %v10179_v59 }
 0x1bb   :  { %3103 = vmatprep.subr.mxu1 %v11273_v0  ;;  %11281 = vst [vmem:[#allocation91_spill] sm:$0xff] %v7868_v48  ;;  %v7876_v0 = vand.u32 4294901760, %v191_v51  ;;  %11291 = vst [vmem:[#allocation28_spill] sm:$0xff] %v7890_v28 }
 0x1bc   :  { %2932 = vmatpush2.msra.mxu0 %v11275_v24  ;;  %3105 = vmatpush2.msra.mxu1 %v11278_v62  ;;  %v7878_v24 = vand.u32 4294901760, %v190_v19  ;;  %v11288_v62 = vld [vmem:[#allocation115_spill] sm:$0xff] }
 0x1bd   :  { %2936 = vmatprep.subr.mxu0 %v11280_v12  ;;  %3107 = vmatprep.subr.mxu1 %v11282_v49  ;;  %11286 = vst [vmem:[#allocation95_spill] sm:$0xff] %v7876_v0  ;;  %v11289_v27 = vand.u32 4294901760, %v11288_v62  ;;  %v7883_v12 = vadd.f32 %v1684_v14, %v1524_v29  ;;  %v7888_v49 = vsub.f32 %v7812_v33, %v10181_v3  ;;  %v11292_v29 = vand.u32 4294901760, %v11125_v30  ;;  %v1686_v14 = vpop.f32.mrf.mxu1  ;;  %v11294_v30 = vld [vmem:[#allocation117_spill] sm:$0xff] }
 0x1be   :  { %2940 = vmatpush2.msra.mxu0 %v11284_v21  ;;  %11287 = vst [vmem:[#allocation8_spill] sm:$0xff] %v7878_v24  ;;  %3109 = vmatpush2.msra.mxu1 %v11123_v7  ;;  %v188_v7 = vld [vmem:[%s9708_s1 + $0x4a8] sm:$0xff]  ;;  %v7904_v21 = vadd.f32 %v1539_v42, %v7617_v1  ;;  %v7909_v62 = vsub.f32 %v7820_v37, %v10180_v17  ;;  %v11295_v1 = vand.u32 4294901760, %v11294_v30  ;;  %v1541_v42 = vpop.f32.mrf.mxu0  ;;  %v11297_v3 = vand.u32 4294901760, %v7126_v55  ;;  %v11301_v55 = vld [vmem:[#allocation93_spill] sm:$0xff] }
 0x1bf   :  { %2944 = vmatprep.subr.mxu0 %v11289_v27  ;;  %11290 = vst [vmem:[#allocation97_spill] sm:$0xff] %v7883_v12  ;;  %3111 = vmatprep.subr.mxu1 %v11124_v34  ;;  %v187_v27 = vld [vmem:[%s9708_s1 + $0x4a0] sm:$0xff]  ;;  %v7916_v34 = vsub.f32 %v192_v16, %v7858_v56  ;;  %v7928_v59 = vsub.f32 %v191_v51, %v7876_v0  ;;  %v11302_v51 = vand.u32 4294901760, %v7285_v57  ;;  %v11306_v17 = vld [vmem:[#allocation114_spill] sm:$0xff]  ;;  %v11308_v57 = vand.u32 4294901760, %v7853_v53 }
 0x1c0   :  { %2948 = vmatpush2.msra.mxu0 %v11292_v29  ;;  %3113 = vmatpush2.msra.mxu1 %v11126_v8  ;;  %v7921_v29 = vadd.f32 %v1686_v14, %v1526_v25  ;;  %v7931_v16 = vadd.f32 %v1541_v42, %v7624_v22  ;;  %v7933_v8 = vand.u32 4294901760, %v188_v7  ;;  %v186_v25 = vld [vmem:[%s9708_s1 + $0x498] sm:$0xff]  ;;  %v185_v14 = vld [vmem:[%s9708_s1 + $0x490] sm:$0xff]  ;;  %v7951_v30 = vand.u32 4294901760, %v187_v27 }
 0x1c1   :  { %11293 = vst [vmem:[#allocation72_spill] sm:$0xff] %v7916_v34  ;;  %2952 = vmatprep.subr.mxu0 %v11295_v1  ;;  %3115 = vmatprep.subr.mxu1 %v11127_v58  ;;  %11298 = vst [vmem:[#allocation98_spill] sm:$0xff] %v7928_v59  ;;  %v7942_v58 = vsub.f32 %v190_v19, %v7878_v24  ;;  %v11305_v42 = vld [vmem:[#allocation100_spill] sm:$0xff] }
 0x1c2   :  { %11296 = vst [vmem:[#allocation66_spill] sm:$0xff] %v7921_v29  ;;  %2956 = vmatpush2.msra.mxu0 %v11297_v3  ;;  %11299 = vst [vmem:[#allocation101_spill] sm:$0xff] %v7933_v8  ;;  %3117 = vmatpush2.msra.mxu1 %v11301_v55  ;;  %v7949_v3 = vsub.f32 %v189_v35, %v7890_v28  ;;  %v11307_v29 = vand.u32 4294901760, %v11306_v17  ;;  %v1547_v35 = vpop.f32.mrf.mxu0  ;;  %v11309_v1 = vld [vmem:[#allocation124_spill] sm:$0xff]  ;;  %v11312_v55 = vand.u32 4294901760, %v7868_v48 }
 0x1c3   :  { %11300 = vst [vmem:[#allocation41_spill] sm:$0xff] %v7942_v58  ;;  %2960 = vmatprep.subr.mxu0 %v11302_v51  ;;  %11304 = vst [vmem:[#allocation51_spill] sm:$0xff] %v7951_v30  ;;  %3119 = vmatprep.subr.mxu1 %v11305_v42  ;;  %v7962_v51 = vsub.f32 %v7853_v53, %v11308_v57  ;;  %v11310_v12 = vand.u32 4294901760, %v11309_v1  ;;  %v7969_v17 = vadd.f32 %v1547_v35, %v7635_v31 }
 0x1c4   :  { %11303 = vst [vmem:[#allocation106_spill] sm:$0xff] %v7949_v3  ;;  %2964 = vmatpush2.msra.mxu0 %v11307_v29  ;;  %3121 = vmatpush2.msra.mxu1 %v11130_v50  ;;  %v1692_v29 = vpop.f32.mrf.mxu1  ;;  %v7971_v42 = vand.u32 4294901760, %v186_v25  ;;  %v7976_v19 = vsub.f32 %v7868_v48, %v11312_v55  ;;  %v7978_v57 = vand.u32 4294901760, %v185_v14  ;;  %v184_v50 = vld [vmem:[%s9708_s1 + $0x488] sm:$0xff]  ;;  %v11314_v31 = vand.u32 4294901760, %v7216_v23  ;;  %v1549_v55 = vpop.f32.mrf.mxu0 }
 0x1c5   :  { %2968 = vmatprep.subr.mxu0 %v11310_v12  ;;  %v183_v12 = vld [vmem:[%s9708_s1 + $0x480] sm:$0xff]  ;;  %3123 = vmatprep.subr.mxu1 %v11131_v43  ;;  %v7990_v1 = vadd.f32 %v1692_v29, %v7834_v52  ;;  %v10186_v35 = vand.u32 4294901760, %v7928_v59  ;;  %v7995_v48 = vsub.f32 %v188_v7, %v7933_v8  ;;  %v11317_v53 = vand.u32 4294901760, %v7360_v61  ;;  %v182_v7 = vld [vmem:[%s9708_s1 + $0x478] sm:$0xff] }
 0x1c6   :  { %11311 = vst [vmem:[#allocation59_spill] sm:$0xff] %v7971_v42  ;;  %11313 = vst [vmem:[#allocation109_spill] sm:$0xff] %v7978_v57  ;;  %2972 = vmatpush2.msra.mxu0 %v11314_v31  ;;  %3125 = vmatpush2.msra.mxu1 %v11132_v6  ;;  %v8001_v43 = vsub.f32 %v187_v27, %v7951_v30  ;;  %v11319_v23 = vand.u32 4294901760, %v7874_v47  ;;  %v8009_v29 = vadd.f32 %v1549_v55, %v7642_v63  ;;  %v1694_v31 = vpop.f32.mrf.mxu1  ;;  %v181_v6 = vld [vmem:[%s9708_s1 + $0x470] sm:$0xff] }
 0x1c7   :  { %11315 = vst [vmem:[#allocation57_spill] sm:$0xff] %v7990_v1  ;;  %11316 = vst [vmem:[#allocation63_spill] sm:$0xff] %v7995_v48  ;;  %2976 = vmatprep.subr.mxu0 %v11317_v53  ;;  %3127 = vmatprep.subr.mxu1 %v7051_v10  ;;  %v11320_v61 = vand.u32 4294901760, %v7302_v13  ;;  %v8019_v53 = vadd.f32 %v1694_v31, %v7856_v20  ;;  %v8021_v27 = vand.u32 4294901760, %v184_v50  ;;  %v11323_v63 = vand.u32 4294901760, %v7916_v34  ;;  %v11336_v1 = vld [vmem:[#allocation118_spill] sm:$0xff] }
 0x1c8   :  { %11318 = vst [vmem:[#allocation99_spill] sm:$0xff] %v8001_v43  ;;  %v8006_v52 = vsub.f32 %v7874_v47, %v11319_v23  ;;  %v8028_v23 = vand.u32 4294901760, %v183_v12  ;;  %3129 = vmatpush2.msra.mxu1 %v7038_v41  ;;  %v11325_v10 = vand.u32 4294901760, %v7381_v36  ;;  %v8039_v31 = vsub.f32 %v185_v14, %v7978_v57  ;;  %v1700_v36 = vpop.f32.mrf.mxu1 }
 0x1c9   :  { %2980 = vmatpush2.msra.mxu0 %v11320_v61  ;;  %11321 = vst [vmem:[#allocation105_spill] sm:$0xff] %v8019_v53  ;;  %11322 = vst [vmem:[#allocation103_spill] sm:$0xff] %v8021_v27  ;;  %v8026_v55 = vsub.f32 %v7916_v34, %v11323_v63  ;;  %v8042_v61 = vsub.f32 %v186_v25, %v7971_v42  ;;  %3131 = vmatprep.subr.mxu1 %v7103_v4  ;;  %v11328_v63 = vld [vmem:[#allocation126_spill] sm:$0xff]  ;;  %v11331_v20 = vand.u32 4294901760, %v7942_v58  ;;  %v179_v4 = vld [vmem:[%s9708_s1 + $0x460] sm:$0xff] }
 0x1ca   :  { %11324 = vst [vmem:[#allocation107_spill] sm:$0xff] %v8028_v23  ;;  %2984 = vmatprep.subr.mxu0 %v11325_v10  ;;  %11326 = vst [vmem:[#allocation110_spill] sm:$0xff] %v8039_v31  ;;  %v11329_v22 = vand.u32 4294901760, %v11328_v63  ;;  %v8050_v41 = vsub.f32 %v7928_v59, %v10186_v35  ;;  %v8052_v10 = vand.u32 4294901760, %v182_v7  ;;  %3133 = vmatpush2.msra.mxu1 %v11133_v11  ;;  %v8068_v35 = vand.u32 4294901760, %v181_v6  ;;  %v180_v25 = vld [vmem:[%s9708_s1 + $0x468] sm:$0xff] }
 0x1cb   :  { %11327 = vst [vmem:[#allocation113_spill] sm:$0xff] %v8042_v61  ;;  %v8057_v14 = vsub.f32 %v7942_v58, %v11331_v20  ;;  %v8066_v63 = vadd.f32 %v1700_v36, %v7904_v21  ;;  %v11335_v13 = vand.u32 4294901760, %v7949_v3  ;;  %v11337_v58 = vld [vmem:[#allocation112_spill] sm:$0xff]  ;;  %v8084_v36 = vsub.f32 %v183_v12, %v8028_v23  ;;  %v11343_v21 = vld [vmem:[#allocation121_spill] sm:$0xff]  ;;  %v11366_v59 = vld [vmem:[#allocation127_spill] sm:$0xff] }
 0x1cc   :  { %2988 = vmatpush2.msra.mxu0 %v11329_v22  ;;  %11330 = vst [vmem:[#allocation119_spill] sm:$0xff] %v8052_v10  ;;  %v11332_v22 = vld [vmem:[#allocation116_spill] sm:$0xff]  ;;  %11334 = vst [vmem:[#allocation122_spill] sm:$0xff] %v8068_v35  ;;  %3135 = vmatprep.subr.mxu1 %v11337_v58  ;;  %v8111_v11 = vsub.f32 %v182_v7, %v8052_v10  ;;  %v8116_v12 = vsub.f32 %v181_v6, %v8068_v35  ;;  %v11394_v37 = vand.u32 4294901760, %v8006_v52  ;;  %v227_v52 = vld [vmem:[%s9708_s1 + $0x5e0] sm:$0xff] }
 0x1cd   :  { %2990 = vmatprep.mubr.f32.mxu0 %v11332_v22  ;;  %11333 = vst [vmem:[#allocation120_spill] sm:$0xff] %v8066_v63  ;;  %v8073_v20 = vsub.f32 %v7949_v3, %v11335_v13  ;;  %11338 = vst [vmem:[#allocation65_spill] sm:$0xff] %v8084_v36  ;;  %v1702_v63 = vpop.f32.mrf.mxu1  ;;  %v8087_v13 = vsub.f32 %v184_v50, %v8021_v27  ;;  %3184 = vmatprep.subr.mxu0 %v7779_v2  ;;  %v8094_v3 = vand.u32 4294901760, %v179_v4  ;;  %v178_v58 = vld [vmem:[%s9708_s1 + $0x458] sm:$0xff]  ;;  %v169_v2 = vld [vmem:[%s9708_s1 + $0x410] sm:$0xff] }
 0x1ce   :  { %2992 = vmatmul.mubr.f32.vlgmr.msra.gmra.mxu0 %v11336_v1  ;;  %3137 = vmatpush2.msra.mxu1 %v11136_v9  ;;  %v8092_v53 = vadd.f32 %v1702_v63, %v7931_v16  ;;  %v8105_v16 = vand.u32 4294901760, %v180_v25  ;;  %v177_v63 = vld [vmem:[%s9708_s1 + $0x450] sm:$0xff]  ;;  %11342 = vst [vmem:[#allocation10_spill] sm:$0xff] %v8111_v11  ;;  %11344 = vst [vmem:[#allocation71_spill] sm:$0xff] %v8116_v12  ;;  %v11345_v9 = vand.u32 4294901760, %v7995_v48  ;;  %v8254_v34 = vand.u32 4294901760, %v169_v2 }
 0x1cf   :  { %11339 = vst [vmem:[#allocation130_spill] sm:$0xff] %v8087_v13  ;;  %11341 = vst [vmem:[#allocation67_spill] sm:$0xff] %v8094_v3  ;;  %3186 = vmatpush1.msra.mxu0 %v7781_v54  ;;  %3139 = vmatprep.subr.mxu1 %v7185_v39  ;;  %v1708_v7 = vpop.f32.mrf.mxu1  ;;  %v8137_v39 = vand.u32 4294901760, %v178_v58 }
 0x1d0   :  { %11340 = vst [vmem:[#allocation32_spill] sm:$0xff] %v8092_v53  ;;  %3188 = vmatprep.subr.mxu0 %v7786_v60  ;;  %2998 = vmatprep.mubr.f32.mxu0 %v11343_v21  ;;  %v8122_v50 = vsub.f32 %v7995_v48, %v11345_v9  ;;  %v11346_v53 = vand.u32 4294901760, %v8001_v43  ;;  %v175_v60 = vld [vmem:[%s9708_s1 + $0x440] sm:$0xff]  ;;  %v8135_v6 = vadd.f32 %v1708_v7, %v7969_v17  ;;  %v176_v9 = vld [vmem:[%s9708_s1 + $0x448] sm:$0xff]  ;;  %v11349_v48 = vld [vmem:[#allocation123_spill] sm:$0xff]  ;;  %v11351_v17 = vand.u32 4294901760, %v8042_v61 }
 0x1d1   :  { %3141 = vmatpush2.msra.mxu1 %v11139_v18  ;;  %3190 = vmatpush1.msra.mxu0 %v7817_v38  ;;  %11348 = vst [vmem:[#allocation77_spill] sm:$0xff] %v8137_v39  ;;  %v8147_v18 = vsub.f32 %v179_v4, %v8094_v3  ;;  %v11353_v38 = vand.u32 4294901760, %v8039_v31  ;;  %11372 = vst [vmem:[#allocation7_spill] sm:$0xff] %v8254_v34 }
 0x1d2   :  { %v8127_v54 = vsub.f32 %v8001_v43, %v11346_v53  ;;  %11347 = vst [vmem:[#allocation12_spill] sm:$0xff] %v8135_v6  ;;  %3000 = vmatmul.mubr.f32.gmra.mxu0 %v11349_v48  ;;  %3143 = vmatprep.subr.mxu1 %v7249_v45  ;;  %v8152_v7 = vsub.f32 %v8042_v61, %v11351_v17  ;;  %v8154_v6 = vand.u32 4294901760, %v177_v63  ;;  %v1710_v43 = vpop.f32.mrf.mxu1  ;;  %v174_v45 = vld [vmem:[%s9708_s1 + $0x438] sm:$0xff]  ;;  %v8169_v17 = vand.u32 4294901760, %v175_v60  ;;  %v11358_v61 = vld [vmem:[#allocation125_spill] sm:$0xff] }
 0x1d3   :  { %11350 = vst [vmem:[#allocation11_spill] sm:$0xff] %v8147_v18  ;;  %v8159_v53 = vsub.f32 %v8039_v31, %v11353_v38  ;;  %3192 = vmatprep.subr.mxu0 %v7825_v46  ;;  %3145 = vmatpush2.msra.mxu1 %v11142_v44  ;;  %v8167_v4 = vadd.f32 %v1710_v43, %v8009_v29  ;;  %v173_v38 = vld [vmem:[%s9708_s1 + $0x430] sm:$0xff]  ;;  %v8182_v29 = vand.u32 4294901760, %v176_v9  ;;  %v11359_v46 = vand.u32 4294901760, %v8087_v13  ;;  %v172_v43 = vld [vmem:[%s9708_s1 + $0x428] sm:$0xff] }
 0x1d4   :  { %11352 = vst [vmem:[#allocation81_spill] sm:$0xff] %v8154_v6  ;;  %11355 = vst [vmem:[#allocation87_spill] sm:$0xff] %v8169_v17  ;;  %v8176_v31 = vsub.f32 %v180_v25, %v8105_v16  ;;  %3194 = vmatpush1.msra.mxu0 %v7836_v26  ;;  %3147 = vmatprep.subr.mxu1 %v11144_v40  ;;  %v11360_v26 = vand.u32 4294901760, %v8084_v36  ;;  %v8197_v44 = vand.u32 4294901760, %v174_v45 }
 0x1d5   :  { %11354 = vst [vmem:[#allocation14_spill] sm:$0xff] %v8167_v4  ;;  %11357 = vst [vmem:[#allocation92_spill] sm:$0xff] %v8182_v29  ;;  %3196 = vmatprep.subr.mxu0 %v7858_v56  ;;  %3006 = vmatprep.mubr.f32.mxu0 %v11358_v61  ;;  %v8190_v25 = vsub.f32 %v8087_v13, %v11359_v46  ;;  %v171_v4 = vld [vmem:[%s9708_s1 + $0x420] sm:$0xff]  ;;  %v8206_v56 = vsub.f32 %v178_v58, %v8137_v39  ;;  %v8215_v13 = vand.u32 4294901760, %v173_v38  ;;  %v170_v46 = vld [vmem:[%s9708_s1 + $0x418] sm:$0xff] }
 0x1d6   :  { %11356 = vst [vmem:[#allocation15_spill] sm:$0xff] %v8176_v31  ;;  %v8195_v40 = vsub.f32 %v8084_v36, %v11360_v26  ;;  %11361 = vst [vmem:[#allocation46_spill] sm:$0xff] %v8197_v44  ;;  %3149 = vmatpush2.msra.mxu1 %v11146_v15  ;;  %3151 = vmatprep.mubr.f32.mxu1 %v11332_v22  ;;  %v8212_v26 = vsub.f32 %v177_v63, %v8154_v6  ;;  %v11365_v22 = vand.u32 4294901760, %v8111_v11 }
 0x1d7   :  { %11362 = vst [vmem:[#allocation22_spill] sm:$0xff] %v8206_v56  ;;  %3198 = vmatpush1.msra.mxu0 %v7876_v0  ;;  %3153 = vmatmul.mubr.f32.vlgmr.msra.gmra.mxu1 %v11336_v1  ;;  %v8223_v15 = vsub.f32 %v175_v60, %v8169_v17  ;;  %v11367_v60 = vand.u32 4294901760, %v8116_v12  ;;  %v8242_v0 = vand.u32 4294901760, %v172_v43  ;;  %v8247_v63 = vsub.f32 %v176_v9, %v8182_v29 }
 0x1d8   :  { %11363 = vst [vmem:[#allocation44_spill] sm:$0xff] %v8212_v26  ;;  %v8228_v58 = vsub.f32 %v8111_v11, %v11365_v22  ;;  %3008 = vmatmul.mubr.f32.gmra.mxu0 %v11366_v59  ;;  %3200 = vmatprep.subr.mxu0 %v7878_v24  ;;  %v8244_v22 = vand.u32 4294901760, %v171_v4  ;;  %v11371_v36 = vand.u32 4294901760, %v7888_v49  ;;  %v8264_v49 = vsub.f32 %v173_v38, %v8215_v13  ;;  %v167_v24 = vld [vmem:[%s9708_s1 + $0x400] sm:$0xff] }
 0x1d9   :  { %11364 = vst [vmem:[#allocation5_spill] sm:$0xff] %v8223_v15  ;;  %v8240_v1 = vsub.f32 %v8116_v12, %v11367_v60  ;;  %11368 = vst [vmem:[#allocation48_spill] sm:$0xff] %v8242_v0  ;;  %3202 = vmatpush1.msra.mxu0 %v7890_v28  ;;  %v8257_v60 = vsub.f32 %v174_v45, %v8197_v44  ;;  %v11374_v12 = vand.u32 4294901760, %v7895_v32  ;;  %v11377_v45 = vand.u32 4294901760, %v7909_v62  ;;  %v11378_v32 = vld [vmem:[#allocation128_spill] sm:$0xff]  ;;  %v168_v28 = vld [vmem:[%s9708_s1 + $0x408] sm:$0xff] }
 0x1da   :  { %11369 = vst [vmem:[#allocation26_spill] sm:$0xff] %v8244_v22  ;;  %11370 = vst [vmem:[#allocation18_spill] sm:$0xff] %v8247_v63  ;;  %3381 = vmatprep.subr.mxu1 %v11371_v36  ;;  %3204 = vmatprep.subr.mxu0 %v7933_v8  ;;  %v8266_v36 = vand.u32 4294901760, %v170_v46  ;;  %v11379_v9 = vand.u32 4294901760, %v8176_v31  ;;  %v11380_v8 = vand.u32 4294901760, %v8147_v18  ;;  %v11383_v62 = vand.u32 4294901760, %v7962_v51 }
 0x1db   :  { %11373 = vst [vmem:[#allocation52_spill] sm:$0xff] %v8257_v60  ;;  %3387 = vmatpush1.msra.mxu1 %v11374_v12  ;;  %11375 = vst [vmem:[#allocation30_spill] sm:$0xff] %v8264_v49  ;;  %3014 = vmatprep.mubr.f32.mxu0 %v11378_v32  ;;  %v8297_v12 = vsub.f32 %v171_v4, %v8244_v22  ;;  %v11385_v47 = vand.u32 4294901760, %v8206_v56  ;;  %v8314_v4 = vand.u32 4294901760, %v167_v24  ;;  %v11388_v51 = vand.u32 4294901760, %v8212_v26 }
 0x1dc   :  { %11376 = vst [vmem:[#allocation20_spill] sm:$0xff] %v8266_v36  ;;  %3393 = vmatprep.subr.mxu1 %v11377_v45  ;;  %v8279_v38 = vsub.f32 %v8176_v31, %v11379_v9  ;;  %v8284_v11 = vsub.f32 %v8147_v18, %v11380_v8  ;;  %v229_v45 = vld [vmem:[%s9708_s1 + $0x5f0] sm:$0xff]  ;;  %3159 = vmatprep.mubr.f32.mxu1 %v11343_v21  ;;  %v11384_v31 = vld [vmem:[#allocation129_spill] sm:$0xff] }
 0x1dd   :  { %3206 = vmatpush1.msra.mxu0 %v7951_v30  ;;  %11381 = vst [vmem:[#allocation9_spill] sm:$0xff] %v8297_v12  ;;  %v8301_v18 = vsub.f32 %v172_v43, %v8242_v0  ;;  %3399 = vmatpush1.msra.mxu1 %v11383_v62  ;;  %v8309_v21 = vsub.f32 %v8206_v56, %v11385_v47  ;;  %11387 = vst [vmem:[#allocation23_spill] sm:$0xff] %v8314_v4  ;;  %v230_v43 = vld [vmem:[%s9708_s1 + $0x5f8] sm:$0xff]  ;;  %v8327_v62 = vand.u32 4294901760, %v168_v28 }
 0x1de   :  { %3016 = vmatmul.mubr.f32.gmra.mxu0 %v11384_v31  ;;  %v8312_v9 = vsub.f32 %v169_v2, %v8254_v34  ;;  %3161 = vmatmul.mubr.f32.gmra.mxu1 %v11349_v48  ;;  %v8325_v47 = vsub.f32 %v8212_v26, %v11388_v51  ;;  %v8329_v2 = vand.u32 4294901760, %v229_v45  ;;  %v11391_v30 = vand.u32 4294901760, %v7976_v19 }
 0x1df   :  { %11382 = vst [vmem:[#allocation56_spill] sm:$0xff] %v8301_v18  ;;  %3208 = vmatprep.subr.mxu0 %v7971_v42  ;;  %11389 = vst [vmem:[#allocation36_spill] sm:$0xff] %v8327_v62  ;;  %v11392_v42 = vand.u32 4294901760, %v8223_v15  ;;  %v8343_v26 = vsub.f32 %v170_v46, %v8266_v36  ;;  %v8353_v48 = vand.u32 4294901760, %v230_v43  ;;  %v11397_v46 = vand.u32 4294901760, %v8026_v55  ;;  %3167 = vmatprep.mubr.f32.mxu1 %v11358_v61 }
 0x1e0   :  { %11386 = vst [vmem:[#allocation34_spill] sm:$0xff] %v8312_v9  ;;  %11390 = vst [vmem:[#allocation27_spill] sm:$0xff] %v8329_v2  ;;  %3405 = vmatprep.subr.mxu1 %v11391_v30  ;;  %3210 = vmatpush1.msra.mxu0 %v7978_v57  ;;  %v11395_v30 = vand.u32 4294901760, %v8247_v63  ;;  %v8368_v56 = vsub.f32 %v167_v24, %v8314_v4  ;;  %v11400_v55 = vand.u32 4294901760, %v8050_v41  ;;  %v8399_v61 = vand.u32 4294901760, %v227_v52 }
 0x1e1   :  { %v8340_v51 = vsub.f32 %v8223_v15, %v11392_v42  ;;  %11393 = vst [vmem:[#allocation38_spill] sm:$0xff] %v8343_v26  ;;  %3411 = vmatpush1.msra.mxu1 %v11394_v37  ;;  %3212 = vmatprep.subr.mxu0 %v8021_v27  ;;  %11396 = vst [vmem:[#allocation60_spill] sm:$0xff] %v8353_v48  ;;  %v228_v42 = vld [vmem:[%s9708_s1 + $0x5e8] sm:$0xff]  ;;  %v11399_v15 = vand.u32 4294901760, %v8257_v60  ;;  %v225_v27 = vld [vmem:[%s9708_s1 + $0x5d0] sm:$0xff]  ;;  %v8384_v24 = vsub.f32 %v229_v45, %v8329_v2 }
 0x1e2   :  { %v8351_v19 = vsub.f32 %v8247_v63, %v11395_v30  ;;  %3417 = vmatprep.subr.mxu1 %v11397_v46  ;;  %11398 = vst [vmem:[#allocation13_spill] sm:$0xff] %v8368_v56  ;;  %3214 = vmatpush1.msra.mxu0 %v8028_v23  ;;  %v11402_v46 = vand.u32 4294901760, %v8264_v49  ;;  %v8392_v30 = vsub.f32 %v168_v28, %v8327_v62  ;;  %11405 = vst [vmem:[#allocation42_spill] sm:$0xff] %v8399_v61  ;;  %v226_v45 = vld [vmem:[%s9708_s1 + $0x5d8] sm:$0xff] }
 0x1e3   :  { %v8373_v8 = vsub.f32 %v8257_v60, %v11399_v15  ;;  %3423 = vmatpush1.msra.mxu1 %v11400_v55  ;;  %11401 = vst [vmem:[#allocation64_spill] sm:$0xff] %v8384_v24  ;;  %3216 = vmatprep.subr.mxu0 %v8052_v10  ;;  %v8397_v55 = vand.u32 4294901760, %v228_v42  ;;  %v11406_v37 = vand.u32 4294901760, %v8057_v14  ;;  %v11407_v28 = vand.u32 4294901760, %v8301_v18  ;;  %v224_v14 = vld [vmem:[%s9708_s1 + $0x5c8] sm:$0xff] }
 0x1e4   :  { %v8389_v15 = vsub.f32 %v8264_v49, %v11402_v46  ;;  %11403 = vst [vmem:[#allocation40_spill] sm:$0xff] %v8392_v30  ;;  %3169 = vmatmul.mubr.f32.gmra.mxu1 %v11366_v59  ;;  %3218 = vmatpush1.msra.mxu0 %v8068_v35  ;;  %v11408_v49 = vand.u32 4294901760, %v8297_v12  ;;  %v8419_v60 = vand.u32 4294901760, %v225_v27  ;;  %v8444_v59 = vand.u32 4294901760, %v226_v45 }
 0x1e5   :  { %11404 = vst [vmem:[#allocation31_spill] sm:$0xff] %v8397_v55  ;;  %3429 = vmatprep.subr.mxu1 %v11406_v37  ;;  %v8412_v41 = vsub.f32 %v8301_v18, %v11407_v28  ;;  %v11410_v37 = vand.u32 4294901760, %v8073_v20  ;;  %3220 = vmatprep.subr.mxu0 %v8105_v16  ;;  %v11411_v28 = vand.u32 4294901760, %v8312_v9  ;;  %v8438_v18 = vsub.f32 %v230_v43, %v8353_v48 }
 0x1e6   :  { %v8417_v10 = vsub.f32 %v8297_v12, %v11408_v49  ;;  %11409 = vst [vmem:[#allocation35_spill] sm:$0xff] %v8419_v60  ;;  %v223_v49 = vld [vmem:[%s9708_s1 + $0x5c0] sm:$0xff]  ;;  %v11413_v20 = vand.u32 4294901760, %v8122_v50  ;;  %3175 = vmatprep.mubr.f32.mxu1 %v11378_v32  ;;  %11414 = vst [vmem:[#allocation33_spill] sm:$0xff] %v8444_v59  ;;  %3222 = vmatpush1.msra.mxu0 %v8094_v3  ;;  %v11415_v43 = vand.u32 4294901760, %v8127_v54  ;;  %v11417_v32 = vand.u32 4294901760, %v8343_v26 }
 0x1e7   :  { %3435 = vmatpush1.msra.mxu1 %v11410_v37  ;;  %v8431_v46 = vsub.f32 %v8312_v9, %v11411_v28  ;;  %11412 = vst [vmem:[#allocation16_spill] sm:$0xff] %v8438_v18  ;;  %v221_v9 = vld [vmem:[%s9708_s1 + $0x5b0] sm:$0xff]  ;;  %v8455_v50 = vsub.f32 %v227_v52, %v8399_v61  ;;  %v8462_v37 = vand.u32 4294901760, %v224_v14  ;;  %v222_v28 = vld [vmem:[%s9708_s1 + $0x5b8] sm:$0xff]  ;;  %v8468_v12 = vsub.f32 %v228_v42, %v8397_v55 }
 0x1e8   :  { %3441 = vmatprep.subr.mxu1 %v11413_v20  ;;  %v8460_v20 = vsub.f32 %v8343_v26, %v11417_v32  ;;  %3177 = vmatmul.mubr.f32.gmra.mxu1 %v11384_v31  ;;  %v8477_v32 = vand.u32 4294901760, %v223_v49  ;;  %v11422_v26 = vand.u32 4294901760, %v8152_v7  ;;  %v11423_v31 = vand.u32 4294901760, %v8368_v56  ;;  %v219_v7 = vld [vmem:[%s9708_s1 + $0x5a0] sm:$0xff] }
 0x1e9   :  { %3447 = vmatpush1.msra.mxu1 %v11415_v43  ;;  %11416 = vst [vmem:[#allocation17_spill] sm:$0xff] %v8455_v50  ;;  %11418 = vst [vmem:[#allocation76_spill] sm:$0xff] %v8462_v37  ;;  %3224 = vmatprep.subr.mxu0 %v8137_v39  ;;  %v8475_v43 = vsub.f32 %v225_v27, %v8419_v60  ;;  %v8489_v52 = vand.u32 4294901760, %v221_v9  ;;  %v220_v27 = vld [vmem:[%s9708_s1 + $0x5a8] sm:$0xff]  ;;  %v8505_v54 = vand.u32 4294901760, %v222_v28 }
 0x1ea   :  { %11419 = vst [vmem:[#allocation50_spill] sm:$0xff] %v8468_v12  ;;  %11421 = vst [vmem:[#allocation80_spill] sm:$0xff] %v8477_v32  ;;  %3453 = vmatprep.subr.mxu1 %v11422_v26  ;;  %3226 = vmatpush1.msra.mxu0 %v8154_v6  ;;  %v8486_v39 = vsub.f32 %v8368_v56, %v11423_v31  ;;  %v11425_v26 = vand.u32 4294901760, %v8159_v53  ;;  %v11426_v31 = vand.u32 4294901760, %v8392_v30  ;;  %v11428_v56 = vand.u32 4294901760, %v8384_v24  ;;  %v217_v53 = vld [vmem:[%s9708_s1 + $0x590] sm:$0xff] }
 0x1eb   :  { %11420 = vst [vmem:[#allocation19_spill] sm:$0xff] %v8475_v43  ;;  %11424 = vst [vmem:[#allocation54_spill] sm:$0xff] %v8489_v52  ;;  %3228 = vmatprep.subr.mxu0 %v8182_v29  ;;  %v8513_v3 = vsub.f32 %v226_v45, %v8444_v59  ;;  %v8528_v45 = vsub.f32 %v224_v14, %v8462_v37  ;;  %v11436_v29 = vand.u32 4294901760, %v8228_v58  ;;  %v11444_v58 = vand.u32 4294901760, %v8455_v50 }
 0x1ec   :  { %3459 = vmatpush1.msra.mxu1 %v11425_v26  ;;  %v8503_v42 = vsub.f32 %v8392_v30, %v11426_v31  ;;  %11427 = vst [vmem:[#allocation43_spill] sm:$0xff] %v8505_v54  ;;  %v8510_v6 = vsub.f32 %v8384_v24, %v11428_v56  ;;  %v11430_v26 = vand.u32 4294901760, %v8190_v25  ;;  %3230 = vmatpush1.msra.mxu0 %v8169_v17  ;;  %v218_v56 = vld [vmem:[%s9708_s1 + $0x598] sm:$0xff]  ;;  %v11432_v24 = vand.u32 4294901760, %v8195_v40  ;;  %v216_v30 = vld [vmem:[%s9708_s1 + $0x588] sm:$0xff] }
 0x1ed   :  { %11429 = vst [vmem:[#allocation21_spill] sm:$0xff] %v8513_v3  ;;  %11431 = vst [vmem:[#allocation82_spill] sm:$0xff] %v8528_v45  ;;  %3232 = vmatprep.subr.mxu0 %v8197_v44  ;;  %v8534_v25 = vsub.f32 %v223_v49, %v8477_v32  ;;  %v8538_v31 = vand.u32 4294901760, %v219_v7  ;;  %v11437_v40 = vand.u32 4294901760, %v8438_v18  ;;  %v8551_v49 = vsub.f32 %v221_v9, %v8489_v52  ;;  %v215_v9 = vld [vmem:[%s9708_s1 + $0x580] sm:$0xff] }
 0x1ee   :  { %3465 = vmatprep.subr.mxu1 %v11430_v26  ;;  %v8536_v26 = vand.u32 4294901760, %v220_v27  ;;  %3234 = vmatpush1.msra.mxu0 %v8215_v13  ;;  %v8553_v44 = vand.u32 4294901760, %v217_v53  ;;  %v11440_v17 = vand.u32 4294901760, %v8240_v1  ;;  %v8560_v14 = vand.u32 4294901760, %v218_v56 }
 0x1ef   :  { %3471 = vmatpush1.msra.mxu1 %v11432_v24  ;;  %11433 = vst [vmem:[#allocation58_spill] sm:$0xff] %v8534_v25  ;;  %11435 = vst [vmem:[#allocation25_spill] sm:$0xff] %v8538_v31  ;;  %v8548_v24 = vsub.f32 %v8438_v18, %v11437_v40  ;;  %3236 = vmatprep.subr.mxu0 %v8242_v0  ;;  %v11442_v40 = vand.u32 4294901760, %v8279_v38  ;;  %v8584_v38 = vsub.f32 %v222_v28, %v8505_v54 }
 0x1f0   :  { %11434 = vst [vmem:[#allocation78_spill] sm:$0xff] %v8536_v26  ;;  %3477 = vmatprep.subr.mxu1 %v11436_v29  ;;  %11438 = vst [vmem:[#allocation88_spill] sm:$0xff] %v8551_v49  ;;  %3238 = vmatpush1.msra.mxu0 %v8244_v22  ;;  %v8577_v29 = vsub.f32 %v8455_v50, %v11444_v58  ;;  %v8593_v58 = vsub.f32 %v219_v7, %v8538_v31  ;;  %v11448_v22 = vand.u32 4294901760, %v8475_v43 }
 0x1f1   :  { %11439 = vst [vmem:[#allocation62_spill] sm:$0xff] %v8553_v44  ;;  %3483 = vmatpush1.msra.mxu1 %v11440_v17  ;;  %11441 = vst [vmem:[#allocation49_spill] sm:$0xff] %v8560_v14  ;;  %v11443_v17 = vand.u32 4294901760, %v8468_v12  ;;  %3240 = vmatprep.subr.mxu0 %v8266_v36  ;;  %v8602_v0 = vsub.f32 %v220_v27, %v8536_v26  ;;  %v8609_v7 = vsub.f32 %v217_v53, %v8553_v44 }
 0x1f2   :  { %3489 = vmatprep.subr.mxu1 %v11442_v40  ;;  %11445 = vst [vmem:[#allocation29_spill] sm:$0xff] %v8584_v38  ;;  %v213_v40 = vld [vmem:[%s9708_s1 + $0x570] sm:$0xff]  ;;  %11447 = vst [vmem:[#allocation55_spill] sm:$0xff] %v8593_v58  ;;  %v8598_v50 = vsub.f32 %v8475_v43, %v11448_v22  ;;  %3242 = vmatpush1.msra.mxu0 %v8254_v34  ;;  %v214_v22 = vld [vmem:[%s9708_s1 + $0x578] sm:$0xff]  ;;  %v11453_v27 = vand.u32 4294901760, %v8325_v47  ;;  %v8625_v53 = vand.u32 4294901760, %v216_v30 }
 0x1f3   :  { %v8572_v1 = vsub.f32 %v8468_v12, %v11443_v17  ;;  %v11446_v17 = vand.u32 4294901760, %v8284_v11  ;;  %11449 = vst [vmem:[#allocation68_spill] sm:$0xff] %v8602_v0  ;;  %v11450_v12 = vand.u32 4294901760, %v8309_v21  ;;  %11451 = vst [vmem:[#allocation86_spill] sm:$0xff] %v8609_v7  ;;  %3244 = vmatprep.subr.mxu0 %v8327_v62  ;;  %v8627_v11 = vand.u32 4294901760, %v213_v40  ;;  %v8676_v47 = vld [vmem:[%s9708_s1 + $0x558] sm:$0xff] }
 0x1f4   :  { %11455 = vst [vmem:[#allocation39_spill] sm:$0xff] %v8625_v53  ;;  %v8630_v34 = vsub.f32 %v218_v56, %v8560_v14  ;;  %v11458_v43 = vand.u32 4294901760, %v8351_v19  ;;  %3246 = vmatpush1.msra.mxu0 %v8314_v4  ;;  %v11459_v28 = vand.u32 4294901760, %v8528_v45  ;;  %v11460_v36 = vand.u32 4294901760, %v8340_v51 }
 0x1f5   :  { %3495 = vmatpush1.msra.mxu1 %v11446_v17  ;;  %v8611_v17 = vand.u32 4294901760, %v215_v9  ;;  %11456 = vst [vmem:[#allocation90_spill] sm:$0xff] %v8627_v11  ;;  %3248 = vmatprep.subr.mxu0 %v8353_v48  ;;  %v11463_v51 = vand.u32 4294901760, %v8373_v8  ;;  %v11465_v19 = vand.u32 4294901760, %v8551_v49  ;;  %v209_v8 = vld [vmem:[%s9708_s1 + $0x550] sm:$0xff]  ;;  %v8687_v48 = vsub.f32 %v213_v40, %v8627_v11 }
 0x1f6   :  { %3501 = vmatprep.subr.mxu1 %v11450_v12  ;;  %v11454_v12 = vand.u32 4294901760, %v8513_v3  ;;  %11457 = vst [vmem:[#allocation70_spill] sm:$0xff] %v8630_v34  ;;  %3250 = vmatpush2.msra.mxu0 %v8329_v2  ;;  %v11469_v4 = vand.u32 4294901760, %v8412_v41  ;;  %v11473_v41 = vand.u32 4294901760, %v8417_v10  ;;  %v8719_v2 = vand.u32 4294901760, %v8676_v47 }
 0x1f7   :  { %11452 = vst [vmem:[#allocation61_spill] sm:$0xff] %v8611_v17  ;;  %3507 = vmatpush1.msra.mxu1 %v11453_v27  ;;  %v8652_v27 = vand.u32 4294901760, %v214_v22  ;;  %v8670_v62 = vsub.f32 %v8551_v49, %v11465_v19  ;;  %3252 = vmatprep.subr.mxu0 %v8397_v55  ;;  %11467 = vst [vmem:[#allocation37_spill] sm:$0xff] %v8687_v48  ;;  %v8691_v49 = vsub.f32 %v216_v30, %v8625_v53  ;;  %v207_v30 = vld [vmem:[%s9708_s1 + $0x540] sm:$0xff]  ;;  %v205_v55 = vld [vmem:[%s9708_s1 + $0x530] sm:$0xff] }
 0x1f8   :  { %v8623_v21 = vsub.f32 %v8513_v3, %v11454_v12  ;;  %3513 = vmatprep.subr.mxu1 %v11458_v43  ;;  %v8640_v12 = vsub.f32 %v8528_v45, %v11459_v28  ;;  %v11461_v43 = vand.u32 4294901760, %v8534_v25  ;;  %v212_v28 = vld [vmem:[%s9708_s1 + $0x568] sm:$0xff]  ;;  %3254 = vmatpush2.msra.mxu0 %v8399_v61  ;;  %11475 = vst [vmem:[#allocation102_spill] sm:$0xff] %v8719_v2  ;;  %v8721_v61 = vand.u32 4294901760, %v209_v8 }
 0x1f9   :  { %3519 = vmatpush1.msra.mxu1 %v11460_v36  ;;  %11462 = vst [vmem:[#allocation89_spill] sm:$0xff] %v8652_v27  ;;  %v211_v36 = vld [vmem:[%s9708_s1 + $0x560] sm:$0xff]  ;;  %11468 = vst [vmem:[#allocation104_spill] sm:$0xff] %v8691_v49  ;;  %v8702_v19 = vand.u32 4294901760, %v212_v28  ;;  %3256 = vmatprep.subr.mxu0 %v8444_v59  ;;  %v11477_v10 = vand.u32 4294901760, %v8460_v20  ;;  %v11479_v59 = vand.u32 4294901760, %v8609_v7  ;;  %v8744_v20 = vsub.f32 %v214_v22, %v8652_v27 }
 0x1fa   :  { %v8650_v56 = vsub.f32 %v8534_v25, %v11461_v43  ;;  %3525 = vmatprep.subr.mxu1 %v11463_v51  ;;  %v8665_v43 = vsub.f32 %v215_v9, %v8611_v17  ;;  %v11466_v9 = vand.u32 4294901760, %v8389_v15  ;;  %v8704_v40 = vand.u32 4294901760, %v211_v36  ;;  %11476 = vst [vmem:[#allocation47_spill] sm:$0xff] %v8721_v61  ;;  %3258 = vmatpush2.msra.mxu0 %v8419_v60  ;;  %v206_v22 = vld [vmem:[%s9708_s1 + $0x538] sm:$0xff] }
 0x1fb   :  { %11471 = vst [vmem:[#allocation45_spill] sm:$0xff] %v8702_v19  ;;  %v11474_v15 = vand.u32 4294901760, %v8602_v0  ;;  %11480 = vst [vmem:[#allocation111_spill] sm:$0xff] %v8744_v20  ;;  %3260 = vmatprep.subr.mxu0 %v8462_v37  ;;  %v8755_v60 = vand.u32 4294901760, %v207_v30  ;;  %v8768_v37 = vand.u32 4294901760, %v205_v55 }
 0x1fc   :  { %11464 = vst [vmem:[#allocation74_spill] sm:$0xff] %v8665_v43  ;;  %3531 = vmatpush1.msra.mxu1 %v11466_v9  ;;  %v11470_v9 = vand.u32 4294901760, %v8584_v38  ;;  %11472 = vst [vmem:[#allocation84_spill] sm:$0xff] %v8704_v40  ;;  %3262 = vmatpush2.msra.mxu0 %v8477_v32 }
 0x1fd   :  { %3537 = vmatprep.subr.mxu1 %v11469_v4  ;;  %v11478_v4 = vand.u32 4294901760, %v8593_v58  ;;  %11483 = vst [vmem:[#allocation53_spill] sm:$0xff] %v8755_v60  ;;  %11486 = vst [vmem:[#allocation115_spill] sm:$0xff] %v8768_v37  ;;  %3264 = vmatprep.subr.mxu0 %v8505_v54  ;;  %v11495_v54 = vand.u32 4294901760, %v8665_v43 }
 0x1fe   :  { %v8700_v51 = vsub.f32 %v8584_v38, %v11470_v9  ;;  %3543 = vmatpush1.msra.mxu1 %v11473_v41  ;;  %v8716_v9 = vsub.f32 %v8602_v0, %v11474_v15  ;;  %v8738_v0 = vsub.f32 %v8609_v7, %v11479_v59  ;;  %v208_v38 = vld [vmem:[%s9708_s1 + $0x548] sm:$0xff]  ;;  %v11487_v7 = vand.u32 4294901760, %v8486_v39  ;;  %3266 = vmatpush2.msra.mxu0 %v8489_v52 }
 0x1ff   :  { %3549 = vmatprep.subr.mxu1 %v11477_v10  ;;  %v8733_v15 = vsub.f32 %v8593_v58, %v11478_v4  ;;  %v11481_v10 = vand.u32 4294901760, %v8431_v46  ;;  %v11482_v4 = vand.u32 4294901760, %v8630_v34  ;;  %v11484_v46 = vand.u32 4294901760, %v8503_v42  ;;  %3268 = vmatprep.subr.mxu0 %v8536_v26 }
 0x200   :  { %v8776_v42 = vsub.f32 %v209_v8, %v8721_v61  ;;  %v11490_v59 = vand.u32 4294901760, %v8548_v24  ;;  %v8791_v8 = vand.u32 4294901760, %v206_v22  ;;  %v20_v24 = vld [vmem:[%s9707_s0 + $0x28] sm:$0xff]  ;;  %v11493_v39 = vand.u32 4294901760, %v8691_v49  ;;  %3270 = vmatpush2.msra.mxu0 %v8538_v31 }
 0x201   :  { %3555 = vmatpush1.msra.mxu1 %v11481_v10  ;;  %v8752_v41 = vsub.f32 %v8630_v34, %v11482_v4  ;;  %v8766_v4 = vsub.f32 %v211_v36, %v8704_v40  ;;  %v8781_v10 = vsub.f32 %v212_v28, %v8702_v19  ;;  %v203_v36 = vld [vmem:[%s9708_s1 + $0x520] sm:$0xff]  ;;  %v8797_v28 = vld [vmem:[%s9708_s1 + $0x528] sm:$0xff]  ;;  %v8812_v52 = vsub.f32 %v207_v30, %v8755_v60 }
 0x202   :  { %3561 = vmatprep.subr.mxu1 %v11484_v46  ;;  %11488 = vst [vmem:[#allocation117_spill] sm:$0xff] %v8776_v42  ;;  %v8778_v46 = vand.u32 4294901760, %v208_v38  ;;  %11491 = vst [vmem:[#allocation100_spill] sm:$0xff] %v8791_v8  ;;  %v8809_v34 = vsub.f32 %v8691_v49, %v11493_v39  ;;  %v8817_v32 = vsub.f32 %v8665_v43, %v11495_v54  ;;  %v11497_v30 = vand.u32 4294901760, %v8687_v48  ;;  %v8838_v54 = vld [vmem:[%s9708_s1 + $0x518] sm:$0xff] }
 0x203   :  { %11485 = vst [vmem:[#allocation108_spill] sm:$0xff] %v8766_v4  ;;  %3567 = vmatpush1.msra.mxu1 %v11487_v7  ;;  %11489 = vst [vmem:[#allocation93_spill] sm:$0xff] %v8781_v10  ;;  %v8826_v39 = vsub.f32 %v205_v55, %v8768_v37  ;;  %v8833_v26 = vand.u32 4294901760, %v203_v36  ;;  %v201_v55 = vld [vmem:[%s9708_s1 + $0x510] sm:$0xff]  ;;  %3272 = vmatprep.subr.mxu0 %v8560_v14  ;;  %v8855_v43 = vand.u32 4294901760, %v20_v24  ;;  %v11502_v49 = vand.u32 4294901760, %v8744_v20 }
 0x204   :  { %3573 = vmatprep.subr.mxu1 %v11490_v59  ;;  %v11492_v59 = vand.u32 4294901760, %v8510_v6  ;;  %11494 = vst [vmem:[#allocation114_spill] sm:$0xff] %v8812_v52  ;;  %v19_v6 = vld [vmem:[%s9707_s0 + $0x20] sm:$0xff]  ;;  %v8831_v7 = vsub.f32 %v8687_v48, %v11497_v30  ;;  %v8851_v30 = vand.u32 4294901760, %v8797_v28  ;;  %3274 = vmatpush2.msra.mxu0 %v8553_v44  ;;  %v8867_v14 = vsub.f32 %v208_v38, %v8778_v46  ;;  %v26_v48 = vld [vmem:[%s9707_s0 + $0x58] sm:$0xff] }
 0x205   :  { %11500 = vst [vmem:[#allocation126_spill] sm:$0xff] %v8855_v43  ;;  %v8869_v31 = vand.u32 4294901760, %v19_v6  ;;  %3276 = vmatprep.subr.mxu0 %v8625_v53  ;;  %v8882_v38 = vand.u32 4294901760, %v201_v55  ;;  %v11508_v44 = vand.u32 4294901760, %v8640_v12  ;;  %v11509_v12 = vand.u32 4294901760, %v8650_v56  ;;  %3761 = vmatprep.mubr.f32.mxu1 %v8855_v43 }
 0x206   :  { %3579 = vmatpush2.msra.mxu1 %v11492_v59  ;;  %v11496_v59 = vand.u32 4294901760, %v8572_v1  ;;  %v8842_v1 = vsub.f32 %v8676_v47, %v8719_v2  ;;  %v11501_v47 = vand.u32 4294901760, %v8623_v21  ;;  %11503 = vst [vmem:[#allocation116_spill] sm:$0xff] %v8867_v14  ;;  %v11505_v21 = vand.u32 4294901760, %v8598_v50  ;;  %3278 = vmatpush2.msra.mxu0 %v8611_v17 }
 0x207   :  { %11504 = vst [vmem:[#allocation118_spill] sm:$0xff] %v8869_v31  ;;  %11507 = vst [vmem:[#allocation121_spill] sm:$0xff] %v8882_v38  ;;  %v8889_v50 = vsub.f32 %v203_v36, %v8833_v26  ;;  %3280 = vmatprep.subr.mxu0 %v8652_v27  ;;  %v11510_v36 = vand.u32 4294901760, %v8781_v10  ;;  %v8918_v53 = vsub.f32 %v20_v24, %v8855_v43  ;;  %v8920_v56 = vand.u32 4294901760, %v26_v48  ;;  %v11569_v43 = vld [vmem:[#allocation95_spill] sm:$0xff] }
 0x208   :  { %3585 = vmatprep.subr.mxu1 %v11496_v59  ;;  %11498 = vst [vmem:[#allocation124_spill] sm:$0xff] %v8842_v1  ;;  %v11499_v59 = vand.u32 4294901760, %v8577_v29  ;;  %v8863_v29 = vsub.f32 %v8744_v20, %v11502_v49  ;;  %v3662_v49 = vand.u32 4294901760, %v8817_v32  ;;  %v8896_v32 = vsub.f32 %v206_v22, %v8791_v8  ;;  %v199_v22 = vld [vmem:[%s9708_s1 + $0x500] sm:$0xff]  ;;  %3282 = vmatpush2.msra.mxu0 %v8627_v11 }
 0x209   :  { %v8907_v20 = vsub.f32 %v8781_v10, %v11510_v36  ;;  %11512 = vst [vmem:[#allocation123_spill] sm:$0xff] %v8918_v53  ;;  %11513 = vst [vmem:[#allocation125_spill] sm:$0xff] %v8920_v56  ;;  %v11515_v27 = vand.u32 4294901760, %v8776_v42  ;;  %v8933_v10 = vsub.f32 %v19_v6, %v8869_v31  ;;  %v11516_v24 = vand.u32 4294901760, %v8670_v62  ;;  %3284 = vmatprep.subr.mxu0 %v8702_v19 }
 0x20a   :  { %3591 = vmatpush2.msra.mxu1 %v11499_v59  ;;  %v8880_v59 = vand.u32 4294901760, %v8838_v54  ;;  %v3668_v36 = vand.u32 4294901760, %v8863_v29  ;;  %v11520_v6 = vand.u32 4294901760, %v8716_v9  ;;  %3286 = vmatpush2.msra.mxu0 %v8704_v40  ;;  %v11521_v62 = vand.u32 4294901760, %v8842_v1 }
 0x20b   :  { %3597 = vmatprep.subr.mxu1 %v11501_v47  ;;  %v3656_v47 = vand.u32 4294901760, %v8809_v34  ;;  %v200_v34 = vld [vmem:[%s9708_s1 + $0x508] sm:$0xff]  ;;  %v8960_v29 = vsub.f32 %v8797_v28, %v8851_v30  ;;  %v11524_v19 = vand.u32 4294901760, %v8733_v15  ;;  %3288 = vmatprep.subr.mxu0 %v8719_v2  ;;  %v3680_v9 = vand.u32 4294901760, %v8907_v20 }
 0x20c   :  { %3603 = vmatpush2.msra.mxu1 %v11505_v21  ;;  %11506 = vst [vmem:[#allocation112_spill] sm:$0xff] %v8880_v59  ;;  %v11511_v21 = vand.u32 4294901760, %v8766_v4  ;;  %3290 = vmatpush2.msra.mxu0 %v8721_v61  ;;  %v8996_v20 = vsub.f32 %v8838_v54, %v8880_v59  ;;  %v11531_v40 = vand.u32 4294901760, %v8896_v32 }
 0x20d   :  { %3609 = vmatprep.subr.mxu1 %v11508_v44  ;;  %v25_v44 = vld [vmem:[%s9707_s0 + $0x50] sm:$0xff]  ;;  %11523 = vst [vmem:[#allocation132_spill] sm:$0xff] %v8960_v29  ;;  %3292 = vmatprep.subr.mxu0 %v8778_v46 }
 0x20e   :  { %3615 = vmatpush2.msra.mxu1 %v11509_v12  ;;  %v8912_v17 = vsub.f32 %v8766_v4, %v11511_v21  ;;  %v11514_v12 = vand.u32 4294901760, %v8700_v51  ;;  %v8929_v21 = vsub.f32 %v8776_v42, %v11515_v27  ;;  %v8939_v51 = vsub.f32 %v201_v55, %v8882_v38  ;;  %v32_v27 = vld [vmem:[%s9707_s0 + $0x88] sm:$0xff]  ;;  %3294 = vmatpush2.msra.mxu0 %v8755_v60 }
 0x20f   :  { %v8944_v11 = vand.u32 4294901760, %v25_v44  ;;  %v3691_v55 = vsub.f32 %v8842_v1, %v11521_v62  ;;  %v8969_v62 = vsub.f32 %v26_v48, %v8920_v56  ;;  %v11525_v4 = vand.u32 4294901760, %v8752_v41  ;;  %v31_v48 = vld [vmem:[%s9707_s0 + $0x80] sm:$0xff]  ;;  %3296 = vmatprep.subr.mxu0 %v8791_v8 }
 0x210   :  { %3621 = vmatprep.subr.mxu1 %v11514_v12  ;;  %11517 = vst [vmem:[#allocation127_spill] sm:$0xff] %v8939_v51  ;;  %v8941_v12 = vand.u32 4294901760, %v200_v34  ;;  %v3698_v28 = vand.u32 4294901760, %v8929_v21  ;;  %v8979_v2 = vand.u32 4294901760, %v32_v27  ;;  %v11529_v41 = vand.u32 4294901760, %v8812_v52  ;;  %3298 = vmatpush2.msra.mxu0 %v8768_v37 }
 0x211   :  { %3627 = vmatpush2.msra.mxu1 %v11516_v24  ;;  %11519 = vst [vmem:[#allocation129_spill] sm:$0xff] %v8944_v11  ;;  %v8955_v24 = vand.u32 4294901760, %v199_v22  ;;  %v11534_v21 = vand.u32 4294901760, %v8933_v10  ;;  %3300 = vmatprep.subr.mxu0 %v8851_v30 }
 0x212   :  { %11518 = vst [vmem:[#allocation128_spill] sm:$0xff] %v8941_v12  ;;  %3633 = vmatprep.subr.mxu1 %v11520_v6  ;;  %v3686_v6 = vand.u32 4294901760, %v8912_v17  ;;  %11527 = vst [vmem:[#allocation133_spill] sm:$0xff] %v8979_v2  ;;  %v11528_v17 = vand.u32 4294901760, %v8738_v0  ;;  %v3692_v0 = vand.u32 4294901760, %v3691_v55  ;;  %v9012_v55 = vsub.f32 %v200_v34, %v8941_v12  ;;  %3302 = vmatpush2.msra.mxu0 %v8833_v26 }
 0x213   :  { %11522 = vst [vmem:[#allocation131_spill] sm:$0xff] %v8955_v24  ;;  %3639 = vmatpush2.msra.mxu1 %v11524_v19  ;;  %v11526_v19 = vand.u32 4294901760, %v8867_v14  ;;  %v3320_v8 = vsub.f32 %v8933_v10, %v11534_v21  ;;  %v11535_v34 = vand.u32 4294901760, %v8831_v7  ;;  %v37_v21 = vld [vmem:[%s9707_s0 + $0xb0] sm:$0xff]  ;;  %3304 = vmatprep.subr.mxu0 %v8880_v59  ;;  %v11544_v59 = vand.u32 4294901760, %v8939_v51 }
 0x214   :  { %3645 = vmatprep.subr.mxu1 %v11525_v4  ;;  %v3709_v4 = vsub.f32 %v8812_v52, %v11529_v41  ;;  %v3715_v41 = vsub.f32 %v8896_v32, %v11531_v40  ;;  %v38_v40 = vld [vmem:[%s9707_s0 + $0xb8] sm:$0xff]  ;;  %3306 = vmatpush2.msra.mxu0 %v8882_v38  ;;  %s4703_s0 = smov [#allocation2]  }
 0x215   :  { %v3703_v15 = vsub.f32 %v8867_v14, %v11526_v19  ;;  %3651 = vmatpush2.msra.mxu1 %v11528_v17  ;;  %v8992_v19 = vsub.f32 %v25_v44, %v8944_v11  ;;  %v9000_v17 = vsub.f32 %v199_v22, %v8955_v24  ;;  %v11532_v44 = vand.u32 4294901760, %v8918_v53  ;;  %3308 = vmatprep.subr.mxu0 %v8941_v12  ;;  %s4667_s7 = sshll.u32 %s4703_s0, 4  ;;  %s4668_s7 = int_to_ptr.vmem [resolvable:$true] %s4667_s7 }
 0x216   :  { %3657 = vmatprep.subr.mxu1 %v3656_v47  ;;  %v9014_v22 = vand.u32 4294901760, %v31_v48  ;;  %v9025_v47 = vsub.f32 %v32_v27, %v8979_v2  ;;  %v3710_v60 = vand.u32 4294901760, %v3709_v4  ;;  %v3716_v7 = vand.u32 4294901760, %v3715_v41  ;;  %3310 = vmatpush2.msra.mxu0 %v8955_v24  ;;  %s4681_s8 = scalar_lea.vmem %s4668_s7, 1024  ;;  %p4686_p1 = scmp.lt.s32.totalorder %s4668_s7, %s4668_s7 }
 0x217   :  { %11530 = vst [vmem:[#allocation134_spill] sm:$0xff] %v9000_v17  ;;  %3663 = vmatpush2.msra.mxu1 %v3662_v49  ;;  %v3314_v54 = vsub.f32 %v8918_v53, %v11532_v44  ;;  %v3704_v49 = vand.u32 4294901760, %v3703_v15  ;;  %v11537_v27 = vand.u32 4294901760, %v8960_v29  ;;  %v9043_v44 = vand.u32 4294901760, %v38_v40  ;;  %3795 = vmatprep.subr.mxu0 %v7812_v33  ;;  %p4682_p0 = scmp.ne.s32.totalorder %s4668_s7, %s4681_s8  ;;  %p4687_p2 = scmp.lt.s32.totalorder %s4681_s8, %s4681_s8 }
 0x218   :  { %11533 = vst [vmem:[#allocation135_spill] sm:$0xff] %v9014_v22  ;;  %3669 = vmatprep.subr.mxu1 %v3668_v36  ;;  %v11536_v36 = vand.u32 4294901760, %v8826_v39  ;;  %v11539_v53 = vand.u32 4294901760, %v8969_v62  ;;  %v9051_v41 = vsub.f32 %v31_v48, %v9014_v22  ;;  %v11545_v12 = vand.u32 4294901760, %v9012_v55 }
 0x219   :  { %3675 = vmatpush2.msra.mxu1 %v11535_v34  ;;  %v3727_v4 = vsub.f32 %v8960_v29, %v11537_v27  ;;  %11538 = vst [vmem:[#allocation136_spill] sm:$0xff] %v9043_v44  ;;  %v3321_v27 = vand.u32 4294901760, %v3320_v8  ;;  %v11540_v34 = vand.u32 4294901760, %v8889_v50  ;;  %p4688_p3 = por %p4687_p2, %p4686_p1 }
 0x21a   :  { %v3721_v37 = vsub.f32 %v8826_v39, %v11536_v36  ;;  %3681 = vmatprep.subr.mxu1 %v3680_v9  ;;  %v3315_v36 = vand.u32 4294901760, %v3314_v54  ;;  %v3330_v15 = vsub.f32 %v8969_v62, %v11539_v53  ;;  %v9058_v54 = vand.u32 4294901760, %v37_v21 }
 0x21b   :  { %3687 = vmatpush2.msra.mxu1 %v3686_v6  ;;  %v3733_v6 = vsub.f32 %v8889_v50, %v11540_v34  ;;  %v11542_v9 = vand.u32 4294901760, %v8992_v19  ;;  %v3728_v34 = vand.u32 4294901760, %v3727_v4  ;;  %v10385_v38 = vand.u32 4294901760, %v9051_v41  ;;  %p4689_p4 = pnand %p4688_p3, %p4682_p0 }
 0x21c   :  { %3693 = vmatprep.subr.mxu1 %v3692_v0  ;;  %11541 = vst [vmem:[#allocation137_spill] sm:$0xff] %v9058_v54  ;;  %v3722_v53 = vand.u32 4294901760, %v3721_v37  ;;  %v11543_v0 = vand.u32 4294901760, %v8996_v20  ;;  %v9073_v37 = vsub.f32 %v38_v40, %v9043_v44  ;;  %3316 = vmatprep.mubr.f32.mxu0 %v3315_v36  ;;  %v11546_v4 = vand.u32 4294901760, %v9025_v47 }
 0x21d   :  { %3699 = vmatpush2.msra.mxu1 %v3698_v28  ;;  %v3336_v48 = vsub.f32 %v8992_v19, %v11542_v9  ;;  %v3745_v28 = vsub.f32 %v8939_v51, %v11544_v59  ;;  %v3331_v9 = vand.u32 4294901760, %v3330_v15  ;;  %3322 = vmatmul.mubr.f32.vlgmr.msra.gmra.mxu0 %v3321_v27  ;;  %v9083_v59 = vsub.f32 %v37_v21, %v9058_v54  ;;  %v11548_v27 = vld [vmem:[#allocation83_spill] sm:$0xff] }
 0x21e   :  { %v3739_v8 = vsub.f32 %v8996_v20, %v11543_v0  ;;  %3705 = vmatprep.subr.mxu1 %v3704_v49  ;;  %v3751_v0 = vsub.f32 %v9012_v55, %v11545_v12  ;;  %v3734_v49 = vand.u32 4294901760, %v3733_v6  ;;  %v3346_v24 = vsub.f32 %v9025_v47, %v11546_v4  ;;  %3798 = vmatpush1.msra.mxu0 %v7805_v5 }
 0x21f   :  { %3711 = vmatpush2.msra.mxu1 %v3710_v60  ;;  %v3337_v60 = vand.u32 4294901760, %v3336_v48  ;;  %v11547_v15 = vand.u32 4294901760, %v9000_v17  ;;  %v10384_v36 = vand.u32 4294901760, %v9073_v37  ;;  %3801 = vmatprep.subr.mxu0 %v11548_v27  ;;  %v3352_v6 = vsub.f32 %v9051_v41, %v10385_v38  ;;  %v11565_v38 = vld [vmem:[#allocation94_spill] sm:$0xff] }
 0x220   :  { %3717 = vmatprep.subr.mxu1 %v3716_v7  ;;  %v3740_v40 = vand.u32 4294901760, %v3739_v8  ;;  %v3746_v7 = vand.u32 4294901760, %v3745_v28  ;;  %3332 = vmatprep.mubr.f32.mxu0 %v3331_v9  ;;  %v3752_v21 = vand.u32 4294901760, %v3751_v0  ;;  %v3347_v48 = vand.u32 4294901760, %v3346_v24  ;;  %v11550_v28 = vld [vmem:[#allocation91_spill] sm:$0xff]  ;;  %v11551_v0 = vld [vmem:[#allocation6_spill] sm:$0xff] }
 0x221   :  { %3723 = vmatpush2.msra.mxu1 %v3722_v53  ;;  %v3757_v12 = vsub.f32 %v9000_v17, %v11547_v15  ;;  %v11549_v53 = vld [vmem:[#allocation96_spill] sm:$0xff]  ;;  %v10383_v8 = vand.u32 4294901760, %v9083_v59  ;;  %3338 = vmatmul.mubr.f32.gmra.mxu0 %v3337_v60  ;;  %v3362_v9 = vsub.f32 %v9073_v37, %v10384_v36  ;;  %v3353_v4 = vand.u32 4294901760, %v3352_v6  ;;  %v11553_v60 = vld [vmem:[#allocation98_spill] sm:$0xff]  ;;  %v11554_v15 = vld [vmem:[#allocation41_spill] sm:$0xff] }
 0x222   :  { %3729 = vmatprep.subr.mxu1 %v3728_v34  ;;  %3804 = vmatpush1.msra.mxu0 %v11549_v53  ;;  %v11557_v6 = vld [vmem:[#allocation73_spill] sm:$0xff] }
 0x223   :  { %3735 = vmatpush2.msra.mxu1 %v3734_v49  ;;  %v3758_v34 = vand.u32 4294901760, %v3757_v12  ;;  %3807 = vmatprep.subr.mxu0 %v11550_v28  ;;  %v11552_v49 = vld [vmem:[#allocation72_spill] sm:$0xff]  ;;  %v3368_v24 = vsub.f32 %v9083_v59, %v10383_v8  ;;  %v11555_v12 = vld [vmem:[#allocation69_spill] sm:$0xff]  ;;  %v11560_v8 = vld [vmem:[#allocation99_spill] sm:$0xff] }
 0x224   :  { %3741 = vmatprep.subr.mxu1 %v3740_v40  ;;  %3810 = vmatpush1.msra.mxu0 %v11551_v0  ;;  %v3363_v40 = vand.u32 4294901760, %v3362_v9  ;;  %v11561_v9 = vld [vmem:[#allocation75_spill] sm:$0xff]  ;;  %v11563_v36 = vld [vmem:[#allocation85_spill] sm:$0xff] }
 0x225   :  { %3747 = vmatpush2.msra.mxu1 %v3746_v7  ;;  %3813 = vmatprep.subr.mxu0 %v11552_v49  ;;  %v11556_v7 = vld [vmem:[#allocation106_spill] sm:$0xff] }
 0x226   :  { %3753 = vmatprep.subr.mxu1 %v3752_v21  ;;  %3348 = vmatprep.mubr.f32.mxu0 %v3347_v48  ;;  %v3369_v21 = vand.u32 4294901760, %v3368_v24  ;;  %v11558_v48 = vld [vmem:[#allocation63_spill] sm:$0xff]  ;;  %v11564_v24 = vld [vmem:[#allocation110_spill] sm:$0xff] }
 0x227   :  { %3759 = vmatpush2.msra.mxu1 %v3758_v34  ;;  %3816 = vmatpush1.msra.mxu0 %v11553_v60  ;;  %v11559_v34 = vld [vmem:[#allocation79_spill] sm:$0xff] }
 0x228   :  { %3763 = vmatmul.mubr.f32.vlgmr.msra.gmra.mxu1 %v8869_v31  ;;  %3354 = vmatmul.mubr.f32.gmra.mxu0 %v3353_v4  ;;  %v11562_v4 = vld [vmem:[#allocation113_spill] sm:$0xff]  ;;  %v11566_v31 = vld [vmem:[#allocation130_spill] sm:$0xff] }
 0x229   :  { %3819 = vmatprep.subr.mxu0 %v11554_v15  ;;  %4027 = vmatprep.subr.mxu1 %v11555_v12 }
 0x22a   :  { %3822 = vmatpush1.msra.mxu0 %v11556_v7  ;;  %4029 = vmatpush1.msra.mxu1 %v11557_v6 }
 0x22b   :  { %3825 = vmatprep.subr.mxu0 %v11558_v48  ;;  %4031 = vmatprep.subr.mxu1 %v11559_v34 }
 0x22c   :  { %3364 = vmatprep.mubr.f32.mxu0 %v3363_v40  ;;  %3769 = vmatprep.mubr.f32.mxu1 %v8920_v56  ;;  %v11567_v40 = vld [vmem:[#allocation24_spill] sm:$0xff]  ;;  %v11568_v56 = vld [vmem:[#allocation65_spill] sm:$0xff] }
 0x22d   :  { %3828 = vmatpush1.msra.mxu0 %v11560_v8  ;;  %4033 = vmatpush1.msra.mxu1 %v11561_v9 }
 0x22e   :  { %3370 = vmatmul.mubr.f32.gmra.mxu0 %v3369_v21  ;;  %3771 = vmatmul.mubr.f32.gmra.mxu1 %v8944_v11  ;;  %v11570_v21 = vld [vmem:[#allocation10_spill] sm:$0xff]  ;;  %v11571_v11 = vld [vmem:[#allocation8_spill] sm:$0xff] }
 0x22f   :  { %3831 = vmatprep.subr.mxu0 %v11562_v4  ;;  %4035 = vmatprep.subr.mxu1 %v11563_v36  ;;  %v11572_v36 = vld [vmem:[#allocation71_spill] sm:$0xff] }
 0x230   :  { %3834 = vmatpush1.msra.mxu0 %v11564_v24  ;;  %4037 = vmatpush1.msra.mxu1 %v11565_v38  ;;  %v11573_v24 = vld [vmem:[#allocation28_spill] sm:$0xff]  ;;  %v11574_v38 = vld [vmem:[#allocation15_spill] sm:$0xff] }
 0x231   :  { %3837 = vmatprep.subr.mxu0 %v11566_v31  ;;  %4039 = vmatprep.subr.mxu1 %v11567_v40  ;;  %v11575_v31 = vld [vmem:[#allocation101_spill] sm:$0xff] }
 0x232   :  { %3777 = vmatprep.mubr.f32.mxu1 %v8979_v2  ;;  %3840 = vmatpush1.msra.mxu0 %v11568_v56  ;;  %v11576_v2 = vld [vmem:[#allocation11_spill] sm:$0xff] }
 0x233   :  { %4041 = vmatpush1.msra.mxu1 %v11569_v43  ;;  %3843 = vmatprep.subr.mxu0 %v11570_v21  ;;  %v11577_v56 = vld [vmem:[#allocation51_spill] sm:$0xff] }
 0x234   :  { %3779 = vmatmul.mubr.f32.gmra.mxu1 %v9014_v22  ;;  %4043 = vmatprep.subr.mxu1 %v11571_v11  ;;  %v11578_v22 = vld [vmem:[#allocation22_spill] sm:$0xff]  ;;  %v11579_v21 = vld [vmem:[#allocation59_spill] sm:$0xff]  ;;  %v11580_v11 = vld [vmem:[#allocation44_spill] sm:$0xff] }
 0x235   :  { %3846 = vmatpush1.msra.mxu0 %v11572_v36  ;;  %4045 = vmatpush1.msra.mxu1 %v11573_v24 }
 0x236   :  { %3849 = vmatprep.subr.mxu0 %v11574_v38  ;;  %4047 = vmatprep.subr.mxu1 %v11575_v31  ;;  %v11581_v38 = vld [vmem:[#allocation103_spill] sm:$0xff]  ;;  %v11582_v31 = vld [vmem:[#allocation5_spill] sm:$0xff] }
 0x237   :  { %3785 = vmatprep.mubr.f32.mxu1 %v9043_v44  ;;  %3852 = vmatpush1.msra.mxu0 %v11576_v2  ;;  %v11583_v44 = vld [vmem:[#allocation52_spill] sm:$0xff] }
 0x238   :  { %4049 = vmatpush1.msra.mxu1 %v11577_v56  ;;  %3855 = vmatprep.subr.mxu0 %v11578_v22  ;;  %v11584_v56 = vld [vmem:[#allocation119_spill] sm:$0xff] }
 0x239   :  { %3787 = vmatmul.mubr.f32.gmra.mxu1 %v9058_v54  ;;  %4051 = vmatprep.subr.mxu1 %v11579_v21  ;;  %v11585_v54 = vld [vmem:[#allocation30_spill] sm:$0xff]  ;;  %v11586_v21 = vld [vmem:[#allocation56_spill] sm:$0xff] }
 0x23a   :  { %3858 = vmatpush1.msra.mxu0 %v11580_v11  ;;  %4053 = vmatpush1.msra.mxu1 %v7978_v57  ;;  %v11587_v57 = vld [vmem:[#allocation9_spill] sm:$0xff] }
 0x23b   :  { %3861 = vmatprep.subr.mxu0 %v8247_v63  ;;  %4055 = vmatprep.subr.mxu1 %v11581_v38  ;;  %v11588_v63 = vld [vmem:[#allocation67_spill] sm:$0xff]  ;;  %v11589_v38 = vld [vmem:[#allocation38_spill] sm:$0xff] }
 0x23c   :  { %3864 = vmatpush1.msra.mxu0 %v11582_v31  ;;  %4057 = vmatpush1.msra.mxu1 %v8028_v23  ;;  %v11590_v31 = vld [vmem:[#allocation77_spill] sm:$0xff]  ;;  %v11591_v23 = vld [vmem:[#allocation34_spill] sm:$0xff] }
 0x23d   :  { %3867 = vmatprep.subr.mxu0 %v11583_v44  ;;  %4059 = vmatprep.subr.mxu1 %v11584_v56  ;;  %v11592_v44 = vld [vmem:[#allocation81_spill] sm:$0xff]  ;;  %v11593_v56 = vld [vmem:[#allocation40_spill] sm:$0xff] }
 0x23e   :  { %3870 = vmatpush1.msra.mxu0 %v11585_v54  ;;  %4061 = vmatpush1.msra.mxu1 %v8068_v35  ;;  %v11594_v54 = vld [vmem:[#allocation92_spill] sm:$0xff]  ;;  %v11595_v35 = vld [vmem:[#allocation13_spill] sm:$0xff] }
 0x23f   :  { %3873 = vmatprep.subr.mxu0 %v11586_v21  ;;  %4063 = vmatprep.subr.mxu1 %v8105_v16  ;;  %v11596_v21 = vld [vmem:[#allocation87_spill] sm:$0xff] }
 0x240   :  { %3876 = vmatpush1.msra.mxu0 %v11587_v57  ;;  %4065 = vmatpush1.msra.mxu1 %v11588_v63  ;;  %v11597_v57 = vld [vmem:[#allocation46_spill] sm:$0xff]  ;;  %v11598_v63 = vld [vmem:[#allocation64_spill] sm:$0xff] }
 0x241   :  { %3879 = vmatprep.subr.mxu0 %v11589_v38  ;;  %4067 = vmatprep.subr.mxu1 %v11590_v31  ;;  %v11599_v31 = vld [vmem:[#allocation50_spill] sm:$0xff] }
 0x242   :  { %3882 = vmatpush1.msra.mxu0 %v11591_v23  ;;  %4069 = vmatpush1.msra.mxu1 %v11592_v44  ;;  %v11600_v23 = vld [vmem:[#allocation48_spill] sm:$0xff]  ;;  %v11601_v44 = vld [vmem:[#allocation17_spill] sm:$0xff] }
 0x243   :  { %3885 = vmatprep.subr.mxu0 %v11593_v56  ;;  %4071 = vmatprep.subr.mxu1 %v11594_v54  ;;  %v11602_v56 = vld [vmem:[#allocation26_spill] sm:$0xff] }
 0x244   :  { %3888 = vmatpush1.msra.mxu0 %v11595_v35  ;;  %4073 = vmatpush1.msra.mxu1 %v11596_v21  ;;  %v11603_v35 = vld [vmem:[#allocation20_spill] sm:$0xff]  ;;  %v11604_v21 = vld [vmem:[#allocation19_spill] sm:$0xff] }
 0x245   :  { %3891 = vmatprep.subr.mxu0 %v8438_v18  ;;  %4075 = vmatprep.subr.mxu1 %v11597_v57  ;;  %v11605_v18 = vld [vmem:[#allocation7_spill] sm:$0xff] }
 0x246   :  { %3894 = vmatpush2.msra.mxu0 %v11598_v63  ;;  %4077 = vmatpush1.msra.mxu1 %v8215_v13  ;;  %v11606_v63 = vld [vmem:[#allocation36_spill] sm:$0xff] }
 0x247   :  { %3897 = vmatprep.subr.mxu0 %v11599_v31  ;;  %4079 = vmatprep.subr.mxu1 %v11600_v23  ;;  %v11607_v31 = vld [vmem:[#allocation23_spill] sm:$0xff]  ;;  %v11608_v23 = vld [vmem:[#allocation29_spill] sm:$0xff] }
 0x248   :  { %3900 = vmatpush2.msra.mxu0 %v11601_v44  ;;  %4081 = vmatpush1.msra.mxu1 %v11602_v56  ;;  %v11609_v44 = vld [vmem:[#allocation60_spill] sm:$0xff] }
 0x249   :  { %3903 = vmatprep.subr.mxu0 %v8513_v3  ;;  %4083 = vmatprep.subr.mxu1 %v11603_v35  ;;  %v11610_v56 = vld [vmem:[#allocation88_spill] sm:$0xff]  ;;  %v11611_v3 = vld [vmem:[#allocation27_spill] sm:$0xff] }
 0x24a   :  { %3906 = vmatpush2.msra.mxu0 %v11604_v21  ;;  %4085 = vmatpush1.msra.mxu1 %v11605_v18  ;;  %v11612_v35 = vld [vmem:[#allocation68_spill] sm:$0xff]  ;;  %v11613_v21 = vld [vmem:[#allocation31_spill] sm:$0xff] }
 0x24b   :  { %3909 = vmatprep.subr.mxu0 %v8528_v45  ;;  %4087 = vmatprep.subr.mxu1 %v11606_v63  ;;  %v11614_v45 = vld [vmem:[#allocation42_spill] sm:$0xff] }
 0x24c   :  { %3912 = vmatpush2.msra.mxu0 %v8534_v25  ;;  %4089 = vmatpush1.msra.mxu1 %v11607_v31  ;;  %v11615_v63 = vld [vmem:[#allocation70_spill] sm:$0xff]  ;;  %v11616_v25 = vld [vmem:[#allocation33_spill] sm:$0xff] }
 0x24d   :  { %3915 = vmatprep.subr.mxu0 %v11608_v23  ;;  %4091 = vmatprep.subr.mxu1 %v11609_v44  ;;  %v11617_v31 = vld [vmem:[#allocation86_spill] sm:$0xff]  ;;  %v11618_v23 = vld [vmem:[#allocation35_spill] sm:$0xff]  ;;  %v11619_v44 = vld [vmem:[#allocation104_spill] sm:$0xff] }
 0x24e   :  { %3918 = vmatpush2.msra.mxu0 %v11610_v56  ;;  %4093 = vmatpush2.msra.mxu1 %v11611_v3  ;;  %v11620_v56 = vld [vmem:[#allocation76_spill] sm:$0xff]  ;;  %v11621_v3 = vld [vmem:[#allocation74_spill] sm:$0xff] }
 0x24f   :  { %3921 = vmatprep.subr.mxu0 %v11612_v35  ;;  %4095 = vmatprep.subr.mxu1 %v11613_v21  ;;  %v11622_v35 = vld [vmem:[#allocation80_spill] sm:$0xff]  ;;  %v11623_v21 = vld [vmem:[#allocation111_spill] sm:$0xff] }
 0x250   :  { %3924 = vmatpush2.msra.mxu0 %v8593_v58  ;;  %4097 = vmatpush2.msra.mxu1 %v11614_v45  ;;  %v11624_v58 = vld [vmem:[#allocation43_spill] sm:$0xff]  ;;  %v11625_v45 = vld [vmem:[#allocation37_spill] sm:$0xff] }
 0x251   :  { %3927 = vmatprep.subr.mxu0 %v11615_v63  ;;  %4099 = vmatprep.subr.mxu1 %v11616_v25  ;;  %v11626_v63 = vld [vmem:[#allocation54_spill] sm:$0xff]  ;;  %v11627_v25 = vld [vmem:[#allocation93_spill] sm:$0xff] }
 0x252   :  { %3930 = vmatpush2.msra.mxu0 %v11617_v31  ;;  %4101 = vmatpush2.msra.mxu1 %v11618_v23  ;;  %v11628_v31 = vld [vmem:[#allocation78_spill] sm:$0xff]  ;;  %v11629_v23 = vld [vmem:[#allocation108_spill] sm:$0xff] }
 0x253   :  { %3933 = vmatprep.subr.mxu0 %v11619_v44  ;;  %4103 = vmatprep.subr.mxu1 %v11620_v56  ;;  %v11630_v44 = vld [vmem:[#allocation25_spill] sm:$0xff] }
 0x254   :  { %3936 = vmatpush2.msra.mxu0 %v11621_v3  ;;  %4105 = vmatpush2.msra.mxu1 %v11622_v35  ;;  %v11631_v3 = vld [vmem:[#allocation49_spill] sm:$0xff] }
 0x255   :  { %3939 = vmatprep.subr.mxu0 %v11623_v21  ;;  %4107 = vmatprep.subr.mxu1 %v11624_v58  ;;  %v11632_v21 = vld [vmem:[#allocation62_spill] sm:$0xff] }
 0x256   :  { %3942 = vmatpush2.msra.mxu0 %v11625_v45  ;;  %4109 = vmatpush2.msra.mxu1 %v11626_v63  ;;  %v11633_v45 = vld [vmem:[#allocation39_spill] sm:$0xff] }
 0x257   :  { %3945 = vmatprep.subr.mxu0 %v11627_v25  ;;  %4111 = vmatprep.subr.mxu1 %v11628_v31  ;;  %v11634_v25 = vld [vmem:[#allocation61_spill] sm:$0xff] }
 0x258   :  { %3948 = vmatpush2.msra.mxu0 %v11629_v23  ;;  %4113 = vmatpush2.msra.mxu1 %v11630_v44  ;;  %v11635_v23 = vld [vmem:[#allocation89_spill] sm:$0xff] }
 0x259   :  { %3951 = vmatprep.subr.mxu0 %v8842_v1  ;;  %4115 = vmatprep.subr.mxu1 %v11631_v3  ;;  %v11636_v1 = vld [vmem:[#allocation90_spill] sm:$0xff] }
 0x25a   :  { %3954 = vmatpush2.msra.mxu0 %v8776_v42  ;;  %4117 = vmatpush2.msra.mxu1 %v11632_v21  ;;  %v11637_v42 = vld [vmem:[#allocation45_spill] sm:$0xff] }
 0x25b   :  { %3957 = vmatprep.subr.mxu0 %v8867_v14  ;;  %4119 = vmatprep.subr.mxu1 %v11633_v45  ;;  %v11638_v14 = vld [vmem:[#allocation84_spill] sm:$0xff] }
 0x25c   :  { %3960 = vmatpush2.msra.mxu0 %v8812_v52  ;;  %4121 = vmatpush2.msra.mxu1 %v11634_v25  ;;  %v11639_v52 = vld [vmem:[#allocation102_spill] sm:$0xff] }
 0x25d   :  { %3963 = vmatprep.subr.mxu0 %v8896_v32  ;;  %4123 = vmatprep.subr.mxu1 %v11635_v23 }
 0x25e   :  { %3966 = vmatpush2.msra.mxu0 %v8826_v39  ;;  %4125 = vmatpush2.msra.mxu1 %v11636_v1 }
 0x25f   :  { %3969 = vmatprep.subr.mxu0 %v8960_v29  ;;  %4127 = vmatprep.subr.mxu1 %v11637_v42  ;;  %v11640_v29 = vld [vmem:[#allocation123_spill] sm:$0xff]  ;;  %v11641_v42 = vld [vmem:[#allocation53_spill] sm:$0xff] }
 0x260   :  { %3972 = vmatpush2.msra.mxu0 %v8889_v50  ;;  %4129 = vmatpush2.msra.mxu1 %v11638_v14  ;;  %v11642_v14 = vld [vmem:[#allocation100_spill] sm:$0xff] }
 0x261   :  { %3975 = vmatprep.subr.mxu0 %v8996_v20  ;;  %4131 = vmatprep.subr.mxu1 %v11639_v52  ;;  %v11643_v52 = vand.u32 4294901760, %v7812_v33  ;;  %v11648_v33 = vld [vmem:[#allocation112_spill] sm:$0xff] }
 0x262   :  { %3978 = vmatpush2.msra.mxu0 %v8939_v51  ;;  %4133 = vmatpush2.msra.mxu1 %v8721_v61  ;;  %v11644_v51 = vld [vmem:[#allocation115_spill] sm:$0xff]  ;;  %v11645_v61 = vand.u32 4294901760, %v7805_v5  ;;  %v11650_v5 = vld [vmem:[#allocation121_spill] sm:$0xff] }
 0x263   :  { %3981 = vmatprep.subr.mxu0 %v9012_v55  ;;  %4135 = vmatprep.subr.mxu1 %v8778_v46 }
 0x264   :  { %3984 = vmatpush2.msra.mxu0 %v9000_v17  ;;  %3987 = vmatprep.mubr.f32.mxu0 %v11640_v29  ;;  %v11646_v17 = vand.u32 4294901760, %v11548_v27  ;;  %v11653_v27 = vand.u32 4294901760, %v11552_v49  ;;  %v11659_v49 = vand.u32 4294901760, %v11556_v7  ;;  %v11665_v7 = vld [vmem:[#allocation85_spill] sm:$0xff] }
 0x265   :  { %4137 = vmatpush2.msra.mxu1 %v11641_v42  ;;  %3990 = vmatmul.mubr.f32.vlgmr.msra.gmra.mxu0 %v8933_v10  ;;  %v11647_v42 = vand.u32 4294901760, %v11549_v53  ;;  %v11655_v53 = vand.u32 4294901760, %v11640_v29  ;;  %v11660_v29 = vand.u32 4294901760, %v11558_v48 }
 0x266   :  { %4139 = vmatprep.subr.mxu1 %v11642_v14  ;;  %4206 = vmatprep.subr.mxu0 %v11643_v52  ;;  %v11649_v52 = vand.u32 4294901760, %v11550_v28  ;;  %v11656_v28 = vand.u32 4294901760, %v11553_v60  ;;  %v11662_v60 = vand.u32 4294901760, %v11560_v8 }
 0x267   :  { %4141 = vmatpush2.msra.mxu1 %v11644_v51  ;;  %4210 = vmatpush1.msra.mxu0 %v11645_v61  ;;  %v11651_v61 = vand.u32 4294901760, %v11551_v0  ;;  %v11658_v0 = vand.u32 4294901760, %v11554_v15  ;;  %v11663_v15 = vand.u32 4294901760, %v8992_v19 }
 0x268   :  { %4143 = vmatprep.subr.mxu1 %v8851_v30  ;;  %4214 = vmatprep.subr.mxu0 %v11646_v17  ;;  %v11652_v17 = vld [vmem:[#allocation128_spill] sm:$0xff] }
 0x269   :  { %3997 = vmatprep.mubr.f32.mxu0 %v8969_v62  ;;  %4145 = vmatpush2.msra.mxu1 %v8833_v26 }
 0x26a   :  { %4218 = vmatpush1.msra.mxu0 %v11647_v42  ;;  %4147 = vmatprep.subr.mxu1 %v11648_v33  ;;  %v11654_v42 = vld [vmem:[#allocation131_spill] sm:$0xff] }
 0x26b   :  { %4000 = vmatmul.mubr.f32.gmra.mxu0 %v8992_v19  ;;  %4222 = vmatprep.subr.mxu0 %v11649_v52  ;;  %v11657_v52 = vand.u32 4294901760, %v8933_v10  ;;  %v11661_v10 = vand.u32 4294901760, %v8969_v62  ;;  %v11668_v62 = vld [vmem:[#allocation94_spill] sm:$0xff]  ;;  %v11672_v19 = vld [vmem:[#allocation65_spill] sm:$0xff] }
 0x26c   :  { %4149 = vmatpush2.msra.mxu1 %v11650_v5  ;;  %4226 = vmatpush1.msra.mxu0 %v11651_v61  ;;  %v11673_v61 = vand.u32 4294901760, %v11672_v19  ;;  %v11704_v19 = vld [vmem:[#allocation9_spill] sm:$0xff] }
 0x26d   :  { %4151 = vmatprep.subr.mxu1 %v11652_v17  ;;  %4230 = vmatprep.subr.mxu0 %v11653_v27  ;;  %v11675_v27 = vld [vmem:[#allocation10_spill] sm:$0xff] }
 0x26e   :  { %4007 = vmatprep.mubr.f32.mxu0 %v9025_v47  ;;  %4153 = vmatpush2.msra.mxu1 %v11654_v42 }
 0x26f   :  { %4157 = vmatprep.mubr.f32.mxu1 %v11655_v53  ;;  %4234 = vmatpush1.msra.mxu0 %v11656_v28  ;;  %v11676_v53 = vand.u32 4294901760, %v11675_v27  ;;  %v11677_v28 = vld [vmem:[#allocation8_spill] sm:$0xff]  ;;  %v11707_v27 = vand.u32 4294901760, %v11589_v38 }
 0x270   :  { %4161 = vmatmul.mubr.f32.vlgmr.msra.gmra.mxu1 %v11657_v52  ;;  %4010 = vmatmul.mubr.f32.gmra.mxu0 %v9051_v41  ;;  %v11678_v52 = vand.u32 4294901760, %v11572_v36  ;;  %v11686_v36 = vand.u32 4294901760, %v11578_v22 }
 0x271   :  { %4238 = vmatprep.subr.mxu0 %v11658_v0  ;;  %4493 = vmatprep.subr.mxu1 %v11555_v12  ;;  %v11664_v12 = vand.u32 4294901760, %v11562_v4  ;;  %v11674_v4 = vand.u32 4294901760, %v9051_v41  ;;  %v11681_v0 = vld [vmem:[#allocation101_spill] sm:$0xff]  ;;  %v11683_v41 = vand.u32 4294901760, %v11576_v2  ;;  %v11692_v2 = vld [vmem:[#allocation103_spill] sm:$0xff] }
 0x272   :  { %4242 = vmatpush1.msra.mxu0 %v11659_v49  ;;  %4495 = vmatpush1.msra.mxu1 %v11557_v6  ;;  %v11666_v6 = vld [vmem:[#allocation110_spill] sm:$0xff]  ;;  %v11684_v49 = vld [vmem:[#allocation51_spill] sm:$0xff] }
 0x273   :  { %4246 = vmatprep.subr.mxu0 %v11660_v29  ;;  %4497 = vmatprep.subr.mxu1 %v11559_v34  ;;  %v11667_v48 = vand.u32 4294901760, %v11666_v6  ;;  %v11669_v34 = vld [vmem:[#allocation130_spill] sm:$0xff]  ;;  %v11685_v29 = vand.u32 4294901760, %v9083_v59  ;;  %v11696_v6 = vld [vmem:[#allocation52_spill] sm:$0xff] }
 0x274   :  { %4017 = vmatprep.mubr.f32.mxu0 %v9073_v37  ;;  %4169 = vmatprep.mubr.f32.mxu1 %v11661_v10  ;;  %v11670_v8 = vand.u32 4294901760, %v11669_v34  ;;  %v11688_v10 = vand.u32 4294901760, %v11580_v11  ;;  %v11697_v22 = vand.u32 4294901760, %v11696_v6  ;;  %v11701_v34 = vld [vmem:[#allocation122_spill] sm:$0xff] }
 0x275   :  { %4250 = vmatpush1.msra.mxu0 %v11662_v60  ;;  %4499 = vmatpush1.msra.mxu1 %v11561_v9  ;;  %v11671_v9 = vand.u32 4294901760, %v9025_v47  ;;  %v11679_v47 = vld [vmem:[#allocation15_spill] sm:$0xff]  ;;  %v11689_v60 = vld [vmem:[#allocation109_spill] sm:$0xff] }
 0x276   :  { %4020 = vmatmul.mubr.f32.gmra.mxu0 %v9083_v59  ;;  %4173 = vmatmul.mubr.f32.gmra.mxu1 %v11663_v15  ;;  %v11695_v59 = vld [vmem:[#allocation107_spill] sm:$0xff] }
 0x277   :  { %4254 = vmatprep.subr.mxu0 %v11664_v12  ;;  %4501 = vmatprep.subr.mxu1 %v11665_v7  ;;  %v11693_v12 = vld [vmem:[#allocation5_spill] sm:$0xff] }
 0x278   :  { %4258 = vmatpush1.msra.mxu0 %v11667_v48  ;;  %4503 = vmatpush1.msra.mxu1 %v11668_v62  ;;  %v11694_v7 = vand.u32 4294901760, %v11693_v12  ;;  %v11698_v48 = vld [vmem:[#allocation119_spill] sm:$0xff]  ;;  %v11699_v62 = vld [vmem:[#allocation30_spill] sm:$0xff] }
 0x279   :  { %4262 = vmatprep.subr.mxu0 %v11670_v8  ;;  %4505 = vmatprep.subr.mxu1 %v11567_v40  ;;  %v11680_v40 = vand.u32 4294901760, %v11679_v47  ;;  %v11700_v11 = vand.u32 4294901760, %v11699_v62  ;;  %v11702_v8 = vld [vmem:[#allocation56_spill] sm:$0xff]  ;;  %v11711_v47 = vld [vmem:[#allocation81_spill] sm:$0xff] }
 0x27a   :  { %4181 = vmatprep.mubr.f32.mxu1 %v11671_v9  ;;  %4266 = vmatpush1.msra.mxu0 %v11673_v61  ;;  %v11703_v9 = vand.u32 4294901760, %v11702_v8  ;;  %v11705_v61 = vand.u32 4294901760, %v11704_v19  ;;  %v11741_v19 = vld [vmem:[#allocation88_spill] sm:$0xff] }
 0x27b   :  { %4507 = vmatpush1.msra.mxu1 %v11569_v43  ;;  %4270 = vmatprep.subr.mxu0 %v11676_v53  ;;  %v11682_v43 = vand.u32 4294901760, %v9073_v37  ;;  %v11690_v37 = vld [vmem:[#allocation18_spill] sm:$0xff]  ;;  %v11708_v53 = vld [vmem:[#allocation77_spill] sm:$0xff] }
 0x27c   :  { %4185 = vmatmul.mubr.f32.gmra.mxu1 %v11674_v4  ;;  %4509 = vmatprep.subr.mxu1 %v11677_v28  ;;  %v11691_v15 = vand.u32 4294901760, %v11690_v37  ;;  %v11706_v4 = vld [vmem:[#allocation67_spill] sm:$0xff]  ;;  %v11709_v28 = vld [vmem:[#allocation34_spill] sm:$0xff] }
 0x27d   :  { %4274 = vmatpush1.msra.mxu0 %v11678_v52  ;;  %4511 = vmatpush1.msra.mxu1 %v11573_v24  ;;  %v11687_v24 = vld [vmem:[#allocation59_spill] sm:$0xff]  ;;  %v11710_v52 = vand.u32 4294901760, %v11709_v28 }
 0x27e   :  { %4278 = vmatprep.subr.mxu0 %v11680_v40  ;;  %4513 = vmatprep.subr.mxu1 %v11681_v0  ;;  %v11712_v40 = vld [vmem:[#allocation40_spill] sm:$0xff]  ;;  %v11747_v28 = vld [vmem:[#allocation55_spill] sm:$0xff] }
 0x27f   :  { %4193 = vmatprep.mubr.f32.mxu1 %v11682_v43  ;;  %4282 = vmatpush1.msra.mxu0 %v11683_v41  ;;  %v11713_v0 = vand.u32 4294901760, %v11712_v40  ;;  %v11716_v41 = vld [vmem:[#allocation87_spill] sm:$0xff]  ;;  %v11750_v40 = vld [vmem:[#allocation70_spill] sm:$0xff] }
 0x280   :  { %4515 = vmatpush1.msra.mxu1 %v11684_v49  ;;  %4286 = vmatprep.subr.mxu0 %v11686_v36  ;;  %v11717_v49 = vld [vmem:[#allocation16_spill] sm:$0xff] }
 0x281   :  { %4197 = vmatmul.mubr.f32.gmra.mxu1 %v11685_v29  ;;  %4517 = vmatprep.subr.mxu1 %v11687_v24  ;;  %v11718_v38 = vand.u32 4294901760, %v11717_v49  ;;  %v11719_v29 = vld [vmem:[#allocation64_spill] sm:$0xff]  ;;  %v11721_v24 = vld [vmem:[#allocation50_spill] sm:$0xff]  ;;  %v11755_v49 = vld [vmem:[#allocation35_spill] sm:$0xff] }
 0x282   :  { %4290 = vmatpush1.msra.mxu0 %v11688_v10  ;;  %4519 = vmatpush1.msra.mxu1 %v11689_v60  ;;  %v11720_v36 = vand.u32 4294901760, %v11719_v29  ;;  %v11722_v10 = vand.u32 4294901760, %v11721_v24  ;;  %v11723_v60 = vld [vmem:[#allocation48_spill] sm:$0xff] }
 0x283   :  { %4294 = vmatprep.subr.mxu0 %v11691_v15  ;;  %4521 = vmatprep.subr.mxu1 %v11692_v2  ;;  %v11726_v15 = vld [vmem:[#allocation26_spill] sm:$0xff]  ;;  %v11727_v2 = vld [vmem:[#allocation21_spill] sm:$0xff] }
 0x284   :  { %4298 = vmatpush1.msra.mxu0 %v11694_v7  ;;  %4523 = vmatpush1.msra.mxu1 %v11695_v59  ;;  %v11728_v12 = vand.u32 4294901760, %v11727_v2  ;;  %v11729_v7 = vld [vmem:[#allocation20_spill] sm:$0xff] }
 0x285   :  { %4302 = vmatprep.subr.mxu0 %v11697_v22  ;;  %4525 = vmatprep.subr.mxu1 %v11698_v48  ;;  %v11734_v22 = vld [vmem:[#allocation36_spill] sm:$0xff]  ;;  %v11735_v48 = vld [vmem:[#allocation58_spill] sm:$0xff] }
 0x286   :  { %4306 = vmatpush1.msra.mxu0 %v11700_v11  ;;  %4527 = vmatpush1.msra.mxu1 %v11701_v34  ;;  %v11736_v62 = vand.u32 4294901760, %v11735_v48  ;;  %v11737_v11 = vld [vmem:[#allocation23_spill] sm:$0xff]  ;;  %v11738_v34 = vld [vmem:[#allocation29_spill] sm:$0xff]  ;;  %v11782_v48 = vld [vmem:[#allocation84_spill] sm:$0xff] }
 0x287   :  { %4310 = vmatprep.subr.mxu0 %v11703_v9  ;;  %4529 = vmatprep.subr.mxu1 %v8105_v16  ;;  %v11714_v16 = vld [vmem:[#allocation13_spill] sm:$0xff]  ;;  %v11739_v8 = vand.u32 4294901760, %v11738_v34  ;;  %v11740_v9 = vld [vmem:[#allocation60_spill] sm:$0xff]  ;;  %v11791_v34 = vld [vmem:[#allocation126_spill] sm:$0xff] }
 0x288   :  { %4314 = vmatpush1.msra.mxu0 %v11705_v61  ;;  %4531 = vmatpush1.msra.mxu1 %v11706_v4  ;;  %v11715_v43 = vand.u32 4294901760, %v11714_v16  ;;  %v11742_v61 = vand.u32 4294901760, %v11741_v19  ;;  %v11743_v4 = vld [vmem:[#allocation27_spill] sm:$0xff]  ;;  %v11752_v16 = vld [vmem:[#allocation33_spill] sm:$0xff] }
 0x289   :  { %4318 = vmatprep.subr.mxu0 %v11707_v27  ;;  %4533 = vmatprep.subr.mxu1 %v11708_v53  ;;  %v11746_v53 = vld [vmem:[#allocation31_spill] sm:$0xff] }
 0x28a   :  { %4322 = vmatpush1.msra.mxu0 %v11710_v52  ;;  %4535 = vmatpush1.msra.mxu1 %v11711_v47  ;;  %v11748_v52 = vand.u32 4294901760, %v11747_v28  ;;  %v11749_v47 = vld [vmem:[#allocation42_spill] sm:$0xff] }
 0x28b   :  { %4326 = vmatprep.subr.mxu0 %v11713_v0  ;;  %4537 = vmatprep.subr.mxu1 %v11594_v54  ;;  %v11724_v54 = vld [vmem:[#allocation17_spill] sm:$0xff]  ;;  %v11751_v0 = vand.u32 4294901760, %v11750_v40 }
 0x28c   :  { %4330 = vmatpush1.msra.mxu0 %v11715_v43  ;;  %4539 = vmatpush1.msra.mxu1 %v11716_v41  ;;  %v11725_v37 = vand.u32 4294901760, %v11724_v54  ;;  %v11753_v43 = vld [vmem:[#allocation86_spill] sm:$0xff]  ;;  %v11762_v54 = vld [vmem:[#allocation37_spill] sm:$0xff] }
 0x28d   :  { %4334 = vmatprep.subr.mxu0 %v11718_v38  ;;  %4541 = vmatprep.subr.mxu1 %v11597_v57  ;;  %v11730_v57 = vld [vmem:[#allocation19_spill] sm:$0xff]  ;;  %v11754_v41 = vand.u32 4294901760, %v11753_v43  ;;  %v11756_v38 = vld [vmem:[#allocation104_spill] sm:$0xff] }
 0x28e   :  { %4338 = vmatpush2.msra.mxu0 %v11720_v36  ;;  %4543 = vmatpush1.msra.mxu1 %v8215_v13  ;;  %v11731_v59 = vand.u32 4294901760, %v11730_v57  ;;  %v11732_v13 = vld [vmem:[#allocation82_spill] sm:$0xff]  ;;  %v11757_v29 = vand.u32 4294901760, %v11756_v38 }
 0x28f   :  { %4342 = vmatprep.subr.mxu0 %v11722_v10  ;;  %4545 = vmatprep.subr.mxu1 %v11723_v60  ;;  %v11733_v6 = vand.u32 4294901760, %v11732_v13  ;;  %v11758_v36 = vld [vmem:[#allocation74_spill] sm:$0xff]  ;;  %v11760_v10 = vld [vmem:[#allocation111_spill] sm:$0xff] }
 0x290   :  { %4346 = vmatpush2.msra.mxu0 %v11725_v37  ;;  %4547 = vmatpush1.msra.mxu1 %v11726_v15  ;;  %v11759_v24 = vand.u32 4294901760, %v11758_v36  ;;  %v11761_v60 = vand.u32 4294901760, %v11760_v10  ;;  %v11763_v37 = vand.u32 4294901760, %v11762_v54  ;;  %v11764_v15 = vld [vmem:[#allocation93_spill] sm:$0xff] }
 0x291   :  { %4350 = vmatprep.subr.mxu0 %v11728_v12  ;;  %4549 = vmatprep.subr.mxu1 %v11729_v7  ;;  %v11765_v2 = vand.u32 4294901760, %v11764_v15 }
 0x292   :  { %4354 = vmatpush2.msra.mxu0 %v11731_v59  ;;  %4551 = vmatpush1.msra.mxu1 %v11605_v18  ;;  %v11744_v18 = vld [vmem:[#allocation68_spill] sm:$0xff] }
 0x293   :  { %4358 = vmatprep.subr.mxu0 %v11733_v6  ;;  %4553 = vmatprep.subr.mxu1 %v11734_v22  ;;  %v11745_v27 = vand.u32 4294901760, %v11744_v18  ;;  %v11780_v22 = vld [vmem:[#allocation45_spill] sm:$0xff] }
 0x294   :  { %4362 = vmatpush2.msra.mxu0 %v11736_v62  ;;  %4555 = vmatpush1.msra.mxu1 %v11737_v11  ;;  %v11787_v62 = vld [vmem:[#allocation47_spill] sm:$0xff]  ;;  %v11789_v11 = vld [vmem:[#allocation134_spill] sm:$0xff] }
 0x295   :  { %4366 = vmatprep.subr.mxu0 %v11739_v8  ;;  %4557 = vmatprep.subr.mxu1 %v11740_v9  ;;  %v11792_v8 = vld [vmem:[#allocation53_spill] sm:$0xff] }
 0x296   :  { %4370 = vmatpush2.msra.mxu0 %v11742_v61  ;;  %4559 = vmatpush2.msra.mxu1 %v11743_v4  ;;  %v11794_v9 = vld [vmem:[#allocation125_spill] sm:$0xff] }
 0x297   :  { %4374 = vmatprep.subr.mxu0 %v11745_v27  ;;  %4561 = vmatprep.subr.mxu1 %v11746_v53 }
 0x298   :  { %4378 = vmatpush2.msra.mxu0 %v11748_v52  ;;  %4563 = vmatpush2.msra.mxu1 %v11749_v47 }
 0x299   :  { %4382 = vmatprep.subr.mxu0 %v11751_v0  ;;  %4565 = vmatprep.subr.mxu1 %v11752_v16 }
 0x29a   :  { %4386 = vmatpush2.msra.mxu0 %v11754_v41  ;;  %4567 = vmatpush2.msra.mxu1 %v11755_v49 }
 0x29b   :  { %4390 = vmatprep.subr.mxu0 %v11757_v29  ;;  %4569 = vmatprep.subr.mxu1 %v11620_v56  ;;  %v11766_v56 = vld [vmem:[#allocation108_spill] sm:$0xff] }
 0x29c   :  { %4394 = vmatpush2.msra.mxu0 %v11759_v24  ;;  %4571 = vmatpush2.msra.mxu1 %v11622_v35  ;;  %v11767_v12 = vand.u32 4294901760, %v11766_v56  ;;  %v11768_v35 = vld [vmem:[#allocation124_spill] sm:$0xff] }
 0x29d   :  { %4398 = vmatprep.subr.mxu0 %v11761_v60  ;;  %4573 = vmatprep.subr.mxu1 %v11624_v58  ;;  %v11769_v7 = vand.u32 4294901760, %v11768_v35  ;;  %v11770_v58 = vld [vmem:[#allocation117_spill] sm:$0xff] }
 0x29e   :  { %4402 = vmatpush2.msra.mxu0 %v11763_v37  ;;  %4575 = vmatpush2.msra.mxu1 %v11626_v63  ;;  %v11771_v57 = vand.u32 4294901760, %v11770_v58  ;;  %v11772_v63 = vld [vmem:[#allocation116_spill] sm:$0xff] }
 0x29f   :  { %4406 = vmatprep.subr.mxu0 %v11765_v2  ;;  %4577 = vmatprep.subr.mxu1 %v11628_v31  ;;  %v11773_v59 = vand.u32 4294901760, %v11772_v63  ;;  %v11774_v31 = vld [vmem:[#allocation114_spill] sm:$0xff] }
 0x2a0   :  { %4410 = vmatpush2.msra.mxu0 %v11767_v12  ;;  %4579 = vmatpush2.msra.mxu1 %v11630_v44  ;;  %v11775_v13 = vand.u32 4294901760, %v11774_v31  ;;  %v11776_v44 = vand.u32 4294901760, %v8896_v32  ;;  %v11784_v32 = vld [vmem:[#allocation102_spill] sm:$0xff] }
 0x2a1   :  { %4414 = vmatprep.subr.mxu0 %v11769_v7  ;;  %4581 = vmatprep.subr.mxu1 %v11631_v3  ;;  %v11777_v3 = vand.u32 4294901760, %v8826_v39 }
 0x2a2   :  { %4418 = vmatpush2.msra.mxu0 %v11771_v57  ;;  %4583 = vmatpush2.msra.mxu1 %v11632_v21  ;;  %v11778_v21 = vld [vmem:[#allocation132_spill] sm:$0xff] }
 0x2a3   :  { %4422 = vmatprep.subr.mxu0 %v11773_v59  ;;  %4585 = vmatprep.subr.mxu1 %v11633_v45  ;;  %v11779_v6 = vand.u32 4294901760, %v11778_v21  ;;  %v11781_v45 = vand.u32 4294901760, %v8889_v50  ;;  %v11790_v50 = vand.u32 4294901760, %v11789_v11 }
 0x2a4   :  { %4426 = vmatpush2.msra.mxu0 %v11775_v13  ;;  %4587 = vmatpush2.msra.mxu1 %v11634_v25  ;;  %v11783_v25 = vand.u32 4294901760, %v8996_v20  ;;  %v11793_v20 = vld [vmem:[#allocation118_spill] sm:$0xff] }
 0x2a5   :  { %4430 = vmatprep.subr.mxu0 %v11776_v44  ;;  %4589 = vmatprep.subr.mxu1 %v11635_v23  ;;  %v11785_v23 = vld [vmem:[#allocation127_spill] sm:$0xff] }
 0x2a6   :  { %4434 = vmatpush2.msra.mxu0 %v11777_v3  ;;  %4591 = vmatpush2.msra.mxu1 %v11636_v1  ;;  %v11786_v39 = vand.u32 4294901760, %v11785_v23  ;;  %v11788_v1 = vand.u32 4294901760, %v9012_v55  ;;  %v11796_v55 = vld [vmem:[#allocation133_spill] sm:$0xff] }
 0x2a7   :  { %4438 = vmatprep.subr.mxu0 %v11779_v6  ;;  %4593 = vmatprep.subr.mxu1 %v11780_v22 }
 0x2a8   :  { %4442 = vmatpush2.msra.mxu0 %v11781_v45  ;;  %4595 = vmatpush2.msra.mxu1 %v11782_v48 }
 0x2a9   :  { %4446 = vmatprep.subr.mxu0 %v11783_v25  ;;  %4597 = vmatprep.subr.mxu1 %v11784_v32 }
 0x2aa   :  { %4450 = vmatpush2.msra.mxu0 %v11786_v39  ;;  %4599 = vmatpush2.msra.mxu1 %v11787_v62 }
 0x2ab   :  { %4454 = vmatprep.subr.mxu0 %v11788_v1  ;;  %4601 = vmatprep.subr.mxu1 %v8778_v46  ;;  %v11795_v46 = vld [vmem:[#allocation129_spill] sm:$0xff] }
 0x2ac   :  { %4458 = vmatpush2.msra.mxu0 %v11790_v50  ;;  %4460 = vmatprep.mubr.f32.mxu0 %v11791_v34 }
 0x2ad   :  { %4603 = vmatpush2.msra.mxu1 %v11792_v8  ;;  %4462 = vmatmul.mubr.f32.vlgmr.msra.gmra.mxu0 %v11793_v20 }
 0x2ae   :  { %4605 = vmatprep.subr.mxu1 %v11642_v14  ;;  %4468 = vmatprep.mubr.f32.mxu0 %v11794_v9  ;;  %v11797_v14 = vld [vmem:[#allocation135_spill] sm:$0xff] }
 0x2af   :  { %4607 = vmatpush2.msra.mxu1 %v11644_v51  ;;  %4621 = vmatprep.mubr.f32.mxu1 %v11791_v34  ;;  %v9467_v51 = vpop.f32.mrf.mxu0 }
 0x2b0   :  { %4609 = vmatprep.subr.mxu1 %v8851_v30  ;;  %v11798_v30 = vld [vmem:[#allocation136_spill] sm:$0xff] }
 0x2b1   :  { %4611 = vmatpush2.msra.mxu1 %v8833_v26  ;;  %4470 = vmatmul.mubr.f32.gmra.mxu0 %v11795_v46  ;;  %v11799_v26 = vld [vmem:[#allocation137_spill] sm:$0xff] }
 0x2b2   :  { %4613 = vmatprep.subr.mxu1 %v11648_v33  ;;  %4476 = vmatprep.mubr.f32.mxu0 %v11796_v55  ;;  %v9469_v33 = vpop.f32.mrf.mxu0 }
 0x2b3   :  { %4615 = vmatpush2.msra.mxu1 %v11650_v5 }
 0x2b4   :  { %4617 = vmatprep.subr.mxu1 %v11652_v17  ;;  %v9471_v5 = vpop.f32.mrf.mxu0  ;;  %v9473_v17 = vpop.f32.mrf.mxu1 }
 0x2b5   :  { %4619 = vmatpush2.msra.mxu1 %v11654_v42  ;;  %4478 = vmatmul.mubr.f32.gmra.mxu0 %v11797_v14 }
 0x2b6   :  { %4623 = vmatmul.mubr.f32.vlgmr.msra.gmra.mxu1 %v11793_v20  ;;  %4484 = vmatprep.mubr.f32.mxu0 %v11798_v30  ;;  %v9475_v42 = vpop.f32.mrf.mxu0  ;;  %v9477_v19 = vpop.f32.mrf.mxu1 }
 0x2b7   :  { %4629 = vmatprep.mubr.f32.mxu1 %v11794_v9 }
 0x2b8   :  { %v9479_v61 = vpop.f32.mrf.mxu0  ;;  %v9481_v4 = vpop.f32.mrf.mxu1 }
 0x2b9   :  { %4486 = vmatmul.mubr.f32.gmra.mxu0 %v11799_v26 }
 0x2ba   :  { %4631 = vmatmul.mubr.f32.gmra.mxu1 %v11795_v46  ;;  %v9483_v18 = vpop.f32.mrf.mxu0  ;;  %v9485_v27 = vpop.f32.mrf.mxu1 }
 0x2bb   :  { %4637 = vmatprep.mubr.f32.mxu1 %v11796_v55 }
 0x2bc   :  { %v9487_v53 = vpop.f32.mrf.mxu0  ;;  %v9489_v28 = vpop.f32.mrf.mxu1 }
 0x2be   :  { %4639 = vmatmul.mubr.f32.gmra.mxu1 %v11797_v14  ;;  %v9491_v52 = vpop.f32.mrf.mxu0  ;;  %v9493_v47 = vpop.f32.mrf.mxu1 }
 0x2bf   :  { %4645 = vmatprep.mubr.f32.mxu1 %v11798_v30 }
 0x2c0   :  { %v9495_v40 = vpop.f32.mrf.mxu0  ;;  %v9497_v0 = vpop.f32.mrf.mxu1 }
 0x2c2   :  { %4647 = vmatmul.mubr.f32.gmra.mxu1 %v11799_v26  ;;  %v9499_v16 = vpop.f32.mrf.mxu0  ;;  %v9501_v43 = vpop.f32.mrf.mxu1 }
 0x2c4   :  { %v9503_v41 = vpop.f32.mrf.mxu0  ;;  %v9505_v49 = vpop.f32.mrf.mxu1 }
 0x2c6   :  { %v9507_v38 = vpop.f32.mrf.mxu0  ;;  %v9509_v29 = vpop.f32.mrf.mxu1 }
 0x2c8   :  { %v9511_v36 = vpop.f32.mrf.mxu0  ;;  %v9513_v24 = vpop.f32.mrf.mxu1 }
 0x2ca   :  { %v9515_v10 = vpop.f32.mrf.mxu0  ;;  %v9517_v60 = vpop.f32.mrf.mxu1 }
 0x2cc   :  { %v9519_v54 = vpop.f32.mrf.mxu0  ;;  %v9521_v37 = vpop.f32.mrf.mxu1 }
 0x2ce   :  { %v9523_v15 = vpop.f32.mrf.mxu0  ;;  %v9525_v2 = vpop.f32.mrf.mxu1 }
 0x2d0   :  { %v2993_v56 = vpop.f32.mrf.mxu0  ;;  %v9527_v12 = vpop.f32.mrf.mxu1 }
 0x2d2   :  { %v9529_v35 = vpop.f32.mrf.mxu0  ;;  %v9531_v7 = vpop.f32.mrf.mxu1 }
 0x2d3   :  { %11800 = vst [vmem:[#allocation83_spill] sm:$0xff] %v9531_v7  ;;  %v11824_v7 = vld [vmem:[#allocation57_spill] sm:$0xff] }
 0x2d4   :  { %v9533_v58 = vpop.f32.mrf.mxu0  ;;  %v3154_v57 = vpop.f32.mrf.mxu1 }
 0x2d6   :  { %v9535_v63 = vpop.f32.mrf.mxu0  ;;  %v9537_v59 = vpop.f32.mrf.mxu1 }
 0x2d8   :  { %v9539_v31 = vpop.f32.mrf.mxu0  ;;  %v9541_v13 = vpop.f32.mrf.mxu1 }
 0x2da   :  { %v9543_v44 = vpop.f32.mrf.mxu0  ;;  %v9545_v3 = vpop.f32.mrf.mxu1 }
 0x2dc   :  { %v9547_v21 = vpop.f32.mrf.mxu0  ;;  %v9549_v6 = vpop.f32.mrf.mxu1 }
 0x2dd   :  { %11801 = vst [vmem:[#allocation96_spill] sm:$0xff] %v9547_v21 }
 0x2de   :  { %v9551_v22 = vpop.f32.mrf.mxu0  ;;  %v9553_v45 = vpop.f32.mrf.mxu1 }
 0x2df   :  { %11802 = vst [vmem:[#allocation91_spill] sm:$0xff] %v9551_v22  ;;  %11803 = vst [vmem:[#allocation6_spill] sm:$0xff] %v9553_v45 }
 0x2e0   :  { %v3323_v48 = vpop.f32.mrf.mxu0  ;;  %v9555_v25 = vpop.f32.mrf.mxu1 }
 0x2e1   :  { %11804 = vst [vmem:[#allocation72_spill] sm:$0xff] %v9555_v25 }
 0x2e2   :  { %v9557_v32 = vpop.f32.mrf.mxu0  ;;  %v9559_v23 = vpop.f32.mrf.mxu1 }
 0x2e3   :  { %11805 = vst [vmem:[#allocation98_spill] sm:$0xff] %v9559_v23 }
 0x2e4   :  { %v9561_v39 = vpop.f32.mrf.mxu0 }
 0x2e6   :  { %v9565_v1 = vpop.f32.mrf.mxu0 }
 0x2e8   :  { %v9563_v62 = vpop.f32.mrf.mxu1  ;;  %v9569_v50 = vpop.f32.mrf.mxu0 }
 0x2e9   :  { %11806 = vst [vmem:[#allocation41_spill] sm:$0xff] %v9569_v50 }
 0x2ea   :  { %v9567_v11 = vpop.f32.mrf.mxu1  ;;  %v9573_v8 = vpop.f32.mrf.mxu0 }
 0x2eb   :  { %11807 = vst [vmem:[#allocation69_spill] sm:$0xff] %v9573_v8 }
 0x2ee   :  { %v9571_v34 = vpop.f32.mrf.mxu1  ;;  %v9577_v9 = vpop.f32.mrf.mxu0 }
 0x2ef   :  { %11809 = vst [vmem:[#allocation73_spill] sm:$0xff] %v9577_v9 }
 0x2f0   :  { %v9575_v20 = vpop.f32.mrf.mxu1  ;;  %v9581_v55 = vpop.f32.mrf.mxu0 }
 0x2f1   :  { %11808 = vst [vmem:[#allocation106_spill] sm:$0xff] %v9575_v20  ;;  %11811 = vst [vmem:[#allocation79_spill] sm:$0xff] %v9581_v55 }
 0x2f4   :  { %v9579_v46 = vpop.f32.mrf.mxu1 }
 0x2f5   :  { %11810 = vst [vmem:[#allocation63_spill] sm:$0xff] %v9579_v46 }
 0x2f6   :  { %v9583_v14 = vpop.f32.mrf.mxu1 }
 0x2f7   :  { %11812 = vst [vmem:[#allocation99_spill] sm:$0xff] %v9583_v14  ;;  %v11821_v14 = vld [vmem:[#allocation97_spill] sm:$0xff] }
 0x2f8   :  { %v1854_v50 = vadd.f32 %v9467_v51, %v11821_v14 }
 0x2f9   :  { %v9585_v26 = vpop.f32.mrf.mxu1 }
 0x2fa   :  { %11813 = vst [vmem:[#allocation75_spill] sm:$0xff] %v9585_v26  ;;  %v11822_v26 = vld [vmem:[#allocation66_spill] sm:$0xff] }
 0x2fb   :  { %v9589_v25 = vpop.f32.mrf.mxu1  ;;  %v1856_v45 = vadd.f32 %v9469_v33, %v11822_v26 }
 0x2fc   :  { %11814 = vst [vmem:[#allocation113_spill] sm:$0xff] %v9589_v25  ;;  %v2295_v25 = vadd.f32 %v9473_v17, %v1854_v50  ;;  %v11826_v50 = vld [vmem:[#allocation120_spill] sm:$0xff] }
 0x2fd   :  { %v1886_v14 = vadd.f32 %v9479_v61, %v11826_v50 }
 0x325   :  { %v3991_v30 = vpop.f32.mrf.mxu0 }
 0x327   :  { %v9587_v23 = vpop.f32.mrf.mxu0 }
 0x32b   :  { %v9591_v22 = vpop.f32.mrf.mxu0 }
 0x32c   :  { %11815 = vst [vmem:[#allocation24_spill] sm:$0xff] %v9591_v22 }
 0x32d   :  { %v9595_v20 = vpop.f32.mrf.mxu0 }
 0x32e   :  { %11817 = vst [vmem:[#allocation71_spill] sm:$0xff] %v9595_v20  ;;  %v1870_v20 = vadd.f32 %v9471_v5, %v11824_v7  ;;  %v11827_v7 = vld [vmem:[#allocation32_spill] sm:$0xff] }
 0x330   :  { %v9593_v8 = vpop.f32.mrf.mxu1  ;;  %v9599_v46 = vpop.f32.mrf.mxu0  ;;  %v2303_v51 = vadd.f32 %v9481_v4, %v1870_v20  ;;  %v1888_v4 = vadd.f32 %v9483_v18, %v11827_v7  ;;  %v11828_v20 = vld [vmem:[#allocation12_spill] sm:$0xff] }
 0x331   :  { %11816 = vst [vmem:[#allocation95_spill] sm:$0xff] %v9593_v8  ;;  %11819 = vst [vmem:[#allocation11_spill] sm:$0xff] %v9599_v46  ;;  %v2522_v46 = vadd.f32 %v9495_v40, %v2295_v25 }
 0x332   :  { %v9597_v9 = vpop.f32.mrf.mxu1  ;;  %v9608_v21 = vpop.f32.mrf.mxu0 }
 0x333   :  { %11818 = vst [vmem:[#allocation28_spill] sm:$0xff] %v9597_v9  ;;  %11823 = vst [vmem:[#allocation44_spill] sm:$0xff] %v9608_v21  ;;  %v2297_v9 = vadd.f32 %v9477_v19, %v1856_v45  ;;  %v2693_v17 = vadd.f32 %v9505_v49, %v2522_v46  ;;  %v2532_v19 = vadd.f32 %v9503_v41, %v2303_v51 }
 0x334   :  { %v2313_v41 = vadd.f32 %v9493_v47, %v1888_v4  ;;  %v11836_v4 = vld [vmem:[#allocation24_spill] sm:$0xff] }
 0x335   :  { %v2524_v33 = vadd.f32 %v9499_v16, %v2297_v9  ;;  %v2311_v16 = vadd.f32 %v9489_v28, %v1886_v14  ;;  %v2705_v61 = vadd.f32 %v9513_v24, %v2532_v19  ;;  %v11831_v14 = vld [vmem:[#allocation83_spill] sm:$0xff] }
 0x336   :  { %v9601_v55 = vpop.f32.mrf.mxu1  ;;  %v9623_v26 = vpop.f32.mrf.mxu0  ;;  %v2544_v47 = vadd.f32 %v9515_v10, %v2313_v41  ;;  %v11841_v41 = vld [vmem:[#allocation63_spill] sm:$0xff] }
 0x337   :  { %11820 = vst [vmem:[#allocation22_spill] sm:$0xff] %v9601_v55  ;;  %v11825_v55 = vld [vmem:[#allocation105_spill] sm:$0xff]  ;;  %v2695_v40 = vadd.f32 %v9509_v29, %v2524_v33  ;;  %v2542_v29 = vadd.f32 %v9511_v36, %v2311_v16  ;;  %v3002_v28 = vadd.f32 %v9533_v58, %v2705_v61 }
 0x338   :  { %v9610_v22 = vpop.f32.mrf.mxu1  ;;  %v1872_v8 = vadd.f32 %v9475_v42, %v11825_v55  ;;  %v2994_v42 = vadd.f32 %v2993_v56, %v2693_v17  ;;  %v9640_v56 = vpop.f32.mrf.mxu0  ;;  %v11830_v50 = vld [vmem:[#allocation95_spill] sm:$0xff] }
 0x339   :  { %v2996_v45 = vadd.f32 %v9529_v35, %v2695_v40  ;;  %v11829_v35 = vld [vmem:[#allocation14_spill] sm:$0xff]  ;;  %v2717_v36 = vadd.f32 %v9521_v37, %v2542_v29  ;;  %v3163_v55 = vadd.f32 %v9541_v13, %v3002_v28 }
 0x33a   :  { %v2305_v5 = vadd.f32 %v9485_v27, %v1872_v8  ;;  %v3155_v25 = vadd.f32 %v3154_v57, %v2994_v42  ;;  %v1902_v27 = vadd.f32 %v9487_v53, %v11828_v20  ;;  %v1904_v57 = vadd.f32 %v9491_v52, %v11829_v35  ;;  %v11837_v16 = vld [vmem:[#allocation28_spill] sm:$0xff]  ;;  %v11840_v20 = vld [vmem:[#allocation69_spill] sm:$0xff] }
 0x33b   :  { %v2719_v52 = vadd.f32 %v9525_v2, %v2544_v47 }
 0x33c   :  { %v9625_v21 = vpop.f32.mrf.mxu1  ;;  %v2534_v49 = vadd.f32 %v9507_v38, %v2305_v5  ;;  %v3157_v38 = vadd.f32 %v9537_v59, %v2996_v45  ;;  %v3324_v24 = vadd.f32 %v3323_v48, %v3155_v25  ;;  %v2319_v53 = vadd.f32 %v9497_v0, %v1902_v27  ;;  %v11839_v45 = vld [vmem:[#allocation72_spill] sm:$0xff] }
 0x33d   :  { %v2321_v59 = vadd.f32 %v9501_v43, %v1904_v57  ;;  %v3010_v0 = vadd.f32 %v9539_v31, %v2717_v36  ;;  %v11844_v36 = vld [vmem:[#allocation98_spill] sm:$0xff] }
 0x33e   :  { %v9642_v8 = vpop.f32.mrf.mxu1  ;;  %v2707_v18 = vadd.f32 %v9517_v60, %v2534_v49  ;;  %v3326_v60 = vadd.f32 %v9557_v32, %v3157_v38  ;;  %v3765_v58 = vadd.f32 %v9563_v62, %v3324_v24  ;;  %v2552_v48 = vadd.f32 %v9519_v54, %v2319_v53  ;;  %v11842_v38 = vld [vmem:[#allocation71_spill] sm:$0xff]  ;;  %v11843_v35 = vld [vmem:[#allocation22_spill] sm:$0xff] }
 0x33f   :  { %v2554_v62 = vadd.f32 %v9523_v15, %v2321_v59  ;;  %v3012_v54 = vadd.f32 %v9543_v44, %v2719_v52  ;;  %v3171_v2 = vadd.f32 %v9549_v6, %v3010_v0  ;;  %v11833_v15 = vld [vmem:[#allocation6_spill] sm:$0xff]  ;;  %v11847_v52 = vld [vmem:[#allocation11_spill] sm:$0xff] }
 0x340   :  { %v3004_v46 = vadd.f32 %v9535_v63, %v2707_v18  ;;  %v3340_v63 = vadd.f32 %v9561_v39, %v3163_v55  ;;  %v3767_v13 = vadd.f32 %v9567_v11, %v3326_v60  ;;  %v3992_v32 = vadd.f32 %v3991_v30, %v3765_v58  ;;  %v11832_v30 = vld [vmem:[#allocation96_spill] sm:$0xff]  ;;  %v11835_v6 = vld [vmem:[#allocation106_spill] sm:$0xff]  ;;  %v11845_v55 = vld [vmem:[#allocation73_spill] sm:$0xff] }
 0x341   :  { %v9660_v10 = vpop.f32.mrf.mxu1  ;;  %v2729_v43 = vadd.f32 %v9527_v12, %v2552_v48  ;;  %v2731_v11 = vadd.f32 %v11831_v14, %v2554_v62  ;;  %v3173_v19 = vadd.f32 %v11833_v15, %v3012_v54  ;;  %v11834_v12 = vld [vmem:[#allocation41_spill] sm:$0xff]  ;;  %v11846_v60 = vld [vmem:[#allocation99_spill] sm:$0xff] }
 0x342   :  { %v3165_v51 = vadd.f32 %v9545_v3, %v3004_v46  ;;  %v3773_v17 = vadd.f32 %v9571_v34, %v3340_v63  ;;  %v3994_v3 = vadd.f32 %v9587_v23, %v3767_v13  ;;  %v4163_v39 = vadd.f32 %v11830_v50, %v3992_v32  ;;  %v11838_v23 = vld [vmem:[#allocation91_spill] sm:$0xff] }
 0x343   :  { %v3018_v5 = vadd.f32 %v11832_v30, %v2729_v43  ;;  %v3356_v40 = vadd.f32 %v11834_v12, %v3171_v2  ;;  %v4200_v44 = vpop.f32.mrf.mxu1  ;;  %v3020_v61 = vadd.f32 %v11838_v23, %v2731_v11  ;;  %v3358_v27 = vadd.f32 %v11840_v20, %v3173_v19  ;;  %v11848_v32 = vld [vmem:[#allocation79_spill] sm:$0xff]  ;;  %v11850_v2 = vld [vmem:[#allocation44_spill] sm:$0xff] }
 0x344   :  { %v3342_v31 = vadd.f32 %v9565_v1, %v3165_v51  ;;  %v4002_v1 = vadd.f32 %v11836_v4, %v3773_v17  ;;  %v4165_v34 = vadd.f32 %v11837_v16, %v3994_v3 }
 0x345   :  { %v3179_v25 = vadd.f32 %v11839_v45, %v3018_v5  ;;  %v3781_v29 = vadd.f32 %v11841_v41, %v3356_v40  ;;  %v3181_v46 = vadd.f32 %v11844_v36, %v3020_v61  ;;  %v3783_v58 = vadd.f32 %v11846_v60, %v3358_v27 }
 0x346   :  { %v3775_v7 = vadd.f32 %v11835_v6, %v3342_v31  ;;  %v4175_v57 = vadd.f32 %v11843_v35, %v4002_v1 }
 0x347   :  { %v4012_v0 = vadd.f32 %v11847_v52, %v3781_v29  ;;  %v3374_v62 = vadd.f32 %v11848_v32, %v3181_v46  ;;  %v4014_v31 = vadd.f32 %v11850_v2, %v3783_v58 }
 0x348   :  { %v4004_v24 = vadd.f32 %v11842_v38, %v3775_v7 }
 0x349   :  { %v4187_v17 = vadd.f32 %v9625_v21, %v4012_v0  ;;  %v4189_v30 = vadd.f32 %v9642_v8, %v4014_v31 }
 0x34a   :  { %v4177_v51 = vadd.f32 %v9610_v22, %v4004_v24 }
 0x36d   :  { %v4463_v9 = vpop.f32.mrf.mxu0 }
 0x36e   :  { %v4464_v49 = vadd.f32 %v4463_v9, %v4163_v39  ;;  %v3372_v9 = vadd.f32 %v11845_v55, %v3179_v25  ;;  %v11851_v39 = vld [vmem:[#allocation113_spill] sm:$0xff] }
 0x36f   :  { %v4465_v37 = vpop.f32.mrf.mxu0  ;;  %v3791_v14 = vadd.f32 %v11851_v39, %v3374_v62 }
 0x370   :  { %v4466_v53 = vadd.f32 %v4465_v37, %v4165_v34  ;;  %v11849_v37 = vld [vmem:[#allocation75_spill] sm:$0xff] }
 0x371   :  { %v4471_v33 = vpop.f32.mrf.mxu0  ;;  %v3789_v43 = vadd.f32 %v11849_v37, %v3372_v9  ;;  %v4024_v12 = vadd.f32 %v9640_v56, %v3791_v14 }
 0x372   :  { %v4472_v63 = vadd.f32 %v4471_v33, %v4175_v57 }
 0x373   :  { %v4473_v42 = vpop.f32.mrf.mxu0  ;;  %v4022_v33 = vadd.f32 %v9623_v26, %v3789_v43  ;;  %v4201_v4 = vadd.f32 %v4200_v44, %v4024_v12 }
 0x374   :  { %v4474_v3 = vadd.f32 %v4473_v42, %v4177_v51 }
 0x375   :  { %v4479_v18 = vpop.f32.mrf.mxu0  ;;  %v4199_v21 = vadd.f32 %v9660_v10, %v4022_v33 }
 0x376   :  { %v4624_v28 = vpop.f32.mrf.mxu1  ;;  %v4480_v5 = vadd.f32 %v4479_v18, %v4187_v17 }
 0x377   :  { %v4625_v47 = vadd.f32 %v4624_v28, %v4464_v49  ;;  %v4481_v59 = vpop.f32.mrf.mxu0 }
 0x378   :  { %v4626_v48 = vpop.f32.mrf.mxu1  ;;  %v4482_v40 = vadd.f32 %v4481_v59, %v4189_v30 }
 0x379   :  { %4653 = vst [vmem:[#allocation2] sm:$0xff] %v4625_v47  ;;  %v4627_v13 = vadd.f32 %v4626_v48, %v4466_v53  ;;  %v4487_v11 = vpop.f32.mrf.mxu0 }
 0x37a   :  { %v4632_v54 = vpop.f32.mrf.mxu1  ;;  %v4488_v1 = vadd.f32 %v4487_v11, %v4199_v21 }
 0x37b   :  { %4655 = vst.msk [vmem:[#allocation2 + $0x8] sm:$0xff] %vm4654_vm0, %v4627_v13  ;;  %v4633_v50 = vadd.f32 %v4632_v54, %v4472_v63  ;;  %v4489_v6 = vpop.f32.mrf.mxu0 }
 0x37c   :  { %v4634_v22 = vpop.f32.mrf.mxu1  ;;  %v4490_v16 = vadd.f32 %v4489_v6, %v4201_v4 }
 0x37d   :  { %4656 = vst [vmem:[#allocation2 + $0x10] sm:$0xff] %v4633_v50  ;;  %v4635_v15 = vadd.f32 %v4634_v22, %v4474_v3 }
 0x37e   :  { %v4640_v19 = vpop.f32.mrf.mxu1 }
 0x37f   :  { %4657 = vst.msk [vmem:[#allocation2 + $0x18] sm:$0xff] %vm4654_vm0, %v4635_v15  ;;  %v4641_v42 = vadd.f32 %v4640_v19, %v4480_v5 }
 0x380   :  { %v4642_v7 = vpop.f32.mrf.mxu1 }
 0x381   :  { %4658 = vst [vmem:[#allocation2 + $0x20] sm:$0xff] %v4641_v42  ;;  %v4643_v26 = vadd.f32 %v4642_v7, %v4482_v40 }
 0x382   :  { %v4648_v8 = vpop.f32.mrf.mxu1 }
 0x383   :  { %4659 = vst.msk [vmem:[#allocation2 + $0x28] sm:$0xff] %vm4654_vm0, %v4643_v26  ;;  %v4649_v34 = vadd.f32 %v4648_v8, %v4488_v1 }
 0x384   :  { %v4650_v56 = vpop.f32.mrf.mxu1 }
 0x385   :  { %4660 = vst [vmem:[#allocation2 + $0x30] sm:$0xff] %v4649_v34  ;;  %v4651_v10 = vadd.f32 %v4650_v56, %v4490_v16 }
 0x387   :  { %4661 = vst.msk [vmem:[#allocation2 + $0x38] sm:$0xff] %vm4654_vm0, %v4651_v10 }
 0x388   :  { %4692 = shalt.err (!%p4689_p4)
}
 0x389   :  { %s4704_s9 = smov 256   ;;  %s4705_s2 = smov 16  }
 0x38a   :  { %4673 = dma.vmem_to_hbm [thread:$0]  %s4668_s7, 1024, %s9710_s3, [#allocation3], %s4704_s9, %s4704_s9, %s4705_s2  }
 0x38b   :  { %4701 = dma.done.wait [#allocation3], 1024  }
 0x38c   :  { %4702 = vsyncadd [#allocation3], 4294966272 }
 0x38d   :  { %4677 = vsyncpa [#allocation3], 1 }

// kernel: tpu_custom_call.1
= control target key start
LH: loop header
LB: loop body
LE: loop exit
PB: predicated region body
PF: predicated region fallthrough
CT: control target
= control target key end

     0   :  { %s9707_s0 = inlined_call_operand.vmem [shape: f32[32,768], index: 0, kind: input, shape index: {}]   ;;  %s9708_s1 = inlined_call_operand.vmem [shape: f32[768,192], index: 1, kind: input, shape index: {}]   ;;  %s9709_s2 = inlined_call_operand.vmem [shape: f32[1,192], index: 2, kind: input, shape index: {}]   ;;  %s9710_s3 = inlined_call_operand.hbm [shape: f32[32,192], index: 3, kind: output, shape index: {}]  }
   0x1   :  { %v70_v0 = vld [vmem:[%s9708_s1 + $0xf8] sm:$0xff]  ;;  %v69_v1 = vld [vmem:[%s9708_s1 + $0xf0] sm:$0xff]  ;;  %v68_v2 = vld [vmem:[%s9708_s1 + $0xe8] sm:$0xff] }
   0x2   :  { %v4735_v3 = vand.u32 4294901760, %v70_v0  ;;  %v4737_v4 = vand.u32 4294901760, %v69_v1  ;;  %v4739_v5 = vand.u32 4294901760, %v68_v2  ;;  %v67_v6 = vld [vmem:[%s9708_s1 + $0xe0] sm:$0xff]  ;;  %v66_v7 = vld [vmem:[%s9708_s1 + $0xd8] sm:$0xff]  ;;  %v65_v8 = vld [vmem:[%s9708_s1 + $0xd0] sm:$0xff] }
   0x3   :  { %v4750_v9 = vand.u32 4294901760, %v67_v6  ;;  %v4752_v10 = vand.u32 4294901760, %v66_v7  ;;  %v4754_v11 = vand.u32 4294901760, %v65_v8  ;;  %v64_v12 = vld [vmem:[%s9708_s1 + $0xc8] sm:$0xff]  ;;  %v63_v13 = vld [vmem:[%s9708_s1 + $0xc0] sm:$0xff]  ;;  %v62_v14 = vld [vmem:[%s9708_s1 + $0xb8] sm:$0xff] }
   0x4   :  { %244 = vmatprep.subr.mxu0 %v4735_v3  ;;  %v4766_v15 = vand.u32 4294901760, %v64_v12  ;;  %v4768_v16 = vand.u32 4294901760, %v63_v13  ;;  %v4770_v17 = vand.u32 4294901760, %v62_v14  ;;  %v4773_v18 = vsub.f32 %v70_v0, %v4735_v3  ;;  %v4778_v19 = vld [vmem:[%s9708_s1 + $0xb0] sm:$0xff]  ;;  %v4783_v20 = vld [vmem:[%s9708_s1 + $0xa8] sm:$0xff]  ;;  %v4788_v21 = vld [vmem:[%s9708_s1 + $0xa0] sm:$0xff] }
   0x5   :  { %246 = vmatpush1.msra.mxu0 %v4737_v4  ;;  %v4792_v22 = vand.u32 4294901760, %v4778_v19  ;;  %v4795_v23 = vsub.f32 %v69_v1, %v4737_v4  ;;  %v4798_v24 = vand.u32 4294901760, %v4783_v20  ;;  %v4801_v25 = vsub.f32 %v68_v2, %v4739_v5  ;;  %v4806_v26 = vld [vmem:[%s9708_s1 + $0x98] sm:$0xff]  ;;  %v4811_v27 = vld [vmem:[%s9708_s1 + $0x90] sm:$0xff]  ;;  %v4816_v28 = vld [vmem:[%s9708_s1 + $0x88] sm:$0xff] }
   0x6   :  { %10419 = vst [vmem:[#allocation5_spill] sm:$0xff] %v4766_v15  ;;  %10420 = vst [vmem:[#allocation6_spill] sm:$0xff] %v4768_v16  ;;  %248 = vmatprep.subr.mxu0 %v4739_v5  ;;  %v9724_v29 = vand.u32 4294901760, %v4773_v18  ;;  %v4821_v30 = vand.u32 4294901760, %v4788_v21  ;;  %v4824_v31 = vsub.f32 %v67_v6, %v4750_v9  ;;  %v4827_v32 = vand.u32 4294901760, %v4806_v26  ;;  %v4841_v37 = vld [vmem:[%s9708_s1 + $0x80] sm:$0xff] }
   0x7   :  { %10421 = vst [vmem:[#allocation7_spill] sm:$0xff] %v4770_v17  ;;  %10422 = vst [vmem:[#allocation8_spill] sm:$0xff] %v4792_v22  ;;  %250 = vmatpush1.msra.mxu0 %v4750_v9  ;;  %v9723_v33 = vand.u32 4294901760, %v4795_v23  ;;  %v9721_v34 = vand.u32 4294901760, %v4801_v25  ;;  %v4833_v35 = vsub.f32 %v66_v7, %v4752_v10  ;;  %v4836_v36 = vand.u32 4294901760, %v4811_v27  ;;  %v4868_v46 = vld [vmem:[%s9708_s1 + $0x78] sm:$0xff] }
   0x8   :  { %10423 = vst [vmem:[#allocation9_spill] sm:$0xff] %v4798_v24  ;;  %10424 = vst [vmem:[#allocation10_spill] sm:$0xff] %v4821_v30  ;;  %252 = vmatprep.subr.mxu0 %v4752_v10  ;;  %v439_v38 = vsub.f32 %v4773_v18, %v9724_v29  ;;  %v9720_v39 = vand.u32 4294901760, %v4824_v31  ;;  %v4849_v40 = vsub.f32 %v65_v8, %v4754_v11  ;;  %v4852_v41 = vand.u32 4294901760, %v4816_v28  ;;  %v4881_v51 = vld [vmem:[%s9708_s1 + $0x70] sm:$0xff]  ;;  %v4891_v56 = vld [vmem:[%s9708_s1 + $0x68] sm:$0xff] }
   0x9   :  { %10425 = vst [vmem:[#allocation11_spill] sm:$0xff] %v4827_v32  ;;  %10426 = vst [vmem:[#allocation12_spill] sm:$0xff] %v4836_v36  ;;  %254 = vmatpush1.msra.mxu0 %v4754_v11  ;;  %v445_v42 = vsub.f32 %v4795_v23, %v9723_v33  ;;  %v451_v43 = vsub.f32 %v4801_v25, %v9721_v34  ;;  %v9718_v44 = vand.u32 4294901760, %v4833_v35  ;;  %v4876_v50 = vand.u32 4294901760, %v4841_v37  ;;  %v4906_v61 = vld [vmem:[%s9708_s1 + $0x60] sm:$0xff]  ;;  %v4921_v2 = vld [vmem:[%s9708_s1 + $0x58] sm:$0xff] }
   0xa   :  { %10427 = vst [vmem:[#allocation13_spill] sm:$0xff] %v4852_v41  ;;  %v4863_v45 = vsub.f32 %v64_v12, %v4766_v15  ;;  %256 = vmatprep.subr.mxu0 %v4766_v15  ;;  %v440_v47 = vand.u32 4294901760, %v439_v38  ;;  %v457_v48 = vsub.f32 %v4824_v31, %v9720_v39  ;;  %v9716_v49 = vand.u32 4294901760, %v4849_v40  ;;  %v5057_v33 = vld [vmem:[%s9708_s1 + $0x18] sm:$0xff] }
   0xb   :  { %10428 = vst [vmem:[#allocation14_spill] sm:$0xff] %v4876_v50  ;;  %258 = vmatpush1.msra.mxu0 %v4768_v16  ;;  %v446_v52 = vand.u32 4294901760, %v445_v42  ;;  %v452_v53 = vand.u32 4294901760, %v451_v43  ;;  %v463_v54 = vsub.f32 %v4833_v35, %v9718_v44  ;;  %v4898_v59 = vsub.f32 %v63_v13, %v4768_v16  ;;  %v4935_v13 = vld [vmem:[%s9708_s1 + $0x50] sm:$0xff]  ;;  %v5030_v44 = vld [vmem:[%s9708_s1 + $0x28] sm:$0xff] }
   0xc   :  { %v9715_v55 = vand.u32 4294901760, %v4863_v45  ;;  %260 = vmatprep.subr.mxu0 %v4770_v17  ;;  %441 = vmatprep.subr.mxu1 %v440_v47  ;;  %v458_v57 = vand.u32 4294901760, %v457_v48  ;;  %v469_v58 = vsub.f32 %v4849_v40, %v9716_v49  ;;  %v4901_v60 = vand.u32 4294901760, %v4868_v46  ;;  %v5014_v49 = vld [vmem:[%s9708_s1 + $0x30] sm:$0xff] }
   0xd   :  { %262 = vmatpush1.msra.mxu0 %v4792_v22  ;;  %447 = vmatpush1.msra.mxu1 %v446_v52  ;;  %v464_v62 = vand.u32 4294901760, %v463_v54  ;;  %v4913_v0 = vsub.f32 %v62_v14, %v4770_v17  ;;  %v4916_v1 = vand.u32 4294901760, %v4881_v51  ;;  %v9713_v7 = vand.u32 4294901760, %v4898_v59 }
   0xe   :  { %10429 = vst [vmem:[#allocation15_spill] sm:$0xff] %v4901_v60  ;;  %v475_v63 = vsub.f32 %v4863_v45, %v9715_v55  ;;  %264 = vmatprep.subr.mxu0 %v4798_v24  ;;  %453 = vmatprep.subr.mxu1 %v452_v53  ;;  %v470_v6 = vand.u32 4294901760, %v469_v58  ;;  %v4927_v8 = vsub.f32 %v4778_v19, %v4792_v22  ;;  %v4930_v12 = vand.u32 4294901760, %v4891_v56 }
   0xf   :  { %10430 = vst [vmem:[#allocation16_spill] sm:$0xff] %v4916_v1  ;;  %266 = vmatpush1.msra.mxu0 %v4821_v30  ;;  %459 = vmatpush1.msra.mxu1 %v458_v57  ;;  %v9711_v38 = vand.u32 4294901760, %v4913_v0  ;;  %v4941_v42 = vsub.f32 %v4783_v20, %v4798_v24  ;;  %v4944_v19 = vand.u32 4294901760, %v4906_v61  ;;  %v481_v43 = vsub.f32 %v4898_v59, %v9713_v7  ;;  %v4961_v20 = vld [vmem:[%s9708_s1 + $0x48] sm:$0xff] }
  0x10   :  { %10431 = vst [vmem:[#allocation17_spill] sm:$0xff] %v4930_v12  ;;  %v476_v14 = vand.u32 4294901760, %v475_v63  ;;  %268 = vmatprep.subr.mxu0 %v4827_v32  ;;  %465 = vmatprep.subr.mxu1 %v464_v62  ;;  %v9712_v47 = vand.u32 4294901760, %v4927_v8  ;;  %v4953_v48 = vsub.f32 %v4788_v21, %v4821_v30  ;;  %v4956_v52 = vand.u32 4294901760, %v4921_v2 }
  0x11   :  { %10432 = vst [vmem:[#allocation18_spill] sm:$0xff] %v4944_v19  ;;  %270 = vmatpush1.msra.mxu0 %v4836_v36  ;;  %471 = vmatpush1.msra.mxu1 %v470_v6  ;;  %v487_v53 = vsub.f32 %v4913_v0, %v9711_v38  ;;  %v9714_v54 = vand.u32 4294901760, %v4941_v42  ;;  %v4970_v21 = vsub.f32 %v4806_v26, %v4827_v32  ;;  %v4973_v57 = vand.u32 4294901760, %v4935_v13  ;;  %v4987_v26 = vld [vmem:[%s9708_s1 + $0x40] sm:$0xff] }
  0x12   :  { %10433 = vst [vmem:[#allocation19_spill] sm:$0xff] %v4956_v52  ;;  %272 = vmatprep.subr.mxu0 %v4852_v41  ;;  %477 = vmatprep.subr.mxu1 %v476_v14  ;;  %v482_v58 = vand.u32 4294901760, %v481_v43  ;;  %v493_v62 = vsub.f32 %v4927_v8, %v9712_v47  ;;  %v9717_v63 = vand.u32 4294901760, %v4953_v48  ;;  %v4982_v6 = vsub.f32 %v4811_v27, %v4836_v36  ;;  %v5000_v27 = vld [vmem:[%s9708_s1 + $0x38] sm:$0xff] }
  0x13   :  { %10434 = vst [vmem:[#allocation20_spill] sm:$0xff] %v4973_v57  ;;  %274 = vmatpush1.msra.mxu0 %v4876_v50  ;;  %v488_v38 = vand.u32 4294901760, %v487_v53  ;;  %v499_v14 = vsub.f32 %v4941_v42, %v9714_v54  ;;  %v9719_v43 = vand.u32 4294901760, %v4970_v21  ;;  %v4995_v47 = vand.u32 4294901760, %v4961_v20 }
  0x14   :  { %483 = vmatpush1.msra.mxu1 %v482_v58  ;;  %276 = vmatprep.subr.mxu0 %v4901_v60  ;;  %v494_v7 = vand.u32 4294901760, %v493_v62  ;;  %v505_v53 = vsub.f32 %v4953_v48, %v9717_v63  ;;  %v9722_v54 = vand.u32 4294901760, %v4982_v6  ;;  %v5009_v55 = vsub.f32 %v4816_v28, %v4852_v41 }
  0x15   :  { %10435 = vst [vmem:[#allocation21_spill] sm:$0xff] %v4995_v47  ;;  %489 = vmatprep.subr.mxu1 %v488_v38  ;;  %278 = vmatpush1.msra.mxu0 %v4916_v1  ;;  %v500_v58 = vand.u32 4294901760, %v499_v14  ;;  %v511_v62 = vsub.f32 %v4970_v21, %v9719_v43  ;;  %v5021_v63 = vand.u32 4294901760, %v4987_v26  ;;  %v5025_v28 = vsub.f32 %v4841_v37, %v4876_v50  ;;  %v5043_v37 = vld [vmem:[%s9708_s1 + $0x20] sm:$0xff] }
  0x16   :  { %10436 = vst [vmem:[#allocation22_spill] sm:$0xff] %v5009_v55  ;;  %495 = vmatpush1.msra.mxu1 %v494_v7  ;;  %280 = vmatprep.subr.mxu0 %v4930_v12  ;;  %v506_v38 = vand.u32 4294901760, %v505_v53  ;;  %v517_v14 = vsub.f32 %v4982_v6, %v9722_v54  ;;  %v9727_v43 = vand.u32 4294901760, %v5009_v55  ;;  %v5038_v39 = vand.u32 4294901760, %v5000_v27 }
  0x17   :  { %10437 = vst [vmem:[#allocation23_spill] sm:$0xff] %v5021_v63  ;;  %10438 = vst [vmem:[#allocation24_spill] sm:$0xff] %v5025_v28  ;;  %501 = vmatprep.subr.mxu1 %v500_v58  ;;  %282 = vmatpush1.msra.mxu0 %v4944_v19  ;;  %v512_v7 = vand.u32 4294901760, %v511_v62  ;;  %v9728_v53 = vand.u32 4294901760, %v5025_v28  ;;  %v5049_v34 = vsub.f32 %v4868_v46, %v4901_v60  ;;  %v5052_v54 = vand.u32 4294901760, %v5014_v49 }
  0x18   :  { %10439 = vst [vmem:[#allocation25_spill] sm:$0xff] %v5038_v39  ;;  %507 = vmatpush1.msra.mxu1 %v506_v38  ;;  %284 = vmatprep.subr.mxu0 %v4956_v52  ;;  %v518_v58 = vand.u32 4294901760, %v517_v14  ;;  %v523_v62 = vsub.f32 %v5009_v55, %v9727_v43  ;;  %v5065_v46 = vsub.f32 %v4881_v51, %v4916_v1  ;;  %v5068_v29 = vand.u32 4294901760, %v5030_v44  ;;  %v5085_v51 = vld [vmem:[%s9708_s1 + $0x10] sm:$0xff] }
  0x19   :  { %10440 = vst [vmem:[#allocation26_spill] sm:$0xff] %v5049_v34  ;;  %10441 = vst [vmem:[#allocation27_spill] sm:$0xff] %v5052_v54  ;;  %513 = vmatprep.subr.mxu1 %v512_v7  ;;  %286 = vmatpush1.msra.mxu0 %v4973_v57  ;;  %v529_v38 = vsub.f32 %v5025_v28, %v9728_v53  ;;  %v5077_v60 = vsub.f32 %v4891_v56, %v4930_v12  ;;  %v5080_v43 = vand.u32 4294901760, %v5043_v37 }
  0x1a   :  { %10442 = vst [vmem:[#allocation28_spill] sm:$0xff] %v5065_v46  ;;  %10443 = vst [vmem:[#allocation29_spill] sm:$0xff] %v5068_v29 }
  0x1b   :  { %10444 = vst [vmem:[#allocation30_spill] sm:$0xff] %v5077_v60  ;;  %10445 = vst [vmem:[#allocation31_spill] sm:$0xff] %v5080_v43 }
  0x1c   :  { %8 = vsyncpa [#allocation3], 0  ;;  %519 = vmatpush1.msra.mxu1 %v518_v58  ;;  %288 = vmatprep.subr.mxu0 %v4995_v47  ;;  %v524_v7 = vand.u32 4294901760, %v523_v62  ;;  %v5091_v14 = vsub.f32 %v4906_v61, %v4944_v19  ;;  %v5094_v56 = vand.u32 4294901760, %v5057_v33  ;;  %v5099_v12 = vld [vmem:[%s9708_s1 + $0x8] sm:$0xff]  ;;  %v530_v58 = vand.u32 4294901760, %v529_v38 }
  0x1d   :  { %290 = vmatpush1.msra.mxu0 %v5021_v63  ;;  %v10448_v1 = vand.u32 4294901760, %v5049_v34  ;;  %v9745_v53 = vand.u32 4294901760, %v5077_v60  ;;  %v5108_v61 = vsub.f32 %v4921_v2, %v4956_v52  ;;  %v10450_v19 = vand.u32 4294901760, %v5065_v46  ;;  %v5125_v2 = vld [vmem:[%s9708_s1] sm:$0xff]  ;;  %v5152_v41 = vld [vmem:[%s9708_s1 + $0x1f0] sm:$0xff]  ;;  %v5168_v36 = vld [vmem:[%s9708_s1 + $0x1e8] sm:$0xff] }
  0x1e   :  { %10446 = vst [vmem:[#allocation32_spill] sm:$0xff] %v5091_v14  ;;  %10447 = vst [vmem:[#allocation33_spill] sm:$0xff] %v5094_v56  ;;  %525 = vmatprep.subr.mxu1 %v524_v7  ;;  %292 = vmatprep.subr.mxu0 %v5038_v39  ;;  %v5116_v38 = vand.u32 4294901760, %v5085_v51  ;;  %v5133_v52 = vand.u32 4294901760, %v5099_v12  ;;  %vm4654_vm0 = vcmask 523264  }
  0x1f   :  { %v535_v62 = vsub.f32 %v5049_v34, %v10448_v1  ;;  %10449 = vst [vmem:[#allocation34_spill] sm:$0xff] %v5108_v61  ;;  %v541_v50 = vsub.f32 %v5065_v46, %v10450_v19  ;;  %v5120_v1 = vsub.f32 %v4935_v13, %v4973_v57  ;;  %531 = vmatpush1.msra.mxu1 %v530_v58  ;;  %v5138_v13 = vld [vmem:[%s9708_s1 + $0x1f8] sm:$0xff]  ;;  %v10454_v58 = vand.u32 4294901760, %v5091_v14 }
  0x20   :  { %10451 = vst [vmem:[#allocation35_spill] sm:$0xff] %v5116_v38  ;;  %294 = vmatpush1.msra.mxu0 %v5052_v54  ;;  %v547_v19 = vsub.f32 %v5077_v60, %v9745_v53  ;;  %10453 = vst [vmem:[#allocation37_spill] sm:$0xff] %v5133_v52  ;;  %v5147_v53 = vsub.f32 %v4961_v20, %v4995_v47  ;;  %v5163_v20 = vsub.f32 %v4987_v26, %v5021_v63  ;;  %v5181_v26 = vld [vmem:[%s9708_s1 + $0x1e0] sm:$0xff]  ;;  %v5195_v47 = vld [vmem:[%s9708_s1 + $0x1d8] sm:$0xff] }
  0x21   :  { %10452 = vst [vmem:[#allocation36_spill] sm:$0xff] %v5120_v1  ;;  %v536_v7 = vand.u32 4294901760, %v535_v62  ;;  %v542_v57 = vand.u32 4294901760, %v541_v50  ;;  %296 = vmatprep.subr.mxu0 %v5068_v29  ;;  %v553_v62 = vsub.f32 %v5091_v14, %v10454_v58  ;;  %v10456_v50 = vand.u32 4294901760, %v5108_v61 }
  0x22   :  { %10455 = vst [vmem:[#allocation38_spill] sm:$0xff] %v5147_v53  ;;  %v548_v32 = vand.u32 4294901760, %v547_v19  ;;  %298 = vmatpush1.msra.mxu0 %v5080_v43  ;;  %v5159_v58 = vand.u32 4294901760, %v5125_v2  ;;  %10458 = vst [vmem:[#allocation40_spill] sm:$0xff] %v5163_v20  ;;  %v10459_v19 = vand.u32 4294901760, %v5120_v1  ;;  %v5215_v14 = vsub.f32 %v5030_v44, %v5068_v29  ;;  %v5237_v29 = vld [vmem:[%s9708_s1 + $0x1c8] sm:$0xff] }
  0x23   :  { %537 = vmatprep.subr.mxu1 %v536_v7  ;;  %v559_v30 = vsub.f32 %v5108_v61, %v10456_v50  ;;  %v554_v7 = vand.u32 4294901760, %v553_v62  ;;  %300 = vmatprep.subr.mxu0 %v5094_v56  ;;  %v5176_v61 = vand.u32 4294901760, %v5138_v13  ;;  %v5187_v62 = vsub.f32 %v5000_v27, %v5038_v39 }
  0x24   :  { %10457 = vst [vmem:[#allocation39_spill] sm:$0xff] %v5159_v58  ;;  %543 = vmatpush1.msra.mxu1 %v542_v57  ;;  %v565_v50 = vsub.f32 %v5120_v1, %v10459_v19  ;;  %302 = vmatpush1.msra.mxu0 %v5116_v38  ;;  %v5190_v19 = vand.u32 4294901760, %v5152_v41  ;;  %v5203_v27 = vsub.f32 %v5014_v49, %v5052_v54  ;;  %v5206_v57 = vand.u32 4294901760, %v5168_v36  ;;  %v5223_v49 = vld [vmem:[%s9708_s1 + $0x1d0] sm:$0xff] }
  0x25   :  { %10460 = vst [vmem:[#allocation41_spill] sm:$0xff] %v5176_v61  ;;  %549 = vmatprep.subr.mxu1 %v548_v32  ;;  %v560_v63 = vand.u32 4294901760, %v559_v30  ;;  %10461 = vst [vmem:[#allocation42_spill] sm:$0xff] %v5187_v62  ;;  %304 = vmatprep.subr.mxu0 %v5133_v52  ;;  %v10463_v30 = vand.u32 4294901760, %v5147_v53  ;;  %v10466_v39 = vand.u32 4294901760, %v5163_v20  ;;  %v5232_v44 = vand.u32 4294901760, %v5195_v47 }
  0x26   :  { %10462 = vst [vmem:[#allocation43_spill] sm:$0xff] %v5190_v19  ;;  %555 = vmatpush1.msra.mxu1 %v554_v7  ;;  %v566_v1 = vand.u32 4294901760, %v565_v50  ;;  %10464 = vst [vmem:[#allocation44_spill] sm:$0xff] %v5203_v27  ;;  %306 = vmatpush1.msra.mxu0 %v5159_v58  ;;  %v5229_v50 = vsub.f32 %v5043_v37, %v5080_v43  ;;  %v5246_v37 = vsub.f32 %v5057_v33, %v5094_v56  ;;  %v5263_v33 = vld [vmem:[%s9708_s1 + $0x1c0] sm:$0xff] }
  0x27   :  { %v571_v32 = vsub.f32 %v5147_v53, %v10463_v30  ;;  %10465 = vst [vmem:[#allocation45_spill] sm:$0xff] %v5206_v57  ;;  %561 = vmatprep.subr.mxu1 %v560_v63  ;;  %v577_v7 = vsub.f32 %v5163_v20, %v10466_v39  ;;  %10467 = vst [vmem:[#allocation46_spill] sm:$0xff] %v5215_v14  ;;  %v5218_v30 = vand.u32 4294901760, %v5181_v26  ;;  %308 = vmatprep.subr.mxu0 %v5176_v61 }
  0x28   :  { %567 = vmatpush1.msra.mxu1 %v566_v1  ;;  %10469 = vst [vmem:[#allocation48_spill] sm:$0xff] %v5229_v50  ;;  %10470 = vst [vmem:[#allocation49_spill] sm:$0xff] %v5232_v44  ;;  %v10471_v1 = vand.u32 4294901760, %v5187_v62  ;;  %310 = vmatpush2.msra.mxu0 %v5190_v19  ;;  %v9776_v39 = vand.u32 4294901760, %v5215_v14  ;;  %v10473_v43 = vand.u32 4294901760, %v5203_v27  ;;  %v5254_v53 = vand.u32 4294901760, %v5223_v49 }
  0x29   :  { %10468 = vst [vmem:[#allocation47_spill] sm:$0xff] %v5218_v30  ;;  %v572_v63 = vand.u32 4294901760, %v571_v32  ;;  %v578_v54 = vand.u32 4294901760, %v577_v7  ;;  %10472 = vst [vmem:[#allocation50_spill] sm:$0xff] %v5246_v37  ;;  %312 = vmatprep.subr.mxu0 %v5206_v57  ;;  %v5271_v56 = vand.u32 4294901760, %v5237_v29  ;;  %v5285_v7 = vsub.f32 %v5099_v12, %v5133_v52  ;;  %v5333_v52 = vld [vmem:[%s9708_s1 + $0x198] sm:$0xff] }
  0x2a   :  { %v583_v32 = vsub.f32 %v5187_v62, %v10471_v1  ;;  %v589_v20 = vsub.f32 %v5203_v27, %v10473_v43  ;;  %10474 = vst [vmem:[#allocation51_spill] sm:$0xff] %v5254_v53  ;;  %v5258_v1 = vsub.f32 %v5085_v51, %v5116_v38  ;;  %v595_v43 = vsub.f32 %v5215_v14, %v9776_v39  ;;  %v5276_v51 = vld [vmem:[%s9708_s1 + $0x1b8] sm:$0xff]  ;;  %v5290_v14 = vld [vmem:[%s9708_s1 + $0x1b0] sm:$0xff]  ;;  %v5306_v39 = vld [vmem:[%s9708_s1 + $0x1a8] sm:$0xff] }
  0x2b   :  { %573 = vmatprep.subr.mxu1 %v572_v63  ;;  %314 = vmatpush2.msra.mxu0 %v5218_v30  ;;  %10476 = vst [vmem:[#allocation53_spill] sm:$0xff] %v5271_v56  ;;  %10478 = vst [vmem:[#allocation54_spill] sm:$0xff] %v5285_v7  ;;  %v5301_v12 = vsub.f32 %v5125_v2, %v5159_v58  ;;  %v5319_v2 = vld [vmem:[%s9708_s1 + $0x1a0] sm:$0xff] }
  0x2c   :  { %10475 = vst [vmem:[#allocation52_spill] sm:$0xff] %v5258_v1  ;;  %579 = vmatpush1.msra.mxu1 %v578_v54  ;;  %v584_v63 = vand.u32 4294901760, %v583_v32  ;;  %v590_v38 = vand.u32 4294901760, %v589_v20  ;;  %v10477_v54 = vand.u32 4294901760, %v5229_v50  ;;  %316 = vmatprep.subr.mxu0 %v5232_v44  ;;  %v596_v27 = vand.u32 4294901760, %v595_v43 }
  0x2d   :  { %v10479_v20 = vand.u32 4294901760, %v5246_v37  ;;  %318 = vmatpush2.msra.mxu0 %v5254_v53  ;;  %10481 = vst [vmem:[#allocation56_spill] sm:$0xff] %v5301_v12  ;;  %v10482_v43 = vand.u32 4294901760, %v5258_v1 }
  0x2e   :  { %v601_v32 = vsub.f32 %v5229_v50, %v10477_v54  ;;  %585 = vmatprep.subr.mxu1 %v584_v63  ;;  %v5297_v54 = vand.u32 4294901760, %v5263_v33  ;;  %320 = vmatprep.subr.mxu0 %v5271_v56 }
  0x2f   :  { %v607_v62 = vsub.f32 %v5246_v37, %v10479_v20  ;;  %591 = vmatpush1.msra.mxu1 %v590_v38  ;;  %v613_v20 = vsub.f32 %v5258_v1, %v10482_v43  ;;  %v5314_v37 = vand.u32 4294901760, %v5276_v51  ;;  %v5328_v43 = vand.u32 4294901760, %v5290_v14 }
  0x30   :  { %10480 = vst [vmem:[#allocation55_spill] sm:$0xff] %v5297_v54  ;;  %v602_v63 = vand.u32 4294901760, %v601_v32  ;;  %597 = vmatprep.subr.mxu1 %v596_v27  ;;  %322 = vmatpush2.msra.mxu0 %v5297_v54  ;;  %v5325_v32 = vsub.f32 %v5138_v13, %v5176_v61  ;;  %v5341_v13 = vsub.f32 %v5152_v41, %v5190_v19  ;;  %v5344_v38 = vand.u32 4294901760, %v5306_v39  ;;  %v5361_v41 = vld [vmem:[%s9708_s1 + $0x190] sm:$0xff] }
  0x31   :  { %10483 = vst [vmem:[#allocation57_spill] sm:$0xff] %v5314_v37  ;;  %v608_v58 = vand.u32 4294901760, %v607_v62  ;;  %10485 = vst [vmem:[#allocation59_spill] sm:$0xff] %v5328_v43  ;;  %v614_v1 = vand.u32 4294901760, %v613_v20  ;;  %v10486_v62 = vand.u32 4294901760, %v5285_v7  ;;  %324 = vmatprep.subr.mxu0 %v5314_v37  ;;  %v10489_v61 = vand.u32 4294901760, %v5301_v12 }
  0x32   :  { %10484 = vst [vmem:[#allocation58_spill] sm:$0xff] %v5325_v32  ;;  %603 = vmatpush1.msra.mxu1 %v602_v63  ;;  %10487 = vst [vmem:[#allocation60_spill] sm:$0xff] %v5341_v13  ;;  %326 = vmatpush2.msra.mxu0 %v5328_v43  ;;  %v5353_v20 = vsub.f32 %v5168_v36, %v5206_v57  ;;  %v5367_v63 = vsub.f32 %v5181_v26, %v5218_v30  ;;  %v5370_v36 = vand.u32 4294901760, %v5333_v52  ;;  %v5375_v57 = vld [vmem:[%s9708_s1 + $0x188] sm:$0xff] }
  0x33   :  { %v619_v27 = vsub.f32 %v5285_v7, %v10486_v62  ;;  %10488 = vst [vmem:[#allocation61_spill] sm:$0xff] %v5344_v38  ;;  %609 = vmatprep.subr.mxu1 %v608_v58  ;;  %v625_v50 = vsub.f32 %v5301_v12, %v10489_v61  ;;  %v5356_v62 = vand.u32 4294901760, %v5319_v2  ;;  %328 = vmatprep.subr.mxu0 %v5344_v38  ;;  %v10496_v30 = vand.u32 4294901760, %v5341_v13  ;;  %v5427_v7 = vld [vmem:[%s9708_s1 + $0x170] sm:$0xff] }
  0x34   :  { %10490 = vst [vmem:[#allocation62_spill] sm:$0xff] %v5353_v20  ;;  %615 = vmatpush1.msra.mxu1 %v614_v1  ;;  %10492 = vst [vmem:[#allocation64_spill] sm:$0xff] %v5367_v63  ;;  %v10494_v1 = vand.u32 4294901760, %v5325_v32  ;;  %v9811_v61 = vand.u32 4294901760, %v5353_v20  ;;  %v5384_v26 = vsub.f32 %v5195_v47, %v5232_v44  ;;  %v5401_v47 = vld [vmem:[%s9708_s1 + $0x180] sm:$0xff]  ;;  %v5408_v44 = vand.u32 4294901760, %v5375_v57 }
  0x35   :  { %10491 = vst [vmem:[#allocation63_spill] sm:$0xff] %v5356_v62  ;;  %v620_v58 = vand.u32 4294901760, %v619_v27  ;;  %10493 = vst [vmem:[#allocation65_spill] sm:$0xff] %v5370_v36  ;;  %v626_v19 = vand.u32 4294901760, %v625_v50  ;;  %330 = vmatpush2.msra.mxu0 %v5356_v62  ;;  %v637_v12 = vsub.f32 %v5341_v13, %v10496_v30  ;;  %v5392_v50 = vand.u32 4294901760, %v5361_v41 }
  0x36   :  { %v631_v27 = vsub.f32 %v5325_v32, %v10494_v1  ;;  %10495 = vst [vmem:[#allocation66_spill] sm:$0xff] %v5384_v26  ;;  %332 = vmatprep.subr.mxu0 %v5370_v36  ;;  %v5396_v1 = vsub.f32 %v5223_v49, %v5254_v53  ;;  %v643_v30 = vsub.f32 %v5353_v20, %v9811_v61  ;;  %10499 = vst [vmem:[#allocation69_spill] sm:$0xff] %v5408_v44  ;;  %v5413_v49 = vld [vmem:[%s9708_s1 + $0x178] sm:$0xff] }
  0x37   :  { %621 = vmatprep.subr.mxu1 %v620_v58  ;;  %10497 = vst [vmem:[#allocation67_spill] sm:$0xff] %v5392_v50  ;;  %v638_v53 = vand.u32 4294901760, %v637_v12  ;;  %v10500_v13 = vand.u32 4294901760, %v5367_v63  ;;  %334 = vmatpush2.msra.mxu0 %v5392_v50  ;;  %v5422_v61 = vsub.f32 %v5237_v29, %v5271_v56  ;;  %v10502_v12 = vand.u32 4294901760, %v5384_v26  ;;  %v5469_v56 = vld [vmem:[%s9708_s1 + $0x158] sm:$0xff] }
  0x38   :  { %10498 = vst [vmem:[#allocation68_spill] sm:$0xff] %v5396_v1  ;;  %627 = vmatpush1.msra.mxu1 %v626_v19  ;;  %v632_v58 = vand.u32 4294901760, %v631_v27  ;;  %v644_v20 = vand.u32 4294901760, %v643_v30  ;;  %336 = vmatprep.subr.mxu0 %v5408_v44  ;;  %v5438_v29 = vsub.f32 %v5263_v33, %v5297_v54  ;;  %v5443_v27 = vld [vmem:[%s9708_s1 + $0x168] sm:$0xff]  ;;  %v10505_v30 = vand.u32 4294901760, %v5396_v1  ;;  %v5455_v33 = vld [vmem:[%s9708_s1 + $0x160] sm:$0xff] }
  0x39   :  { %v649_v19 = vsub.f32 %v5367_v63, %v10500_v13  ;;  %10501 = vst [vmem:[#allocation70_spill] sm:$0xff] %v5422_v61  ;;  %v655_v32 = vsub.f32 %v5384_v26, %v10502_v12  ;;  %v5434_v13 = vand.u32 4294901760, %v5401_v47  ;;  %v5450_v26 = vand.u32 4294901760, %v5413_v49 }
  0x3a   :  { %633 = vmatprep.subr.mxu1 %v632_v58  ;;  %10504 = vst [vmem:[#allocation72_spill] sm:$0xff] %v5438_v29  ;;  %v661_v12 = vsub.f32 %v5396_v1, %v10505_v30  ;;  %v5464_v30 = vand.u32 4294901760, %v5427_v7 }
  0x3b   :  { %10503 = vst [vmem:[#allocation71_spill] sm:$0xff] %v5434_v13  ;;  %639 = vmatpush2.msra.mxu1 %v638_v53  ;;  %v650_v58 = vand.u32 4294901760, %v649_v19  ;;  %10506 = vst [vmem:[#allocation73_spill] sm:$0xff] %v5450_v26  ;;  %v656_v54 = vand.u32 4294901760, %v655_v32  ;;  %338 = vmatpush2.msra.mxu0 %v5434_v13  ;;  %v5461_v19 = vsub.f32 %v5276_v51, %v5314_v37  ;;  %v10509_v32 = vand.u32 4294901760, %v5422_v61 }
  0x3c   :  { %645 = vmatprep.subr.mxu1 %v644_v20  ;;  %10508 = vst [vmem:[#allocation75_spill] sm:$0xff] %v5464_v30  ;;  %v662_v1 = vand.u32 4294901760, %v661_v12  ;;  %340 = vmatprep.subr.mxu0 %v5450_v26  ;;  %v5477_v51 = vsub.f32 %v5290_v14, %v5328_v43  ;;  %v5480_v53 = vand.u32 4294901760, %v5443_v27  ;;  %v10512_v37 = vand.u32 4294901760, %v5438_v29  ;;  %v5497_v14 = vld [vmem:[%s9708_s1 + $0x150] sm:$0xff] }
  0x3d   :  { %10507 = vst [vmem:[#allocation74_spill] sm:$0xff] %v5461_v19  ;;  %651 = vmatpush2.msra.mxu1 %v650_v58  ;;  %v667_v20 = vsub.f32 %v5422_v61, %v10509_v32  ;;  %342 = vmatpush2.msra.mxu0 %v5464_v30  ;;  %v5489_v12 = vsub.f32 %v5306_v39, %v5344_v38  ;;  %v5492_v32 = vand.u32 4294901760, %v5455_v33  ;;  %v5506_v39 = vand.u32 4294901760, %v5469_v56  ;;  %v5511_v38 = vld [vmem:[%s9708_s1 + $0x148] sm:$0xff]  ;;  %v5563_v61 = vld [vmem:[%s9708_s1 + $0x130] sm:$0xff] }
  0x3e   :  { %10510 = vst [vmem:[#allocation76_spill] sm:$0xff] %v5477_v51  ;;  %10511 = vst [vmem:[#allocation77_spill] sm:$0xff] %v5480_v53  ;;  %657 = vmatprep.subr.mxu1 %v656_v54  ;;  %v673_v63 = vsub.f32 %v5438_v29, %v10512_v37  ;;  %344 = vmatprep.subr.mxu0 %v5480_v53  ;;  %v5503_v58 = vsub.f32 %v5319_v2, %v5356_v62  ;;  %v10519_v62 = vand.u32 4294901760, %v5477_v51 }
  0x3f   :  { %10513 = vst [vmem:[#allocation78_spill] sm:$0xff] %v5489_v12  ;;  %10514 = vst [vmem:[#allocation79_spill] sm:$0xff] %v5492_v32  ;;  %663 = vmatpush2.msra.mxu1 %v662_v1  ;;  %v668_v54 = vand.u32 4294901760, %v667_v20  ;;  %v10517_v1 = vand.u32 4294901760, %v5461_v19  ;;  %v9844_v37 = vand.u32 4294901760, %v5489_v12  ;;  %346 = vmatpush2.msra.mxu0 %v5492_v32  ;;  %v5520_v2 = vsub.f32 %v5333_v52, %v5370_v36  ;;  %v5537_v52 = vld [vmem:[%s9708_s1 + $0x140] sm:$0xff] }
  0x40   :  { %10515 = vst [vmem:[#allocation80_spill] sm:$0xff] %v5503_v58  ;;  %10516 = vst [vmem:[#allocation81_spill] sm:$0xff] %v5506_v39  ;;  %v674_v43 = vand.u32 4294901760, %v673_v63  ;;  %v685_v29 = vsub.f32 %v5477_v51, %v10519_v62  ;;  %348 = vmatprep.subr.mxu0 %v5506_v39  ;;  %v5528_v63 = vand.u32 4294901760, %v5497_v14  ;;  %v5544_v36 = vand.u32 4294901760, %v5511_v38 }
  0x41   :  { %v679_v20 = vsub.f32 %v5461_v19, %v10517_v1  ;;  %10518 = vst [vmem:[#allocation82_spill] sm:$0xff] %v5520_v2  ;;  %669 = vmatprep.subr.mxu1 %v668_v54  ;;  %v5532_v1 = vsub.f32 %v5361_v41, %v5392_v50  ;;  %v691_v62 = vsub.f32 %v5489_v12, %v9844_v37  ;;  %v5549_v41 = vld [vmem:[%s9708_s1 + $0x138] sm:$0xff]  ;;  %v10523_v51 = vand.u32 4294901760, %v5503_v58 }
  0x42   :  { %10520 = vst [vmem:[#allocation83_spill] sm:$0xff] %v5528_v63  ;;  %675 = vmatpush2.msra.mxu1 %v674_v43  ;;  %10522 = vst [vmem:[#allocation85_spill] sm:$0xff] %v5544_v36  ;;  %v686_v50 = vand.u32 4294901760, %v685_v29  ;;  %350 = vmatpush2.msra.mxu0 %v5528_v63  ;;  %v5558_v37 = vsub.f32 %v5375_v57, %v5408_v44  ;;  %v10525_v29 = vand.u32 4294901760, %v5520_v2  ;;  %v5605_v44 = vld [vmem:[%s9708_s1 + $0x118] sm:$0xff] }
  0x43   :  { %10521 = vst [vmem:[#allocation84_spill] sm:$0xff] %v5532_v1  ;;  %v680_v54 = vand.u32 4294901760, %v679_v20  ;;  %v697_v43 = vsub.f32 %v5503_v58, %v10523_v51  ;;  %v692_v12 = vand.u32 4294901760, %v691_v62  ;;  %352 = vmatprep.subr.mxu0 %v5544_v36  ;;  %v5570_v51 = vand.u32 4294901760, %v5537_v52  ;;  %v5579_v20 = vld [vmem:[%s9708_s1 + $0x128] sm:$0xff] }
  0x44   :  { %10524 = vst [vmem:[#allocation86_spill] sm:$0xff] %v5558_v37  ;;  %v703_v19 = vsub.f32 %v5520_v2, %v10525_v29  ;;  %v5574_v57 = vsub.f32 %v5401_v47, %v5434_v13  ;;  %v10528_v62 = vand.u32 4294901760, %v5532_v1  ;;  %v5586_v2 = vand.u32 4294901760, %v5549_v41  ;;  %v5591_v47 = vld [vmem:[%s9708_s1 + $0x120] sm:$0xff] }
  0x45   :  { %681 = vmatprep.subr.mxu1 %v680_v54  ;;  %10526 = vst [vmem:[#allocation87_spill] sm:$0xff] %v5570_v51  ;;  %v698_v54 = vand.u32 4294901760, %v697_v43  ;;  %354 = vmatpush2.msra.mxu0 %v5570_v51  ;;  %v5597_v43 = vsub.f32 %v5413_v49, %v5450_v26  ;;  %v5613_v49 = vsub.f32 %v5427_v7, %v5464_v30  ;;  %v5633_v7 = vld [vmem:[%s9708_s1 + $0x110] sm:$0xff] }
  0x46   :  { %10527 = vst [vmem:[#allocation88_spill] sm:$0xff] %v5574_v57  ;;  %687 = vmatpush2.msra.mxu1 %v686_v50  ;;  %v709_v29 = vsub.f32 %v5532_v1, %v10528_v62  ;;  %10529 = vst [vmem:[#allocation89_spill] sm:$0xff] %v5586_v2  ;;  %v704_v13 = vand.u32 4294901760, %v703_v19  ;;  %v5600_v62 = vand.u32 4294901760, %v5563_v61  ;;  %v10531_v19 = vand.u32 4294901760, %v5558_v37  ;;  %356 = vmatprep.subr.mxu0 %v5586_v2 }
  0x47   :  { %693 = vmatprep.subr.mxu1 %v692_v12  ;;  %10530 = vst [vmem:[#allocation90_spill] sm:$0xff] %v5597_v43  ;;  %10532 = vst [vmem:[#allocation91_spill] sm:$0xff] %v5613_v49  ;;  %v5616_v50 = vand.u32 4294901760, %v5579_v20  ;;  %v10534_v26 = vand.u32 4294901760, %v5574_v57 }
  0x48   :  { %699 = vmatpush2.msra.mxu1 %v698_v54  ;;  %v710_v1 = vand.u32 4294901760, %v709_v29  ;;  %v715_v12 = vsub.f32 %v5558_v37, %v10531_v19  ;;  %358 = vmatpush2.msra.mxu0 %v5600_v62  ;;  %v5625_v29 = vsub.f32 %v5443_v27, %v5480_v53  ;;  %v5628_v19 = vand.u32 4294901760, %v5591_v47  ;;  %v5647_v53 = vld [vmem:[%s9708_s1 + $0x108] sm:$0xff] }
  0x49   :  { %10533 = vst [vmem:[#allocation92_spill] sm:$0xff] %v5616_v50  ;;  %705 = vmatprep.subr.mxu1 %v704_v13  ;;  %v721_v58 = vsub.f32 %v5574_v57, %v10534_v26  ;;  %360 = vmatprep.subr.mxu0 %v5616_v50  ;;  %v5639_v54 = vsub.f32 %v5455_v33, %v5492_v32  ;;  %v5642_v27 = vand.u32 4294901760, %v5605_v44  ;;  %v10541_v32 = vand.u32 4294901760, %v5613_v49 }
  0x4a   :  { %10535 = vst [vmem:[#allocation93_spill] sm:$0xff] %v5625_v29  ;;  %10536 = vst [vmem:[#allocation94_spill] sm:$0xff] %v5628_v19  ;;  %711 = vmatpush2.msra.mxu1 %v710_v1  ;;  %v716_v13 = vand.u32 4294901760, %v715_v12  ;;  %v10539_v1 = vand.u32 4294901760, %v5597_v43  ;;  %v9879_v26 = vand.u32 4294901760, %v5625_v29  ;;  %362 = vmatpush2.msra.mxu0 %v5628_v19  ;;  %v5656_v33 = vsub.f32 %v5469_v56, %v5506_v39  ;;  %v5673_v56 = vld [vmem:[%s9708_s1 + $0x100] sm:$0xff] }
  0x4b   :  { %10537 = vst [vmem:[#allocation95_spill] sm:$0xff] %v5639_v54  ;;  %10538 = vst [vmem:[#allocation96_spill] sm:$0xff] %v5642_v27  ;;  %v722_v30 = vand.u32 4294901760, %v721_v58  ;;  %v733_v57 = vsub.f32 %v5613_v49, %v10541_v32  ;;  %364 = vmatprep.subr.mxu0 %v5642_v27  ;;  %v5664_v58 = vand.u32 4294901760, %v5633_v7  ;;  %v5680_v39 = vand.u32 4294901760, %v5647_v53 }
  0x4c   :  { %v727_v12 = vsub.f32 %v5597_v43, %v10539_v1  ;;  %10540 = vst [vmem:[#allocation97_spill] sm:$0xff] %v5656_v33  ;;  %717 = vmatprep.subr.mxu1 %v716_v13  ;;  %v5668_v1 = vsub.f32 %v5497_v14, %v5528_v63  ;;  %v739_v32 = vsub.f32 %v5625_v29, %v9879_v26  ;;  %v16_v14 = vld [vmem:[%s9707_s0 + $0x8] sm:$0xff]  ;;  %v10542_v49 = vand.u32 4294901760, %v5639_v54  ;;  %v15_v26 = vld [vmem:[%s9707_s0] sm:$0xff] }
  0x4d   :  { %723 = vmatpush2.msra.mxu1 %v722_v30  ;;  %v734_v63 = vand.u32 4294901760, %v733_v57  ;;  %366 = vmatpush2.msra.mxu0 %v5664_v58  ;;  %v10544_v57 = vand.u32 4294901760, %v5656_v33  ;;  %v5706_v30 = vsub.f32 %v5537_v52, %v5570_v51  ;;  %v5718_v52 = vsub.f32 %v5549_v41, %v5586_v2 }
  0x4e   :  { %v728_v13 = vand.u32 4294901760, %v727_v12  ;;  %v745_v43 = vsub.f32 %v5639_v54, %v10542_v49  ;;  %v5692_v12 = vsub.f32 %v5511_v38, %v5544_v36  ;;  %v740_v37 = vand.u32 4294901760, %v739_v32  ;;  %368 = vmatprep.subr.mxu0 %v5680_v39 }
  0x4f   :  { %v751_v29 = vsub.f32 %v5656_v33, %v10544_v57  ;;  %v5702_v49 = vand.u32 4294901760, %v5673_v56  ;;  %v10545_v36 = vand.u32 4294901760, %v5668_v1  ;;  %v5712_v54 = vand.u32 4294901760, %v16_v14 }
  0x50   :  { %10543 = vst [vmem:[#allocation98_spill] sm:$0xff] %v5692_v12  ;;  %729 = vmatprep.subr.mxu1 %v728_v13  ;;  %v746_v38 = vand.u32 4294901760, %v745_v43  ;;  %v9891_v32 = vand.u32 4294901760, %v5692_v12  ;;  %v9890_v33 = vand.u32 4294901760, %v5706_v30 }
  0x51   :  { %735 = vmatpush2.msra.mxu1 %v734_v63  ;;  %v757_v13 = vsub.f32 %v5668_v1, %v10545_v36  ;;  %10546 = vst [vmem:[#allocation99_spill] sm:$0xff] %v5712_v54  ;;  %v752_v57 = vand.u32 4294901760, %v751_v29  ;;  %370 = vmatpush2.msra.mxu0 %v5702_v49  ;;  %v5720_v63 = vand.u32 4294901760, %v15_v26  ;;  %v5726_v51 = vsub.f32 %v16_v14, %v5712_v54 }
  0x52   :  { %741 = vmatprep.subr.mxu1 %v740_v37  ;;  %v763_v36 = vsub.f32 %v5692_v12, %v9891_v32  ;;  %855 = vmatprep.subr.mxu0 %v4773_v18  ;;  %v5731_v37 = vsub.f32 %v5563_v61, %v5600_v62  ;;  %v769_v41 = vsub.f32 %v5706_v30, %v9890_v33  ;;  %v9894_v29 = vand.u32 4294901760, %v5718_v52 }
  0x53   :  { %10547 = vst [vmem:[#allocation100_spill] sm:$0xff] %v5720_v63  ;;  %747 = vmatpush2.msra.mxu1 %v746_v38  ;;  %v758_v43 = vand.u32 4294901760, %v757_v13  ;;  %v5738_v38 = vsub.f32 %v15_v26, %v5720_v63  ;;  %v5742_v14 = vsub.f32 %v5579_v20, %v5616_v50  ;;  %821 = vmatprep.mubr.f32.mxu1 %v5712_v54  ;;  %v9895_v61 = vand.u32 4294901760, %v5726_v51 }
  0x54   :  { %753 = vmatprep.subr.mxu1 %v752_v57  ;;  %v764_v13 = vand.u32 4294901760, %v763_v36  ;;  %v9898_v57 = vand.u32 4294901760, %v5731_v37  ;;  %v5749_v33 = vsub.f32 %v5591_v47, %v5628_v19  ;;  %v770_v32 = vand.u32 4294901760, %v769_v41 }
  0x55   :  { %759 = vmatpush2.msra.mxu1 %v758_v43  ;;  %v775_v26 = vsub.f32 %v5718_v52, %v9894_v29  ;;  %v9903_v20 = vand.u32 4294901760, %v5738_v38  ;;  %v9904_v50 = vand.u32 4294901760, %v5742_v14  ;;  %v374_v43 = vsub.f32 %v5726_v51, %v9895_v61 }
  0x56   :  { %765 = vmatprep.subr.mxu1 %v764_v13  ;;  %v781_v36 = vsub.f32 %v5731_v37, %v9898_v57  ;;  %v5765_v41 = vsub.f32 %v5605_v44, %v5642_v27  ;;  %v5775_v54 = vsub.f32 %v5633_v7, %v5664_v58  ;;  %v10548_v19 = vand.u32 4294901760, %v5749_v33 }
  0x57   :  { %771 = vmatpush2.msra.mxu1 %v770_v32  ;;  %v776_v29 = vand.u32 4294901760, %v775_v26  ;;  %v380_v13 = vsub.f32 %v5738_v38, %v9903_v20  ;;  %v787_v61 = vsub.f32 %v5742_v14, %v9904_v50  ;;  %v375_v57 = vand.u32 4294901760, %v374_v43 }
  0x58   :  { %v782_v47 = vand.u32 4294901760, %v781_v36  ;;  %v793_v44 = vsub.f32 %v5749_v33, %v10548_v19  ;;  %v9908_v32 = vand.u32 4294901760, %v5765_v41  ;;  %v9907_v20 = vand.u32 4294901760, %v5775_v54 }
  0x59   :  { %777 = vmatprep.subr.mxu1 %v776_v29  ;;  %v381_v26 = vand.u32 4294901760, %v380_v13  ;;  %v788_v27 = vand.u32 4294901760, %v787_v61  ;;  %v5784_v50 = vsub.f32 %v5647_v53, %v5680_v39  ;;  %376 = vmatprep.mubr.f32.mxu0 %v375_v57  ;;  %v5791_v19 = vsub.f32 %v5673_v56, %v5702_v49 }
  0x5a   :  { %783 = vmatpush2.msra.mxu1 %v782_v47  ;;  %v794_v7 = vand.u32 4294901760, %v793_v44  ;;  %v799_v43 = vsub.f32 %v5765_v41, %v9908_v32  ;;  %v805_v29 = vsub.f32 %v5775_v54, %v9907_v20  ;;  %v10549_v44 = vld [vmem:[#allocation32_spill] sm:$0xff]  ;;  %v10563_v32 = vld [vmem:[#allocation46_spill] sm:$0xff] }
  0x5b   :  { %382 = vmatmul.mubr.f32.vlgmr.msra.gmra.mxu0 %v381_v26  ;;  %789 = vmatprep.subr.mxu1 %v788_v27  ;;  %v9906_v53 = vand.u32 4294901760, %v5784_v50  ;;  %v9905_v57 = vand.u32 4294901760, %v5791_v19  ;;  %v10550_v26 = vld [vmem:[#allocation10_spill] sm:$0xff]  ;;  %v10562_v20 = vld [vmem:[#allocation16_spill] sm:$0xff] }
  0x5c   :  { %858 = vmatpush1.msra.mxu0 %v4795_v23  ;;  %795 = vmatpush2.msra.mxu1 %v794_v7  ;;  %v800_v61 = vand.u32 4294901760, %v799_v43  ;;  %v806_v36 = vand.u32 4294901760, %v805_v29  ;;  %v10551_v7 = vld [vmem:[#allocation34_spill] sm:$0xff]  ;;  %v10552_v43 = vld [vmem:[#allocation11_spill] sm:$0xff]  ;;  %v10553_v29 = vld [vmem:[#allocation36_spill] sm:$0xff] }
  0x5d   :  { %861 = vmatprep.subr.mxu0 %v4801_v25  ;;  %v811_v56 = vsub.f32 %v5784_v50, %v9906_v53  ;;  %v817_v27 = vsub.f32 %v5791_v19, %v9905_v57  ;;  %v10560_v57 = vld [vmem:[#allocation15_spill] sm:$0xff]  ;;  %v10561_v53 = vld [vmem:[#allocation44_spill] sm:$0xff] }
  0x5e   :  { %864 = vmatpush1.msra.mxu0 %v4824_v31  ;;  %801 = vmatprep.subr.mxu1 %v800_v61  ;;  %v10554_v61 = vld [vmem:[#allocation12_spill] sm:$0xff] }
  0x5f   :  { %867 = vmatprep.subr.mxu0 %v4833_v35  ;;  %807 = vmatpush2.msra.mxu1 %v806_v36  ;;  %v812_v47 = vand.u32 4294901760, %v811_v56  ;;  %v818_v13 = vand.u32 4294901760, %v817_v27  ;;  %v10555_v36 = vld [vmem:[#allocation38_spill] sm:$0xff]  ;;  %v10556_v56 = vld [vmem:[#allocation13_spill] sm:$0xff]  ;;  %v10557_v27 = vld [vmem:[#allocation40_spill] sm:$0xff] }
  0x60   :  { %870 = vmatpush1.msra.mxu0 %v4849_v40 }
  0x61   :  { %813 = vmatprep.subr.mxu1 %v812_v47  ;;  %873 = vmatprep.subr.mxu0 %v4863_v45  ;;  %v10558_v47 = vld [vmem:[#allocation14_spill] sm:$0xff] }
  0x62   :  { %819 = vmatpush2.msra.mxu1 %v818_v13  ;;  %876 = vmatpush1.msra.mxu0 %v4898_v59  ;;  %v10559_v13 = vld [vmem:[#allocation42_spill] sm:$0xff] }
  0x63   :  { %823 = vmatmul.mubr.f32.vlgmr.msra.gmra.mxu1 %v5720_v63  ;;  %879 = vmatprep.subr.mxu0 %v4913_v0  ;;  %v10564_v63 = vld [vmem:[#allocation17_spill] sm:$0xff] }
  0x64   :  { %1087 = vmatprep.subr.mxu1 %v4735_v3  ;;  %882 = vmatpush1.msra.mxu0 %v4927_v8 }
  0x65   :  { %1089 = vmatpush1.msra.mxu1 %v4737_v4  ;;  %885 = vmatprep.subr.mxu0 %v4941_v42 }
  0x66   :  { %1091 = vmatprep.subr.mxu1 %v4739_v5  ;;  %888 = vmatpush1.msra.mxu0 %v4953_v48 }
  0x67   :  { %1093 = vmatpush1.msra.mxu1 %v4750_v9  ;;  %891 = vmatprep.subr.mxu0 %v4970_v21 }
  0x68   :  { %1095 = vmatprep.subr.mxu1 %v4752_v10  ;;  %894 = vmatpush1.msra.mxu0 %v4982_v6 }
  0x69   :  { %1097 = vmatpush1.msra.mxu1 %v4754_v11  ;;  %897 = vmatprep.subr.mxu0 %v5009_v55  ;;  %v10620_v55 = vld [vmem:[#allocation61_spill] sm:$0xff] }
  0x6a   :  { %1099 = vmatprep.subr.mxu1 %v4766_v15  ;;  %900 = vmatpush1.msra.mxu0 %v5025_v28  ;;  %v10612_v28 = vld [vmem:[#allocation55_spill] sm:$0xff] }
  0x6b   :  { %1101 = vmatpush1.msra.mxu1 %v4768_v16  ;;  %903 = vmatprep.subr.mxu0 %v5049_v34  ;;  %v10608_v34 = vld [vmem:[#allocation51_spill] sm:$0xff]  ;;  %v10609_v16 = vld [vmem:[#allocation86_spill] sm:$0xff] }
  0x6c   :  { %1103 = vmatprep.subr.mxu1 %v4770_v17  ;;  %906 = vmatpush1.msra.mxu0 %v5065_v46  ;;  %v10604_v46 = vld [vmem:[#allocation82_spill] sm:$0xff]  ;;  %v10606_v17 = vld [vmem:[#allocation84_spill] sm:$0xff] }
  0x6d   :  { %1105 = vmatpush1.msra.mxu1 %v4792_v22  ;;  %909 = vmatprep.subr.mxu0 %v5077_v60  ;;  %v10599_v60 = vld [vmem:[#allocation78_spill] sm:$0xff]  ;;  %v10603_v22 = vld [vmem:[#allocation47_spill] sm:$0xff] }
  0x6e   :  { %1107 = vmatprep.subr.mxu1 %v4798_v24  ;;  %912 = vmatpush1.msra.mxu0 %v10549_v44  ;;  %v10592_v44 = vld [vmem:[#allocation37_spill] sm:$0xff]  ;;  %v10597_v24 = vld [vmem:[#allocation76_spill] sm:$0xff] }
  0x6f   :  { %1109 = vmatpush1.msra.mxu1 %v10550_v26  ;;  %915 = vmatprep.subr.mxu0 %v10551_v7 }
  0x70   :  { %1111 = vmatprep.subr.mxu1 %v10552_v43  ;;  %918 = vmatpush1.msra.mxu0 %v10553_v29  ;;  %v10580_v29 = vld [vmem:[#allocation27_spill] sm:$0xff]  ;;  %v10583_v43 = vld [vmem:[#allocation64_spill] sm:$0xff] }
  0x71   :  { %1113 = vmatpush1.msra.mxu1 %v10554_v61  ;;  %921 = vmatprep.subr.mxu0 %v10555_v36  ;;  %v10565_v61 = vld [vmem:[#allocation48_spill] sm:$0xff]  ;;  %v10566_v36 = vld [vmem:[#allocation18_spill] sm:$0xff] }
  0x72   :  { %1115 = vmatprep.subr.mxu1 %v10556_v56  ;;  %924 = vmatpush1.msra.mxu0 %v10557_v27  ;;  %v10567_v56 = vld [vmem:[#allocation50_spill] sm:$0xff] }
  0x73   :  { %1117 = vmatpush1.msra.mxu1 %v10558_v47  ;;  %927 = vmatprep.subr.mxu0 %v10559_v13  ;;  %v22_v13 = vld [vmem:[%s9707_s0 + $0x38] sm:$0xff]  ;;  %v10568_v47 = vld [vmem:[#allocation19_spill] sm:$0xff]  ;;  %v10576_v27 = vld [vmem:[#allocation58_spill] sm:$0xff] }
  0x74   :  { %1119 = vmatprep.subr.mxu1 %v10560_v57  ;;  %930 = vmatpush1.msra.mxu0 %v10561_v53  ;;  %v10569_v57 = vld [vmem:[#allocation52_spill] sm:$0xff] }
  0x75   :  { %1121 = vmatpush1.msra.mxu1 %v10562_v20  ;;  %933 = vmatprep.subr.mxu0 %v10563_v32  ;;  %v10570_v53 = vld [vmem:[#allocation20_spill] sm:$0xff]  ;;  %v10571_v20 = vld [vmem:[#allocation54_spill] sm:$0xff]  ;;  %v10575_v32 = vld [vmem:[#allocation23_spill] sm:$0xff] }
  0x76   :  { %1123 = vmatprep.subr.mxu1 %v10564_v63  ;;  %936 = vmatpush1.msra.mxu0 %v10565_v61  ;;  %v21_v61 = vld [vmem:[%s9707_s0 + $0x30] sm:$0xff]  ;;  %v10572_v63 = vld [vmem:[#allocation21_spill] sm:$0xff] }
  0x77   :  { %1125 = vmatpush1.msra.mxu1 %v10566_v36  ;;  %939 = vmatprep.subr.mxu0 %v10567_v56  ;;  %v10573_v36 = vld [vmem:[#allocation56_spill] sm:$0xff]  ;;  %v5865_v56 = vand.u32 4294901760, %v22_v13 }
  0x78   :  { %1127 = vmatprep.subr.mxu1 %v10568_v47  ;;  %942 = vmatpush1.msra.mxu0 %v10569_v57  ;;  %v10577_v47 = vld [vmem:[#allocation25_spill] sm:$0xff]  ;;  %v10578_v57 = vld [vmem:[#allocation60_spill] sm:$0xff] }
  0x79   :  { %1129 = vmatpush1.msra.mxu1 %v10570_v53  ;;  %945 = vmatprep.subr.mxu0 %v10571_v20  ;;  %10574 = vst [vmem:[#allocation101_spill] sm:$0xff] %v5865_v56  ;;  %v5871_v53 = vand.u32 4294901760, %v21_v61  ;;  %v28_v20 = vld [vmem:[%s9707_s0 + $0x68] sm:$0xff] }
  0x7a   :  { %1131 = vmatprep.subr.mxu1 %v10572_v63  ;;  %948 = vmatpush1.msra.mxu0 %v10573_v36  ;;  %v10581_v63 = vld [vmem:[#allocation62_spill] sm:$0xff]  ;;  %v10582_v36 = vld [vmem:[#allocation29_spill] sm:$0xff]  ;;  %v5888_v7 = vand.u32 4294901760, %v28_v20 }
  0x7b   :  { %1133 = vmatpush1.msra.mxu1 %v10575_v32  ;;  %951 = vmatprep.subr.mxu0 %v10576_v27  ;;  %10579 = vst [vmem:[#allocation102_spill] sm:$0xff] %v5871_v53  ;;  %v5881_v27 = vsub.f32 %v22_v13, %v5865_v56  ;;  %v10585_v32 = vld [vmem:[#allocation66_spill] sm:$0xff] }
  0x7c   :  { %1135 = vmatprep.subr.mxu1 %v10577_v47  ;;  %954 = vmatpush2.msra.mxu0 %v10578_v57  ;;  %v27_v57 = vld [vmem:[%s9707_s0 + $0x60] sm:$0xff]  ;;  %v10584_v47 = vld [vmem:[#allocation31_spill] sm:$0xff]  ;;  %10586 = vst [vmem:[#allocation103_spill] sm:$0xff] %v5888_v7  ;;  %v10590_v13 = vld [vmem:[#allocation70_spill] sm:$0xff] }
  0x7d   :  { %1137 = vmatpush1.msra.mxu1 %v10580_v29  ;;  %957 = vmatprep.subr.mxu0 %v10581_v63  ;;  %v10587_v29 = vld [vmem:[#allocation33_spill] sm:$0xff]  ;;  %v10588_v63 = vld [vmem:[#allocation68_spill] sm:$0xff]  ;;  %v5897_v26 = vand.u32 4294901760, %v27_v57 }
  0x7e   :  { %1139 = vmatprep.subr.mxu1 %v10582_v36  ;;  %960 = vmatpush2.msra.mxu0 %v10583_v43  ;;  %v5893_v36 = vsub.f32 %v21_v61, %v5871_v53  ;;  %v10589_v43 = vld [vmem:[#allocation35_spill] sm:$0xff]  ;;  %v10595_v61 = vld [vmem:[#allocation74_spill] sm:$0xff] }
  0x7f   :  { %1141 = vmatpush1.msra.mxu1 %v10584_v47  ;;  %963 = vmatprep.subr.mxu0 %v10585_v32  ;;  %10591 = vst [vmem:[#allocation104_spill] sm:$0xff] %v5897_v26  ;;  %v10593_v47 = vld [vmem:[#allocation72_spill] sm:$0xff]  ;;  %v33_v32 = vld [vmem:[%s9707_s0 + $0x90] sm:$0xff] }
  0x80   :  { %1143 = vmatprep.subr.mxu1 %v10587_v29  ;;  %966 = vmatpush2.msra.mxu0 %v10588_v63  ;;  %v34_v29 = vld [vmem:[%s9707_s0 + $0x98] sm:$0xff]  ;;  %v10594_v63 = vld [vmem:[#allocation39_spill] sm:$0xff] }
  0x81   :  { %1145 = vmatpush1.msra.mxu1 %v10589_v43  ;;  %969 = vmatprep.subr.mxu0 %v10590_v13  ;;  %v5908_v43 = vsub.f32 %v28_v20, %v5888_v7  ;;  %v10596_v13 = vld [vmem:[#allocation41_spill] sm:$0xff] }
  0x82   :  { %1147 = vmatprep.subr.mxu1 %v10592_v44  ;;  %972 = vmatpush2.msra.mxu0 %v10593_v47  ;;  %v10598_v47 = vld [vmem:[#allocation43_spill] sm:$0xff]  ;;  %v10600_v20 = vld [vmem:[#allocation45_spill] sm:$0xff] }
  0x83   :  { %1149 = vmatpush1.msra.mxu1 %v10594_v63  ;;  %975 = vmatprep.subr.mxu0 %v10595_v61  ;;  %v5919_v63 = vsub.f32 %v27_v57, %v5897_v26  ;;  %v5921_v61 = vand.u32 4294901760, %v34_v29  ;;  %v10605_v57 = vld [vmem:[#allocation49_spill] sm:$0xff] }
  0x84   :  { %1151 = vmatprep.subr.mxu1 %v10596_v13  ;;  %978 = vmatpush2.msra.mxu0 %v10597_v24  ;;  %v10601_v13 = vld [vmem:[#allocation80_spill] sm:$0xff]  ;;  %v10602_v24 = vand.u32 4294901760, %v5881_v27 }
  0x85   :  { %1153 = vmatpush2.msra.mxu1 %v10598_v47  ;;  %981 = vmatprep.subr.mxu0 %v10599_v60  ;;  %v5931_v60 = vand.u32 4294901760, %v33_v32  ;;  %v10610_v47 = vld [vmem:[#allocation53_spill] sm:$0xff] }
  0x86   :  { %1155 = vmatprep.subr.mxu1 %v10600_v20  ;;  %984 = vmatpush2.msra.mxu0 %v10601_v13  ;;  %v390_v44 = vsub.f32 %v5881_v27, %v10602_v24  ;;  %v10607_v20 = vand.u32 4294901760, %v5893_v36  ;;  %v10615_v24 = vld [vmem:[#allocation57_spill] sm:$0xff] }
  0x87   :  { %1157 = vmatpush2.msra.mxu1 %v10603_v22  ;;  %987 = vmatprep.subr.mxu0 %v10604_v46  ;;  %v5942_v46 = vsub.f32 %v34_v29, %v5921_v61  ;;  %v10611_v22 = vld [vmem:[#allocation88_spill] sm:$0xff]  ;;  %v10616_v29 = vld [vmem:[#allocation91_spill] sm:$0xff] }
  0x88   :  { %1159 = vmatprep.subr.mxu1 %v10605_v57  ;;  %990 = vmatpush2.msra.mxu0 %v10606_v17  ;;  %v396_v13 = vsub.f32 %v5893_v36, %v10607_v20  ;;  %v391_v57 = vand.u32 4294901760, %v390_v44  ;;  %v10613_v17 = vld [vmem:[#allocation90_spill] sm:$0xff]  ;;  %v10614_v20 = vand.u32 4294901760, %v5908_v43  ;;  %v10619_v44 = vand.u32 4294901760, %v5919_v63 }
  0x89   :  { %1161 = vmatpush2.msra.mxu1 %v10608_v34  ;;  %993 = vmatprep.subr.mxu0 %v10609_v16  ;;  %v5952_v16 = vsub.f32 %v33_v32, %v5931_v60  ;;  %v10621_v32 = vld [vmem:[#allocation95_spill] sm:$0xff] }
  0x8a   :  { %1163 = vmatprep.subr.mxu1 %v10610_v47  ;;  %996 = vmatpush2.msra.mxu0 %v10611_v22  ;;  %v406_v34 = vsub.f32 %v5908_v43, %v10614_v20  ;;  %v397_v15 = vand.u32 4294901760, %v396_v13  ;;  %v10617_v47 = vld [vmem:[#allocation59_spill] sm:$0xff]  ;;  %v10618_v22 = vld [vmem:[#allocation93_spill] sm:$0xff] }
  0x8b   :  { %1165 = vmatpush2.msra.mxu1 %v10612_v28  ;;  %999 = vmatprep.subr.mxu0 %v10613_v17  ;;  %v412_v17 = vsub.f32 %v5919_v63, %v10619_v44  ;;  %v9921_v28 = vand.u32 4294901760, %v5942_v46  ;;  %v10622_v20 = vld [vmem:[#allocation63_spill] sm:$0xff]  ;;  %v9923_v13 = vand.u32 4294901760, %v5952_v16 }
  0x8c   :  { %1167 = vmatprep.subr.mxu1 %v10615_v24  ;;  %1002 = vmatpush2.msra.mxu0 %v10616_v29  ;;  %v407_v24 = vand.u32 4294901760, %v406_v34  ;;  %v10627_v34 = vld [vmem:[#allocation71_spill] sm:$0xff] }
  0x8d   :  { %1169 = vmatpush2.msra.mxu1 %v10617_v47  ;;  %1005 = vmatprep.subr.mxu0 %v10618_v22  ;;  %v10623_v47 = vld [vmem:[#allocation97_spill] sm:$0xff]  ;;  %v413_v44 = vand.u32 4294901760, %v412_v17 }
  0x8e   :  { %1171 = vmatprep.subr.mxu1 %v10620_v55  ;;  %392 = vmatprep.mubr.f32.mxu0 %v391_v57  ;;  %v10624_v22 = vld [vmem:[#allocation65_spill] sm:$0xff]  ;;  %v422_v55 = vsub.f32 %v5942_v46, %v9921_v28  ;;  %v10625_v57 = vld [vmem:[#allocation67_spill] sm:$0xff] }
  0x8f   :  { %1008 = vmatpush2.msra.mxu0 %v10621_v32  ;;  %1173 = vmatpush2.msra.mxu1 %v10622_v20  ;;  %v10626_v20 = vld [vmem:[#allocation69_spill] sm:$0xff] }
  0x90   :  { %398 = vmatmul.mubr.f32.gmra.mxu0 %v397_v15  ;;  %1011 = vmatprep.subr.mxu0 %v10623_v47  ;;  %v428_v15 = vsub.f32 %v5952_v16, %v9923_v13  ;;  %v423_v17 = vand.u32 4294901760, %v422_v55  ;;  %v10628_v28 = vld [vmem:[#allocation73_spill] sm:$0xff] }
  0x91   :  { %1175 = vmatprep.subr.mxu1 %v10624_v22  ;;  %1014 = vmatpush2.msra.mxu0 %v5668_v1  ;;  %v10630_v13 = vld [vmem:[#allocation77_spill] sm:$0xff] }
  0x92   :  { %1177 = vmatpush2.msra.mxu1 %v10625_v57  ;;  %1017 = vmatprep.subr.mxu0 %v5692_v12  ;;  %v10629_v12 = vld [vmem:[#allocation75_spill] sm:$0xff]  ;;  %v10632_v55 = vld [vmem:[#allocation81_spill] sm:$0xff] }
  0x93   :  { %1179 = vmatprep.subr.mxu1 %v10626_v20  ;;  %408 = vmatprep.mubr.f32.mxu0 %v407_v24  ;;  %v429_v24 = vand.u32 4294901760, %v428_v15  ;;  %v10634_v15 = vld [vmem:[#allocation85_spill] sm:$0xff] }
  0x94   :  { %1020 = vmatpush2.msra.mxu0 %v5706_v30  ;;  %1181 = vmatpush2.msra.mxu1 %v10627_v34 }
  0x95   :  { %414 = vmatmul.mubr.f32.gmra.mxu0 %v413_v44  ;;  %1023 = vmatprep.subr.mxu0 %v5718_v52  ;;  %v10631_v44 = vld [vmem:[#allocation79_spill] sm:$0xff] }
  0x96   :  { %1183 = vmatprep.subr.mxu1 %v10628_v28  ;;  %1026 = vmatpush2.msra.mxu0 %v5731_v37 }
  0x97   :  { %1185 = vmatpush2.msra.mxu1 %v10629_v12  ;;  %829 = vmatprep.mubr.f32.mxu1 %v5865_v56  ;;  %v10633_v56 = vld [vmem:[#allocation83_spill] sm:$0xff] }
  0x98   :  { %1029 = vmatprep.subr.mxu0 %v5742_v14  ;;  %1187 = vmatprep.subr.mxu1 %v10630_v13 }
  0x99   :  { %424 = vmatprep.mubr.f32.mxu0 %v423_v17  ;;  %831 = vmatmul.mubr.f32.gmra.mxu1 %v5871_v53  ;;  %v10635_v17 = vld [vmem:[#allocation87_spill] sm:$0xff]  ;;  %v10639_v53 = vand.u32 4294901760, %v4801_v25  ;;  %v10644_v25 = vand.u32 4294901760, %v4849_v40  ;;  %v10649_v40 = vand.u32 4294901760, %v4913_v0  ;;  %v10653_v0 = vand.u32 4294901760, %v4953_v48  ;;  %v10659_v48 = vld [vmem:[#allocation5_spill] sm:$0xff] }
  0x9a   :  { %1032 = vmatpush2.msra.mxu0 %v5749_v33  ;;  %1189 = vmatpush2.msra.mxu1 %v10631_v44 }
  0x9b   :  { %430 = vmatmul.mubr.f32.gmra.mxu0 %v429_v24  ;;  %1035 = vmatprep.subr.mxu0 %v5765_v41  ;;  %v10636_v24 = vand.u32 4294901760, %v4773_v18  ;;  %v10641_v18 = vand.u32 4294901760, %v4824_v31  ;;  %v10646_v31 = vand.u32 4294901760, %v5726_v51 }
  0x9c   :  { %1191 = vmatprep.subr.mxu1 %v10632_v55  ;;  %1038 = vmatpush2.msra.mxu0 %v5775_v54 }
  0x9d   :  { %1193 = vmatpush2.msra.mxu1 %v10633_v56  ;;  %837 = vmatprep.mubr.f32.mxu1 %v5888_v7  ;;  %v10637_v7 = vand.u32 4294901760, %v4795_v23  ;;  %v10642_v23 = vld [vmem:[#allocation96_spill] sm:$0xff] }
  0x9e   :  { %1041 = vmatprep.subr.mxu0 %v5784_v50  ;;  %1195 = vmatprep.subr.mxu1 %v10634_v15 }
  0x9f   :  { %839 = vmatmul.mubr.f32.gmra.mxu1 %v5897_v26  ;;  %1044 = vmatpush2.msra.mxu0 %v5791_v19  ;;  %v10638_v26 = vld [vmem:[#allocation92_spill] sm:$0xff] }
  0xa0   :  { %1047 = vmatprep.mubr.f32.mxu0 %v5726_v51  ;;  %1197 = vmatpush2.msra.mxu1 %v10635_v17  ;;  %v10651_v51 = vand.u32 4294901760, %v4941_v42 }
  0xa1   :  { %1050 = vmatmul.mubr.f32.vlgmr.msra.gmra.mxu0 %v5738_v38  ;;  %1199 = vmatprep.subr.mxu1 %v5586_v2  ;;  %v10640_v2 = vld [vmem:[#allocation94_spill] sm:$0xff] }
  0xa2   :  { %1266 = vmatprep.subr.mxu0 %v10636_v24  ;;  %1201 = vmatpush2.msra.mxu1 %v5600_v62  ;;  %v10648_v24 = vand.u32 4294901760, %v5738_v38  ;;  %v10661_v38 = vld [vmem:[#allocation24_spill] sm:$0xff] }
  0xa3   :  { %1270 = vmatpush1.msra.mxu0 %v10637_v7  ;;  %845 = vmatprep.mubr.f32.mxu1 %v5921_v61  ;;  %v10643_v7 = vand.u32 4294901760, %v4833_v35  ;;  %v10647_v35 = vand.u32 4294901760, %v4898_v59  ;;  %v10652_v59 = vand.u32 4294901760, %v5881_v27 }
  0xa4   :  { %1203 = vmatprep.subr.mxu1 %v10638_v26  ;;  %1274 = vmatprep.subr.mxu0 %v10639_v53  ;;  %v10645_v53 = vand.u32 4294901760, %v4863_v45  ;;  %v10650_v45 = vand.u32 4294901760, %v4927_v8  ;;  %v10657_v8 = vld [vmem:[#allocation22_spill] sm:$0xff] }
  0xa5   :  { %847 = vmatmul.mubr.f32.gmra.mxu1 %v5931_v60  ;;  %1057 = vmatprep.mubr.f32.mxu0 %v5881_v27  ;;  %v10658_v42 = vand.u32 4294901760, %v10657_v8 }
  0xa6   :  { %1205 = vmatpush2.msra.mxu1 %v10640_v2  ;;  %1278 = vmatpush1.msra.mxu0 %v10641_v18  ;;  %v10668_v18 = vld [vmem:[#allocation28_spill] sm:$0xff] }
  0xa7   :  { %1060 = vmatmul.mubr.f32.gmra.mxu0 %v5893_v36  ;;  %1207 = vmatprep.subr.mxu1 %v10642_v23 }
  0xa8   :  { %1282 = vmatprep.subr.mxu0 %v10643_v7  ;;  %1209 = vmatpush2.msra.mxu1 %v5664_v58  ;;  %v10669_v7 = vand.u32 4294901760, %v10668_v18 }
  0xa9   :  { %1286 = vmatpush1.msra.mxu0 %v10644_v25  ;;  %1211 = vmatprep.subr.mxu1 %v5680_v39  ;;  %v10670_v25 = vld [vmem:[#allocation8_spill] sm:$0xff] }
  0xaa   :  { %1290 = vmatprep.subr.mxu0 %v10645_v53  ;;  %1067 = vmatprep.mubr.f32.mxu0 %v5908_v43 }
  0xab   :  { %1213 = vmatpush2.msra.mxu1 %v5702_v49  ;;  %1217 = vmatprep.mubr.f32.mxu1 %v10646_v31  ;;  %v10673_v31 = vld [vmem:[#allocation9_spill] sm:$0xff] }
  0xac   :  { %1294 = vmatpush1.msra.mxu0 %v10647_v35  ;;  %1221 = vmatmul.mubr.f32.vlgmr.msra.gmra.mxu1 %v10648_v24  ;;  %v10674_v35 = vand.u32 4294901760, %v5942_v46 }
  0xad   :  { %1070 = vmatmul.mubr.f32.gmra.mxu0 %v5919_v63  ;;  %1298 = vmatprep.subr.mxu0 %v10649_v40  ;;  %v10677_v40 = vld [vmem:[#allocation10_spill] sm:$0xff] }
  0xae   :  { %1553 = vmatprep.subr.mxu1 %v4735_v3  ;;  %1302 = vmatpush1.msra.mxu0 %v10650_v45  ;;  %v10654_v3 = vand.u32 4294901760, %v5893_v36  ;;  %v10662_v36 = vand.u32 4294901760, %v10661_v38  ;;  %v10678_v45 = vand.u32 4294901760, %v5952_v16  ;;  %v10691_v38 = vld [vmem:[#allocation42_spill] sm:$0xff] }
  0xaf   :  { %1555 = vmatpush1.msra.mxu1 %v4737_v4  ;;  %1306 = vmatprep.subr.mxu0 %v10651_v51  ;;  %v10655_v4 = vand.u32 4294901760, %v4970_v21  ;;  %v10663_v21 = vld [vmem:[#allocation6_spill] sm:$0xff] }
  0xb0   :  { %1557 = vmatprep.subr.mxu1 %v4739_v5  ;;  %1077 = vmatprep.mubr.f32.mxu0 %v5942_v46  ;;  %v10656_v5 = vand.u32 4294901760, %v4982_v6  ;;  %v10665_v6 = vld [vmem:[#allocation26_spill] sm:$0xff] }
  0xb1   :  { %1229 = vmatprep.mubr.f32.mxu1 %v10652_v59  ;;  %1310 = vmatpush1.msra.mxu0 %v10653_v0  ;;  %v10666_v27 = vand.u32 4294901760, %v10665_v6  ;;  %v10679_v51 = vld [vmem:[#allocation34_spill] sm:$0xff]  ;;  %v10681_v0 = vld [vmem:[#allocation11_spill] sm:$0xff] }
  0xb2   :  { %1559 = vmatpush1.msra.mxu1 %v4750_v9  ;;  %1080 = vmatmul.mubr.f32.gmra.mxu0 %v5952_v16  ;;  %v10660_v9 = vand.u32 4294901760, %v5908_v43  ;;  %v10671_v43 = vld [vmem:[#allocation30_spill] sm:$0xff]  ;;  %v10680_v59 = vand.u32 4294901760, %v10679_v51 }
  0xb3   :  { %1233 = vmatmul.mubr.f32.gmra.mxu1 %v10654_v3  ;;  %1314 = vmatprep.subr.mxu0 %v10655_v4  ;;  %v10672_v53 = vand.u32 4294901760, %v10671_v43  ;;  %v10682_v3 = vld [vmem:[#allocation36_spill] sm:$0xff]  ;;  %v10685_v46 = vld [vmem:[#allocation38_spill] sm:$0xff] }
  0xb4   :  { %1561 = vmatprep.subr.mxu1 %v4752_v10  ;;  %1318 = vmatpush1.msra.mxu0 %v10656_v5  ;;  %v10664_v10 = vand.u32 4294901760, %v5919_v63  ;;  %v10675_v63 = vld [vmem:[#allocation32_spill] sm:$0xff]  ;;  %v10683_v4 = vand.u32 4294901760, %v10682_v3  ;;  %v10686_v8 = vand.u32 4294901760, %v10685_v46  ;;  %v10690_v16 = vld [vmem:[#allocation14_spill] sm:$0xff] }
  0xb5   :  { %1563 = vmatpush1.msra.mxu1 %v4754_v11  ;;  %1322 = vmatprep.subr.mxu0 %v10658_v42  ;;  %v10667_v11 = vld [vmem:[#allocation7_spill] sm:$0xff]  ;;  %v10676_v24 = vand.u32 4294901760, %v10675_v63  ;;  %v10684_v5 = vld [vmem:[#allocation12_spill] sm:$0xff]  ;;  %v10687_v42 = vld [vmem:[#allocation13_spill] sm:$0xff] }
  0xb6   :  { %1565 = vmatprep.subr.mxu1 %v10659_v48  ;;  %1241 = vmatprep.mubr.f32.mxu1 %v10660_v9  ;;  %v10688_v48 = vld [vmem:[#allocation40_spill] sm:$0xff]  ;;  %v10705_v63 = vld [vmem:[#allocation19_spill] sm:$0xff]  ;;  %v10709_v51 = vld [vmem:[#allocation54_spill] sm:$0xff] }
  0xb7   :  { %1326 = vmatpush1.msra.mxu0 %v10662_v36  ;;  %1567 = vmatpush1.msra.mxu1 %v10663_v21  ;;  %v10689_v9 = vand.u32 4294901760, %v10688_v48  ;;  %v10692_v36 = vand.u32 4294901760, %v10691_v38  ;;  %v10693_v21 = vld [vmem:[#allocation15_spill] sm:$0xff]  ;;  %v10712_v3 = vld [vmem:[#allocation56_spill] sm:$0xff]  ;;  %v10715_v46 = vld [vmem:[#allocation58_spill] sm:$0xff] }
  0xb8   :  { %1245 = vmatmul.mubr.f32.gmra.mxu1 %v10664_v10  ;;  %1330 = vmatprep.subr.mxu0 %v10666_v27  ;;  %v10694_v10 = vld [vmem:[#allocation44_spill] sm:$0xff]  ;;  %v10721_v38 = vld [vmem:[#allocation62_spill] sm:$0xff] }
  0xb9   :  { %1569 = vmatprep.subr.mxu1 %v10667_v11  ;;  %1334 = vmatpush1.msra.mxu0 %v10669_v7  ;;  %v10695_v6 = vand.u32 4294901760, %v10694_v10  ;;  %v10696_v27 = vld [vmem:[#allocation16_spill] sm:$0xff]  ;;  %v10697_v11 = vld [vmem:[#allocation46_spill] sm:$0xff]  ;;  %v10699_v7 = vld [vmem:[#allocation17_spill] sm:$0xff] }
  0xba   :  { %1571 = vmatpush1.msra.mxu1 %v10670_v25  ;;  %1338 = vmatprep.subr.mxu0 %v10672_v53  ;;  %v10698_v18 = vand.u32 4294901760, %v10697_v11  ;;  %v10700_v25 = vld [vmem:[#allocation48_spill] sm:$0xff]  ;;  %v10702_v53 = vld [vmem:[#allocation18_spill] sm:$0xff] }
  0xbb   :  { %1573 = vmatprep.subr.mxu1 %v10673_v31  ;;  %1253 = vmatprep.mubr.f32.mxu1 %v10674_v35  ;;  %v10701_v43 = vand.u32 4294901760, %v10700_v25  ;;  %v10703_v31 = vld [vmem:[#allocation50_spill] sm:$0xff]  ;;  %v10718_v48 = vld [vmem:[#allocation60_spill] sm:$0xff] }
  0xbc   :  { %1342 = vmatpush1.msra.mxu0 %v10676_v24  ;;  %1575 = vmatpush1.msra.mxu1 %v10677_v40  ;;  %v10704_v35 = vand.u32 4294901760, %v10703_v31  ;;  %v10706_v24 = vld [vmem:[#allocation52_spill] sm:$0xff]  ;;  %v10727_v11 = vld [vmem:[#allocation66_spill] sm:$0xff] }
  0xbd   :  { %1257 = vmatmul.mubr.f32.gmra.mxu1 %v10678_v45  ;;  %1346 = vmatprep.subr.mxu0 %v10680_v59  ;;  %v10707_v40 = vand.u32 4294901760, %v10706_v24  ;;  %v10708_v45 = vld [vmem:[#allocation20_spill] sm:$0xff]  ;;  %v10710_v59 = vand.u32 4294901760, %v10709_v51  ;;  %v10733_v31 = vld [vmem:[#allocation70_spill] sm:$0xff]  ;;  %v10735_v24 = vld [vmem:[#allocation37_spill] sm:$0xff] }
  0xbe   :  { %1577 = vmatprep.subr.mxu1 %v10681_v0  ;;  %1350 = vmatpush1.msra.mxu0 %v10683_v4  ;;  %v10711_v0 = vld [vmem:[#allocation21_spill] sm:$0xff]  ;;  %v10713_v4 = vand.u32 4294901760, %v10712_v3  ;;  %v10724_v10 = vld [vmem:[#allocation64_spill] sm:$0xff]  ;;  %v10738_v51 = vld [vmem:[#allocation39_spill] sm:$0xff] }
  0xbf   :  { %1579 = vmatpush1.msra.mxu1 %v10684_v5  ;;  %1354 = vmatprep.subr.mxu0 %v10686_v8  ;;  %v10714_v5 = vld [vmem:[#allocation23_spill] sm:$0xff]  ;;  %v10716_v8 = vand.u32 4294901760, %v10715_v46  ;;  %v10730_v25 = vld [vmem:[#allocation68_spill] sm:$0xff] }
  0xc0   :  { %1581 = vmatprep.subr.mxu1 %v10687_v42  ;;  %1358 = vmatpush1.msra.mxu0 %v10689_v9  ;;  %v10717_v42 = vld [vmem:[#allocation25_spill] sm:$0xff]  ;;  %v10719_v9 = vand.u32 4294901760, %v10718_v48  ;;  %v133_v3 = vld [vmem:[%s9708_s1 + $0x2f0] sm:$0xff] }
  0xc1   :  { %1583 = vmatpush1.msra.mxu1 %v10690_v16  ;;  %1362 = vmatprep.subr.mxu0 %v10692_v36  ;;  %v10720_v16 = vld [vmem:[#allocation27_spill] sm:$0xff]  ;;  %v10722_v36 = vand.u32 4294901760, %v10721_v38  ;;  %v131_v48 = vld [vmem:[%s9708_s1 + $0x2e0] sm:$0xff] }
  0xc2   :  { %1585 = vmatprep.subr.mxu1 %v10693_v21  ;;  %1366 = vmatpush1.msra.mxu0 %v10695_v6  ;;  %v10723_v21 = vld [vmem:[#allocation29_spill] sm:$0xff]  ;;  %v10725_v6 = vand.u32 4294901760, %v10724_v10  ;;  %v10749_v10 = vld [vmem:[#allocation80_spill] sm:$0xff] }
  0xc3   :  { %1587 = vmatpush1.msra.mxu1 %v10696_v27  ;;  %1370 = vmatprep.subr.mxu0 %v10698_v18  ;;  %v10726_v27 = vld [vmem:[#allocation31_spill] sm:$0xff]  ;;  %v10728_v18 = vand.u32 4294901760, %v10727_v11 }
  0xc4   :  { %1589 = vmatprep.subr.mxu1 %v10699_v7  ;;  %1374 = vmatpush1.msra.mxu0 %v10701_v43  ;;  %v10729_v7 = vld [vmem:[#allocation33_spill] sm:$0xff]  ;;  %v10731_v43 = vand.u32 4294901760, %v10730_v25  ;;  %v129_v11 = vld [vmem:[%s9708_s1 + $0x2d0] sm:$0xff] }
  0xc5   :  { %1591 = vmatpush1.msra.mxu1 %v10702_v53  ;;  %1378 = vmatprep.subr.mxu0 %v10704_v35  ;;  %v10732_v53 = vld [vmem:[#allocation35_spill] sm:$0xff]  ;;  %v10734_v35 = vand.u32 4294901760, %v10733_v31  ;;  %v10757_v31 = vld [vmem:[#allocation49_spill] sm:$0xff] }
  0xc6   :  { %1593 = vmatprep.subr.mxu1 %v10705_v63  ;;  %1382 = vmatpush1.msra.mxu0 %v10707_v40  ;;  %v134_v63 = vld [vmem:[%s9708_s1 + $0x2f8] sm:$0xff] }
  0xc7   :  { %1595 = vmatpush1.msra.mxu1 %v10708_v45  ;;  %1386 = vmatprep.subr.mxu0 %v10710_v59  ;;  %v10736_v40 = vld [vmem:[#allocation72_spill] sm:$0xff]  ;;  %v10739_v59 = vld [vmem:[#allocation74_spill] sm:$0xff] }
  0xc8   :  { %1597 = vmatprep.subr.mxu1 %v10711_v0  ;;  %1390 = vmatpush1.msra.mxu0 %v10713_v4  ;;  %v10737_v45 = vand.u32 4294901760, %v10736_v40  ;;  %v10740_v0 = vand.u32 4294901760, %v10739_v59  ;;  %v10741_v4 = vld [vmem:[#allocation41_spill] sm:$0xff]  ;;  %v10762_v59 = vld [vmem:[#allocation51_spill] sm:$0xff] }
  0xc9   :  { %1599 = vmatpush1.msra.mxu1 %v10714_v5  ;;  %1394 = vmatprep.subr.mxu0 %v10716_v8  ;;  %v10742_v5 = vld [vmem:[#allocation76_spill] sm:$0xff]  ;;  %v6157_v8 = vand.u32 4294901760, %v134_v63 }
  0xca   :  { %1601 = vmatprep.subr.mxu1 %v10717_v42  ;;  %1398 = vmatpush2.msra.mxu0 %v10719_v9  ;;  %v10743_v46 = vand.u32 4294901760, %v10742_v5  ;;  %v132_v42 = vld [vmem:[%s9708_s1 + $0x2e8] sm:$0xff]  ;;  %v10745_v9 = vld [vmem:[#allocation43_spill] sm:$0xff]  ;;  %v6200_v5 = vand.u32 4294901760, %v129_v11 }
  0xcb   :  { %1603 = vmatpush1.msra.mxu1 %v10720_v16  ;;  %1402 = vmatprep.subr.mxu0 %v10722_v36  ;;  %10744 = vst [vmem:[#allocation91_spill] sm:$0xff] %v6157_v8  ;;  %v10746_v16 = vld [vmem:[#allocation78_spill] sm:$0xff]  ;;  %v130_v36 = vld [vmem:[%s9708_s1 + $0x2d8] sm:$0xff] }
  0xcc   :  { %1605 = vmatprep.subr.mxu1 %v10723_v21  ;;  %1406 = vmatpush2.msra.mxu0 %v10725_v6  ;;  %v10747_v38 = vand.u32 4294901760, %v10746_v16  ;;  %v10748_v21 = vld [vmem:[#allocation45_spill] sm:$0xff]  ;;  %v10750_v6 = vand.u32 4294901760, %v10749_v10  ;;  %v6189_v40 = vand.u32 4294901760, %v130_v36  ;;  %10765 = vst [vmem:[#allocation71_spill] sm:$0xff] %v6200_v5  ;;  %v10767_v16 = vld [vmem:[#allocation88_spill] sm:$0xff] }
  0xcd   :  { %1607 = vmatpush1.msra.mxu1 %v10726_v27  ;;  %1410 = vmatprep.subr.mxu0 %v10728_v18  ;;  %v6174_v27 = vand.u32 4294901760, %v133_v3  ;;  %v10752_v18 = vld [vmem:[#allocation47_spill] sm:$0xff] }
  0xce   :  { %1609 = vmatprep.subr.mxu1 %v10729_v7  ;;  %1414 = vmatpush2.msra.mxu0 %v10731_v43  ;;  %v10753_v7 = vld [vmem:[#allocation82_spill] sm:$0xff]  ;;  %v6182_v43 = vand.u32 4294901760, %v132_v42  ;;  %10760 = vst [vmem:[#allocation67_spill] sm:$0xff] %v6189_v40  ;;  %v10770_v10 = vld [vmem:[#allocation55_spill] sm:$0xff] }
  0xcf   :  { %1611 = vmatpush1.msra.mxu1 %v10732_v53  ;;  %1418 = vmatprep.subr.mxu0 %v10734_v35  ;;  %10751 = vst [vmem:[#allocation95_spill] sm:$0xff] %v6174_v27  ;;  %v10754_v25 = vand.u32 4294901760, %v10753_v7  ;;  %v6184_v53 = vand.u32 4294901760, %v131_v48  ;;  %v10758_v35 = vld [vmem:[#allocation84_spill] sm:$0xff] }
  0xd0   :  { %1613 = vmatprep.subr.mxu1 %v10735_v24  ;;  %1422 = vmatpush2.msra.mxu0 %v10737_v45  ;;  %10755 = vst [vmem:[#allocation97_spill] sm:$0xff] %v6182_v43  ;;  %v10759_v24 = vand.u32 4294901760, %v10758_v35  ;;  %v128_v45 = vld [vmem:[%s9708_s1 + $0x2c8] sm:$0xff]  ;;  %v10776_v35 = vld [vmem:[#allocation57_spill] sm:$0xff] }
  0xd1   :  { %1615 = vmatpush1.msra.mxu1 %v10738_v51  ;;  %1426 = vmatprep.subr.mxu0 %v10740_v0  ;;  %10756 = vst [vmem:[#allocation65_spill] sm:$0xff] %v6184_v53  ;;  %v6195_v51 = vsub.f32 %v134_v63, %v6157_v8  ;;  %v10763_v0 = vld [vmem:[#allocation86_spill] sm:$0xff]  ;;  %v126_v63 = vld [vmem:[%s9708_s1 + $0x2b8] sm:$0xff]  ;;  %v6218_v7 = vsub.f32 %v131_v48, %v6184_v53 }
  0xd2   :  { %1617 = vmatprep.subr.mxu1 %v10741_v4  ;;  %1430 = vmatpush2.msra.mxu0 %v10743_v46  ;;  %v10764_v4 = vand.u32 4294901760, %v10763_v0  ;;  %v127_v46 = vld [vmem:[%s9708_s1 + $0x2c0] sm:$0xff]  ;;  %v6235_v48 = vsub.f32 %v130_v36, %v6189_v40 }
  0xd3   :  { %1619 = vmatpush2.msra.mxu1 %v10745_v9  ;;  %1434 = vmatprep.subr.mxu0 %v10747_v38  ;;  %10761 = vst [vmem:[#allocation69_spill] sm:$0xff] %v6195_v51  ;;  %v10766_v9 = vld [vmem:[#allocation53_spill] sm:$0xff]  ;;  %v10768_v38 = vand.u32 4294901760, %v10767_v16  ;;  %10773 = vst [vmem:[#allocation75_spill] sm:$0xff] %v6218_v7  ;;  %v9933_v0 = vand.u32 4294901760, %v6195_v51 }
  0xd4   :  { %1621 = vmatprep.subr.mxu1 %v10748_v21  ;;  %1438 = vmatpush2.msra.mxu0 %v10750_v6  ;;  %v6209_v21 = vsub.f32 %v133_v3, %v6174_v27  ;;  %v10771_v6 = vld [vmem:[#allocation90_spill] sm:$0xff]  ;;  %v6226_v3 = vsub.f32 %v132_v42, %v6182_v43  ;;  %10779 = vst [vmem:[#allocation83_spill] sm:$0xff] %v6235_v48 }
  0xd5   :  { %1623 = vmatpush2.msra.mxu1 %v10752_v18  ;;  %1442 = vmatprep.subr.mxu0 %v10754_v25  ;;  %v10772_v18 = vand.u32 4294901760, %v10771_v6  ;;  %v6220_v25 = vand.u32 4294901760, %v128_v45  ;;  %v6241_v42 = vsub.f32 %v129_v11, %v6200_v5  ;;  %v123_v11 = vld [vmem:[%s9708_s1 + $0x2a0] sm:$0xff] }
  0xd6   :  { %1625 = vmatprep.subr.mxu1 %v10757_v31  ;;  %1446 = vmatpush2.msra.mxu0 %v10759_v24  ;;  %10769 = vst [vmem:[#allocation73_spill] sm:$0xff] %v6209_v21  ;;  %v125_v31 = vld [vmem:[%s9708_s1 + $0x2b0] sm:$0xff]  ;;  %10775 = vst [vmem:[#allocation79_spill] sm:$0xff] %v6226_v3  ;;  %v10777_v24 = vand.u32 4294901760, %v10616_v29  ;;  %v10786_v29 = vand.u32 4294901760, %v10621_v32  ;;  %v9936_v36 = vand.u32 4294901760, %v6209_v21 }
  0xd7   :  { %1627 = vmatpush2.msra.mxu1 %v10762_v59  ;;  %1450 = vmatprep.subr.mxu0 %v10764_v4  ;;  %10774 = vst [vmem:[#allocation77_spill] sm:$0xff] %v6220_v25  ;;  %v6231_v59 = vand.u32 4294901760, %v127_v46  ;;  %v10780_v4 = vld [vmem:[#allocation59_spill] sm:$0xff]  ;;  %10783 = vst [vmem:[#allocation85_spill] sm:$0xff] %v6241_v42  ;;  %v6248_v6 = vand.u32 4294901760, %v125_v31  ;;  %v9935_v32 = vand.u32 4294901760, %v6226_v3 }
  0xd8   :  { %1629 = vmatprep.subr.mxu1 %v10766_v9  ;;  %1454 = vmatpush2.msra.mxu0 %v10768_v38  ;;  %v10781_v9 = vld [vmem:[#allocation93_spill] sm:$0xff]  ;;  %v6243_v38 = vand.u32 4294901760, %v126_v63 }
  0xd9   :  { %1631 = vmatpush2.msra.mxu1 %v10770_v10  ;;  %1458 = vmatprep.subr.mxu0 %v10772_v18  ;;  %10778 = vst [vmem:[#allocation81_spill] sm:$0xff] %v6231_v59  ;;  %v10782_v16 = vand.u32 4294901760, %v10781_v9  ;;  %v10785_v10 = vld [vmem:[#allocation61_spill] sm:$0xff]  ;;  %10787 = vst [vmem:[#allocation92_spill] sm:$0xff] %v6248_v6  ;;  %v124_v18 = vld [vmem:[%s9708_s1 + $0x2a8] sm:$0xff]  ;;  %v6263_v9 = vsub.f32 %v128_v45, %v6220_v25  ;;  %v9937_v45 = vand.u32 4294901760, %v6235_v48 }
  0xda   :  { %1633 = vmatprep.subr.mxu1 %v10776_v35  ;;  %1462 = vmatpush2.msra.mxu0 %v10777_v24  ;;  %10784 = vst [vmem:[#allocation87_spill] sm:$0xff] %v6243_v38  ;;  %v10788_v35 = vld [vmem:[#allocation63_spill] sm:$0xff]  ;;  %v10789_v24 = vand.u32 4294901760, %v10623_v47  ;;  %v6274_v47 = vsub.f32 %v6195_v51, %v9933_v0  ;;  %v6292_v0 = vsub.f32 %v126_v63, %v6243_v38 }
  0xdb   :  { %1635 = vmatpush2.msra.mxu1 %v10780_v4  ;;  %1466 = vmatprep.subr.mxu0 %v10782_v16  ;;  %v9934_v4 = vand.u32 4294901760, %v6218_v7  ;;  %10790 = vst [vmem:[#allocation94_spill] sm:$0xff] %v6263_v9  ;;  %v10791_v16 = vand.u32 4294901760, %v5668_v1  ;;  %v6283_v1 = vand.u32 4294901760, %v124_v18 }
  0xdc   :  { %1637 = vmatprep.subr.mxu1 %v10785_v10  ;;  %1470 = vmatpush2.msra.mxu0 %v10786_v29  ;;  %v6269_v10 = vsub.f32 %v127_v46, %v6231_v59  ;;  %v122_v29 = vld [vmem:[%s9708_s1 + $0x298] sm:$0xff]  ;;  %v6285_v46 = vand.u32 4294901760, %v123_v11  ;;  %10797 = vst [vmem:[#allocation24_spill] sm:$0xff] %v6292_v0 }
  0xdd   :  { %1639 = vmatpush2.msra.mxu1 %v10788_v35  ;;  %1474 = vmatprep.subr.mxu0 %v10789_v24  ;;  %10795 = vst [vmem:[#allocation22_spill] sm:$0xff] %v6283_v1  ;;  %v121_v24 = vld [vmem:[%s9708_s1 + $0x290] sm:$0xff]  ;;  %v6318_v63 = vand.u32 4294901760, %v122_v29 }
  0xde   :  { %1641 = vmatprep.subr.mxu1 %v10624_v22  ;;  %1478 = vmatpush2.msra.mxu0 %v10791_v16  ;;  %10792 = vst [vmem:[#allocation96_spill] sm:$0xff] %v6269_v10  ;;  %v10793_v22 = vld [vmem:[#allocation98_spill] sm:$0xff]  ;;  %10796 = vst [vmem:[#allocation5_spill] sm:$0xff] %v6285_v46  ;;  %v10800_v16 = vand.u32 4294901760, %v5718_v52  ;;  %v119_v52 = vld [vmem:[%s9708_s1 + $0x280] sm:$0xff] }
  0xdf   :  { %1643 = vmatpush2.msra.mxu1 %v10625_v57  ;;  %v10794_v35 = vand.u32 4294901760, %v10793_v22  ;;  %v10798_v57 = vand.u32 4294901760, %v5706_v30  ;;  %v6298_v22 = vsub.f32 %v125_v31, %v6248_v6  ;;  %v6316_v30 = vsub.f32 %v6218_v7, %v9934_v4  ;;  %10801 = vst [vmem:[#allocation26_spill] sm:$0xff] %v6318_v63  ;;  %v120_v31 = vld [vmem:[%s9708_s1 + $0x288] sm:$0xff] }
  0xe0   :  { %1645 = vmatprep.subr.mxu1 %v10626_v20  ;;  %v6311_v20 = vsub.f32 %v6226_v3, %v9935_v32  ;;  %v6334_v4 = vsub.f32 %v6235_v48, %v9937_v45  ;;  %v6336_v32 = vand.u32 4294901760, %v121_v24  ;;  %v118_v45 = vld [vmem:[%s9708_s1 + $0x278] sm:$0xff] }
  0xe1   :  { %1482 = vmatprep.subr.mxu0 %v10794_v35  ;;  %10799 = vst [vmem:[#allocation6_spill] sm:$0xff] %v6298_v22  ;;  %v6303_v35 = vsub.f32 %v6209_v21, %v9936_v36  ;;  %1647 = vmatpush2.msra.mxu1 %v10627_v34  ;;  %v10804_v34 = vand.u32 4294901760, %v5742_v14  ;;  %v6355_v36 = vsub.f32 %v124_v18, %v6283_v1  ;;  %v117_v14 = vld [vmem:[%s9708_s1 + $0x270] sm:$0xff]  ;;  %v6394_v18 = vand.u32 4294901760, %v118_v45  ;;  %v10844_v21 = vld [vmem:[#allocation102_spill] sm:$0xff] }
  0xe2   :  { %1486 = vmatpush2.msra.mxu0 %v10798_v57  ;;  %1649 = vmatprep.subr.mxu1 %v10628_v28  ;;  %10803 = vst [vmem:[#allocation7_spill] sm:$0xff] %v6336_v32  ;;  %v6343_v28 = vsub.f32 %v123_v11, %v6285_v46  ;;  %v6361_v11 = vand.u32 4294901760, %v120_v31  ;;  %v10811_v57 = vand.u32 4294901760, %v5765_v41  ;;  %v10814_v41 = vand.u32 4294901760, %v5775_v54  ;;  %v115_v54 = vld [vmem:[%s9708_s1 + $0x260] sm:$0xff] }
  0xe3   :  { %1490 = vmatprep.subr.mxu0 %v10800_v16  ;;  %v10802_v16 = vand.u32 4294901760, %v5731_v37  ;;  %1651 = vmatpush2.msra.mxu1 %v10629_v12  ;;  %v10806_v37 = vand.u32 4294901760, %v6241_v42  ;;  %10807 = vst [vmem:[#allocation8_spill] sm:$0xff] %v6355_v36  ;;  %v10808_v12 = vand.u32 4294901760, %v5749_v33  ;;  %v10812_v33 = vand.u32 4294901760, %v6263_v9  ;;  %10817 = vst [vmem:[#allocation34_spill] sm:$0xff] %v6394_v18 }
  0xe4   :  { %10805 = vst [vmem:[#allocation28_spill] sm:$0xff] %v6343_v28  ;;  %1653 = vmatprep.subr.mxu1 %v10630_v13  ;;  %10809 = vst [vmem:[#allocation30_spill] sm:$0xff] %v6361_v11  ;;  %v10833_v48 = vand.u32 4294901760, %v6343_v28 }
  0xe5   :  { %1494 = vmatpush2.msra.mxu0 %v10802_v16  ;;  %v6348_v16 = vsub.f32 %v6241_v42, %v10806_v37  ;;  %1655 = vmatpush2.msra.mxu1 %v10631_v44  ;;  %v6380_v37 = vsub.f32 %v122_v29, %v6318_v63  ;;  %v116_v29 = vld [vmem:[%s9708_s1 + $0x268] sm:$0xff]  ;;  %v6433_v44 = vsub.f32 %v120_v31, %v6361_v11 }
  0xe6   :  { %1498 = vmatprep.subr.mxu0 %v10804_v34  ;;  %v6363_v34 = vand.u32 4294901760, %v119_v52  ;;  %1657 = vmatprep.subr.mxu1 %v10632_v55  ;;  %v10818_v55 = vand.u32 4294901760, %v5784_v50  ;;  %v10820_v50 = vand.u32 4294901760, %v5791_v19  ;;  %v6453_v19 = vsub.f32 %v118_v45, %v6394_v18  ;;  %v111_v45 = vld [vmem:[%s9708_s1 + $0x240] sm:$0xff] }
  0xe7   :  { %1502 = vmatpush2.msra.mxu0 %v10808_v12  ;;  %v6374_v12 = vsub.f32 %v6263_v9, %v10812_v33  ;;  %10813 = vst [vmem:[#allocation32_spill] sm:$0xff] %v6380_v37  ;;  %v10816_v33 = vand.u32 4294901760, %v6269_v10  ;;  %1659 = vmatpush2.msra.mxu1 %v10633_v56  ;;  %v114_v9 = vld [vmem:[%s9708_s1 + $0x258] sm:$0xff]  ;;  %10824 = vst [vmem:[#allocation12_spill] sm:$0xff] %v6433_v44  ;;  %v6466_v7 = vsub.f32 %v6343_v28, %v10833_v48  ;;  %v109_v48 = vld [vmem:[%s9708_s1 + $0x230] sm:$0xff] }
  0xe8   :  { %10810 = vst [vmem:[#allocation9_spill] sm:$0xff] %v6363_v34  ;;  %1506 = vmatprep.subr.mxu0 %v10811_v57  ;;  %v6387_v57 = vsub.f32 %v121_v24, %v6336_v32  ;;  %1661 = vmatprep.subr.mxu1 %v10634_v15  ;;  %v6420_v56 = vsub.f32 %v119_v52, %v6363_v34  ;;  %v10825_v15 = vld [vmem:[#allocation99_spill] sm:$0xff]  ;;  %v6438_v52 = vand.u32 4294901760, %v116_v29  ;;  %v6446_v31 = vand.u32 4294901760, %v114_v9  ;;  %v110_v28 = vld [vmem:[%s9708_s1 + $0x238] sm:$0xff] }
  0xe9   :  { %1510 = vmatpush2.msra.mxu0 %v10814_v41  ;;  %v6392_v13 = vsub.f32 %v6269_v10, %v10816_v33  ;;  %v10819_v41 = vand.u32 4294901760, %v6292_v0  ;;  %v113_v10 = vld [vmem:[%s9708_s1 + $0x250] sm:$0xff]  ;;  %1520 = vmatprep.mubr.f32.mxu0 %v10825_v15  ;;  %10831 = vst [vmem:[#allocation14_spill] sm:$0xff] %v6453_v19 }
  0xea   :  { %10815 = vst [vmem:[#allocation10_spill] sm:$0xff] %v6387_v57  ;;  %1514 = vmatprep.subr.mxu0 %v10818_v55  ;;  %10821 = vst [vmem:[#allocation11_spill] sm:$0xff] %v6420_v56  ;;  %v6422_v55 = vand.u32 4294901760, %v117_v14  ;;  %1663 = vmatpush2.msra.mxu1 %v10635_v17  ;;  %v112_v17 = vld [vmem:[%s9708_s1 + $0x248] sm:$0xff]  ;;  %v6468_v3 = vand.u32 4294901760, %v113_v10 }
  0xeb   :  { %v6409_v33 = vsub.f32 %v6292_v0, %v10819_v41  ;;  %1518 = vmatpush2.msra.mxu0 %v10820_v50  ;;  %v10823_v41 = vand.u32 4294901760, %v6298_v22  ;;  %10826 = vst [vmem:[#allocation38_spill] sm:$0xff] %v6438_v52  ;;  %v6440_v50 = vand.u32 4294901760, %v115_v54  ;;  %v10829_v0 = vld [vmem:[#allocation89_spill] sm:$0xff]  ;;  %10830 = vst [vmem:[#allocation40_spill] sm:$0xff] %v6446_v31  ;;  %1681 = vmatprep.mubr.f32.mxu1 %v10825_v15 }
  0xec   :  { %10822 = vst [vmem:[#allocation36_spill] sm:$0xff] %v6422_v55  ;;  %1665 = vmatprep.subr.mxu1 %v10829_v0  ;;  %1714 = vmatprep.subr.mxu0 %v6157_v8  ;;  %v10832_v0 = vand.u32 4294901760, %v6355_v36  ;;  %10834 = vst [vmem:[#allocation42_spill] sm:$0xff] %v6468_v3  ;;  %v6513_v8 = vsub.f32 %v114_v9, %v6446_v31  ;;  %v10847_v9 = vand.u32 4294901760, %v6433_v44 }
  0xed   :  { %v6427_v24 = vsub.f32 %v6298_v22, %v10823_v41  ;;  %10827 = vst [vmem:[#allocation13_spill] sm:$0xff] %v6440_v50  ;;  %v10828_v22 = vld [vmem:[#allocation100_spill] sm:$0xff]  ;;  %1667 = vmatpush2.msra.mxu1 %v5600_v62  ;;  %v6476_v62 = vsub.f32 %v117_v14, %v6422_v55  ;;  %v6500_v41 = vsub.f32 %v116_v29, %v6438_v52  ;;  %v6536_v29 = vand.u32 4294901760, %v109_v48 }
  0xee   :  { %1522 = vmatmul.mubr.f32.vlgmr.msra.gmra.mxu0 %v10828_v22  ;;  %v6461_v42 = vsub.f32 %v6355_v36, %v10832_v0  ;;  %1669 = vmatprep.subr.mxu1 %v10638_v26  ;;  %v10836_v36 = vld [vmem:[#allocation101_spill] sm:$0xff]  ;;  %v10838_v26 = vand.u32 4294901760, %v6380_v37  ;;  %v6494_v0 = vand.u32 4294901760, %v112_v17  ;;  %10843 = vst [vmem:[#allocation48_spill] sm:$0xff] %v6513_v8 }
  0xef   :  { %1716 = vmatpush1.msra.mxu0 %v6174_v27  ;;  %10835 = vst [vmem:[#allocation15_spill] sm:$0xff] %v6476_v62  ;;  %1528 = vmatprep.mubr.f32.mxu0 %v10836_v36  ;;  %v6487_v27 = vsub.f32 %v115_v54, %v6440_v50  ;;  %10840 = vst [vmem:[#allocation46_spill] sm:$0xff] %v6500_v41  ;;  %v10841_v54 = vand.u32 4294901760, %v6387_v57 }
  0xf0   :  { %1718 = vmatprep.subr.mxu0 %v6182_v43  ;;  %v6492_v14 = vsub.f32 %v6380_v37, %v10838_v26  ;;  %10839 = vst [vmem:[#allocation16_spill] sm:$0xff] %v6494_v0  ;;  %1671 = vmatpush2.msra.mxu1 %v10640_v2  ;;  %v6509_v26 = vand.u32 4294901760, %v111_v45  ;;  %v6529_v37 = vsub.f32 %v6433_v44, %v10847_v9  ;;  %10849 = vst [vmem:[#allocation19_spill] sm:$0xff] %v6536_v29  ;;  %v10851_v44 = vld [vmem:[#allocation103_spill] sm:$0xff] }
  0xf1   :  { %10837 = vst [vmem:[#allocation44_spill] sm:$0xff] %v6487_v27  ;;  %1720 = vmatpush1.msra.mxu0 %v6184_v53  ;;  %v6507_v43 = vsub.f32 %v6387_v57, %v10841_v54  ;;  %1673 = vmatprep.subr.mxu1 %v10642_v23  ;;  %v6520_v53 = vsub.f32 %v113_v10, %v6468_v3  ;;  %v6522_v54 = vand.u32 4294901760, %v110_v28  ;;  %v10848_v23 = vand.u32 4294901760, %v6420_v56  ;;  %v108_v57 = vld [vmem:[%s9708_s1 + $0x228] sm:$0xff] }
  0xf2   :  { %10842 = vst [vmem:[#allocation17_spill] sm:$0xff] %v6509_v26  ;;  %1530 = vmatmul.mubr.f32.gmra.mxu0 %v10844_v21  ;;  %1722 = vmatprep.subr.mxu0 %v6189_v40  ;;  %v6551_v10 = vsub.f32 %v112_v17, %v6494_v0  ;;  %v6557_v51 = vsub.f32 %v111_v45, %v6509_v26  ;;  %v105_v45 = vld [vmem:[%s9708_s1 + $0x210] sm:$0xff] }
  0xf3   :  { %10845 = vst [vmem:[#allocation18_spill] sm:$0xff] %v6520_v53  ;;  %10846 = vst [vmem:[#allocation50_spill] sm:$0xff] %v6522_v54  ;;  %1675 = vmatpush2.msra.mxu1 %v5664_v58  ;;  %v6534_v2 = vsub.f32 %v6420_v56, %v10848_v23  ;;  %v107_v58 = vld [vmem:[%s9708_s1 + $0x220] sm:$0xff]  ;;  %1724 = vmatpush1.msra.mxu0 %v6200_v5  ;;  %v106_v56 = vld [vmem:[%s9708_s1 + $0x218] sm:$0xff]  ;;  %v6570_v23 = vand.u32 4294901760, %v108_v57  ;;  %v6586_v17 = vsub.f32 %v109_v48, %v6536_v29 }
  0xf4   :  { %1677 = vmatprep.subr.mxu1 %v5680_v39  ;;  %10850 = vst [vmem:[#allocation52_spill] sm:$0xff] %v6551_v10  ;;  %1726 = vmatprep.subr.mxu0 %v6220_v25  ;;  %10852 = vst [vmem:[#allocation20_spill] sm:$0xff] %v6557_v51  ;;  %v10853_v39 = vand.u32 4294901760, %v6453_v19  ;;  %v6572_v40 = vand.u32 4294901760, %v107_v58  ;;  %v10858_v25 = vand.u32 4294901760, %v6476_v62  ;;  %v6605_v48 = vand.u32 4294901760, %v106_v56 }
  0xf5   :  { %1536 = vmatprep.mubr.f32.mxu0 %v10851_v44  ;;  %1679 = vmatpush2.msra.mxu1 %v5702_v49  ;;  %10854 = vst [vmem:[#allocation54_spill] sm:$0xff] %v6570_v23  ;;  %10857 = vst [vmem:[#allocation23_spill] sm:$0xff] %v6586_v17  ;;  %v10861_v49 = vand.u32 4294901760, %v6487_v27  ;;  %v10866_v29 = vand.u32 4294901760, %v6303_v35  ;;  %v10870_v35 = vand.u32 4294901760, %v6311_v20  ;;  %v10873_v20 = vand.u32 4294901760, %v6551_v10 }
  0xf6   :  { %v6562_v9 = vsub.f32 %v6453_v19, %v10853_v39  ;;  %10855 = vst [vmem:[#allocation21_spill] sm:$0xff] %v6572_v40  ;;  %v6579_v19 = vsub.f32 %v110_v28, %v6522_v54  ;;  %1728 = vmatpush1.msra.mxu0 %v6231_v59  ;;  %1683 = vmatmul.mubr.f32.vlgmr.msra.gmra.mxu1 %v10828_v22  ;;  %v10859_v39 = vld [vmem:[#allocation104_spill] sm:$0xff]  ;;  %v10860_v28 = vand.u32 4294901760, %v6500_v41  ;;  %10862 = vst [vmem:[#allocation58_spill] sm:$0xff] %v6605_v48 }
  0xf7   :  { %v6591_v5 = vsub.f32 %v6476_v62, %v10858_v25  ;;  %1538 = vmatmul.mubr.f32.gmra.mxu0 %v10859_v39  ;;  %1730 = vmatprep.subr.mxu0 %v6243_v38  ;;  %v6603_v15 = vsub.f32 %v6487_v27, %v10861_v49  ;;  %v104_v25 = vld [vmem:[%s9708_s1 + $0x208] sm:$0xff]  ;;  %v103_v38 = vld [vmem:[%s9708_s1 + $0x200] sm:$0xff]  ;;  %v10864_v27 = vand.u32 4294901760, %v6513_v8  ;;  %v6623_v59 = vand.u32 4294901760, %v105_v45 }
  0xf8   :  { %10856 = vst [vmem:[#allocation56_spill] sm:$0xff] %v6579_v19  ;;  %v6598_v22 = vsub.f32 %v6500_v41, %v10860_v28  ;;  %v10863_v28 = vand.u32 4294901760, %v6274_v47  ;;  %1732 = vmatpush1.msra.mxu0 %v6248_v6  ;;  %v6630_v47 = vsub.f32 %v107_v58, %v6572_v40  ;;  %v6642_v62 = vsub.f32 %v108_v57, %v6570_v23  ;;  %v164_v57 = vld [vmem:[%s9708_s1 + $0x3e8] sm:$0xff] }
  0xf9   :  { %v6621_v41 = vsub.f32 %v6513_v8, %v10864_v27  ;;  %10865 = vst [vmem:[#allocation25_spill] sm:$0xff] %v6623_v59  ;;  %1734 = vmatprep.subr.mxu0 %v6283_v1  ;;  %v165_v8 = vld [vmem:[%s9708_s1 + $0x3f0] sm:$0xff]  ;;  %1544 = vmatprep.mubr.f32.mxu0 %v5921_v61  ;;  %v6648_v58 = vand.u32 4294901760, %v104_v25  ;;  %v6666_v1 = vsub.f32 %v106_v56, %v6605_v48  ;;  %v163_v56 = vld [vmem:[%s9708_s1 + $0x3e0] sm:$0xff]  ;;  %v10880_v6 = vand.u32 4294901760, %v6334_v4 }
  0xfa   :  { %1911 = vmatprep.subr.mxu1 %v10863_v28  ;;  %10867 = vst [vmem:[#allocation60_spill] sm:$0xff] %v6630_v47  ;;  %v10868_v28 = vand.u32 4294901760, %v6520_v53  ;;  %10869 = vst [vmem:[#allocation27_spill] sm:$0xff] %v6642_v62  ;;  %1689 = vmatprep.mubr.f32.mxu1 %v10836_v36  ;;  %v10875_v36 = vand.u32 4294901760, %v6316_v30  ;;  %v161_v30 = vld [vmem:[%s9708_s1 + $0x3d0] sm:$0xff]  ;;  %v6724_v4 = vand.u32 4294901760, %v163_v56 }
  0xfb   :  { %1917 = vmatpush1.msra.mxu1 %v10866_v29  ;;  %10871 = vst [vmem:[#allocation62_spill] sm:$0xff] %v6648_v58  ;;  %1736 = vmatpush1.msra.mxu0 %v6285_v46  ;;  %v166_v29 = vld [vmem:[%s9708_s1 + $0x3f8] sm:$0xff]  ;;  %10874 = vst [vmem:[#allocation64_spill] sm:$0xff] %v6666_v1  ;;  %v6718_v46 = vsub.f32 %v104_v25, %v6648_v58  ;;  %v10888_v25 = vand.u32 4294901760, %v6374_v12  ;;  %v10892_v12 = vand.u32 4294901760, %v6642_v62 }
  0xfc   :  { %v6635_v49 = vsub.f32 %v6520_v53, %v10868_v28  ;;  %1923 = vmatprep.subr.mxu1 %v10870_v35  ;;  %v6650_v28 = vand.u32 4294901760, %v103_v38  ;;  %v6660_v35 = vsub.f32 %v6551_v10, %v10873_v20  ;;  %1546 = vmatmul.mubr.f32.gmra.mxu0 %v5931_v60  ;;  %v6673_v53 = vsub.f32 %v105_v45, %v6623_v59 }
  0xfd   :  { %1929 = vmatpush1.msra.mxu1 %v10875_v36  ;;  %v10877_v20 = vand.u32 4294901760, %v6557_v51  ;;  %v6680_v10 = vand.u32 4294901760, %v165_v8  ;;  %1738 = vmatprep.subr.mxu0 %v6318_v63  ;;  %v10879_v36 = vand.u32 4294901760, %v6579_v19  ;;  %v6707_v45 = vand.u32 4294901760, %v166_v29  ;;  %10884 = vst [vmem:[#allocation35_spill] sm:$0xff] %v6718_v46  ;;  %10886 = vst [vmem:[#allocation70_spill] sm:$0xff] %v6724_v4 }
  0xfe   :  { %10872 = vst [vmem:[#allocation29_spill] sm:$0xff] %v6650_v28  ;;  %10876 = vst [vmem:[#allocation31_spill] sm:$0xff] %v6673_v53  ;;  %1691 = vmatmul.mubr.f32.gmra.mxu1 %v10844_v21  ;;  %1935 = vmatprep.subr.mxu1 %v10880_v6  ;;  %v6705_v21 = vsub.f32 %v103_v38, %v6650_v28  ;;  %v10885_v6 = vand.u32 4294901760, %v6348_v16  ;;  %v6739_v38 = vand.u32 4294901760, %v164_v57 }
  0xff   :  { %v6678_v27 = vsub.f32 %v6557_v51, %v10877_v20  ;;  %10878 = vst [vmem:[#allocation66_spill] sm:$0xff] %v6680_v10  ;;  %v6694_v20 = vsub.f32 %v6579_v19, %v10879_v36  ;;  %1740 = vmatpush1.msra.mxu0 %v6336_v32  ;;  %10882 = vst [vmem:[#allocation68_spill] sm:$0xff] %v6707_v45  ;;  %v10883_v36 = vand.u32 4294901760, %v6586_v17  ;;  %v162_v51 = vld [vmem:[%s9708_s1 + $0x3d8] sm:$0xff]  ;;  %1697 = vmatprep.mubr.f32.mxu1 %v10851_v44  ;;  %v160_v32 = vld [vmem:[%s9708_s1 + $0x3c8] sm:$0xff] }
 0x100   :  { %10881 = vst [vmem:[#allocation33_spill] sm:$0xff] %v6705_v21  ;;  %1941 = vmatpush1.msra.mxu1 %v10885_v6  ;;  %1742 = vmatprep.subr.mxu0 %v6361_v11  ;;  %v6737_v6 = vsub.f32 %v165_v8, %v6680_v10  ;;  %10890 = vst [vmem:[#allocation39_spill] sm:$0xff] %v6739_v38  ;;  %v10891_v11 = vand.u32 4294901760, %v6392_v13  ;;  %v6749_v44 = vsub.f32 %v6642_v62, %v10892_v12 }
 0x101   :  { %v6712_v19 = vsub.f32 %v6586_v17, %v10883_v36  ;;  %v6727_v36 = vand.u32 4294901760, %v161_v30  ;;  %v159_v17 = vld [vmem:[%s9708_s1 + $0x3c0] sm:$0xff]  ;;  %1947 = vmatprep.subr.mxu1 %v10888_v25  ;;  %1744 = vmatpush1.msra.mxu0 %v6363_v34  ;;  %v10893_v25 = vand.u32 4294901760, %v6630_v47  ;;  %v6756_v16 = vand.u32 4294901760, %v162_v51 }
 0x102   :  { %10889 = vst [vmem:[#allocation72_spill] sm:$0xff] %v6737_v6  ;;  %1953 = vmatpush1.msra.mxu1 %v10891_v11  ;;  %1746 = vmatprep.subr.mxu0 %v6394_v18  ;;  %v6765_v12 = vand.u32 4294901760, %v159_v17  ;;  %v6768_v63 = vsub.f32 %v166_v29, %v6707_v45  ;;  %v10899_v11 = vand.u32 4294901760, %v6666_v1  ;;  %v6803_v62 = vsub.f32 %v164_v57, %v6739_v38 }
 0x103   :  { %10887 = vst [vmem:[#allocation37_spill] sm:$0xff] %v6727_v36  ;;  %v6754_v8 = vsub.f32 %v6630_v47, %v10893_v25  ;;  %10894 = vst [vmem:[#allocation74_spill] sm:$0xff] %v6756_v16  ;;  %1699 = vmatmul.mubr.f32.gmra.mxu1 %v10859_v39  ;;  %v157_v25 = vld [vmem:[%s9708_s1 + $0x3b0] sm:$0xff]  ;;  %v10897_v47 = vand.u32 4294901760, %v6409_v33  ;;  %1748 = vmatpush1.msra.mxu0 %v6422_v55  ;;  %v6777_v39 = vsub.f32 %v163_v56, %v6724_v4  ;;  %v158_v33 = vld [vmem:[%s9708_s1 + $0x3b8] sm:$0xff] }
 0x104   :  { %10895 = vst [vmem:[#allocation41_spill] sm:$0xff] %v6765_v12  ;;  %10896 = vst [vmem:[#allocation76_spill] sm:$0xff] %v6768_v63  ;;  %v6782_v13 = vsub.f32 %v6666_v1, %v10899_v11  ;;  %v6785_v29 = vsub.f32 %v161_v30, %v6727_v36  ;;  %1750 = vmatprep.subr.mxu0 %v6438_v52  ;;  %v10902_v56 = vand.u32 4294901760, %v6673_v53  ;;  %v6799_v11 = vand.u32 4294901760, %v160_v32  ;;  %v155_v1 = vld [vmem:[%s9708_s1 + $0x3a0] sm:$0xff] }
 0x105   :  { %1959 = vmatprep.subr.mxu1 %v10897_v47  ;;  %10898 = vst [vmem:[#allocation43_spill] sm:$0xff] %v6777_v39  ;;  %v10901_v47 = vand.u32 4294901760, %v6427_v24  ;;  %10904 = vst [vmem:[#allocation80_spill] sm:$0xff] %v6803_v62  ;;  %v10905_v24 = vand.u32 4294901760, %v6461_v42  ;;  %1705 = vmatprep.mubr.f32.mxu1 %v5921_v61  ;;  %v6816_v30 = vsub.f32 %v162_v51, %v6756_v16  ;;  %v10908_v57 = vand.u32 4294901760, %v6466_v7  ;;  %v156_v51 = vld [vmem:[%s9708_s1 + $0x3a8] sm:$0xff] }
 0x106   :  { %10900 = vst [vmem:[#allocation78_spill] sm:$0xff] %v6785_v29  ;;  %v6797_v55 = vsub.f32 %v6673_v53, %v10902_v56  ;;  %10903 = vst [vmem:[#allocation45_spill] sm:$0xff] %v6799_v11  ;;  %v6813_v53 = vand.u32 4294901760, %v157_v25  ;;  %1752 = vmatpush1.msra.mxu0 %v6440_v50  ;;  %v10909_v52 = vand.u32 4294901760, %v6718_v46  ;;  %v6827_v61 = vsub.f32 %v159_v17, %v6765_v12 }
 0x107   :  { %1965 = vmatpush1.msra.mxu1 %v10901_v47  ;;  %10907 = vst [vmem:[#allocation82_spill] sm:$0xff] %v6816_v30  ;;  %1754 = vmatprep.subr.mxu0 %v6446_v31  ;;  %v6843_v17 = vand.u32 4294901760, %v155_v1  ;;  %v10914_v56 = vand.u32 4294901760, %v6492_v14  ;;  %v10916_v14 = vand.u32 4294901760, %v6507_v43  ;;  %v10920_v47 = vand.u32 4294901760, %v6529_v37 }
 0x108   :  { %1971 = vmatprep.subr.mxu1 %v10905_v24  ;;  %10906 = vst [vmem:[#allocation47_spill] sm:$0xff] %v6813_v53  ;;  %v6824_v42 = vsub.f32 %v6718_v46, %v10909_v52  ;;  %10910 = vst [vmem:[#allocation49_spill] sm:$0xff] %v6827_v61  ;;  %v6829_v24 = vand.u32 4294901760, %v158_v33  ;;  %1707 = vmatmul.mubr.f32.gmra.mxu1 %v5931_v60  ;;  %v10912_v52 = vand.u32 4294901760, %v6705_v21  ;;  %v10915_v46 = vand.u32 4294901760, %v6737_v6 }
 0x109   :  { %1977 = vmatpush1.msra.mxu1 %v10908_v57  ;;  %10913 = vst [vmem:[#allocation51_spill] sm:$0xff] %v6843_v17  ;;  %1756 = vmatpush1.msra.mxu0 %v6468_v3  ;;  %v6866_v60 = vand.u32 4294901760, %v156_v51  ;;  %v10923_v37 = vand.u32 4294901760, %v6534_v2  ;;  %v6896_v43 = vsub.f32 %v155_v1, %v6843_v17  ;;  %v10927_v2 = vand.u32 4294901760, %v6562_v9  ;;  %v149_v9 = vld [vmem:[%s9708_s1 + $0x370] sm:$0xff] }
 0x10a   :  { %10911 = vst [vmem:[#allocation84_spill] sm:$0xff] %v6829_v24  ;;  %v6841_v57 = vsub.f32 %v6705_v21, %v10912_v52  ;;  %1983 = vmatprep.subr.mxu1 %v10914_v56  ;;  %v6853_v7 = vsub.f32 %v6737_v6, %v10915_v46  ;;  %v153_v52 = vld [vmem:[%s9708_s1 + $0x390] sm:$0xff]  ;;  %1758 = vmatprep.subr.mxu0 %v6494_v0  ;;  %v154_v46 = vld [vmem:[%s9708_s1 + $0x398] sm:$0xff]  ;;  %v151_v21 = vld [vmem:[%s9708_s1 + $0x380] sm:$0xff]  ;;  %v10929_v1 = vand.u32 4294901760, %v6803_v62  ;;  %v10939_v0 = vand.u32 4294901760, %v6603_v15 }
 0x10b   :  { %1989 = vmatpush1.msra.mxu1 %v10916_v14  ;;  %v6864_v56 = vsub.f32 %v157_v25, %v6813_v53  ;;  %10918 = vst [vmem:[#allocation53_spill] sm:$0xff] %v6866_v60  ;;  %v6873_v6 = vsub.f32 %v160_v32, %v6799_v11  ;;  %1760 = vmatpush1.msra.mxu0 %v6509_v26  ;;  %v10921_v25 = vand.u32 4294901760, %v6768_v63  ;;  %10924 = vst [vmem:[#allocation90_spill] sm:$0xff] %v6896_v43 }
 0x10c   :  { %1995 = vmatprep.subr.mxu1 %v10920_v47  ;;  %v6889_v32 = vsub.f32 %v158_v33, %v6829_v24  ;;  %1762 = vmatprep.subr.mxu0 %v6522_v54  ;;  %v6903_v26 = vand.u32 4294901760, %v153_v52  ;;  %v152_v33 = vld [vmem:[%s9708_s1 + $0x388] sm:$0xff]  ;;  %v6915_v31 = vsub.f32 %v6803_v62, %v10929_v1  ;;  %v10933_v47 = vand.u32 4294901760, %v6816_v30 }
 0x10d   :  { %10917 = vst [vmem:[#allocation86_spill] sm:$0xff] %v6864_v56  ;;  %10919 = vst [vmem:[#allocation88_spill] sm:$0xff] %v6873_v6  ;;  %v6882_v14 = vsub.f32 %v6768_v63, %v10921_v25  ;;  %2001 = vmatpush1.msra.mxu1 %v10923_v37  ;;  %v10925_v25 = vand.u32 4294901760, %v6777_v39  ;;  %v10928_v37 = vld [vmem:[#allocation19_spill] sm:$0xff]  ;;  %v10938_v62 = vand.u32 4294901760, %v6827_v61 }
 0x10e   :  { %10922 = vst [vmem:[#allocation55_spill] sm:$0xff] %v6889_v32  ;;  %10926 = vst [vmem:[#allocation57_spill] sm:$0xff] %v6903_v26  ;;  %2007 = vmatprep.subr.mxu1 %v10927_v2  ;;  %1764 = vmatpush1.msra.mxu0 %v10928_v37  ;;  %v10932_v2 = vand.u32 4294901760, %v6591_v5  ;;  %v6933_v1 = vsub.f32 %v6816_v30, %v10933_v47  ;;  %v6936_v37 = vand.u32 4294901760, %v151_v21  ;;  %v10936_v5 = vand.u32 4294901760, %v6598_v22 }
 0x10f   :  { %v6901_v63 = vsub.f32 %v6777_v39, %v10925_v25  ;;  %v6917_v25 = vand.u32 4294901760, %v154_v46  ;;  %v10931_v39 = vand.u32 4294901760, %v6785_v29  ;;  %1766 = vmatprep.subr.mxu0 %v6570_v23  ;;  %v6948_v47 = vand.u32 4294901760, %v152_v33  ;;  %v7011_v23 = vld [vmem:[%s9708_s1 + $0x358] sm:$0xff] }
 0x110   :  { %2013 = vmatpush1.msra.mxu1 %v10932_v2  ;;  %10934 = vst [vmem:[#allocation93_spill] sm:$0xff] %v6936_v37  ;;  %1768 = vmatpush1.msra.mxu0 %v6572_v40  ;;  %v6953_v30 = vsub.f32 %v6827_v61, %v10938_v62  ;;  %v10942_v40 = vand.u32 4294901760, %v6621_v41  ;;  %v10945_v2 = vand.u32 4294901760, %v6635_v49  ;;  %v10946_v41 = vand.u32 4294901760, %v6873_v6  ;;  %v145_v49 = vld [vmem:[%s9708_s1 + $0x350] sm:$0xff] }
 0x111   :  { %10930 = vst [vmem:[#allocation59_spill] sm:$0xff] %v6917_v25  ;;  %v6922_v54 = vsub.f32 %v6785_v29, %v10931_v39  ;;  %v150_v39 = vld [vmem:[%s9708_s1 + $0x378] sm:$0xff]  ;;  %v6942_v29 = vsub.f32 %v156_v51, %v6866_v60  ;;  %2019 = vmatprep.subr.mxu1 %v10936_v5  ;;  %10937 = vst [vmem:[#allocation63_spill] sm:$0xff] %v6948_v47  ;;  %1770 = vmatprep.subr.mxu0 %v6605_v48  ;;  %v6963_v5 = vand.u32 4294901760, %v149_v9 }
 0x112   :  { %2025 = vmatpush1.msra.mxu1 %v10939_v0  ;;  %v6961_v51 = vsub.f32 %v153_v52, %v6903_v26  ;;  %1772 = vmatpush1.msra.mxu0 %v6623_v59  ;;  %v6971_v15 = vand.u32 4294901760, %v150_v39  ;;  %v147_v52 = vld [vmem:[%s9708_s1 + $0x360] sm:$0xff]  ;;  %v6977_v22 = vsub.f32 %v154_v46, %v6917_v25  ;;  %v6986_v0 = vsub.f32 %v6873_v6, %v10946_v41  ;;  %v148_v46 = vld [vmem:[%s9708_s1 + $0x368] sm:$0xff] }
 0x113   :  { %10935 = vst [vmem:[#allocation61_spill] sm:$0xff] %v6942_v29  ;;  %10941 = vst [vmem:[#allocation99_spill] sm:$0xff] %v6963_v5  ;;  %2031 = vmatprep.subr.mxu1 %v10942_v40  ;;  %1774 = vmatprep.subr.mxu0 %v6648_v58  ;;  %v6989_v62 = vsub.f32 %v151_v21, %v6936_v37  ;;  %v10949_v21 = vand.u32 4294901760, %v6889_v32  ;;  %v233_v58 = vlaneseq  ;;  %v10952_v41 = vand.u32 4294901760, %v6864_v56 }
 0x114   :  { %10940 = vst [vmem:[#allocation98_spill] sm:$0xff] %v6961_v51  ;;  %10943 = vst [vmem:[#allocation100_spill] sm:$0xff] %v6971_v15  ;;  %2037 = vmatpush1.msra.mxu1 %v10945_v2  ;;  %v10948_v2 = vand.u32 4294901760, %v6660_v35  ;;  %1776 = vmatpush1.msra.mxu0 %v6650_v28  ;;  %v10950_v35 = vand.u32 4294901760, %v6678_v27  ;;  %v7024_v61 = vand.u32 4294901760, %v147_v52  ;;  %v143_v27 = vld [vmem:[%s9708_s1 + $0x340] sm:$0xff] }
 0x115   :  { %10944 = vst [vmem:[#allocation89_spill] sm:$0xff] %v6977_v22  ;;  %10947 = vst [vmem:[#allocation101_spill] sm:$0xff] %v6989_v62  ;;  %v7005_v40 = vsub.f32 %v6889_v32, %v10949_v21  ;;  %1778 = vmatprep.subr.mxu0 %v6707_v45  ;;  %v7022_v21 = vsub.f32 %v6864_v56, %v10952_v41  ;;  %v7027_v32 = vsub.f32 %v152_v33, %v6948_v47  ;;  %v7056_v45 = vld [vmem:[%s9708_s1 + $0x348] sm:$0xff] }
 0x116   :  { %2043 = vmatprep.subr.mxu1 %v10948_v2  ;;  %v7017_v2 = vsub.f32 %v149_v9, %v6963_v5  ;;  %10953 = vst [vmem:[#allocation103_spill] sm:$0xff] %v7024_v61  ;;  %1780 = vmatpush2.msra.mxu0 %v6680_v10  ;;  %v7035_v9 = vand.u32 4294901760, %v148_v46  ;;  %v7038_v41 = vand.u32 4294901760, %v145_v49  ;;  %v10957_v33 = vand.u32 4294901760, %v6712_v19 }
 0x117   :  { %2049 = vmatpush1.msra.mxu1 %v10950_v35  ;;  %10954 = vst [vmem:[#allocation104_spill] sm:$0xff] %v7027_v32  ;;  %v10955_v35 = vand.u32 4294901760, %v6694_v20  ;;  %1782 = vmatprep.subr.mxu0 %v6739_v38  ;;  %v10958_v20 = vand.u32 4294901760, %v6942_v29  ;;  %v7051_v10 = vand.u32 4294901760, %v7011_v23  ;;  %v7059_v19 = vsub.f32 %v150_v39, %v6971_v15 }
 0x118   :  { %10951 = vst [vmem:[#allocation102_spill] sm:$0xff] %v7017_v2  ;;  %10956 = vst [vmem:[#allocation105_spill] sm:$0xff] %v7035_v9  ;;  %1784 = vmatpush2.msra.mxu0 %v6724_v4  ;;  %v7070_v38 = vand.u32 4294901760, %v143_v27  ;;  %v7075_v39 = vshrl.u32 %v233_v58, 7  ;;  %v7082_v28 = vsub.f32 %v147_v52, %v7024_v61  ;;  %v10966_v58 = vand.u32 4294901760, %v6977_v22 }
 0x119   :  { %2055 = vmatprep.subr.mxu1 %v10955_v35  ;;  %v7048_v35 = vsub.f32 %v6942_v29, %v10958_v20  ;;  %10959 = vst [vmem:[#allocation106_spill] sm:$0xff] %v7059_v19  ;;  %v10961_v20 = vand.u32 4294901760, %v6896_v43  ;;  %v141_v29 = vld [vmem:[%s9708_s1 + $0x330] sm:$0xff]  ;;  %1786 = vmatprep.subr.mxu0 %v6756_v16  ;;  %v10968_v52 = vand.u32 4294901760, %v6961_v51  ;;  %v7103_v4 = vand.u32 4294901760, %v7056_v45 }
 0x11a   :  { %2061 = vmatpush1.msra.mxu1 %v10957_v33  ;;  %v10960_v33 = vand.u32 4294901760, %v6749_v44  ;;  %10962 = vst [vmem:[#allocation107_spill] sm:$0xff] %v7070_v38  ;;  %v10963_v44 = vand.u32 4294901760, %v6754_v8  ;;  %10964 = vst [vmem:[#allocation108_spill] sm:$0xff] %v7082_v28  ;;  %1788 = vmatpush2.msra.mxu0 %v6727_v36  ;;  %v7092_v8 = vsub.f32 %v6977_v22, %v10966_v58  ;;  %v235_v36 = vsub.s32 0, %v7075_v39 }
 0x11b   :  { %v7068_v56 = vsub.f32 %v6896_v43, %v10961_v20  ;;  %v10965_v43 = vand.u32 4294901760, %v6782_v13  ;;  %v7108_v13 = vld [vmem:[%s9708_s1 + $0x338] sm:$0xff]  ;;  %1790 = vmatprep.subr.mxu0 %v6799_v11  ;;  %v7118_v20 = vand.u32 4294901760, %v141_v29  ;;  %v7134_v58 = vsub.f32 %v148_v46, %v7035_v9 }
 0x11c   :  { %2067 = vmatprep.subr.mxu1 %v10960_v33  ;;  %v7100_v33 = vsub.f32 %v6961_v51, %v10968_v52  ;;  %v10971_v51 = vand.u32 4294901760, %v6824_v42  ;;  %1792 = vmatpush2.msra.mxu0 %v6765_v12  ;;  %v10973_v42 = vand.u32 4294901760, %v6841_v57  ;;  %v10975_v16 = vand.u32 4294901760, %v6989_v62  ;;  %v18_v57 = vld [vmem:[%s9707_s0 + $0x18] sm:$0xff] }
 0x11d   :  { %2073 = vmatpush1.msra.mxu1 %v10963_v44  ;;  %v7095_v44 = vsub.f32 %v145_v49, %v7038_v41  ;;  %v10969_v49 = vand.u32 4294901760, %v6797_v55  ;;  %10970 = vst [vmem:[#allocation110_spill] sm:$0xff] %v7118_v20  ;;  %v7126_v55 = vsub.f32 %v143_v27, %v7070_v38  ;;  %10972 = vst [vmem:[#allocation111_spill] sm:$0xff] %v7134_v58  ;;  %1794 = vmatprep.subr.mxu0 %v6829_v24 }
 0x11e   :  { %2079 = vmatprep.subr.mxu1 %v10965_v43  ;;  %v139_v43 = vld [vmem:[%s9708_s1 + $0x320] sm:$0xff]  ;;  %v7148_v52 = vsub.f32 %v6989_v62, %v10975_v16  ;;  %v7151_v46 = vand.u32 4294901760, %v7108_v13  ;;  %1796 = vmatpush2.msra.mxu0 %v6813_v53  ;;  %v239_v11 = vsub.s32 1, %v7075_v39  ;;  %v10980_v22 = vand.u32 4294901760, %v7059_v19 }
 0x11f   :  { %10967 = vst [vmem:[#allocation109_spill] sm:$0xff] %v7095_v44  ;;  %2085 = vmatpush1.msra.mxu1 %v10969_v49  ;;  %v7131_v49 = vld [vmem:[%s9708_s1 + $0x328] sm:$0xff]  ;;  %v7153_v12 = vand.u32 4294901760, %v139_v43  ;;  %1798 = vmatprep.subr.mxu0 %v6866_v60  ;;  %v10982_v16 = vand.u32 4294901760, %v7017_v2  ;;  %v10983_v62 = vand.u32 4294901760, %v6915_v31  ;;  %v137_v60 = vld [vmem:[%s9708_s1 + $0x310] sm:$0xff] }
 0x120   :  { %2091 = vmatprep.subr.mxu1 %v10971_v51  ;;  %v10974_v51 = vand.u32 4294901760, %v7027_v32  ;;  %10976 = vst [vmem:[#allocation112_spill] sm:$0xff] %v7151_v46  ;;  %v7185_v39 = vand.u32 4294901760, %v7131_v49  ;;  %1800 = vmatpush2.msra.mxu0 %v6843_v17  ;;  %v7206_v53 = vand.u32 4294901760, %v18_v57 }
 0x121   :  { %2097 = vmatpush1.msra.mxu1 %v10973_v42  ;;  %10977 = vst [vmem:[#allocation113_spill] sm:$0xff] %v7153_v12  ;;  %v231_v42 = vld [vmem:[%s9709_s2] sm:$0x3]  ;;  %v7182_v24 = vsub.f32 %v7017_v2, %v10982_v16  ;;  %v7201_v16 = vsub.f32 %v7011_v23, %v7051_v10  ;;  %1802 = vmatprep.subr.mxu0 %v6917_v25 }
 0x122   :  { %v7143_v27 = vsub.f32 %v7027_v32, %v10974_v51  ;;  %v10978_v51 = vand.u32 4294901760, %v6882_v14  ;;  %v10979_v32 = vand.u32 4294901760, %v6853_v7  ;;  %v7174_v14 = vsub.f32 %v7059_v19, %v10980_v22  ;;  %v17_v7 = vld [vmem:[%s9707_s0 + $0x10] sm:$0xff]  ;;  %v7197_v22 = vld [vmem:[%s9708_s1 + $0x318] sm:$0xff]  ;;  %10985 = vst [vmem:[#allocation116_spill] sm:$0xff] %v7206_v53  ;;  %1804 = vmatpush2.msra.mxu0 %v6903_v26  ;;  %2291 = vmatprep.mubr.f32.mxu1 %v7206_v53 }
 0x123   :  { %10984 = vst [vmem:[#allocation115_spill] sm:$0xff] %v7201_v16  ;;  %v7208_v31 = vrot.slane %v231_v42, %v235_v36  ;;  %v7216_v23 = vsub.f32 %v139_v43, %v7153_v12  ;;  %v10987_v19 = vand.u32 4294901760, %v6933_v1  ;;  %v10988_v36 = vand.u32 4294901760, %v7082_v28  ;;  %v24_v1 = vld [vmem:[%s9707_s0 + $0x48] sm:$0xff]  ;;  %1806 = vmatprep.subr.mxu0 %v6948_v47 }
 0x124   :  { %2103 = vmatprep.subr.mxu1 %v10978_v51  ;;  %v7177_v51 = vsub.f32 %v141_v29, %v7118_v20  ;;  %v7234_v43 = vsub.f32 %v7056_v45, %v7103_v4  ;;  %v7236_v17 = vand.u32 4294901760, %v17_v7  ;;  %v7249_v45 = vand.u32 4294901760, %v7197_v22  ;;  %1808 = vmatpush2.msra.mxu0 %v6936_v37 }
 0x125   :  { %2109 = vmatpush2.msra.mxu1 %v10979_v32  ;;  %v383_v32 = vpop.f32.mrf.mxu0  ;;  %v7251_v26 = vand.u32 4294901760, %v137_v60  ;;  %v7266_v2 = vsub.f32 %v18_v57, %v7206_v53  ;;  %v10995_v29 = vand.u32 4294901760, %v6953_v30  ;;  %1810 = vmatprep.subr.mxu0 %v6971_v15  ;;  %v7285_v57 = vsub.f32 %v7108_v13, %v7151_v46  ;;  %v11055_v53 = vld [vmem:[#allocation71_spill] sm:$0xff] }
 0x126   :  { %10981 = vst [vmem:[#allocation114_spill] sm:$0xff] %v7177_v51  ;;  %2115 = vmatprep.subr.mxu1 %v10983_v62  ;;  %v10986_v62 = vand.u32 4294901760, %v6901_v63  ;;  %v7225_v63 = vsub.f32 %v7082_v28, %v10988_v36  ;;  %10989 = vst [vmem:[#allocation117_spill] sm:$0xff] %v7234_v43  ;;  %v10991_v36 = vand.u32 4294901760, %v6922_v54  ;;  %v10993_v28 = vand.u32 4294901760, %v6986_v0  ;;  %1812 = vmatpush2.msra.mxu0 %v6963_v5 }
 0x127   :  { %10990 = vst [vmem:[#allocation118_spill] sm:$0xff] %v7236_v17  ;;  %10992 = vst [vmem:[#allocation119_spill] sm:$0xff] %v7251_v26  ;;  %v385_v25 = vpop.f32.mrf.mxu0  ;;  %v10994_v54 = vand.u32 4294901760, %v7134_v58  ;;  %v384_v0 = vadd.f32 %v383_v32, %v7208_v31  ;;  %v7287_v47 = vand.u32 4294901760, %v24_v1  ;;  %v10999_v32 = vand.u32 4294901760, %v7005_v40  ;;  %1814 = vmatprep.subr.mxu0 %v7035_v9 }
 0x128   :  { %2121 = vmatpush2.msra.mxu1 %v10986_v62  ;;  %v7230_v62 = vld [vmem:[%s9708_s1 + $0x308] sm:$0xff]  ;;  %v7302_v13 = vsub.f32 %v137_v60, %v7251_v26  ;;  %1816 = vmatpush2.msra.mxu0 %v7024_v61  ;;  %v11006_v5 = vand.u32 4294901760, %v7068_v56  ;;  %v11008_v56 = vand.u32 4294901760, %v7234_v43  ;;  %v7360_v61 = vsub.f32 %v7197_v22, %v7249_v45 }
 0x129   :  { %2127 = vmatprep.subr.mxu1 %v10987_v19  ;;  %v7241_v19 = vrot.slane %v231_v42, %v239_v11  ;;  %v7259_v11 = vsub.f32 %v7134_v58, %v10994_v54  ;;  %v10996_v54 = vand.u32 4294901760, %v7095_v44  ;;  %v7281_v37 = vand.u32 4294901760, %v7230_v62  ;;  %10998 = vst [vmem:[#allocation121_spill] sm:$0xff] %v7287_v47  ;;  %1818 = vmatprep.subr.mxu0 %v7051_v10 }
 0x12a   :  { %2133 = vmatpush2.msra.mxu1 %v10991_v36  ;;  %v135_v36 = vld [vmem:[%s9708_s1 + $0x300] sm:$0xff]  ;;  %1820 = vmatpush2.msra.mxu0 %v7038_v41 }
 0x12b   :  { %2139 = vmatprep.subr.mxu1 %v10993_v28  ;;  %v23_v28 = vld [vmem:[%s9707_s0 + $0x40] sm:$0xff]  ;;  %v7278_v42 = vsub.f32 %v7095_v44, %v10996_v54  ;;  %10997 = vst [vmem:[#allocation120_spill] sm:$0xff] %v7281_v37  ;;  %v7295_v54 = vsub.f32 %v17_v7, %v7236_v17  ;;  %v386_v15 = vadd.f32 %v385_v25, %v7241_v19  ;;  %v11000_v44 = vand.u32 4294901760, %v7022_v21  ;;  %v30_v7 = vld [vmem:[%s9707_s0 + $0x78] sm:$0xff] }
 0x12c   :  { %2145 = vmatpush2.msra.mxu1 %v10995_v29  ;;  %v7304_v40 = vand.u32 4294901760, %v135_v36  ;;  %v7307_v30 = vand.u32 4294901760, %v23_v28  ;;  %v824_v29 = vpop.f32.mrf.mxu1  ;;  %v11003_v25 = vand.u32 4294901760, %v7048_v35  ;;  %v11004_v21 = vand.u32 4294901760, %v7201_v16  ;;  %1822 = vmatprep.subr.mxu0 %v7103_v4 }
 0x12d   :  { %2151 = vmatprep.subr.mxu1 %v10999_v32  ;;  %v7321_v32 = vsub.f32 %v7131_v49, %v7185_v39  ;;  %v7323_v9 = vadd.f32 %v824_v29, %v384_v0  ;;  %v2210_v35 = vand.u32 4294901760, %v7259_v11  ;;  %v11007_v49 = vand.u32 4294901760, %v7092_v8  ;;  %1824 = vmatpush2.msra.mxu0 %v7070_v38 }
 0x12e   :  { %2157 = vmatpush2.msra.mxu1 %v11000_v44  ;;  %11001 = vst [vmem:[#allocation122_spill] sm:$0xff] %v7304_v40  ;;  %11002 = vst [vmem:[#allocation123_spill] sm:$0xff] %v7307_v30  ;;  %v2221_v60 = vsub.f32 %v7201_v16, %v11004_v21  ;;  %v7332_v21 = vsub.f32 %v24_v1, %v7287_v47  ;;  %v826_v44 = vpop.f32.mrf.mxu1  ;;  %v7341_v11 = vand.u32 4294901760, %v30_v7  ;;  %v11010_v29 = vand.u32 4294901760, %v7100_v33 }
 0x12f   :  { %2163 = vmatprep.subr.mxu1 %v11003_v25  ;;  %11005 = vst [vmem:[#allocation124_spill] sm:$0xff] %v7321_v32  ;;  %v2228_v25 = vand.u32 4294901760, %v7278_v42  ;;  %v29_v42 = vld [vmem:[%s9707_s0 + $0x70] sm:$0xff]  ;;  %v7346_v1 = vadd.f32 %v826_v44, %v386_v15  ;;  %v11011_v8 = vand.u32 4294901760, %v7126_v55  ;;  %v7356_v0 = vsub.f32 %v23_v28, %v7307_v30  ;;  %1826 = vmatprep.subr.mxu0 %v7151_v46 }
 0x130   :  { %2169 = vmatpush2.msra.mxu1 %v11006_v5  ;;  %v2233_v5 = vsub.f32 %v7234_v43, %v11008_v56  ;;  %11009 = vst [vmem:[#allocation125_spill] sm:$0xff] %v7341_v11  ;;  %v11012_v15 = vand.u32 4294901760, %v7143_v27  ;;  %v2222_v33 = vand.u32 4294901760, %v2221_v60  ;;  %v7366_v44 = vsub.f32 %v135_v36, %v7304_v40  ;;  %1828 = vmatpush2.msra.mxu0 %v7118_v20 }
 0x131   :  { %2175 = vmatprep.subr.mxu1 %v11007_v49  ;;  %v2239_v49 = vsub.f32 %v7126_v55, %v11011_v8  ;;  %v11015_v56 = vand.u32 4294901760, %v7148_v52  ;;  %v11016_v27 = vand.u32 4294901760, %v7285_v57  ;;  %v7381_v36 = vsub.f32 %v7230_v62, %v7281_v37  ;;  %1830 = vmatprep.subr.mxu0 %v7185_v39 }
 0x132   :  { %2181 = vmatpush2.msra.mxu1 %v11010_v29  ;;  %11013 = vst [vmem:[#allocation126_spill] sm:$0xff] %v7366_v44  ;;  %v11014_v29 = vand.u32 4294901760, %v7266_v2  ;;  %v11018_v52 = vand.u32 4294901760, %v7174_v14  ;;  %v7396_v62 = vsub.f32 %v30_v7, %v7341_v11  ;;  %v11020_v46 = vand.u32 4294901760, %v7182_v24  ;;  %1832 = vmatpush2.msra.mxu0 %v7153_v12 }
 0x133   :  { %2187 = vmatprep.subr.mxu1 %v11012_v15  ;;  %v2245_v22 = vsub.f32 %v7285_v57, %v11016_v27  ;;  %v7383_v15 = vand.u32 4294901760, %v29_v42  ;;  %v11019_v27 = vand.u32 4294901760, %v7295_v54  ;;  %v2240_v38 = vand.u32 4294901760, %v2239_v49  ;;  %1834 = vmatprep.subr.mxu0 %v7249_v45 }
 0x134   :  { %v1844_v8 = vsub.f32 %v7266_v2, %v11014_v29  ;;  %2193 = vmatpush2.msra.mxu1 %v11015_v56  ;;  %v36_v29 = vld [vmem:[%s9707_s0 + $0xa8] sm:$0xff]  ;;  %v2234_v56 = vand.u32 4294901760, %v2233_v5  ;;  %v11021_v14 = vand.u32 4294901760, %v7177_v51  ;;  %v11025_v5 = vand.u32 4294901760, %v7332_v21  ;;  %1836 = vmatpush2.msra.mxu0 %v7251_v26  ;;  %v11036_v26 = vld [vmem:[#allocation73_spill] sm:$0xff] }
 0x135   :  { %11017 = vst [vmem:[#allocation127_spill] sm:$0xff] %v7383_v15  ;;  %2199 = vmatprep.subr.mxu1 %v11018_v52  ;;  %v1850_v60 = vsub.f32 %v7295_v54, %v11019_v27  ;;  %v35_v27 = vld [vmem:[%s9707_s0 + $0xa0] sm:$0xff]  ;;  %v7414_v28 = vand.u32 4294901760, %v36_v29  ;;  %v2246_v20 = vand.u32 4294901760, %v2245_v22  ;;  %v7424_v12 = vsub.f32 %v29_v42, %v7383_v15  ;;  %1838 = vmatprep.subr.mxu0 %v7281_v37 }
 0x136   :  { %2205 = vmatpush2.msra.mxu1 %v11020_v46  ;;  %v2251_v52 = vsub.f32 %v7177_v51, %v11021_v14  ;;  %v1845_v24 = vand.u32 4294901760, %v1844_v8  ;;  %v11022_v46 = vand.u32 4294901760, %v7321_v32  ;;  %v11024_v14 = vand.u32 4294901760, %v7225_v63  ;;  %1840 = vmatpush2.msra.mxu0 %v7304_v40 }
 0x137   :  { %2211 = vmatprep.subr.mxu1 %v2210_v35  ;;  %11023 = vst [vmem:[#allocation128_spill] sm:$0xff] %v7414_v28  ;;  %v1860_v35 = vsub.f32 %v7332_v21, %v11025_v5  ;;  %v11026_v49 = vand.u32 4294901760, %v7216_v23  ;;  %v7431_v22 = vand.u32 4294901760, %v35_v27  ;;  %v11028_v8 = vand.u32 4294901760, %v7356_v0 }
 0x138   :  { %v2257_v7 = vsub.f32 %v7321_v32, %v11022_v46  ;;  %2217 = vmatpush2.msra.mxu1 %v11024_v14  ;;  %v1851_v46 = vand.u32 4294901760, %v1850_v60  ;;  %v2252_v5 = vand.u32 4294901760, %v2251_v52  ;;  %v11030_v14 = vand.u32 4294901760, %v7302_v13  ;;  %1846 = vmatprep.mubr.f32.mxu0 %v1845_v24 }
 0x139   :  { %2223 = vmatprep.subr.mxu1 %v2222_v33  ;;  %v2263_v63 = vsub.f32 %v7216_v23, %v11026_v49  ;;  %11027 = vst [vmem:[#allocation129_spill] sm:$0xff] %v7431_v22  ;;  %v1866_v42 = vsub.f32 %v7356_v0, %v11028_v8  ;;  %v11029_v33 = vand.u32 4294901760, %v7360_v61  ;;  %v7446_v52 = vsub.f32 %v36_v29, %v7414_v28  ;;  %v11034_v29 = vld [vmem:[#allocation69_spill] sm:$0xff] }
 0x13a   :  { %2229 = vmatpush2.msra.mxu1 %v2228_v25  ;;  %v2258_v49 = vand.u32 4294901760, %v2257_v7  ;;  %v2275_v25 = vsub.f32 %v7302_v13, %v11030_v14  ;;  %v1861_v8 = vand.u32 4294901760, %v1860_v35  ;;  %v11031_v37 = vand.u32 4294901760, %v7381_v36  ;;  %1852 = vmatmul.mubr.f32.vlgmr.msra.gmra.mxu0 %v1851_v46 }
 0x13b   :  { %v2269_v60 = vsub.f32 %v7360_v61, %v11029_v33  ;;  %2235 = vmatprep.subr.mxu1 %v2234_v56  ;;  %v2264_v56 = vand.u32 4294901760, %v2263_v63  ;;  %v11032_v7 = vand.u32 4294901760, %v7396_v62  ;;  %v7456_v14 = vsub.f32 %v35_v27, %v7431_v22  ;;  %2325 = vmatprep.subr.mxu0 %v11034_v29  ;;  %v11037_v63 = vld [vmem:[#allocation79_spill] sm:$0xff] }
 0x13c   :  { %2241 = vmatpush2.msra.mxu1 %v2240_v38  ;;  %v2281_v33 = vsub.f32 %v7381_v36, %v11031_v37  ;;  %v1867_v38 = vand.u32 4294901760, %v1866_v42  ;;  %v11035_v35 = vand.u32 4294901760, %v7366_v44  ;;  %2328 = vmatpush1.msra.mxu0 %v11036_v26  ;;  %v10146_v46 = vand.u32 4294901760, %v7446_v52  ;;  %v11039_v42 = vld [vmem:[#allocation75_spill] sm:$0xff] }
 0x13d   :  { %2247 = vmatprep.subr.mxu1 %v2246_v20  ;;  %v1876_v40 = vsub.f32 %v7396_v62, %v11032_v7  ;;  %11033 = vst [vmem:[#allocation130_spill] sm:$0xff] %v7456_v14  ;;  %v2270_v24 = vand.u32 4294901760, %v2269_v60  ;;  %v2276_v20 = vand.u32 4294901760, %v2275_v25  ;;  %2331 = vmatprep.subr.mxu0 %v11037_v63  ;;  %v11038_v7 = vand.u32 4294901760, %v7424_v12  ;;  %v11040_v25 = vld [vmem:[#allocation83_spill] sm:$0xff] }
 0x13e   :  { %2253 = vmatpush2.msra.mxu1 %v2252_v5  ;;  %v2287_v37 = vsub.f32 %v7366_v44, %v11035_v35  ;;  %1862 = vmatprep.mubr.f32.mxu0 %v1861_v8  ;;  %v2282_v27 = vand.u32 4294901760, %v2281_v33  ;;  %v10147_v35 = vand.u32 4294901760, %v7456_v14  ;;  %v1892_v8 = vsub.f32 %v7446_v52, %v10146_v46  ;;  %v11041_v33 = vld [vmem:[#allocation85_spill] sm:$0xff]  ;;  %v11048_v46 = vld [vmem:[#allocation8_spill] sm:$0xff] }
 0x13f   :  { %2259 = vmatprep.subr.mxu1 %v2258_v49  ;;  %v1882_v5 = vsub.f32 %v7424_v12, %v11038_v7  ;;  %2334 = vmatpush1.msra.mxu0 %v11039_v42  ;;  %v1877_v60 = vand.u32 4294901760, %v1876_v40 }
 0x140   :  { %2265 = vmatpush2.msra.mxu1 %v2264_v56  ;;  %1868 = vmatmul.mubr.f32.gmra.mxu0 %v1867_v38  ;;  %v2288_v49 = vand.u32 4294901760, %v2287_v37  ;;  %v11042_v56 = vld [vmem:[#allocation94_spill] sm:$0xff]  ;;  %v1898_v40 = vsub.f32 %v7456_v14, %v10147_v35  ;;  %v11043_v38 = vld [vmem:[#allocation96_spill] sm:$0xff] }
 0x141   :  { %2271 = vmatprep.subr.mxu1 %v2270_v24  ;;  %2337 = vmatprep.subr.mxu0 %v11040_v25  ;;  %v1883_v7 = vand.u32 4294901760, %v1882_v5  ;;  %v1893_v24 = vand.u32 4294901760, %v1892_v8  ;;  %v11044_v37 = vld [vmem:[#allocation24_spill] sm:$0xff]  ;;  %v11051_v8 = vld [vmem:[#allocation65_spill] sm:$0xff] }
 0x142   :  { %2277 = vmatpush2.msra.mxu1 %v2276_v20  ;;  %2340 = vmatpush1.msra.mxu0 %v11041_v33  ;;  %v11045_v20 = vld [vmem:[#allocation91_spill] sm:$0xff]  ;;  %v1899_v5 = vand.u32 4294901760, %v1898_v40  ;;  %v11050_v35 = vld [vmem:[#allocation28_spill] sm:$0xff]  ;;  %v11054_v40 = vld [vmem:[#allocation10_spill] sm:$0xff] }
 0x143   :  { %2283 = vmatprep.subr.mxu1 %v2282_v27  ;;  %2343 = vmatprep.subr.mxu0 %v11042_v56  ;;  %v11046_v27 = vld [vmem:[#allocation6_spill] sm:$0xff]  ;;  %v11056_v14 = vld [vmem:[#allocation12_spill] sm:$0xff] }
 0x144   :  { %1878 = vmatprep.mubr.f32.mxu0 %v1877_v60  ;;  %2289 = vmatpush2.msra.mxu1 %v2288_v49  ;;  %v11047_v60 = vld [vmem:[#allocation95_spill] sm:$0xff]  ;;  %v11049_v49 = vld [vmem:[#allocation97_spill] sm:$0xff] }
 0x145   :  { %2346 = vmatpush1.msra.mxu0 %v11043_v38  ;;  %2293 = vmatmul.mubr.f32.vlgmr.msra.gmra.mxu1 %v7236_v17  ;;  %v11053_v17 = vld [vmem:[#allocation67_spill] sm:$0xff] }
 0x146   :  { %1884 = vmatmul.mubr.f32.gmra.mxu0 %v1883_v7  ;;  %2349 = vmatprep.subr.mxu0 %v11044_v37  ;;  %v11052_v7 = vld [vmem:[#allocation32_spill] sm:$0xff] }
 0x147   :  { %2557 = vmatprep.subr.mxu1 %v11045_v20  ;;  %2352 = vmatpush1.msra.mxu0 %v11046_v27 }
 0x148   :  { %2559 = vmatpush1.msra.mxu1 %v11047_v60  ;;  %2355 = vmatprep.subr.mxu0 %v11048_v46 }
 0x149   :  { %2561 = vmatprep.subr.mxu1 %v11049_v49  ;;  %1894 = vmatprep.mubr.f32.mxu0 %v1893_v24  ;;  %v11057_v24 = vld [vmem:[#allocation77_spill] sm:$0xff] }
 0x14a   :  { %2299 = vmatprep.mubr.f32.mxu1 %v7287_v47  ;;  %2358 = vmatpush1.msra.mxu0 %v11050_v35  ;;  %v11058_v47 = vld [vmem:[#allocation11_spill] sm:$0xff] }
 0x14b   :  { %2563 = vmatpush1.msra.mxu1 %v11051_v8  ;;  %1900 = vmatmul.mubr.f32.gmra.mxu0 %v1899_v5  ;;  %v11059_v8 = vld [vmem:[#allocation81_spill] sm:$0xff]  ;;  %v11060_v5 = vld [vmem:[#allocation14_spill] sm:$0xff] }
 0x14c   :  { %2301 = vmatmul.mubr.f32.gmra.mxu1 %v7307_v30  ;;  %2361 = vmatprep.subr.mxu0 %v11052_v7  ;;  %v11061_v30 = vld [vmem:[#allocation87_spill] sm:$0xff]  ;;  %v11096_v7 = vld [vmem:[#allocation82_spill] sm:$0xff] }
 0x14d   :  { %2565 = vmatprep.subr.mxu1 %v11053_v17  ;;  %2364 = vmatpush1.msra.mxu0 %v11054_v40  ;;  %v11062_v17 = vld [vmem:[#allocation15_spill] sm:$0xff]  ;;  %v11063_v40 = vld [vmem:[#allocation92_spill] sm:$0xff] }
 0x14e   :  { %2567 = vmatpush1.msra.mxu1 %v11055_v53  ;;  %2367 = vmatprep.subr.mxu0 %v11056_v14  ;;  %v11064_v53 = vld [vmem:[#allocation46_spill] sm:$0xff] }
 0x14f   :  { %2569 = vmatprep.subr.mxu1 %v11057_v24  ;;  %2307 = vmatprep.mubr.f32.mxu1 %v7341_v11  ;;  %v11065_v14 = vld [vmem:[#allocation22_spill] sm:$0xff]  ;;  %v11066_v11 = vld [vmem:[#allocation44_spill] sm:$0xff] }
 0x150   :  { %2370 = vmatpush1.msra.mxu0 %v11058_v47  ;;  %2571 = vmatpush1.msra.mxu1 %v11059_v8  ;;  %v11067_v47 = vld [vmem:[#allocation5_spill] sm:$0xff]  ;;  %v11093_v24 = vld [vmem:[#allocation54_spill] sm:$0xff] }
 0x151   :  { %2309 = vmatmul.mubr.f32.gmra.mxu1 %v7383_v15  ;;  %2373 = vmatprep.subr.mxu0 %v11060_v5  ;;  %v11068_v15 = vld [vmem:[#allocation48_spill] sm:$0xff]  ;;  %v11069_v5 = vld [vmem:[#allocation26_spill] sm:$0xff] }
 0x152   :  { %2573 = vmatprep.subr.mxu1 %v11061_v30  ;;  %2376 = vmatpush1.msra.mxu0 %v11062_v17  ;;  %v11070_v30 = vld [vmem:[#allocation18_spill] sm:$0xff]  ;;  %v11071_v17 = vld [vmem:[#allocation7_spill] sm:$0xff] }
 0x153   :  { %2575 = vmatpush1.msra.mxu1 %v11063_v40  ;;  %2379 = vmatprep.subr.mxu0 %v11064_v53  ;;  %v11072_v40 = vld [vmem:[#allocation52_spill] sm:$0xff]  ;;  %v11073_v53 = vld [vmem:[#allocation30_spill] sm:$0xff] }
 0x154   :  { %2577 = vmatprep.subr.mxu1 %v11065_v14  ;;  %2315 = vmatprep.mubr.f32.mxu1 %v7414_v28  ;;  %v11074_v14 = vld [vmem:[#allocation20_spill] sm:$0xff]  ;;  %v399_v28 = vpop.f32.mrf.mxu0 }
 0x155   :  { %2382 = vmatpush1.msra.mxu0 %v11066_v11  ;;  %2579 = vmatpush1.msra.mxu1 %v11067_v47  ;;  %v11075_v47 = vld [vmem:[#allocation56_spill] sm:$0xff]  ;;  %v11089_v11 = vld [vmem:[#allocation50_spill] sm:$0xff] }
 0x156   :  { %2317 = vmatmul.mubr.f32.gmra.mxu1 %v7431_v22  ;;  %2385 = vmatprep.subr.mxu0 %v11068_v15  ;;  %v11076_v22 = vld [vmem:[#allocation23_spill] sm:$0xff]  ;;  %v11077_v15 = vld [vmem:[#allocation36_spill] sm:$0xff] }
 0x157   :  { %2581 = vmatprep.subr.mxu1 %v11069_v5  ;;  %2388 = vmatpush1.msra.mxu0 %v11070_v30  ;;  %v401_v5 = vpop.f32.mrf.mxu0  ;;  %v11078_v30 = vld [vmem:[#allocation27_spill] sm:$0xff] }
 0x158   :  { %2583 = vmatpush1.msra.mxu1 %v11071_v17  ;;  %2391 = vmatprep.subr.mxu0 %v11072_v40  ;;  %v11079_v17 = vld [vmem:[#allocation38_spill] sm:$0xff]  ;;  %v11080_v40 = vld [vmem:[#allocation60_spill] sm:$0xff] }
 0x159   :  { %2585 = vmatprep.subr.mxu1 %v11073_v53  ;;  %2394 = vmatpush1.msra.mxu0 %v11074_v14  ;;  %v11081_v14 = vld [vmem:[#allocation64_spill] sm:$0xff] }
 0x15a   :  { %2587 = vmatpush1.msra.mxu1 %v6363_v34  ;;  %2397 = vmatprep.subr.mxu0 %v11075_v47  ;;  %v415_v34 = vpop.f32.mrf.mxu0  ;;  %v11082_v53 = vld [vmem:[#allocation40_spill] sm:$0xff]  ;;  %v11083_v47 = vld [vmem:[#allocation31_spill] sm:$0xff] }
 0x15b   :  { %2589 = vmatprep.subr.mxu1 %v6394_v18  ;;  %2400 = vmatpush1.msra.mxu0 %v11076_v22  ;;  %v400_v22 = vadd.f32 %v399_v28, %v7208_v31  ;;  %v11085_v18 = vld [vmem:[#allocation16_spill] sm:$0xff] }
 0x15c   :  { %2591 = vmatpush1.msra.mxu1 %v11077_v15  ;;  %2403 = vmatprep.subr.mxu0 %v11078_v30  ;;  %v11084_v15 = vld [vmem:[#allocation35_spill] sm:$0xff]  ;;  %v417_v30 = vpop.f32.mrf.mxu0 }
 0x15d   :  { %2593 = vmatprep.subr.mxu1 %v11079_v17  ;;  %2406 = vmatpush1.msra.mxu0 %v11080_v40  ;;  %v11086_v17 = vld [vmem:[#allocation33_spill] sm:$0xff] }
 0x15e   :  { %2595 = vmatpush1.msra.mxu1 %v6440_v50  ;;  %2409 = vmatprep.subr.mxu0 %v11081_v14  ;;  %v402_v50 = vadd.f32 %v401_v5, %v7241_v19  ;;  %v11087_v40 = vld [vmem:[#allocation17_spill] sm:$0xff]  ;;  %v11088_v14 = vld [vmem:[#allocation76_spill] sm:$0xff]  ;;  %v431_v8 = vpop.f32.mrf.mxu0  ;;  %v416_v5 = vadd.f32 %v415_v34, %v7208_v31 }
 0x15f   :  { %2597 = vmatprep.subr.mxu1 %v11082_v53  ;;  %2412 = vmatpush1.msra.mxu0 %v11083_v47  ;;  %v832_v53 = vpop.f32.mrf.mxu1  ;;  %v11090_v47 = vld [vmem:[#allocation72_spill] sm:$0xff]  ;;  %v11099_v34 = vld [vmem:[#allocation49_spill] sm:$0xff] }
 0x160   :  { %2599 = vmatpush1.msra.mxu1 %v6468_v3  ;;  %2415 = vmatprep.subr.mxu0 %v11084_v15  ;;  %v833_v28 = vadd.f32 %v832_v53, %v400_v22  ;;  %v11091_v3 = vld [vmem:[#allocation19_spill] sm:$0xff]  ;;  %v11092_v15 = vld [vmem:[#allocation80_spill] sm:$0xff]  ;;  %v11097_v53 = vld [vmem:[#allocation78_spill] sm:$0xff]  ;;  %v418_v22 = vadd.f32 %v417_v30, %v7241_v19  ;;  %v432_v30 = vadd.f32 %v431_v8, %v7208_v31 }
 0x161   :  { %2601 = vmatprep.subr.mxu1 %v11085_v18  ;;  %2418 = vmatpush1.msra.mxu0 %v11086_v17  ;;  %v834_v18 = vpop.f32.mrf.mxu1  ;;  %v11094_v17 = vld [vmem:[#allocation43_spill] sm:$0xff]  ;;  %v11112_v8 = vld [vmem:[#allocation37_spill] sm:$0xff] }
 0x162   :  { %2603 = vmatpush1.msra.mxu1 %v11087_v40  ;;  %2421 = vmatprep.subr.mxu0 %v11088_v14  ;;  %v835_v40 = vadd.f32 %v834_v18, %v402_v50  ;;  %v11095_v14 = vld [vmem:[#allocation21_spill] sm:$0xff] }
 0x163   :  { %2605 = vmatprep.subr.mxu1 %v11089_v11  ;;  %2424 = vmatpush2.msra.mxu0 %v11090_v47  ;;  %v433_v11 = vpop.f32.mrf.mxu0  ;;  %v11100_v50 = vld [vmem:[#allocation29_spill] sm:$0xff] }
 0x164   :  { %2607 = vmatpush1.msra.mxu1 %v11091_v3  ;;  %2427 = vmatprep.subr.mxu0 %v11092_v15  ;;  %v11102_v15 = vld [vmem:[#allocation68_spill] sm:$0xff]  ;;  %v11104_v3 = vld [vmem:[#allocation66_spill] sm:$0xff] }
 0x165   :  { %2609 = vmatprep.subr.mxu1 %v11093_v24  ;;  %2430 = vmatpush2.msra.mxu0 %v11094_v17  ;;  %v840_v24 = vpop.f32.mrf.mxu1  ;;  %v11098_v17 = vld [vmem:[#allocation62_spill] sm:$0xff] }
 0x166   :  { %2611 = vmatpush1.msra.mxu1 %v11095_v14  ;;  %2433 = vmatprep.subr.mxu0 %v11096_v7  ;;  %v841_v18 = vadd.f32 %v840_v24, %v416_v5  ;;  %v11101_v7 = vld [vmem:[#allocation55_spill] sm:$0xff]  ;;  %v1051_v14 = vpop.f32.mrf.mxu0 }
 0x167   :  { %2613 = vmatprep.subr.mxu1 %v6605_v48  ;;  %2436 = vmatpush2.msra.mxu0 %v11097_v53  ;;  %v842_v48 = vpop.f32.mrf.mxu1  ;;  %v11103_v53 = vld [vmem:[#allocation86_spill] sm:$0xff]  ;;  %v11106_v5 = vld [vmem:[#allocation39_spill] sm:$0xff] }
 0x168   :  { %2615 = vmatpush1.msra.mxu1 %v6623_v59  ;;  %2439 = vmatprep.subr.mxu0 %v6873_v6  ;;  %v1052_v6 = vadd.f32 %v1051_v14, %v7323_v9  ;;  %v843_v59 = vadd.f32 %v842_v48, %v418_v22  ;;  %v1053_v24 = vpop.f32.mrf.mxu0  ;;  %v11110_v9 = vld [vmem:[#allocation74_spill] sm:$0xff]  ;;  %v11113_v22 = vld [vmem:[#allocation104_spill] sm:$0xff] }
 0x169   :  { %2617 = vmatprep.subr.mxu1 %v11098_v17  ;;  %2442 = vmatpush2.msra.mxu0 %v11099_v34  ;;  %v11105_v17 = vld [vmem:[#allocation61_spill] sm:$0xff]  ;;  %v11108_v34 = vld [vmem:[#allocation70_spill] sm:$0xff]  ;;  %v848_v31 = vpop.f32.mrf.mxu1 }
 0x16a   :  { %2619 = vmatpush1.msra.mxu1 %v11100_v50  ;;  %2445 = vmatprep.subr.mxu0 %v11101_v7  ;;  %v11107_v50 = vld [vmem:[#allocation90_spill] sm:$0xff]  ;;  %v434_v7 = vadd.f32 %v433_v11, %v7241_v19  ;;  %v849_v14 = vadd.f32 %v848_v31, %v432_v30  ;;  %v11115_v19 = vld [vmem:[#allocation101_spill] sm:$0xff] }
 0x16b   :  { %2621 = vmatprep.subr.mxu1 %v11102_v15  ;;  %2448 = vmatpush2.msra.mxu0 %v11103_v53  ;;  %v1054_v15 = vadd.f32 %v1053_v24, %v7346_v1  ;;  %v11109_v53 = vld [vmem:[#allocation89_spill] sm:$0xff]  ;;  %v11111_v48 = vld [vmem:[#allocation98_spill] sm:$0xff] }
 0x16c   :  { %2623 = vmatpush2.msra.mxu1 %v11104_v3  ;;  %2451 = vmatprep.subr.mxu0 %v11105_v17  ;;  %v11114_v17 = vld [vmem:[#allocation45_spill] sm:$0xff]  ;;  %v11119_v30 = vld [vmem:[#allocation102_spill] sm:$0xff] }
 0x16d   :  { %2625 = vmatprep.subr.mxu1 %v11106_v5  ;;  %2454 = vmatpush2.msra.mxu0 %v11107_v50  ;;  %v1061_v5 = vpop.f32.mrf.mxu0  ;;  %v850_v50 = vpop.f32.mrf.mxu1  ;;  %v11116_v24 = vld [vmem:[#allocation41_spill] sm:$0xff] }
 0x16e   :  { %2627 = vmatpush2.msra.mxu1 %v11108_v34  ;;  %2457 = vmatprep.subr.mxu0 %v11109_v53  ;;  %v1062_v11 = vadd.f32 %v1061_v5, %v833_v28  ;;  %v851_v1 = vadd.f32 %v850_v50, %v434_v7  ;;  %v11117_v53 = vld [vmem:[#allocation106_spill] sm:$0xff]  ;;  %v11118_v34 = vld [vmem:[#allocation84_spill] sm:$0xff]  ;;  %v11123_v7 = vld [vmem:[#allocation51_spill] sm:$0xff] }
 0x16f   :  { %2629 = vmatprep.subr.mxu1 %v11110_v9  ;;  %2460 = vmatpush2.msra.mxu0 %v11111_v48  ;;  %v1063_v9 = vpop.f32.mrf.mxu0  ;;  %v1222_v28 = vpop.f32.mrf.mxu1 }
 0x170   :  { %2631 = vmatpush2.msra.mxu1 %v11112_v8  ;;  %2463 = vmatprep.subr.mxu0 %v11113_v22  ;;  %v1064_v31 = vadd.f32 %v1063_v9, %v835_v40  ;;  %v11120_v8 = vld [vmem:[#allocation47_spill] sm:$0xff]  ;;  %v11121_v22 = vld [vmem:[#allocation53_spill] sm:$0xff]  ;;  %v7585_v5 = vadd.f32 %v1222_v28, %v1052_v6  ;;  %v11129_v28 = vld [vmem:[#allocation100_spill] sm:$0xff] }
 0x171   :  { %2633 = vmatprep.subr.mxu1 %v11114_v17  ;;  %2466 = vmatpush2.msra.mxu0 %v11115_v19  ;;  %v11122_v17 = vld [vmem:[#allocation108_spill] sm:$0xff]  ;;  %v1071_v50 = vpop.f32.mrf.mxu0  ;;  %v1224_v9 = vpop.f32.mrf.mxu1  ;;  %v11128_v6 = vld [vmem:[#allocation93_spill] sm:$0xff] }
 0x172   :  { %2635 = vmatpush2.msra.mxu1 %v11116_v24  ;;  %2469 = vmatprep.subr.mxu0 %v11117_v53  ;;  %v1072_v40 = vadd.f32 %v1071_v50, %v841_v18  ;;  %v11130_v50 = vld [vmem:[#allocation99_spill] sm:$0xff] }
 0x173   :  { %2637 = vmatprep.subr.mxu1 %v11118_v34  ;;  %2472 = vmatpush2.msra.mxu0 %v11119_v30  ;;  %v11124_v34 = vld [vmem:[#allocation59_spill] sm:$0xff]  ;;  %v11125_v30 = vld [vmem:[#allocation109_spill] sm:$0xff] }
 0x174   :  { %2639 = vmatpush2.msra.mxu1 %v11120_v8  ;;  %2475 = vmatprep.subr.mxu0 %v7134_v58  ;;  %v11126_v8 = vld [vmem:[#allocation57_spill] sm:$0xff]  ;;  %v11127_v58 = vld [vmem:[#allocation63_spill] sm:$0xff] }
 0x175   :  { %2641 = vmatprep.subr.mxu1 %v11121_v22  ;;  %2478 = vmatpush2.msra.mxu0 %v11122_v17  ;;  %v1073_v22 = vpop.f32.mrf.mxu0  ;;  %v7591_v17 = vadd.f32 %v1224_v9, %v1054_v15  ;;  %v1234_v9 = vpop.f32.mrf.mxu1 }
 0x176   :  { %2643 = vmatpush2.msra.mxu1 %v11123_v7  ;;  %2481 = vmatprep.subr.mxu0 %v7201_v16  ;;  %v1074_v16 = vadd.f32 %v1073_v22, %v843_v59  ;;  %v7603_v59 = vadd.f32 %v1234_v9, %v1062_v11  ;;  %v11133_v11 = vld [vmem:[#allocation107_spill] sm:$0xff]  ;;  %v11136_v9 = vld [vmem:[#allocation110_spill] sm:$0xff] }
 0x177   :  { %2645 = vmatprep.subr.mxu1 %v11124_v34  ;;  %2484 = vmatpush2.msra.mxu0 %v11125_v30  ;;  %v1081_v18 = vpop.f32.mrf.mxu0 }
 0x178   :  { %2647 = vmatpush2.msra.mxu1 %v11126_v8  ;;  %2487 = vmatprep.subr.mxu0 %v7234_v43  ;;  %v1082_v15 = vadd.f32 %v1081_v18, %v849_v14  ;;  %v11131_v43 = vld [vmem:[#allocation105_spill] sm:$0xff]  ;;  %v11134_v18 = vld [vmem:[#allocation112_spill] sm:$0xff] }
 0x179   :  { %2649 = vmatprep.subr.mxu1 %v11127_v58  ;;  %2490 = vmatpush2.msra.mxu0 %v7126_v55  ;;  %v1083_v22 = vpop.f32.mrf.mxu0 }
 0x17a   :  { %2651 = vmatpush2.msra.mxu1 %v11128_v6  ;;  %2493 = vmatprep.subr.mxu0 %v7285_v57  ;;  %v11132_v6 = vld [vmem:[#allocation103_spill] sm:$0xff] }
 0x17b   :  { %2653 = vmatprep.subr.mxu1 %v11129_v28  ;;  %2496 = vmatpush2.msra.mxu0 %v7177_v51  ;;  %v1084_v28 = vadd.f32 %v1083_v22, %v851_v1  ;;  %v1236_v51 = vpop.f32.mrf.mxu1 }
 0x17c   :  { %2655 = vmatpush2.msra.mxu1 %v11130_v50  ;;  %2499 = vmatprep.subr.mxu0 %v7321_v32  ;;  %v7609_v32 = vadd.f32 %v1236_v51, %v1064_v31  ;;  %v11135_v31 = vand.u32 4294901760, %v11034_v29  ;;  %v11140_v29 = vand.u32 4294901760, %v11039_v42  ;;  %v11145_v42 = vand.u32 4294901760, %v11042_v56 }
 0x17d   :  { %2657 = vmatprep.subr.mxu1 %v11131_v43  ;;  %2502 = vmatpush2.msra.mxu0 %v7216_v23  ;;  %v1246_v14 = vpop.f32.mrf.mxu1  ;;  %v11151_v56 = vand.u32 4294901760, %v11046_v27  ;;  %v11157_v27 = vand.u32 4294901760, %v7356_v0 }
 0x17e   :  { %2659 = vmatpush2.msra.mxu1 %v11132_v6  ;;  %2505 = vmatprep.subr.mxu0 %v7360_v61  ;;  %v7617_v1 = vadd.f32 %v1246_v14, %v1072_v40  ;;  %v11138_v40 = vand.u32 4294901760, %v11037_v63 }
 0x17f   :  { %2661 = vmatprep.subr.mxu1 %v7051_v10  ;;  %2508 = vmatpush2.msra.mxu0 %v7302_v13  ;;  %v1248_v51 = vpop.f32.mrf.mxu1 }
 0x180   :  { %2663 = vmatpush2.msra.mxu1 %v7038_v41  ;;  %2511 = vmatprep.subr.mxu0 %v7381_v36  ;;  %v7624_v22 = vadd.f32 %v1248_v51, %v1074_v16  ;;  %v11141_v16 = vand.u32 4294901760, %v11040_v25  ;;  %v11143_v51 = vand.u32 4294901760, %v11041_v33  ;;  %v11148_v25 = vand.u32 4294901760, %v11043_v38 }
 0x181   :  { %2665 = vmatprep.subr.mxu1 %v7103_v4  ;;  %2514 = vmatpush2.msra.mxu0 %v7366_v44  ;;  %v11137_v44 = vand.u32 4294901760, %v11036_v26  ;;  %v1258_v14 = vpop.f32.mrf.mxu1  ;;  %v11150_v33 = vand.u32 4294901760, %v11044_v37  ;;  %v11154_v38 = vand.u32 4294901760, %v11050_v35  ;;  %v11155_v37 = vld [vmem:[#allocation65_spill] sm:$0xff] }
 0x182   :  { %2517 = vmatprep.mubr.f32.mxu0 %v7266_v2  ;;  %2667 = vmatpush2.msra.mxu1 %v11133_v11 }
 0x183   :  { %2520 = vmatmul.mubr.f32.vlgmr.msra.gmra.mxu0 %v7295_v54  ;;  %2669 = vmatprep.subr.mxu1 %v11134_v18  ;;  %v11139_v18 = vld [vmem:[#allocation113_spill] sm:$0xff]  ;;  %v1260_v26 = vpop.f32.mrf.mxu1 }
 0x184   :  { %2736 = vmatprep.subr.mxu0 %v11135_v31  ;;  %2671 = vmatpush2.msra.mxu1 %v11136_v9  ;;  %v7635_v31 = vadd.f32 %v1258_v14, %v1082_v15  ;;  %v7642_v63 = vadd.f32 %v1260_v26, %v1084_v28  ;;  %v11146_v15 = vld [vmem:[#allocation122_spill] sm:$0xff]  ;;  %v11147_v14 = vand.u32 4294901760, %v7266_v2  ;;  %v11149_v28 = vand.u32 4294901760, %v7295_v54 }
 0x185   :  { %2740 = vmatpush1.msra.mxu0 %v11137_v44  ;;  %2673 = vmatprep.subr.mxu1 %v7185_v39  ;;  %v11142_v44 = vld [vmem:[#allocation119_spill] sm:$0xff]  ;;  %v11152_v2 = vand.u32 4294901760, %v11048_v46  ;;  %v11153_v54 = vand.u32 4294901760, %v7332_v21 }
 0x186   :  { %2744 = vmatprep.subr.mxu0 %v11138_v40  ;;  %2527 = vmatprep.mubr.f32.mxu0 %v7332_v21  ;;  %v11144_v40 = vld [vmem:[#allocation120_spill] sm:$0xff]  ;;  %v11163_v21 = vld [vmem:[#allocation71_spill] sm:$0xff] }
 0x187   :  { %2675 = vmatpush2.msra.mxu1 %v11139_v18  ;;  %2748 = vmatpush1.msra.mxu0 %v11140_v29  ;;  %v11160_v29 = vld [vmem:[#allocation67_spill] sm:$0xff] }
 0x188   :  { %2530 = vmatmul.mubr.f32.gmra.mxu0 %v7356_v0  ;;  %2677 = vmatprep.subr.mxu1 %v7249_v45  ;;  %v11168_v0 = vld [vmem:[#allocation11_spill] sm:$0xff] }
 0x189   :  { %2752 = vmatprep.subr.mxu0 %v11141_v16  ;;  %2679 = vmatpush2.msra.mxu1 %v11142_v44  ;;  %v11164_v16 = vld [vmem:[#allocation12_spill] sm:$0xff] }
 0x18a   :  { %2756 = vmatpush1.msra.mxu0 %v11143_v51  ;;  %2681 = vmatprep.subr.mxu1 %v11144_v40  ;;  %v11165_v35 = vand.u32 4294901760, %v11164_v16  ;;  %v11166_v51 = vld [vmem:[#allocation77_spill] sm:$0xff] }
 0x18b   :  { %2760 = vmatprep.subr.mxu0 %v11145_v42  ;;  %2537 = vmatprep.mubr.f32.mxu0 %v7396_v62  ;;  %v11167_v42 = vand.u32 4294901760, %v7396_v62  ;;  %v11178_v62 = vld [vmem:[#allocation46_spill] sm:$0xff] }
 0x18c   :  { %2683 = vmatpush2.msra.mxu1 %v11146_v15  ;;  %2687 = vmatprep.mubr.f32.mxu1 %v11147_v14  ;;  %v11169_v14 = vand.u32 4294901760, %v11168_v0  ;;  %v11191_v0 = vld [vmem:[#allocation7_spill] sm:$0xff] }
 0x18d   :  { %2764 = vmatpush1.msra.mxu0 %v11148_v25  ;;  %2691 = vmatmul.mubr.f32.vlgmr.msra.gmra.mxu1 %v11149_v28  ;;  %v11170_v25 = vld [vmem:[#allocation81_spill] sm:$0xff]  ;;  %v11171_v28 = vand.u32 4294901760, %v7424_v12 }
 0x18e   :  { %2540 = vmatmul.mubr.f32.gmra.mxu0 %v7424_v12  ;;  %2768 = vmatprep.subr.mxu0 %v11150_v33  ;;  %v11172_v33 = vld [vmem:[#allocation14_spill] sm:$0xff]  ;;  %v11182_v12 = vld [vmem:[#allocation44_spill] sm:$0xff] }
 0x18f   :  { %3023 = vmatprep.subr.mxu1 %v11045_v20  ;;  %2772 = vmatpush1.msra.mxu0 %v11151_v56  ;;  %v11156_v20 = vld [vmem:[#allocation130_spill] sm:$0xff]  ;;  %v11173_v56 = vand.u32 4294901760, %v11172_v33 }
 0x190   :  { %3025 = vmatpush1.msra.mxu1 %v11047_v60  ;;  %2776 = vmatprep.subr.mxu0 %v11152_v2  ;;  %v11158_v60 = vld [vmem:[#allocation32_spill] sm:$0xff]  ;;  %v11174_v2 = vld [vmem:[#allocation87_spill] sm:$0xff] }
 0x191   :  { %3027 = vmatprep.subr.mxu1 %v11049_v49  ;;  %2547 = vmatprep.mubr.f32.mxu0 %v7446_v52  ;;  %v11159_v46 = vand.u32 4294901760, %v11158_v60  ;;  %v11161_v49 = vld [vmem:[#allocation10_spill] sm:$0xff] }
 0x192   :  { %2699 = vmatprep.mubr.f32.mxu1 %v11153_v54  ;;  %2780 = vmatpush1.msra.mxu0 %v11154_v38  ;;  %v11162_v26 = vand.u32 4294901760, %v11161_v49  ;;  %v11175_v54 = vld [vmem:[#allocation15_spill] sm:$0xff]  ;;  %v11180_v60 = vld [vmem:[#allocation22_spill] sm:$0xff]  ;;  %v11184_v49 = vld [vmem:[#allocation5_spill] sm:$0xff] }
 0x193   :  { %3029 = vmatpush1.msra.mxu1 %v11155_v37  ;;  %2550 = vmatmul.mubr.f32.gmra.mxu0 %v11156_v20  ;;  %v11176_v38 = vand.u32 4294901760, %v11175_v54  ;;  %v11177_v37 = vld [vmem:[#allocation92_spill] sm:$0xff]  ;;  %v11200_v54 = vld [vmem:[#allocation34_spill] sm:$0xff] }
 0x194   :  { %2703 = vmatmul.mubr.f32.gmra.mxu1 %v11157_v27  ;;  %2784 = vmatprep.subr.mxu0 %v11159_v46  ;;  %v11179_v27 = vand.u32 4294901760, %v11178_v62  ;;  %v11181_v46 = vand.u32 4294901760, %v7446_v52  ;;  %v11192_v52 = vld [vmem:[#allocation52_spill] sm:$0xff] }
 0x195   :  { %3031 = vmatprep.subr.mxu1 %v11160_v29  ;;  %2788 = vmatpush1.msra.mxu0 %v11162_v26  ;;  %v11183_v29 = vand.u32 4294901760, %v11182_v12  ;;  %v11185_v26 = vand.u32 4294901760, %v11156_v20  ;;  %v11197_v20 = vld [vmem:[#allocation9_spill] sm:$0xff]  ;;  %v11203_v62 = vld [vmem:[#allocation36_spill] sm:$0xff] }
 0x196   :  { %3033 = vmatpush1.msra.mxu1 %v11163_v21  ;;  %2792 = vmatprep.subr.mxu0 %v11165_v35  ;;  %v11186_v21 = vld [vmem:[#allocation48_spill] sm:$0xff]  ;;  %v11188_v35 = vld [vmem:[#allocation26_spill] sm:$0xff] }
 0x197   :  { %3035 = vmatprep.subr.mxu1 %v11166_v51  ;;  %2711 = vmatprep.mubr.f32.mxu1 %v11167_v42  ;;  %v11187_v16 = vand.u32 4294901760, %v11186_v21  ;;  %v11189_v51 = vld [vmem:[#allocation18_spill] sm:$0xff]  ;;  %v11207_v12 = vld [vmem:[#allocation60_spill] sm:$0xff] }
 0x198   :  { %2796 = vmatpush1.msra.mxu0 %v11169_v14  ;;  %3037 = vmatpush1.msra.mxu1 %v11170_v25  ;;  %v11190_v42 = vand.u32 4294901760, %v11189_v51  ;;  %v11193_v14 = vand.u32 4294901760, %v11192_v52  ;;  %v11194_v25 = vld [vmem:[#allocation30_spill] sm:$0xff] }
 0x199   :  { %2715 = vmatmul.mubr.f32.gmra.mxu1 %v11171_v28  ;;  %2800 = vmatprep.subr.mxu0 %v11173_v56  ;;  %v11195_v28 = vld [vmem:[#allocation20_spill] sm:$0xff] }
 0x19a   :  { %3039 = vmatprep.subr.mxu1 %v11174_v2  ;;  %2804 = vmatpush1.msra.mxu0 %v11176_v38  ;;  %v11196_v33 = vand.u32 4294901760, %v11195_v28  ;;  %v11198_v56 = vld [vmem:[#allocation56_spill] sm:$0xff]  ;;  %v11201_v38 = vld [vmem:[#allocation23_spill] sm:$0xff] }
 0x19b   :  { %3041 = vmatpush1.msra.mxu1 %v11177_v37  ;;  %2808 = vmatprep.subr.mxu0 %v11179_v27  ;;  %v11199_v2 = vand.u32 4294901760, %v11198_v56  ;;  %v11202_v37 = vand.u32 4294901760, %v11201_v38  ;;  %v11204_v27 = vld [vmem:[#allocation27_spill] sm:$0xff] }
 0x19c   :  { %3043 = vmatprep.subr.mxu1 %v11180_v60  ;;  %2723 = vmatprep.mubr.f32.mxu1 %v11181_v46  ;;  %v11205_v60 = vand.u32 4294901760, %v11204_v27  ;;  %v11206_v46 = vld [vmem:[#allocation38_spill] sm:$0xff]  ;;  %v11226_v38 = vld [vmem:[#allocation19_spill] sm:$0xff] }
 0x19d   :  { %2812 = vmatpush1.msra.mxu0 %v11183_v29  ;;  %3045 = vmatpush1.msra.mxu1 %v11184_v49  ;;  %v11208_v29 = vand.u32 4294901760, %v11207_v12  ;;  %v11209_v49 = vld [vmem:[#allocation13_spill] sm:$0xff]  ;;  %v11229_v27 = vld [vmem:[#allocation54_spill] sm:$0xff] }
 0x19e   :  { %2727 = vmatmul.mubr.f32.gmra.mxu1 %v11185_v26  ;;  %2816 = vmatprep.subr.mxu0 %v11187_v16  ;;  %v11210_v26 = vld [vmem:[#allocation64_spill] sm:$0xff]  ;;  %v11232_v12 = vld [vmem:[#allocation21_spill] sm:$0xff] }
 0x19f   :  { %3047 = vmatprep.subr.mxu1 %v11188_v35  ;;  %2820 = vmatpush1.msra.mxu0 %v11190_v42  ;;  %v11211_v21 = vand.u32 4294901760, %v11210_v26  ;;  %v11212_v16 = vld [vmem:[#allocation40_spill] sm:$0xff]  ;;  %v11213_v35 = vld [vmem:[#allocation31_spill] sm:$0xff]  ;;  %v11215_v42 = vld [vmem:[#allocation42_spill] sm:$0xff] }
 0x1a0   :  { %3049 = vmatpush1.msra.mxu1 %v11191_v0  ;;  %2824 = vmatprep.subr.mxu0 %v11193_v14  ;;  %v11214_v51 = vand.u32 4294901760, %v11213_v35  ;;  %v11216_v0 = vld [vmem:[#allocation35_spill] sm:$0xff]  ;;  %v11218_v14 = vld [vmem:[#allocation16_spill] sm:$0xff]  ;;  %v11235_v26 = vld [vmem:[#allocation58_spill] sm:$0xff] }
 0x1a1   :  { %3051 = vmatprep.subr.mxu1 %v11194_v25  ;;  %2828 = vmatpush1.msra.mxu0 %v11196_v33  ;;  %v11217_v52 = vand.u32 4294901760, %v11216_v0  ;;  %v11219_v25 = vld [vmem:[#allocation33_spill] sm:$0xff]  ;;  %v197_v35 = vld [vmem:[%s9708_s1 + $0x4f0] sm:$0xff] }
 0x1a2   :  { %3053 = vmatpush1.msra.mxu1 %v11197_v20  ;;  %2832 = vmatprep.subr.mxu0 %v11199_v2  ;;  %v11220_v28 = vand.u32 4294901760, %v11219_v25  ;;  %v11221_v33 = vld [vmem:[#allocation17_spill] sm:$0xff]  ;;  %v11222_v20 = vld [vmem:[#allocation76_spill] sm:$0xff]  ;;  %v11224_v2 = vld [vmem:[#allocation50_spill] sm:$0xff] }
 0x1a3   :  { %3055 = vmatprep.subr.mxu1 %v11200_v54  ;;  %2836 = vmatpush1.msra.mxu0 %v11202_v37  ;;  %v11223_v56 = vand.u32 4294901760, %v11222_v20  ;;  %v11225_v54 = vand.u32 4294901760, %v11090_v47  ;;  %v11227_v37 = vld [vmem:[#allocation80_spill] sm:$0xff]  ;;  %v11242_v25 = vld [vmem:[#allocation49_spill] sm:$0xff]  ;;  %v11245_v20 = vld [vmem:[#allocation55_spill] sm:$0xff] }
 0x1a4   :  { %3057 = vmatpush1.msra.mxu1 %v11203_v62  ;;  %2840 = vmatprep.subr.mxu0 %v11205_v60  ;;  %v11228_v62 = vand.u32 4294901760, %v11227_v37  ;;  %v11230_v60 = vld [vmem:[#allocation43_spill] sm:$0xff]  ;;  %v11250_v37 = vld [vmem:[#allocation86_spill] sm:$0xff] }
 0x1a5   :  { %3059 = vmatprep.subr.mxu1 %v11206_v46  ;;  %2844 = vmatpush1.msra.mxu0 %v11208_v29  ;;  %v11231_v46 = vand.u32 4294901760, %v11230_v60  ;;  %v11233_v29 = vld [vmem:[#allocation82_spill] sm:$0xff] }
 0x1a6   :  { %3061 = vmatpush1.msra.mxu1 %v11209_v49  ;;  %2848 = vmatprep.subr.mxu0 %v11211_v21  ;;  %v11234_v49 = vand.u32 4294901760, %v11233_v29  ;;  %v11236_v21 = vld [vmem:[#allocation78_spill] sm:$0xff] }
 0x1a7   :  { %3063 = vmatprep.subr.mxu1 %v11212_v16  ;;  %2852 = vmatpush1.msra.mxu0 %v11214_v51  ;;  %v11237_v47 = vand.u32 4294901760, %v11236_v21  ;;  %v198_v16 = vld [vmem:[%s9708_s1 + $0x4f8] sm:$0xff]  ;;  %v11238_v51 = vld [vmem:[#allocation25_spill] sm:$0xff]  ;;  %v11256_v21 = vld [vmem:[#allocation90_spill] sm:$0xff] }
 0x1a8   :  { %3065 = vmatpush1.msra.mxu1 %v11215_v42  ;;  %2856 = vmatprep.subr.mxu0 %v11217_v52  ;;  %v11239_v42 = vld [vmem:[#allocation88_spill] sm:$0xff]  ;;  %v196_v52 = vld [vmem:[%s9708_s1 + $0x4e8] sm:$0xff] }
 0x1a9   :  { %3067 = vmatprep.subr.mxu1 %v11218_v14  ;;  %2860 = vmatpush1.msra.mxu0 %v11220_v28  ;;  %v11240_v0 = vand.u32 4294901760, %v11239_v42  ;;  %v11241_v14 = vld [vmem:[#allocation62_spill] sm:$0xff]  ;;  %v11243_v28 = vand.u32 4294901760, %v11242_v25  ;;  %v7786_v60 = vand.u32 4294901760, %v196_v52  ;;  %v194_v42 = vld [vmem:[%s9708_s1 + $0x4d8] sm:$0xff] }
 0x1aa   :  { %3069 = vmatpush1.msra.mxu1 %v11221_v33  ;;  %2864 = vmatprep.subr.mxu0 %v11223_v56  ;;  %v11244_v33 = vld [vmem:[#allocation29_spill] sm:$0xff]  ;;  %v11246_v56 = vand.u32 4294901760, %v11245_v20  ;;  %v11261_v20 = vld [vmem:[#allocation74_spill] sm:$0xff] }
 0x1ab   :  { %3071 = vmatprep.subr.mxu1 %v11224_v2  ;;  %2868 = vmatpush2.msra.mxu0 %v11225_v54  ;;  %v7779_v2 = vand.u32 4294901760, %v198_v16  ;;  %v7781_v54 = vand.u32 4294901760, %v197_v35  ;;  %11252 = vst [vmem:[#allocation79_spill] sm:$0xff] %v7786_v60 }
 0x1ac   :  { %3073 = vmatpush1.msra.mxu1 %v11226_v38  ;;  %2872 = vmatprep.subr.mxu0 %v11228_v62  ;;  %v11249_v38 = vld [vmem:[#allocation68_spill] sm:$0xff]  ;;  %v11251_v62 = vand.u32 4294901760, %v11250_v37  ;;  %v7820_v37 = vsub.f32 %v196_v52, %v7786_v60 }
 0x1ad   :  { %3075 = vmatprep.subr.mxu1 %v11229_v27  ;;  %2876 = vmatpush2.msra.mxu0 %v11231_v46  ;;  %11247 = vst [vmem:[#allocation69_spill] sm:$0xff] %v7779_v2  ;;  %11248 = vst [vmem:[#allocation73_spill] sm:$0xff] %v7781_v54  ;;  %v11253_v46 = vld [vmem:[#allocation61_spill] sm:$0xff] }
 0x1ae   :  { %3077 = vmatpush1.msra.mxu1 %v11232_v12  ;;  %2880 = vmatprep.subr.mxu0 %v11234_v49  ;;  %v1523_v27 = vpop.f32.mrf.mxu0  ;;  %v11254_v12 = vand.u32 4294901760, %v11253_v46  ;;  %v195_v49 = vld [vmem:[%s9708_s1 + $0x4e0] sm:$0xff]  ;;  %11264 = vst [vmem:[#allocation83_spill] sm:$0xff] %v7820_v37  ;;  %v7825_v46 = vand.u32 4294901760, %v194_v42 }
 0x1af   :  { %3079 = vmatprep.subr.mxu1 %v11235_v26  ;;  %2884 = vmatpush2.msra.mxu0 %v11237_v47  ;;  %v1524_v29 = vadd.f32 %v1523_v27, %v7585_v5  ;;  %v11255_v26 = vld [vmem:[#allocation39_spill] sm:$0xff]  ;;  %v11257_v47 = vand.u32 4294901760, %v11256_v21  ;;  %v7805_v5 = vsub.f32 %v197_v35, %v7781_v54  ;;  %v11265_v35 = vld [vmem:[#allocation37_spill] sm:$0xff]  ;;  %v11272_v21 = vand.u32 4294901760, %v11117_v53 }
 0x1b0   :  { %3081 = vmatpush1.msra.mxu1 %v11238_v51  ;;  %2888 = vmatprep.subr.mxu0 %v11240_v0  ;;  %v1525_v51 = vpop.f32.mrf.mxu0  ;;  %v11259_v0 = vld [vmem:[#allocation89_spill] sm:$0xff]  ;;  %11268 = vst [vmem:[#allocation85_spill] sm:$0xff] %v7825_v46 }
 0x1b1   :  { %3083 = vmatprep.subr.mxu1 %v11241_v14  ;;  %2892 = vmatpush2.msra.mxu0 %v11243_v28  ;;  %v11260_v14 = vand.u32 4294901760, %v11259_v0  ;;  %v1526_v25 = vadd.f32 %v1525_v51, %v7591_v17  ;;  %v193_v28 = vld [vmem:[%s9708_s1 + $0x4d0] sm:$0xff]  ;;  %v11266_v17 = vld [vmem:[#allocation104_spill] sm:$0xff]  ;;  %v191_v51 = vld [vmem:[%s9708_s1 + $0x4c0] sm:$0xff] }
 0x1b2   :  { %3085 = vmatpush1.msra.mxu1 %v11244_v33  ;;  %2896 = vmatprep.subr.mxu0 %v11246_v56  ;;  %v7812_v33 = vsub.f32 %v198_v16, %v7779_v2  ;;  %v11262_v56 = vand.u32 4294901760, %v11111_v48  ;;  %v1531_v27 = vpop.f32.mrf.mxu0  ;;  %v192_v16 = vld [vmem:[%s9708_s1 + $0x4c8] sm:$0xff]  ;;  %v11270_v48 = vand.u32 4294901760, %v11115_v19  ;;  %v190_v19 = vld [vmem:[%s9708_s1 + $0x4b8] sm:$0xff] }
 0x1b3   :  { %3087 = vmatprep.subr.mxu1 %v11249_v38  ;;  %2900 = vmatpush2.msra.mxu0 %v11251_v62  ;;  %v7817_v38 = vand.u32 4294901760, %v195_v49  ;;  %v11267_v62 = vand.u32 4294901760, %v11266_v17  ;;  %v7834_v52 = vadd.f32 %v1531_v27, %v7603_v59  ;;  %v10179_v59 = vand.u32 4294901760, %v7805_v5  ;;  %v11273_v0 = vld [vmem:[#allocation84_spill] sm:$0xff]  ;;  %v11279_v27 = vld [vmem:[#allocation111_spill] sm:$0xff] }
 0x1b4   :  { %3089 = vmatpush2.msra.mxu1 %v11104_v3  ;;  %2904 = vmatprep.subr.mxu0 %v11254_v12  ;;  %v11258_v3 = vld [vmem:[#allocation70_spill] sm:$0xff]  ;;  %v11269_v12 = vld [vmem:[#allocation45_spill] sm:$0xff]  ;;  %v10180_v17 = vand.u32 4294901760, %v7820_v37 }
 0x1b5   :  { %3091 = vmatprep.subr.mxu1 %v11255_v26  ;;  %2908 = vmatpush2.msra.mxu0 %v11257_v47  ;;  %11263 = vst [vmem:[#allocation75_spill] sm:$0xff] %v7817_v38  ;;  %v7836_v26 = vand.u32 4294901760, %v193_v28  ;;  %v1533_v47 = vpop.f32.mrf.mxu0  ;;  %v7853_v53 = vsub.f32 %v195_v49, %v7817_v38  ;;  %v11282_v49 = vld [vmem:[#allocation53_spill] sm:$0xff] }
 0x1b6   :  { %3093 = vmatpush2.msra.mxu1 %v11258_v3  ;;  %2912 = vmatprep.subr.mxu0 %v11260_v14  ;;  %v10181_v3 = vand.u32 4294901760, %v7812_v33  ;;  %v11274_v14 = vld [vmem:[#allocation102_spill] sm:$0xff] }
 0x1b7   :  { %3095 = vmatprep.subr.mxu1 %v11261_v20  ;;  %2916 = vmatpush2.msra.mxu0 %v11262_v56  ;;  %11271 = vst [vmem:[#allocation94_spill] sm:$0xff] %v7836_v26  ;;  %11276 = vst [vmem:[#allocation96_spill] sm:$0xff] %v7853_v53  ;;  %v7856_v20 = vadd.f32 %v1533_v47, %v7609_v32  ;;  %v7858_v56 = vand.u32 4294901760, %v192_v16  ;;  %v11283_v32 = vld [vmem:[#allocation108_spill] sm:$0xff]  ;;  %v7874_v47 = vsub.f32 %v193_v28, %v7836_v26 }
 0x1b8   :  { %3097 = vmatpush2.msra.mxu1 %v11265_v35  ;;  %2920 = vmatprep.subr.mxu0 %v11267_v62  ;;  %v189_v35 = vld [vmem:[%s9708_s1 + $0x4b0] sm:$0xff] }
 0x1b9   :  { %3099 = vmatprep.subr.mxu1 %v11269_v12  ;;  %2924 = vmatpush2.msra.mxu0 %v11270_v48  ;;  %11277 = vst [vmem:[#allocation24_spill] sm:$0xff] %v7858_v56  ;;  %v11278_v62 = vld [vmem:[#allocation47_spill] sm:$0xff]  ;;  %v11280_v12 = vand.u32 4294901760, %v11279_v27  ;;  %v7868_v48 = vsub.f32 %v194_v42, %v7825_v46  ;;  %11285 = vst [vmem:[#allocation6_spill] sm:$0xff] %v7874_v47  ;;  %v1539_v42 = vpop.f32.mrf.mxu0  ;;  %v7890_v28 = vand.u32 4294901760, %v189_v35 }
 0x1ba   :  { %3101 = vmatpush2.msra.mxu1 %v11116_v24  ;;  %2928 = vmatprep.subr.mxu0 %v11272_v21  ;;  %v11275_v24 = vand.u32 4294901760, %v11274_v14  ;;  %v11284_v21 = vand.u32 4294901760, %v11283_v32  ;;  %v1684_v14 = vpop.f32.mrf.mxu1  ;;  %v7895_v32 = vsub.f32 %v7805_v5, %v10179_v59 }
 0x1bb   :  { %3103 = vmatprep.subr.mxu1 %v11273_v0  ;;  %11281 = vst [vmem:[#allocation91_spill] sm:$0xff] %v7868_v48  ;;  %v7876_v0 = vand.u32 4294901760, %v191_v51  ;;  %11291 = vst [vmem:[#allocation28_spill] sm:$0xff] %v7890_v28 }
 0x1bc   :  { %2932 = vmatpush2.msra.mxu0 %v11275_v24  ;;  %3105 = vmatpush2.msra.mxu1 %v11278_v62  ;;  %v7878_v24 = vand.u32 4294901760, %v190_v19  ;;  %v11288_v62 = vld [vmem:[#allocation115_spill] sm:$0xff] }
 0x1bd   :  { %2936 = vmatprep.subr.mxu0 %v11280_v12  ;;  %3107 = vmatprep.subr.mxu1 %v11282_v49  ;;  %11286 = vst [vmem:[#allocation95_spill] sm:$0xff] %v7876_v0  ;;  %v11289_v27 = vand.u32 4294901760, %v11288_v62  ;;  %v7883_v12 = vadd.f32 %v1684_v14, %v1524_v29  ;;  %v7888_v49 = vsub.f32 %v7812_v33, %v10181_v3  ;;  %v11292_v29 = vand.u32 4294901760, %v11125_v30  ;;  %v1686_v14 = vpop.f32.mrf.mxu1  ;;  %v11294_v30 = vld [vmem:[#allocation117_spill] sm:$0xff] }
 0x1be   :  { %2940 = vmatpush2.msra.mxu0 %v11284_v21  ;;  %11287 = vst [vmem:[#allocation8_spill] sm:$0xff] %v7878_v24  ;;  %3109 = vmatpush2.msra.mxu1 %v11123_v7  ;;  %v188_v7 = vld [vmem:[%s9708_s1 + $0x4a8] sm:$0xff]  ;;  %v7904_v21 = vadd.f32 %v1539_v42, %v7617_v1  ;;  %v7909_v62 = vsub.f32 %v7820_v37, %v10180_v17  ;;  %v11295_v1 = vand.u32 4294901760, %v11294_v30  ;;  %v1541_v42 = vpop.f32.mrf.mxu0  ;;  %v11297_v3 = vand.u32 4294901760, %v7126_v55  ;;  %v11301_v55 = vld [vmem:[#allocation93_spill] sm:$0xff] }
 0x1bf   :  { %2944 = vmatprep.subr.mxu0 %v11289_v27  ;;  %11290 = vst [vmem:[#allocation97_spill] sm:$0xff] %v7883_v12  ;;  %3111 = vmatprep.subr.mxu1 %v11124_v34  ;;  %v187_v27 = vld [vmem:[%s9708_s1 + $0x4a0] sm:$0xff]  ;;  %v7916_v34 = vsub.f32 %v192_v16, %v7858_v56  ;;  %v7928_v59 = vsub.f32 %v191_v51, %v7876_v0  ;;  %v11302_v51 = vand.u32 4294901760, %v7285_v57  ;;  %v11306_v17 = vld [vmem:[#allocation114_spill] sm:$0xff]  ;;  %v11308_v57 = vand.u32 4294901760, %v7853_v53 }
 0x1c0   :  { %2948 = vmatpush2.msra.mxu0 %v11292_v29  ;;  %3113 = vmatpush2.msra.mxu1 %v11126_v8  ;;  %v7921_v29 = vadd.f32 %v1686_v14, %v1526_v25  ;;  %v7931_v16 = vadd.f32 %v1541_v42, %v7624_v22  ;;  %v7933_v8 = vand.u32 4294901760, %v188_v7  ;;  %v186_v25 = vld [vmem:[%s9708_s1 + $0x498] sm:$0xff]  ;;  %v185_v14 = vld [vmem:[%s9708_s1 + $0x490] sm:$0xff]  ;;  %v7951_v30 = vand.u32 4294901760, %v187_v27 }
 0x1c1   :  { %11293 = vst [vmem:[#allocation72_spill] sm:$0xff] %v7916_v34  ;;  %2952 = vmatprep.subr.mxu0 %v11295_v1  ;;  %3115 = vmatprep.subr.mxu1 %v11127_v58  ;;  %11298 = vst [vmem:[#allocation98_spill] sm:$0xff] %v7928_v59  ;;  %v7942_v58 = vsub.f32 %v190_v19, %v7878_v24  ;;  %v11305_v42 = vld [vmem:[#allocation100_spill] sm:$0xff] }
 0x1c2   :  { %11296 = vst [vmem:[#allocation66_spill] sm:$0xff] %v7921_v29  ;;  %2956 = vmatpush2.msra.mxu0 %v11297_v3  ;;  %11299 = vst [vmem:[#allocation101_spill] sm:$0xff] %v7933_v8  ;;  %3117 = vmatpush2.msra.mxu1 %v11301_v55  ;;  %v7949_v3 = vsub.f32 %v189_v35, %v7890_v28  ;;  %v11307_v29 = vand.u32 4294901760, %v11306_v17  ;;  %v1547_v35 = vpop.f32.mrf.mxu0  ;;  %v11309_v1 = vld [vmem:[#allocation124_spill] sm:$0xff]  ;;  %v11312_v55 = vand.u32 4294901760, %v7868_v48 }
 0x1c3   :  { %11300 = vst [vmem:[#allocation41_spill] sm:$0xff] %v7942_v58  ;;  %2960 = vmatprep.subr.mxu0 %v11302_v51  ;;  %11304 = vst [vmem:[#allocation51_spill] sm:$0xff] %v7951_v30  ;;  %3119 = vmatprep.subr.mxu1 %v11305_v42  ;;  %v7962_v51 = vsub.f32 %v7853_v53, %v11308_v57  ;;  %v11310_v12 = vand.u32 4294901760, %v11309_v1  ;;  %v7969_v17 = vadd.f32 %v1547_v35, %v7635_v31 }
 0x1c4   :  { %11303 = vst [vmem:[#allocation106_spill] sm:$0xff] %v7949_v3  ;;  %2964 = vmatpush2.msra.mxu0 %v11307_v29  ;;  %3121 = vmatpush2.msra.mxu1 %v11130_v50  ;;  %v1692_v29 = vpop.f32.mrf.mxu1  ;;  %v7971_v42 = vand.u32 4294901760, %v186_v25  ;;  %v7976_v19 = vsub.f32 %v7868_v48, %v11312_v55  ;;  %v7978_v57 = vand.u32 4294901760, %v185_v14  ;;  %v184_v50 = vld [vmem:[%s9708_s1 + $0x488] sm:$0xff]  ;;  %v11314_v31 = vand.u32 4294901760, %v7216_v23  ;;  %v1549_v55 = vpop.f32.mrf.mxu0 }
 0x1c5   :  { %2968 = vmatprep.subr.mxu0 %v11310_v12  ;;  %v183_v12 = vld [vmem:[%s9708_s1 + $0x480] sm:$0xff]  ;;  %3123 = vmatprep.subr.mxu1 %v11131_v43  ;;  %v7990_v1 = vadd.f32 %v1692_v29, %v7834_v52  ;;  %v10186_v35 = vand.u32 4294901760, %v7928_v59  ;;  %v7995_v48 = vsub.f32 %v188_v7, %v7933_v8  ;;  %v11317_v53 = vand.u32 4294901760, %v7360_v61  ;;  %v182_v7 = vld [vmem:[%s9708_s1 + $0x478] sm:$0xff] }
 0x1c6   :  { %11311 = vst [vmem:[#allocation59_spill] sm:$0xff] %v7971_v42  ;;  %11313 = vst [vmem:[#allocation109_spill] sm:$0xff] %v7978_v57  ;;  %2972 = vmatpush2.msra.mxu0 %v11314_v31  ;;  %3125 = vmatpush2.msra.mxu1 %v11132_v6  ;;  %v8001_v43 = vsub.f32 %v187_v27, %v7951_v30  ;;  %v11319_v23 = vand.u32 4294901760, %v7874_v47  ;;  %v8009_v29 = vadd.f32 %v1549_v55, %v7642_v63  ;;  %v1694_v31 = vpop.f32.mrf.mxu1  ;;  %v181_v6 = vld [vmem:[%s9708_s1 + $0x470] sm:$0xff] }
 0x1c7   :  { %11315 = vst [vmem:[#allocation57_spill] sm:$0xff] %v7990_v1  ;;  %11316 = vst [vmem:[#allocation63_spill] sm:$0xff] %v7995_v48  ;;  %2976 = vmatprep.subr.mxu0 %v11317_v53  ;;  %3127 = vmatprep.subr.mxu1 %v7051_v10  ;;  %v11320_v61 = vand.u32 4294901760, %v7302_v13  ;;  %v8019_v53 = vadd.f32 %v1694_v31, %v7856_v20  ;;  %v8021_v27 = vand.u32 4294901760, %v184_v50  ;;  %v11323_v63 = vand.u32 4294901760, %v7916_v34  ;;  %v11336_v1 = vld [vmem:[#allocation118_spill] sm:$0xff] }
 0x1c8   :  { %11318 = vst [vmem:[#allocation99_spill] sm:$0xff] %v8001_v43  ;;  %v8006_v52 = vsub.f32 %v7874_v47, %v11319_v23  ;;  %v8028_v23 = vand.u32 4294901760, %v183_v12  ;;  %3129 = vmatpush2.msra.mxu1 %v7038_v41  ;;  %v11325_v10 = vand.u32 4294901760, %v7381_v36  ;;  %v8039_v31 = vsub.f32 %v185_v14, %v7978_v57  ;;  %v1700_v36 = vpop.f32.mrf.mxu1 }
 0x1c9   :  { %2980 = vmatpush2.msra.mxu0 %v11320_v61  ;;  %11321 = vst [vmem:[#allocation105_spill] sm:$0xff] %v8019_v53  ;;  %11322 = vst [vmem:[#allocation103_spill] sm:$0xff] %v8021_v27  ;;  %v8026_v55 = vsub.f32 %v7916_v34, %v11323_v63  ;;  %v8042_v61 = vsub.f32 %v186_v25, %v7971_v42  ;;  %3131 = vmatprep.subr.mxu1 %v7103_v4  ;;  %v11328_v63 = vld [vmem:[#allocation126_spill] sm:$0xff]  ;;  %v11331_v20 = vand.u32 4294901760, %v7942_v58  ;;  %v179_v4 = vld [vmem:[%s9708_s1 + $0x460] sm:$0xff] }
 0x1ca   :  { %11324 = vst [vmem:[#allocation107_spill] sm:$0xff] %v8028_v23  ;;  %2984 = vmatprep.subr.mxu0 %v11325_v10  ;;  %11326 = vst [vmem:[#allocation110_spill] sm:$0xff] %v8039_v31  ;;  %v11329_v22 = vand.u32 4294901760, %v11328_v63  ;;  %v8050_v41 = vsub.f32 %v7928_v59, %v10186_v35  ;;  %v8052_v10 = vand.u32 4294901760, %v182_v7  ;;  %3133 = vmatpush2.msra.mxu1 %v11133_v11  ;;  %v8068_v35 = vand.u32 4294901760, %v181_v6  ;;  %v180_v25 = vld [vmem:[%s9708_s1 + $0x468] sm:$0xff] }
 0x1cb   :  { %11327 = vst [vmem:[#allocation113_spill] sm:$0xff] %v8042_v61  ;;  %v8057_v14 = vsub.f32 %v7942_v58, %v11331_v20  ;;  %v8066_v63 = vadd.f32 %v1700_v36, %v7904_v21  ;;  %v11335_v13 = vand.u32 4294901760, %v7949_v3  ;;  %v11337_v58 = vld [vmem:[#allocation112_spill] sm:$0xff]  ;;  %v8084_v36 = vsub.f32 %v183_v12, %v8028_v23  ;;  %v11343_v21 = vld [vmem:[#allocation121_spill] sm:$0xff]  ;;  %v11366_v59 = vld [vmem:[#allocation127_spill] sm:$0xff] }
 0x1cc   :  { %2988 = vmatpush2.msra.mxu0 %v11329_v22  ;;  %11330 = vst [vmem:[#allocation119_spill] sm:$0xff] %v8052_v10  ;;  %v11332_v22 = vld [vmem:[#allocation116_spill] sm:$0xff]  ;;  %11334 = vst [vmem:[#allocation122_spill] sm:$0xff] %v8068_v35  ;;  %3135 = vmatprep.subr.mxu1 %v11337_v58  ;;  %v8111_v11 = vsub.f32 %v182_v7, %v8052_v10  ;;  %v8116_v12 = vsub.f32 %v181_v6, %v8068_v35  ;;  %v11394_v37 = vand.u32 4294901760, %v8006_v52  ;;  %v227_v52 = vld [vmem:[%s9708_s1 + $0x5e0] sm:$0xff] }
 0x1cd   :  { %2990 = vmatprep.mubr.f32.mxu0 %v11332_v22  ;;  %11333 = vst [vmem:[#allocation120_spill] sm:$0xff] %v8066_v63  ;;  %v8073_v20 = vsub.f32 %v7949_v3, %v11335_v13  ;;  %11338 = vst [vmem:[#allocation65_spill] sm:$0xff] %v8084_v36  ;;  %v1702_v63 = vpop.f32.mrf.mxu1  ;;  %v8087_v13 = vsub.f32 %v184_v50, %v8021_v27  ;;  %3184 = vmatprep.subr.mxu0 %v7779_v2  ;;  %v8094_v3 = vand.u32 4294901760, %v179_v4  ;;  %v178_v58 = vld [vmem:[%s9708_s1 + $0x458] sm:$0xff]  ;;  %v169_v2 = vld [vmem:[%s9708_s1 + $0x410] sm:$0xff] }
 0x1ce   :  { %2992 = vmatmul.mubr.f32.vlgmr.msra.gmra.mxu0 %v11336_v1  ;;  %3137 = vmatpush2.msra.mxu1 %v11136_v9  ;;  %v8092_v53 = vadd.f32 %v1702_v63, %v7931_v16  ;;  %v8105_v16 = vand.u32 4294901760, %v180_v25  ;;  %v177_v63 = vld [vmem:[%s9708_s1 + $0x450] sm:$0xff]  ;;  %11342 = vst [vmem:[#allocation10_spill] sm:$0xff] %v8111_v11  ;;  %11344 = vst [vmem:[#allocation71_spill] sm:$0xff] %v8116_v12  ;;  %v11345_v9 = vand.u32 4294901760, %v7995_v48  ;;  %v8254_v34 = vand.u32 4294901760, %v169_v2 }
 0x1cf   :  { %11339 = vst [vmem:[#allocation130_spill] sm:$0xff] %v8087_v13  ;;  %11341 = vst [vmem:[#allocation67_spill] sm:$0xff] %v8094_v3  ;;  %3186 = vmatpush1.msra.mxu0 %v7781_v54  ;;  %3139 = vmatprep.subr.mxu1 %v7185_v39  ;;  %v1708_v7 = vpop.f32.mrf.mxu1  ;;  %v8137_v39 = vand.u32 4294901760, %v178_v58 }
 0x1d0   :  { %11340 = vst [vmem:[#allocation32_spill] sm:$0xff] %v8092_v53  ;;  %3188 = vmatprep.subr.mxu0 %v7786_v60  ;;  %2998 = vmatprep.mubr.f32.mxu0 %v11343_v21  ;;  %v8122_v50 = vsub.f32 %v7995_v48, %v11345_v9  ;;  %v11346_v53 = vand.u32 4294901760, %v8001_v43  ;;  %v175_v60 = vld [vmem:[%s9708_s1 + $0x440] sm:$0xff]  ;;  %v8135_v6 = vadd.f32 %v1708_v7, %v7969_v17  ;;  %v176_v9 = vld [vmem:[%s9708_s1 + $0x448] sm:$0xff]  ;;  %v11349_v48 = vld [vmem:[#allocation123_spill] sm:$0xff]  ;;  %v11351_v17 = vand.u32 4294901760, %v8042_v61 }
 0x1d1   :  { %3141 = vmatpush2.msra.mxu1 %v11139_v18  ;;  %3190 = vmatpush1.msra.mxu0 %v7817_v38  ;;  %11348 = vst [vmem:[#allocation77_spill] sm:$0xff] %v8137_v39  ;;  %v8147_v18 = vsub.f32 %v179_v4, %v8094_v3  ;;  %v11353_v38 = vand.u32 4294901760, %v8039_v31  ;;  %11372 = vst [vmem:[#allocation7_spill] sm:$0xff] %v8254_v34 }
 0x1d2   :  { %v8127_v54 = vsub.f32 %v8001_v43, %v11346_v53  ;;  %11347 = vst [vmem:[#allocation12_spill] sm:$0xff] %v8135_v6  ;;  %3000 = vmatmul.mubr.f32.gmra.mxu0 %v11349_v48  ;;  %3143 = vmatprep.subr.mxu1 %v7249_v45  ;;  %v8152_v7 = vsub.f32 %v8042_v61, %v11351_v17  ;;  %v8154_v6 = vand.u32 4294901760, %v177_v63  ;;  %v1710_v43 = vpop.f32.mrf.mxu1  ;;  %v174_v45 = vld [vmem:[%s9708_s1 + $0x438] sm:$0xff]  ;;  %v8169_v17 = vand.u32 4294901760, %v175_v60  ;;  %v11358_v61 = vld [vmem:[#allocation125_spill] sm:$0xff] }
 0x1d3   :  { %11350 = vst [vmem:[#allocation11_spill] sm:$0xff] %v8147_v18  ;;  %v8159_v53 = vsub.f32 %v8039_v31, %v11353_v38  ;;  %3192 = vmatprep.subr.mxu0 %v7825_v46  ;;  %3145 = vmatpush2.msra.mxu1 %v11142_v44  ;;  %v8167_v4 = vadd.f32 %v1710_v43, %v8009_v29  ;;  %v173_v38 = vld [vmem:[%s9708_s1 + $0x430] sm:$0xff]  ;;  %v8182_v29 = vand.u32 4294901760, %v176_v9  ;;  %v11359_v46 = vand.u32 4294901760, %v8087_v13  ;;  %v172_v43 = vld [vmem:[%s9708_s1 + $0x428] sm:$0xff] }
 0x1d4   :  { %11352 = vst [vmem:[#allocation81_spill] sm:$0xff] %v8154_v6  ;;  %11355 = vst [vmem:[#allocation87_spill] sm:$0xff] %v8169_v17  ;;  %v8176_v31 = vsub.f32 %v180_v25, %v8105_v16  ;;  %3194 = vmatpush1.msra.mxu0 %v7836_v26  ;;  %3147 = vmatprep.subr.mxu1 %v11144_v40  ;;  %v11360_v26 = vand.u32 4294901760, %v8084_v36  ;;  %v8197_v44 = vand.u32 4294901760, %v174_v45 }
 0x1d5   :  { %11354 = vst [vmem:[#allocation14_spill] sm:$0xff] %v8167_v4  ;;  %11357 = vst [vmem:[#allocation92_spill] sm:$0xff] %v8182_v29  ;;  %3196 = vmatprep.subr.mxu0 %v7858_v56  ;;  %3006 = vmatprep.mubr.f32.mxu0 %v11358_v61  ;;  %v8190_v25 = vsub.f32 %v8087_v13, %v11359_v46  ;;  %v171_v4 = vld [vmem:[%s9708_s1 + $0x420] sm:$0xff]  ;;  %v8206_v56 = vsub.f32 %v178_v58, %v8137_v39  ;;  %v8215_v13 = vand.u32 4294901760, %v173_v38  ;;  %v170_v46 = vld [vmem:[%s9708_s1 + $0x418] sm:$0xff] }
 0x1d6   :  { %11356 = vst [vmem:[#allocation15_spill] sm:$0xff] %v8176_v31  ;;  %v8195_v40 = vsub.f32 %v8084_v36, %v11360_v26  ;;  %11361 = vst [vmem:[#allocation46_spill] sm:$0xff] %v8197_v44  ;;  %3149 = vmatpush2.msra.mxu1 %v11146_v15  ;;  %3151 = vmatprep.mubr.f32.mxu1 %v11332_v22  ;;  %v8212_v26 = vsub.f32 %v177_v63, %v8154_v6  ;;  %v11365_v22 = vand.u32 4294901760, %v8111_v11 }
 0x1d7   :  { %11362 = vst [vmem:[#allocation22_spill] sm:$0xff] %v8206_v56  ;;  %3198 = vmatpush1.msra.mxu0 %v7876_v0  ;;  %3153 = vmatmul.mubr.f32.vlgmr.msra.gmra.mxu1 %v11336_v1  ;;  %v8223_v15 = vsub.f32 %v175_v60, %v8169_v17  ;;  %v11367_v60 = vand.u32 4294901760, %v8116_v12  ;;  %v8242_v0 = vand.u32 4294901760, %v172_v43  ;;  %v8247_v63 = vsub.f32 %v176_v9, %v8182_v29 }
 0x1d8   :  { %11363 = vst [vmem:[#allocation44_spill] sm:$0xff] %v8212_v26  ;;  %v8228_v58 = vsub.f32 %v8111_v11, %v11365_v22  ;;  %3008 = vmatmul.mubr.f32.gmra.mxu0 %v11366_v59  ;;  %3200 = vmatprep.subr.mxu0 %v7878_v24  ;;  %v8244_v22 = vand.u32 4294901760, %v171_v4  ;;  %v11371_v36 = vand.u32 4294901760, %v7888_v49  ;;  %v8264_v49 = vsub.f32 %v173_v38, %v8215_v13  ;;  %v167_v24 = vld [vmem:[%s9708_s1 + $0x400] sm:$0xff] }
 0x1d9   :  { %11364 = vst [vmem:[#allocation5_spill] sm:$0xff] %v8223_v15  ;;  %v8240_v1 = vsub.f32 %v8116_v12, %v11367_v60  ;;  %11368 = vst [vmem:[#allocation48_spill] sm:$0xff] %v8242_v0  ;;  %3202 = vmatpush1.msra.mxu0 %v7890_v28  ;;  %v8257_v60 = vsub.f32 %v174_v45, %v8197_v44  ;;  %v11374_v12 = vand.u32 4294901760, %v7895_v32  ;;  %v11377_v45 = vand.u32 4294901760, %v7909_v62  ;;  %v11378_v32 = vld [vmem:[#allocation128_spill] sm:$0xff]  ;;  %v168_v28 = vld [vmem:[%s9708_s1 + $0x408] sm:$0xff] }
 0x1da   :  { %11369 = vst [vmem:[#allocation26_spill] sm:$0xff] %v8244_v22  ;;  %11370 = vst [vmem:[#allocation18_spill] sm:$0xff] %v8247_v63  ;;  %3381 = vmatprep.subr.mxu1 %v11371_v36  ;;  %3204 = vmatprep.subr.mxu0 %v7933_v8  ;;  %v8266_v36 = vand.u32 4294901760, %v170_v46  ;;  %v11379_v9 = vand.u32 4294901760, %v8176_v31  ;;  %v11380_v8 = vand.u32 4294901760, %v8147_v18  ;;  %v11383_v62 = vand.u32 4294901760, %v7962_v51 }
 0x1db   :  { %11373 = vst [vmem:[#allocation52_spill] sm:$0xff] %v8257_v60  ;;  %3387 = vmatpush1.msra.mxu1 %v11374_v12  ;;  %11375 = vst [vmem:[#allocation30_spill] sm:$0xff] %v8264_v49  ;;  %3014 = vmatprep.mubr.f32.mxu0 %v11378_v32  ;;  %v8297_v12 = vsub.f32 %v171_v4, %v8244_v22  ;;  %v11385_v47 = vand.u32 4294901760, %v8206_v56  ;;  %v8314_v4 = vand.u32 4294901760, %v167_v24  ;;  %v11388_v51 = vand.u32 4294901760, %v8212_v26 }
 0x1dc   :  { %11376 = vst [vmem:[#allocation20_spill] sm:$0xff] %v8266_v36  ;;  %3393 = vmatprep.subr.mxu1 %v11377_v45  ;;  %v8279_v38 = vsub.f32 %v8176_v31, %v11379_v9  ;;  %v8284_v11 = vsub.f32 %v8147_v18, %v11380_v8  ;;  %v229_v45 = vld [vmem:[%s9708_s1 + $0x5f0] sm:$0xff]  ;;  %3159 = vmatprep.mubr.f32.mxu1 %v11343_v21  ;;  %v11384_v31 = vld [vmem:[#allocation129_spill] sm:$0xff] }
 0x1dd   :  { %3206 = vmatpush1.msra.mxu0 %v7951_v30  ;;  %11381 = vst [vmem:[#allocation9_spill] sm:$0xff] %v8297_v12  ;;  %v8301_v18 = vsub.f32 %v172_v43, %v8242_v0  ;;  %3399 = vmatpush1.msra.mxu1 %v11383_v62  ;;  %v8309_v21 = vsub.f32 %v8206_v56, %v11385_v47  ;;  %11387 = vst [vmem:[#allocation23_spill] sm:$0xff] %v8314_v4  ;;  %v230_v43 = vld [vmem:[%s9708_s1 + $0x5f8] sm:$0xff]  ;;  %v8327_v62 = vand.u32 4294901760, %v168_v28 }
 0x1de   :  { %3016 = vmatmul.mubr.f32.gmra.mxu0 %v11384_v31  ;;  %v8312_v9 = vsub.f32 %v169_v2, %v8254_v34  ;;  %3161 = vmatmul.mubr.f32.gmra.mxu1 %v11349_v48  ;;  %v8325_v47 = vsub.f32 %v8212_v26, %v11388_v51  ;;  %v8329_v2 = vand.u32 4294901760, %v229_v45  ;;  %v11391_v30 = vand.u32 4294901760, %v7976_v19 }
 0x1df   :  { %11382 = vst [vmem:[#allocation56_spill] sm:$0xff] %v8301_v18  ;;  %3208 = vmatprep.subr.mxu0 %v7971_v42  ;;  %11389 = vst [vmem:[#allocation36_spill] sm:$0xff] %v8327_v62  ;;  %v11392_v42 = vand.u32 4294901760, %v8223_v15  ;;  %v8343_v26 = vsub.f32 %v170_v46, %v8266_v36  ;;  %v8353_v48 = vand.u32 4294901760, %v230_v43  ;;  %v11397_v46 = vand.u32 4294901760, %v8026_v55  ;;  %3167 = vmatprep.mubr.f32.mxu1 %v11358_v61 }
 0x1e0   :  { %11386 = vst [vmem:[#allocation34_spill] sm:$0xff] %v8312_v9  ;;  %11390 = vst [vmem:[#allocation27_spill] sm:$0xff] %v8329_v2  ;;  %3405 = vmatprep.subr.mxu1 %v11391_v30  ;;  %3210 = vmatpush1.msra.mxu0 %v7978_v57  ;;  %v11395_v30 = vand.u32 4294901760, %v8247_v63  ;;  %v8368_v56 = vsub.f32 %v167_v24, %v8314_v4  ;;  %v11400_v55 = vand.u32 4294901760, %v8050_v41  ;;  %v8399_v61 = vand.u32 4294901760, %v227_v52 }
 0x1e1   :  { %v8340_v51 = vsub.f32 %v8223_v15, %v11392_v42  ;;  %11393 = vst [vmem:[#allocation38_spill] sm:$0xff] %v8343_v26  ;;  %3411 = vmatpush1.msra.mxu1 %v11394_v37  ;;  %3212 = vmatprep.subr.mxu0 %v8021_v27  ;;  %11396 = vst [vmem:[#allocation60_spill] sm:$0xff] %v8353_v48  ;;  %v228_v42 = vld [vmem:[%s9708_s1 + $0x5e8] sm:$0xff]  ;;  %v11399_v15 = vand.u32 4294901760, %v8257_v60  ;;  %v225_v27 = vld [vmem:[%s9708_s1 + $0x5d0] sm:$0xff]  ;;  %v8384_v24 = vsub.f32 %v229_v45, %v8329_v2 }
 0x1e2   :  { %v8351_v19 = vsub.f32 %v8247_v63, %v11395_v30  ;;  %3417 = vmatprep.subr.mxu1 %v11397_v46  ;;  %11398 = vst [vmem:[#allocation13_spill] sm:$0xff] %v8368_v56  ;;  %3214 = vmatpush1.msra.mxu0 %v8028_v23  ;;  %v11402_v46 = vand.u32 4294901760, %v8264_v49  ;;  %v8392_v30 = vsub.f32 %v168_v28, %v8327_v62  ;;  %11405 = vst [vmem:[#allocation42_spill] sm:$0xff] %v8399_v61  ;;  %v226_v45 = vld [vmem:[%s9708_s1 + $0x5d8] sm:$0xff] }
 0x1e3   :  { %v8373_v8 = vsub.f32 %v8257_v60, %v11399_v15  ;;  %3423 = vmatpush1.msra.mxu1 %v11400_v55  ;;  %11401 = vst [vmem:[#allocation64_spill] sm:$0xff] %v8384_v24  ;;  %3216 = vmatprep.subr.mxu0 %v8052_v10  ;;  %v8397_v55 = vand.u32 4294901760, %v228_v42  ;;  %v11406_v37 = vand.u32 4294901760, %v8057_v14  ;;  %v11407_v28 = vand.u32 4294901760, %v8301_v18  ;;  %v224_v14 = vld [vmem:[%s9708_s1 + $0x5c8] sm:$0xff] }
 0x1e4   :  { %v8389_v15 = vsub.f32 %v8264_v49, %v11402_v46  ;;  %11403 = vst [vmem:[#allocation40_spill] sm:$0xff] %v8392_v30  ;;  %3169 = vmatmul.mubr.f32.gmra.mxu1 %v11366_v59  ;;  %3218 = vmatpush1.msra.mxu0 %v8068_v35  ;;  %v11408_v49 = vand.u32 4294901760, %v8297_v12  ;;  %v8419_v60 = vand.u32 4294901760, %v225_v27  ;;  %v8444_v59 = vand.u32 4294901760, %v226_v45 }
 0x1e5   :  { %11404 = vst [vmem:[#allocation31_spill] sm:$0xff] %v8397_v55  ;;  %3429 = vmatprep.subr.mxu1 %v11406_v37  ;;  %v8412_v41 = vsub.f32 %v8301_v18, %v11407_v28  ;;  %v11410_v37 = vand.u32 4294901760, %v8073_v20  ;;  %3220 = vmatprep.subr.mxu0 %v8105_v16  ;;  %v11411_v28 = vand.u32 4294901760, %v8312_v9  ;;  %v8438_v18 = vsub.f32 %v230_v43, %v8353_v48 }
 0x1e6   :  { %v8417_v10 = vsub.f32 %v8297_v12, %v11408_v49  ;;  %11409 = vst [vmem:[#allocation35_spill] sm:$0xff] %v8419_v60  ;;  %v223_v49 = vld [vmem:[%s9708_s1 + $0x5c0] sm:$0xff]  ;;  %v11413_v20 = vand.u32 4294901760, %v8122_v50  ;;  %3175 = vmatprep.mubr.f32.mxu1 %v11378_v32  ;;  %11414 = vst [vmem:[#allocation33_spill] sm:$0xff] %v8444_v59  ;;  %3222 = vmatpush1.msra.mxu0 %v8094_v3  ;;  %v11415_v43 = vand.u32 4294901760, %v8127_v54  ;;  %v11417_v32 = vand.u32 4294901760, %v8343_v26 }
 0x1e7   :  { %3435 = vmatpush1.msra.mxu1 %v11410_v37  ;;  %v8431_v46 = vsub.f32 %v8312_v9, %v11411_v28  ;;  %11412 = vst [vmem:[#allocation16_spill] sm:$0xff] %v8438_v18  ;;  %v221_v9 = vld [vmem:[%s9708_s1 + $0x5b0] sm:$0xff]  ;;  %v8455_v50 = vsub.f32 %v227_v52, %v8399_v61  ;;  %v8462_v37 = vand.u32 4294901760, %v224_v14  ;;  %v222_v28 = vld [vmem:[%s9708_s1 + $0x5b8] sm:$0xff]  ;;  %v8468_v12 = vsub.f32 %v228_v42, %v8397_v55 }
 0x1e8   :  { %3441 = vmatprep.subr.mxu1 %v11413_v20  ;;  %v8460_v20 = vsub.f32 %v8343_v26, %v11417_v32  ;;  %3177 = vmatmul.mubr.f32.gmra.mxu1 %v11384_v31  ;;  %v8477_v32 = vand.u32 4294901760, %v223_v49  ;;  %v11422_v26 = vand.u32 4294901760, %v8152_v7  ;;  %v11423_v31 = vand.u32 4294901760, %v8368_v56  ;;  %v219_v7 = vld [vmem:[%s9708_s1 + $0x5a0] sm:$0xff] }
 0x1e9   :  { %3447 = vmatpush1.msra.mxu1 %v11415_v43  ;;  %11416 = vst [vmem:[#allocation17_spill] sm:$0xff] %v8455_v50  ;;  %11418 = vst [vmem:[#allocation76_spill] sm:$0xff] %v8462_v37  ;;  %3224 = vmatprep.subr.mxu0 %v8137_v39  ;;  %v8475_v43 = vsub.f32 %v225_v27, %v8419_v60  ;;  %v8489_v52 = vand.u32 4294901760, %v221_v9  ;;  %v220_v27 = vld [vmem:[%s9708_s1 + $0x5a8] sm:$0xff]  ;;  %v8505_v54 = vand.u32 4294901760, %v222_v28 }
 0x1ea   :  { %11419 = vst [vmem:[#allocation50_spill] sm:$0xff] %v8468_v12  ;;  %11421 = vst [vmem:[#allocation80_spill] sm:$0xff] %v8477_v32  ;;  %3453 = vmatprep.subr.mxu1 %v11422_v26  ;;  %3226 = vmatpush1.msra.mxu0 %v8154_v6  ;;  %v8486_v39 = vsub.f32 %v8368_v56, %v11423_v31  ;;  %v11425_v26 = vand.u32 4294901760, %v8159_v53  ;;  %v11426_v31 = vand.u32 4294901760, %v8392_v30  ;;  %v11428_v56 = vand.u32 4294901760, %v8384_v24  ;;  %v217_v53 = vld [vmem:[%s9708_s1 + $0x590] sm:$0xff] }
 0x1eb   :  { %11420 = vst [vmem:[#allocation19_spill] sm:$0xff] %v8475_v43  ;;  %11424 = vst [vmem:[#allocation54_spill] sm:$0xff] %v8489_v52  ;;  %3228 = vmatprep.subr.mxu0 %v8182_v29  ;;  %v8513_v3 = vsub.f32 %v226_v45, %v8444_v59  ;;  %v8528_v45 = vsub.f32 %v224_v14, %v8462_v37  ;;  %v11436_v29 = vand.u32 4294901760, %v8228_v58  ;;  %v11444_v58 = vand.u32 4294901760, %v8455_v50 }
 0x1ec   :  { %3459 = vmatpush1.msra.mxu1 %v11425_v26  ;;  %v8503_v42 = vsub.f32 %v8392_v30, %v11426_v31  ;;  %11427 = vst [vmem:[#allocation43_spill] sm:$0xff] %v8505_v54  ;;  %v8510_v6 = vsub.f32 %v8384_v24, %v11428_v56  ;;  %v11430_v26 = vand.u32 4294901760, %v8190_v25  ;;  %3230 = vmatpush1.msra.mxu0 %v8169_v17  ;;  %v218_v56 = vld [vmem:[%s9708_s1 + $0x598] sm:$0xff]  ;;  %v11432_v24 = vand.u32 4294901760, %v8195_v40  ;;  %v216_v30 = vld [vmem:[%s9708_s1 + $0x588] sm:$0xff] }
 0x1ed   :  { %11429 = vst [vmem:[#allocation21_spill] sm:$0xff] %v8513_v3  ;;  %11431 = vst [vmem:[#allocation82_spill] sm:$0xff] %v8528_v45  ;;  %3232 = vmatprep.subr.mxu0 %v8197_v44  ;;  %v8534_v25 = vsub.f32 %v223_v49, %v8477_v32  ;;  %v8538_v31 = vand.u32 4294901760, %v219_v7  ;;  %v11437_v40 = vand.u32 4294901760, %v8438_v18  ;;  %v8551_v49 = vsub.f32 %v221_v9, %v8489_v52  ;;  %v215_v9 = vld [vmem:[%s9708_s1 + $0x580] sm:$0xff] }
 0x1ee   :  { %3465 = vmatprep.subr.mxu1 %v11430_v26  ;;  %v8536_v26 = vand.u32 4294901760, %v220_v27  ;;  %3234 = vmatpush1.msra.mxu0 %v8215_v13  ;;  %v8553_v44 = vand.u32 4294901760, %v217_v53  ;;  %v11440_v17 = vand.u32 4294901760, %v8240_v1  ;;  %v8560_v14 = vand.u32 4294901760, %v218_v56 }
 0x1ef   :  { %3471 = vmatpush1.msra.mxu1 %v11432_v24  ;;  %11433 = vst [vmem:[#allocation58_spill] sm:$0xff] %v8534_v25  ;;  %11435 = vst [vmem:[#allocation25_spill] sm:$0xff] %v8538_v31  ;;  %v8548_v24 = vsub.f32 %v8438_v18, %v11437_v40  ;;  %3236 = vmatprep.subr.mxu0 %v8242_v0  ;;  %v11442_v40 = vand.u32 4294901760, %v8279_v38  ;;  %v8584_v38 = vsub.f32 %v222_v28, %v8505_v54 }
 0x1f0   :  { %11434 = vst [vmem:[#allocation78_spill] sm:$0xff] %v8536_v26  ;;  %3477 = vmatprep.subr.mxu1 %v11436_v29  ;;  %11438 = vst [vmem:[#allocation88_spill] sm:$0xff] %v8551_v49  ;;  %3238 = vmatpush1.msra.mxu0 %v8244_v22  ;;  %v8577_v29 = vsub.f32 %v8455_v50, %v11444_v58  ;;  %v8593_v58 = vsub.f32 %v219_v7, %v8538_v31  ;;  %v11448_v22 = vand.u32 4294901760, %v8475_v43 }
 0x1f1   :  { %11439 = vst [vmem:[#allocation62_spill] sm:$0xff] %v8553_v44  ;;  %3483 = vmatpush1.msra.mxu1 %v11440_v17  ;;  %11441 = vst [vmem:[#allocation49_spill] sm:$0xff] %v8560_v14  ;;  %v11443_v17 = vand.u32 4294901760, %v8468_v12  ;;  %3240 = vmatprep.subr.mxu0 %v8266_v36  ;;  %v8602_v0 = vsub.f32 %v220_v27, %v8536_v26  ;;  %v8609_v7 = vsub.f32 %v217_v53, %v8553_v44 }
 0x1f2   :  { %3489 = vmatprep.subr.mxu1 %v11442_v40  ;;  %11445 = vst [vmem:[#allocation29_spill] sm:$0xff] %v8584_v38  ;;  %v213_v40 = vld [vmem:[%s9708_s1 + $0x570] sm:$0xff]  ;;  %11447 = vst [vmem:[#allocation55_spill] sm:$0xff] %v8593_v58  ;;  %v8598_v50 = vsub.f32 %v8475_v43, %v11448_v22  ;;  %3242 = vmatpush1.msra.mxu0 %v8254_v34  ;;  %v214_v22 = vld [vmem:[%s9708_s1 + $0x578] sm:$0xff]  ;;  %v11453_v27 = vand.u32 4294901760, %v8325_v47  ;;  %v8625_v53 = vand.u32 4294901760, %v216_v30 }
 0x1f3   :  { %v8572_v1 = vsub.f32 %v8468_v12, %v11443_v17  ;;  %v11446_v17 = vand.u32 4294901760, %v8284_v11  ;;  %11449 = vst [vmem:[#allocation68_spill] sm:$0xff] %v8602_v0  ;;  %v11450_v12 = vand.u32 4294901760, %v8309_v21  ;;  %11451 = vst [vmem:[#allocation86_spill] sm:$0xff] %v8609_v7  ;;  %3244 = vmatprep.subr.mxu0 %v8327_v62  ;;  %v8627_v11 = vand.u32 4294901760, %v213_v40  ;;  %v8676_v47 = vld [vmem:[%s9708_s1 + $0x558] sm:$0xff] }
 0x1f4   :  { %11455 = vst [vmem:[#allocation39_spill] sm:$0xff] %v8625_v53  ;;  %v8630_v34 = vsub.f32 %v218_v56, %v8560_v14  ;;  %v11458_v43 = vand.u32 4294901760, %v8351_v19  ;;  %3246 = vmatpush1.msra.mxu0 %v8314_v4  ;;  %v11459_v28 = vand.u32 4294901760, %v8528_v45  ;;  %v11460_v36 = vand.u32 4294901760, %v8340_v51 }
 0x1f5   :  { %3495 = vmatpush1.msra.mxu1 %v11446_v17  ;;  %v8611_v17 = vand.u32 4294901760, %v215_v9  ;;  %11456 = vst [vmem:[#allocation90_spill] sm:$0xff] %v8627_v11  ;;  %3248 = vmatprep.subr.mxu0 %v8353_v48  ;;  %v11463_v51 = vand.u32 4294901760, %v8373_v8  ;;  %v11465_v19 = vand.u32 4294901760, %v8551_v49  ;;  %v209_v8 = vld [vmem:[%s9708_s1 + $0x550] sm:$0xff]  ;;  %v8687_v48 = vsub.f32 %v213_v40, %v8627_v11 }
 0x1f6   :  { %3501 = vmatprep.subr.mxu1 %v11450_v12  ;;  %v11454_v12 = vand.u32 4294901760, %v8513_v3  ;;  %11457 = vst [vmem:[#allocation70_spill] sm:$0xff] %v8630_v34  ;;  %3250 = vmatpush2.msra.mxu0 %v8329_v2  ;;  %v11469_v4 = vand.u32 4294901760, %v8412_v41  ;;  %v11473_v41 = vand.u32 4294901760, %v8417_v10  ;;  %v8719_v2 = vand.u32 4294901760, %v8676_v47 }
 0x1f7   :  { %11452 = vst [vmem:[#allocation61_spill] sm:$0xff] %v8611_v17  ;;  %3507 = vmatpush1.msra.mxu1 %v11453_v27  ;;  %v8652_v27 = vand.u32 4294901760, %v214_v22  ;;  %v8670_v62 = vsub.f32 %v8551_v49, %v11465_v19  ;;  %3252 = vmatprep.subr.mxu0 %v8397_v55  ;;  %11467 = vst [vmem:[#allocation37_spill] sm:$0xff] %v8687_v48  ;;  %v8691_v49 = vsub.f32 %v216_v30, %v8625_v53  ;;  %v207_v30 = vld [vmem:[%s9708_s1 + $0x540] sm:$0xff]  ;;  %v205_v55 = vld [vmem:[%s9708_s1 + $0x530] sm:$0xff] }
 0x1f8   :  { %v8623_v21 = vsub.f32 %v8513_v3, %v11454_v12  ;;  %3513 = vmatprep.subr.mxu1 %v11458_v43  ;;  %v8640_v12 = vsub.f32 %v8528_v45, %v11459_v28  ;;  %v11461_v43 = vand.u32 4294901760, %v8534_v25  ;;  %v212_v28 = vld [vmem:[%s9708_s1 + $0x568] sm:$0xff]  ;;  %3254 = vmatpush2.msra.mxu0 %v8399_v61  ;;  %11475 = vst [vmem:[#allocation102_spill] sm:$0xff] %v8719_v2  ;;  %v8721_v61 = vand.u32 4294901760, %v209_v8 }
 0x1f9   :  { %3519 = vmatpush1.msra.mxu1 %v11460_v36  ;;  %11462 = vst [vmem:[#allocation89_spill] sm:$0xff] %v8652_v27  ;;  %v211_v36 = vld [vmem:[%s9708_s1 + $0x560] sm:$0xff]  ;;  %11468 = vst [vmem:[#allocation104_spill] sm:$0xff] %v8691_v49  ;;  %v8702_v19 = vand.u32 4294901760, %v212_v28  ;;  %3256 = vmatprep.subr.mxu0 %v8444_v59  ;;  %v11477_v10 = vand.u32 4294901760, %v8460_v20  ;;  %v11479_v59 = vand.u32 4294901760, %v8609_v7  ;;  %v8744_v20 = vsub.f32 %v214_v22, %v8652_v27 }
 0x1fa   :  { %v8650_v56 = vsub.f32 %v8534_v25, %v11461_v43  ;;  %3525 = vmatprep.subr.mxu1 %v11463_v51  ;;  %v8665_v43 = vsub.f32 %v215_v9, %v8611_v17  ;;  %v11466_v9 = vand.u32 4294901760, %v8389_v15  ;;  %v8704_v40 = vand.u32 4294901760, %v211_v36  ;;  %11476 = vst [vmem:[#allocation47_spill] sm:$0xff] %v8721_v61  ;;  %3258 = vmatpush2.msra.mxu0 %v8419_v60  ;;  %v206_v22 = vld [vmem:[%s9708_s1 + $0x538] sm:$0xff] }
 0x1fb   :  { %11471 = vst [vmem:[#allocation45_spill] sm:$0xff] %v8702_v19  ;;  %v11474_v15 = vand.u32 4294901760, %v8602_v0  ;;  %11480 = vst [vmem:[#allocation111_spill] sm:$0xff] %v8744_v20  ;;  %3260 = vmatprep.subr.mxu0 %v8462_v37  ;;  %v8755_v60 = vand.u32 4294901760, %v207_v30  ;;  %v8768_v37 = vand.u32 4294901760, %v205_v55 }
 0x1fc   :  { %11464 = vst [vmem:[#allocation74_spill] sm:$0xff] %v8665_v43  ;;  %3531 = vmatpush1.msra.mxu1 %v11466_v9  ;;  %v11470_v9 = vand.u32 4294901760, %v8584_v38  ;;  %11472 = vst [vmem:[#allocation84_spill] sm:$0xff] %v8704_v40  ;;  %3262 = vmatpush2.msra.mxu0 %v8477_v32 }
 0x1fd   :  { %3537 = vmatprep.subr.mxu1 %v11469_v4  ;;  %v11478_v4 = vand.u32 4294901760, %v8593_v58  ;;  %11483 = vst [vmem:[#allocation53_spill] sm:$0xff] %v8755_v60  ;;  %11486 = vst [vmem:[#allocation115_spill] sm:$0xff] %v8768_v37  ;;  %3264 = vmatprep.subr.mxu0 %v8505_v54  ;;  %v11495_v54 = vand.u32 4294901760, %v8665_v43 }
 0x1fe   :  { %v8700_v51 = vsub.f32 %v8584_v38, %v11470_v9  ;;  %3543 = vmatpush1.msra.mxu1 %v11473_v41  ;;  %v8716_v9 = vsub.f32 %v8602_v0, %v11474_v15  ;;  %v8738_v0 = vsub.f32 %v8609_v7, %v11479_v59  ;;  %v208_v38 = vld [vmem:[%s9708_s1 + $0x548] sm:$0xff]  ;;  %v11487_v7 = vand.u32 4294901760, %v8486_v39  ;;  %3266 = vmatpush2.msra.mxu0 %v8489_v52 }
 0x1ff   :  { %3549 = vmatprep.subr.mxu1 %v11477_v10  ;;  %v8733_v15 = vsub.f32 %v8593_v58, %v11478_v4  ;;  %v11481_v10 = vand.u32 4294901760, %v8431_v46  ;;  %v11482_v4 = vand.u32 4294901760, %v8630_v34  ;;  %v11484_v46 = vand.u32 4294901760, %v8503_v42  ;;  %3268 = vmatprep.subr.mxu0 %v8536_v26 }
 0x200   :  { %v8776_v42 = vsub.f32 %v209_v8, %v8721_v61  ;;  %v11490_v59 = vand.u32 4294901760, %v8548_v24  ;;  %v8791_v8 = vand.u32 4294901760, %v206_v22  ;;  %v20_v24 = vld [vmem:[%s9707_s0 + $0x28] sm:$0xff]  ;;  %v11493_v39 = vand.u32 4294901760, %v8691_v49  ;;  %3270 = vmatpush2.msra.mxu0 %v8538_v31 }
 0x201   :  { %3555 = vmatpush1.msra.mxu1 %v11481_v10  ;;  %v8752_v41 = vsub.f32 %v8630_v34, %v11482_v4  ;;  %v8766_v4 = vsub.f32 %v211_v36, %v8704_v40  ;;  %v8781_v10 = vsub.f32 %v212_v28, %v8702_v19  ;;  %v203_v36 = vld [vmem:[%s9708_s1 + $0x520] sm:$0xff]  ;;  %v8797_v28 = vld [vmem:[%s9708_s1 + $0x528] sm:$0xff]  ;;  %v8812_v52 = vsub.f32 %v207_v30, %v8755_v60 }
 0x202   :  { %3561 = vmatprep.subr.mxu1 %v11484_v46  ;;  %11488 = vst [vmem:[#allocation117_spill] sm:$0xff] %v8776_v42  ;;  %v8778_v46 = vand.u32 4294901760, %v208_v38  ;;  %11491 = vst [vmem:[#allocation100_spill] sm:$0xff] %v8791_v8  ;;  %v8809_v34 = vsub.f32 %v8691_v49, %v11493_v39  ;;  %v8817_v32 = vsub.f32 %v8665_v43, %v11495_v54  ;;  %v11497_v30 = vand.u32 4294901760, %v8687_v48  ;;  %v8838_v54 = vld [vmem:[%s9708_s1 + $0x518] sm:$0xff] }
 0x203   :  { %11485 = vst [vmem:[#allocation108_spill] sm:$0xff] %v8766_v4  ;;  %3567 = vmatpush1.msra.mxu1 %v11487_v7  ;;  %11489 = vst [vmem:[#allocation93_spill] sm:$0xff] %v8781_v10  ;;  %v8826_v39 = vsub.f32 %v205_v55, %v8768_v37  ;;  %v8833_v26 = vand.u32 4294901760, %v203_v36  ;;  %v201_v55 = vld [vmem:[%s9708_s1 + $0x510] sm:$0xff]  ;;  %3272 = vmatprep.subr.mxu0 %v8560_v14  ;;  %v8855_v43 = vand.u32 4294901760, %v20_v24  ;;  %v11502_v49 = vand.u32 4294901760, %v8744_v20 }
 0x204   :  { %3573 = vmatprep.subr.mxu1 %v11490_v59  ;;  %v11492_v59 = vand.u32 4294901760, %v8510_v6  ;;  %11494 = vst [vmem:[#allocation114_spill] sm:$0xff] %v8812_v52  ;;  %v19_v6 = vld [vmem:[%s9707_s0 + $0x20] sm:$0xff]  ;;  %v8831_v7 = vsub.f32 %v8687_v48, %v11497_v30  ;;  %v8851_v30 = vand.u32 4294901760, %v8797_v28  ;;  %3274 = vmatpush2.msra.mxu0 %v8553_v44  ;;  %v8867_v14 = vsub.f32 %v208_v38, %v8778_v46  ;;  %v26_v48 = vld [vmem:[%s9707_s0 + $0x58] sm:$0xff] }
 0x205   :  { %11500 = vst [vmem:[#allocation126_spill] sm:$0xff] %v8855_v43  ;;  %v8869_v31 = vand.u32 4294901760, %v19_v6  ;;  %3276 = vmatprep.subr.mxu0 %v8625_v53  ;;  %v8882_v38 = vand.u32 4294901760, %v201_v55  ;;  %v11508_v44 = vand.u32 4294901760, %v8640_v12  ;;  %v11509_v12 = vand.u32 4294901760, %v8650_v56  ;;  %3761 = vmatprep.mubr.f32.mxu1 %v8855_v43 }
 0x206   :  { %3579 = vmatpush2.msra.mxu1 %v11492_v59  ;;  %v11496_v59 = vand.u32 4294901760, %v8572_v1  ;;  %v8842_v1 = vsub.f32 %v8676_v47, %v8719_v2  ;;  %v11501_v47 = vand.u32 4294901760, %v8623_v21  ;;  %11503 = vst [vmem:[#allocation116_spill] sm:$0xff] %v8867_v14  ;;  %v11505_v21 = vand.u32 4294901760, %v8598_v50  ;;  %3278 = vmatpush2.msra.mxu0 %v8611_v17 }
 0x207   :  { %11504 = vst [vmem:[#allocation118_spill] sm:$0xff] %v8869_v31  ;;  %11507 = vst [vmem:[#allocation121_spill] sm:$0xff] %v8882_v38  ;;  %v8889_v50 = vsub.f32 %v203_v36, %v8833_v26  ;;  %3280 = vmatprep.subr.mxu0 %v8652_v27  ;;  %v11510_v36 = vand.u32 4294901760, %v8781_v10  ;;  %v8918_v53 = vsub.f32 %v20_v24, %v8855_v43  ;;  %v8920_v56 = vand.u32 4294901760, %v26_v48  ;;  %v11569_v43 = vld [vmem:[#allocation95_spill] sm:$0xff] }
 0x208   :  { %3585 = vmatprep.subr.mxu1 %v11496_v59  ;;  %11498 = vst [vmem:[#allocation124_spill] sm:$0xff] %v8842_v1  ;;  %v11499_v59 = vand.u32 4294901760, %v8577_v29  ;;  %v8863_v29 = vsub.f32 %v8744_v20, %v11502_v49  ;;  %v3662_v49 = vand.u32 4294901760, %v8817_v32  ;;  %v8896_v32 = vsub.f32 %v206_v22, %v8791_v8  ;;  %v199_v22 = vld [vmem:[%s9708_s1 + $0x500] sm:$0xff]  ;;  %3282 = vmatpush2.msra.mxu0 %v8627_v11 }
 0x209   :  { %v8907_v20 = vsub.f32 %v8781_v10, %v11510_v36  ;;  %11512 = vst [vmem:[#allocation123_spill] sm:$0xff] %v8918_v53  ;;  %11513 = vst [vmem:[#allocation125_spill] sm:$0xff] %v8920_v56  ;;  %v11515_v27 = vand.u32 4294901760, %v8776_v42  ;;  %v8933_v10 = vsub.f32 %v19_v6, %v8869_v31  ;;  %v11516_v24 = vand.u32 4294901760, %v8670_v62  ;;  %3284 = vmatprep.subr.mxu0 %v8702_v19 }
 0x20a   :  { %3591 = vmatpush2.msra.mxu1 %v11499_v59  ;;  %v8880_v59 = vand.u32 4294901760, %v8838_v54  ;;  %v3668_v36 = vand.u32 4294901760, %v8863_v29  ;;  %v11520_v6 = vand.u32 4294901760, %v8716_v9  ;;  %3286 = vmatpush2.msra.mxu0 %v8704_v40  ;;  %v11521_v62 = vand.u32 4294901760, %v8842_v1 }
 0x20b   :  { %3597 = vmatprep.subr.mxu1 %v11501_v47  ;;  %v3656_v47 = vand.u32 4294901760, %v8809_v34  ;;  %v200_v34 = vld [vmem:[%s9708_s1 + $0x508] sm:$0xff]  ;;  %v8960_v29 = vsub.f32 %v8797_v28, %v8851_v30  ;;  %v11524_v19 = vand.u32 4294901760, %v8733_v15  ;;  %3288 = vmatprep.subr.mxu0 %v8719_v2  ;;  %v3680_v9 = vand.u32 4294901760, %v8907_v20 }
 0x20c   :  { %3603 = vmatpush2.msra.mxu1 %v11505_v21  ;;  %11506 = vst [vmem:[#allocation112_spill] sm:$0xff] %v8880_v59  ;;  %v11511_v21 = vand.u32 4294901760, %v8766_v4  ;;  %3290 = vmatpush2.msra.mxu0 %v8721_v61  ;;  %v8996_v20 = vsub.f32 %v8838_v54, %v8880_v59  ;;  %v11531_v40 = vand.u32 4294901760, %v8896_v32 }
 0x20d   :  { %3609 = vmatprep.subr.mxu1 %v11508_v44  ;;  %v25_v44 = vld [vmem:[%s9707_s0 + $0x50] sm:$0xff]  ;;  %11523 = vst [vmem:[#allocation132_spill] sm:$0xff] %v8960_v29  ;;  %3292 = vmatprep.subr.mxu0 %v8778_v46 }
 0x20e   :  { %3615 = vmatpush2.msra.mxu1 %v11509_v12  ;;  %v8912_v17 = vsub.f32 %v8766_v4, %v11511_v21  ;;  %v11514_v12 = vand.u32 4294901760, %v8700_v51  ;;  %v8929_v21 = vsub.f32 %v8776_v42, %v11515_v27  ;;  %v8939_v51 = vsub.f32 %v201_v55, %v8882_v38  ;;  %v32_v27 = vld [vmem:[%s9707_s0 + $0x88] sm:$0xff]  ;;  %3294 = vmatpush2.msra.mxu0 %v8755_v60 }
 0x20f   :  { %v8944_v11 = vand.u32 4294901760, %v25_v44  ;;  %v3691_v55 = vsub.f32 %v8842_v1, %v11521_v62  ;;  %v8969_v62 = vsub.f32 %v26_v48, %v8920_v56  ;;  %v11525_v4 = vand.u32 4294901760, %v8752_v41  ;;  %v31_v48 = vld [vmem:[%s9707_s0 + $0x80] sm:$0xff]  ;;  %3296 = vmatprep.subr.mxu0 %v8791_v8 }
 0x210   :  { %3621 = vmatprep.subr.mxu1 %v11514_v12  ;;  %11517 = vst [vmem:[#allocation127_spill] sm:$0xff] %v8939_v51  ;;  %v8941_v12 = vand.u32 4294901760, %v200_v34  ;;  %v3698_v28 = vand.u32 4294901760, %v8929_v21  ;;  %v8979_v2 = vand.u32 4294901760, %v32_v27  ;;  %v11529_v41 = vand.u32 4294901760, %v8812_v52  ;;  %3298 = vmatpush2.msra.mxu0 %v8768_v37 }
 0x211   :  { %3627 = vmatpush2.msra.mxu1 %v11516_v24  ;;  %11519 = vst [vmem:[#allocation129_spill] sm:$0xff] %v8944_v11  ;;  %v8955_v24 = vand.u32 4294901760, %v199_v22  ;;  %v11534_v21 = vand.u32 4294901760, %v8933_v10  ;;  %3300 = vmatprep.subr.mxu0 %v8851_v30 }
 0x212   :  { %11518 = vst [vmem:[#allocation128_spill] sm:$0xff] %v8941_v12  ;;  %3633 = vmatprep.subr.mxu1 %v11520_v6  ;;  %v3686_v6 = vand.u32 4294901760, %v8912_v17  ;;  %11527 = vst [vmem:[#allocation133_spill] sm:$0xff] %v8979_v2  ;;  %v11528_v17 = vand.u32 4294901760, %v8738_v0  ;;  %v3692_v0 = vand.u32 4294901760, %v3691_v55  ;;  %v9012_v55 = vsub.f32 %v200_v34, %v8941_v12  ;;  %3302 = vmatpush2.msra.mxu0 %v8833_v26 }
 0x213   :  { %11522 = vst [vmem:[#allocation131_spill] sm:$0xff] %v8955_v24  ;;  %3639 = vmatpush2.msra.mxu1 %v11524_v19  ;;  %v11526_v19 = vand.u32 4294901760, %v8867_v14  ;;  %v3320_v8 = vsub.f32 %v8933_v10, %v11534_v21  ;;  %v11535_v34 = vand.u32 4294901760, %v8831_v7  ;;  %v37_v21 = vld [vmem:[%s9707_s0 + $0xb0] sm:$0xff]  ;;  %3304 = vmatprep.subr.mxu0 %v8880_v59  ;;  %v11544_v59 = vand.u32 4294901760, %v8939_v51 }
 0x214   :  { %3645 = vmatprep.subr.mxu1 %v11525_v4  ;;  %v3709_v4 = vsub.f32 %v8812_v52, %v11529_v41  ;;  %v3715_v41 = vsub.f32 %v8896_v32, %v11531_v40  ;;  %v38_v40 = vld [vmem:[%s9707_s0 + $0xb8] sm:$0xff]  ;;  %3306 = vmatpush2.msra.mxu0 %v8882_v38  ;;  %s4703_s0 = smov [#allocation2]  }
 0x215   :  { %v3703_v15 = vsub.f32 %v8867_v14, %v11526_v19  ;;  %3651 = vmatpush2.msra.mxu1 %v11528_v17  ;;  %v8992_v19 = vsub.f32 %v25_v44, %v8944_v11  ;;  %v9000_v17 = vsub.f32 %v199_v22, %v8955_v24  ;;  %v11532_v44 = vand.u32 4294901760, %v8918_v53  ;;  %3308 = vmatprep.subr.mxu0 %v8941_v12  ;;  %s4667_s7 = sshll.u32 %s4703_s0, 4  ;;  %s4668_s7 = int_to_ptr.vmem [resolvable:$true] %s4667_s7 }
 0x216   :  { %3657 = vmatprep.subr.mxu1 %v3656_v47  ;;  %v9014_v22 = vand.u32 4294901760, %v31_v48  ;;  %v9025_v47 = vsub.f32 %v32_v27, %v8979_v2  ;;  %v3710_v60 = vand.u32 4294901760, %v3709_v4  ;;  %v3716_v7 = vand.u32 4294901760, %v3715_v41  ;;  %3310 = vmatpush2.msra.mxu0 %v8955_v24  ;;  %s4681_s8 = scalar_lea.vmem %s4668_s7, 1024  ;;  %p4686_p1 = scmp.lt.s32.totalorder %s4668_s7, %s4668_s7 }
 0x217   :  { %11530 = vst [vmem:[#allocation134_spill] sm:$0xff] %v9000_v17  ;;  %3663 = vmatpush2.msra.mxu1 %v3662_v49  ;;  %v3314_v54 = vsub.f32 %v8918_v53, %v11532_v44  ;;  %v3704_v49 = vand.u32 4294901760, %v3703_v15  ;;  %v11537_v27 = vand.u32 4294901760, %v8960_v29  ;;  %v9043_v44 = vand.u32 4294901760, %v38_v40  ;;  %3795 = vmatprep.subr.mxu0 %v7812_v33  ;;  %p4682_p0 = scmp.ne.s32.totalorder %s4668_s7, %s4681_s8  ;;  %p4687_p2 = scmp.lt.s32.totalorder %s4681_s8, %s4681_s8 }
 0x218   :  { %11533 = vst [vmem:[#allocation135_spill] sm:$0xff] %v9014_v22  ;;  %3669 = vmatprep.subr.mxu1 %v3668_v36  ;;  %v11536_v36 = vand.u32 4294901760, %v8826_v39  ;;  %v11539_v53 = vand.u32 4294901760, %v8969_v62  ;;  %v9051_v41 = vsub.f32 %v31_v48, %v9014_v22  ;;  %v11545_v12 = vand.u32 4294901760, %v9012_v55 }
 0x219   :  { %3675 = vmatpush2.msra.mxu1 %v11535_v34  ;;  %v3727_v4 = vsub.f32 %v8960_v29, %v11537_v27  ;;  %11538 = vst [vmem:[#allocation136_spill] sm:$0xff] %v9043_v44  ;;  %v3321_v27 = vand.u32 4294901760, %v3320_v8  ;;  %v11540_v34 = vand.u32 4294901760, %v8889_v50  ;;  %p4688_p3 = por %p4687_p2, %p4686_p1 }
 0x21a   :  { %v3721_v37 = vsub.f32 %v8826_v39, %v11536_v36  ;;  %3681 = vmatprep.subr.mxu1 %v3680_v9  ;;  %v3315_v36 = vand.u32 4294901760, %v3314_v54  ;;  %v3330_v15 = vsub.f32 %v8969_v62, %v11539_v53  ;;  %v9058_v54 = vand.u32 4294901760, %v37_v21 }
 0x21b   :  { %3687 = vmatpush2.msra.mxu1 %v3686_v6  ;;  %v3733_v6 = vsub.f32 %v8889_v50, %v11540_v34  ;;  %v11542_v9 = vand.u32 4294901760, %v8992_v19  ;;  %v3728_v34 = vand.u32 4294901760, %v3727_v4  ;;  %v10385_v38 = vand.u32 4294901760, %v9051_v41  ;;  %p4689_p4 = pnand %p4688_p3, %p4682_p0 }
 0x21c   :  { %3693 = vmatprep.subr.mxu1 %v3692_v0  ;;  %11541 = vst [vmem:[#allocation137_spill] sm:$0xff] %v9058_v54  ;;  %v3722_v53 = vand.u32 4294901760, %v3721_v37  ;;  %v11543_v0 = vand.u32 4294901760, %v8996_v20  ;;  %v9073_v37 = vsub.f32 %v38_v40, %v9043_v44  ;;  %3316 = vmatprep.mubr.f32.mxu0 %v3315_v36  ;;  %v11546_v4 = vand.u32 4294901760, %v9025_v47 }
 0x21d   :  { %3699 = vmatpush2.msra.mxu1 %v3698_v28  ;;  %v3336_v48 = vsub.f32 %v8992_v19, %v11542_v9  ;;  %v3745_v28 = vsub.f32 %v8939_v51, %v11544_v59  ;;  %v3331_v9 = vand.u32 4294901760, %v3330_v15  ;;  %3322 = vmatmul.mubr.f32.vlgmr.msra.gmra.mxu0 %v3321_v27  ;;  %v9083_v59 = vsub.f32 %v37_v21, %v9058_v54  ;;  %v11548_v27 = vld [vmem:[#allocation83_spill] sm:$0xff] }
 0x21e   :  { %v3739_v8 = vsub.f32 %v8996_v20, %v11543_v0  ;;  %3705 = vmatprep.subr.mxu1 %v3704_v49  ;;  %v3751_v0 = vsub.f32 %v9012_v55, %v11545_v12  ;;  %v3734_v49 = vand.u32 4294901760, %v3733_v6  ;;  %v3346_v24 = vsub.f32 %v9025_v47, %v11546_v4  ;;  %3798 = vmatpush1.msra.mxu0 %v7805_v5 }
 0x21f   :  { %3711 = vmatpush2.msra.mxu1 %v3710_v60  ;;  %v3337_v60 = vand.u32 4294901760, %v3336_v48  ;;  %v11547_v15 = vand.u32 4294901760, %v9000_v17  ;;  %v10384_v36 = vand.u32 4294901760, %v9073_v37  ;;  %3801 = vmatprep.subr.mxu0 %v11548_v27  ;;  %v3352_v6 = vsub.f32 %v9051_v41, %v10385_v38  ;;  %v11565_v38 = vld [vmem:[#allocation94_spill] sm:$0xff] }
 0x220   :  { %3717 = vmatprep.subr.mxu1 %v3716_v7  ;;  %v3740_v40 = vand.u32 4294901760, %v3739_v8  ;;  %v3746_v7 = vand.u32 4294901760, %v3745_v28  ;;  %3332 = vmatprep.mubr.f32.mxu0 %v3331_v9  ;;  %v3752_v21 = vand.u32 4294901760, %v3751_v0  ;;  %v3347_v48 = vand.u32 4294901760, %v3346_v24  ;;  %v11550_v28 = vld [vmem:[#allocation91_spill] sm:$0xff]  ;;  %v11551_v0 = vld [vmem:[#allocation6_spill] sm:$0xff] }
 0x221   :  { %3723 = vmatpush2.msra.mxu1 %v3722_v53  ;;  %v3757_v12 = vsub.f32 %v9000_v17, %v11547_v15  ;;  %v11549_v53 = vld [vmem:[#allocation96_spill] sm:$0xff]  ;;  %v10383_v8 = vand.u32 4294901760, %v9083_v59  ;;  %3338 = vmatmul.mubr.f32.gmra.mxu0 %v3337_v60  ;;  %v3362_v9 = vsub.f32 %v9073_v37, %v10384_v36  ;;  %v3353_v4 = vand.u32 4294901760, %v3352_v6  ;;  %v11553_v60 = vld [vmem:[#allocation98_spill] sm:$0xff]  ;;  %v11554_v15 = vld [vmem:[#allocation41_spill] sm:$0xff] }
 0x222   :  { %3729 = vmatprep.subr.mxu1 %v3728_v34  ;;  %3804 = vmatpush1.msra.mxu0 %v11549_v53  ;;  %v11557_v6 = vld [vmem:[#allocation73_spill] sm:$0xff] }
 0x223   :  { %3735 = vmatpush2.msra.mxu1 %v3734_v49  ;;  %v3758_v34 = vand.u32 4294901760, %v3757_v12  ;;  %3807 = vmatprep.subr.mxu0 %v11550_v28  ;;  %v11552_v49 = vld [vmem:[#allocation72_spill] sm:$0xff]  ;;  %v3368_v24 = vsub.f32 %v9083_v59, %v10383_v8  ;;  %v11555_v12 = vld [vmem:[#allocation69_spill] sm:$0xff]  ;;  %v11560_v8 = vld [vmem:[#allocation99_spill] sm:$0xff] }
 0x224   :  { %3741 = vmatprep.subr.mxu1 %v3740_v40  ;;  %3810 = vmatpush1.msra.mxu0 %v11551_v0  ;;  %v3363_v40 = vand.u32 4294901760, %v3362_v9  ;;  %v11561_v9 = vld [vmem:[#allocation75_spill] sm:$0xff]  ;;  %v11563_v36 = vld [vmem:[#allocation85_spill] sm:$0xff] }
 0x225   :  { %3747 = vmatpush2.msra.mxu1 %v3746_v7  ;;  %3813 = vmatprep.subr.mxu0 %v11552_v49  ;;  %v11556_v7 = vld [vmem:[#allocation106_spill] sm:$0xff] }
 0x226   :  { %3753 = vmatprep.subr.mxu1 %v3752_v21  ;;  %3348 = vmatprep.mubr.f32.mxu0 %v3347_v48  ;;  %v3369_v21 = vand.u32 4294901760, %v3368_v24  ;;  %v11558_v48 = vld [vmem:[#allocation63_spill] sm:$0xff]  ;;  %v11564_v24 = vld [vmem:[#allocation110_spill] sm:$0xff] }
 0x227   :  { %3759 = vmatpush2.msra.mxu1 %v3758_v34  ;;  %3816 = vmatpush1.msra.mxu0 %v11553_v60  ;;  %v11559_v34 = vld [vmem:[#allocation79_spill] sm:$0xff] }
 0x228   :  { %3763 = vmatmul.mubr.f32.vlgmr.msra.gmra.mxu1 %v8869_v31  ;;  %3354 = vmatmul.mubr.f32.gmra.mxu0 %v3353_v4  ;;  %v11562_v4 = vld [vmem:[#allocation113_spill] sm:$0xff]  ;;  %v11566_v31 = vld [vmem:[#allocation130_spill] sm:$0xff] }
 0x229   :  { %3819 = vmatprep.subr.mxu0 %v11554_v15  ;;  %4027 = vmatprep.subr.mxu1 %v11555_v12 }
 0x22a   :  { %3822 = vmatpush1.msra.mxu0 %v11556_v7  ;;  %4029 = vmatpush1.msra.mxu1 %v11557_v6 }
 0x22b   :  { %3825 = vmatprep.subr.mxu0 %v11558_v48  ;;  %4031 = vmatprep.subr.mxu1 %v11559_v34 }
 0x22c   :  { %3364 = vmatprep.mubr.f32.mxu0 %v3363_v40  ;;  %3769 = vmatprep.mubr.f32.mxu1 %v8920_v56  ;;  %v11567_v40 = vld [vmem:[#allocation24_spill] sm:$0xff]  ;;  %v11568_v56 = vld [vmem:[#allocation65_spill] sm:$0xff] }
 0x22d   :  { %3828 = vmatpush1.msra.mxu0 %v11560_v8  ;;  %4033 = vmatpush1.msra.mxu1 %v11561_v9 }
 0x22e   :  { %3370 = vmatmul.mubr.f32.gmra.mxu0 %v3369_v21  ;;  %3771 = vmatmul.mubr.f32.gmra.mxu1 %v8944_v11  ;;  %v11570_v21 = vld [vmem:[#allocation10_spill] sm:$0xff]  ;;  %v11571_v11 = vld [vmem:[#allocation8_spill] sm:$0xff] }
 0x22f   :  { %3831 = vmatprep.subr.mxu0 %v11562_v4  ;;  %4035 = vmatprep.subr.mxu1 %v11563_v36  ;;  %v11572_v36 = vld [vmem:[#allocation71_spill] sm:$0xff] }
 0x230   :  { %3834 = vmatpush1.msra.mxu0 %v11564_v24  ;;  %4037 = vmatpush1.msra.mxu1 %v11565_v38  ;;  %v11573_v24 = vld [vmem:[#allocation28_spill] sm:$0xff]  ;;  %v11574_v38 = vld [vmem:[#allocation15_spill] sm:$0xff] }
 0x231   :  { %3837 = vmatprep.subr.mxu0 %v11566_v31  ;;  %4039 = vmatprep.subr.mxu1 %v11567_v40  ;;  %v11575_v31 = vld [vmem:[#allocation101_spill] sm:$0xff] }
 0x232   :  { %3777 = vmatprep.mubr.f32.mxu1 %v8979_v2  ;;  %3840 = vmatpush1.msra.mxu0 %v11568_v56  ;;  %v11576_v2 = vld [vmem:[#allocation11_spill] sm:$0xff] }
 0x233   :  { %4041 = vmatpush1.msra.mxu1 %v11569_v43  ;;  %3843 = vmatprep.subr.mxu0 %v11570_v21  ;;  %v11577_v56 = vld [vmem:[#allocation51_spill] sm:$0xff] }
 0x234   :  { %3779 = vmatmul.mubr.f32.gmra.mxu1 %v9014_v22  ;;  %4043 = vmatprep.subr.mxu1 %v11571_v11  ;;  %v11578_v22 = vld [vmem:[#allocation22_spill] sm:$0xff]  ;;  %v11579_v21 = vld [vmem:[#allocation59_spill] sm:$0xff]  ;;  %v11580_v11 = vld [vmem:[#allocation44_spill] sm:$0xff] }
 0x235   :  { %3846 = vmatpush1.msra.mxu0 %v11572_v36  ;;  %4045 = vmatpush1.msra.mxu1 %v11573_v24 }
 0x236   :  { %3849 = vmatprep.subr.mxu0 %v11574_v38  ;;  %4047 = vmatprep.subr.mxu1 %v11575_v31  ;;  %v11581_v38 = vld [vmem:[#allocation103_spill] sm:$0xff]  ;;  %v11582_v31 = vld [vmem:[#allocation5_spill] sm:$0xff] }
 0x237   :  { %3785 = vmatprep.mubr.f32.mxu1 %v9043_v44  ;;  %3852 = vmatpush1.msra.mxu0 %v11576_v2  ;;  %v11583_v44 = vld [vmem:[#allocation52_spill] sm:$0xff] }
 0x238   :  { %4049 = vmatpush1.msra.mxu1 %v11577_v56  ;;  %3855 = vmatprep.subr.mxu0 %v11578_v22  ;;  %v11584_v56 = vld [vmem:[#allocation119_spill] sm:$0xff] }
 0x239   :  { %3787 = vmatmul.mubr.f32.gmra.mxu1 %v9058_v54  ;;  %4051 = vmatprep.subr.mxu1 %v11579_v21  ;;  %v11585_v54 = vld [vmem:[#allocation30_spill] sm:$0xff]  ;;  %v11586_v21 = vld [vmem:[#allocation56_spill] sm:$0xff] }
 0x23a   :  { %3858 = vmatpush1.msra.mxu0 %v11580_v11  ;;  %4053 = vmatpush1.msra.mxu1 %v7978_v57  ;;  %v11587_v57 = vld [vmem:[#allocation9_spill] sm:$0xff] }
 0x23b   :  { %3861 = vmatprep.subr.mxu0 %v8247_v63  ;;  %4055 = vmatprep.subr.mxu1 %v11581_v38  ;;  %v11588_v63 = vld [vmem:[#allocation67_spill] sm:$0xff]  ;;  %v11589_v38 = vld [vmem:[#allocation38_spill] sm:$0xff] }
 0x23c   :  { %3864 = vmatpush1.msra.mxu0 %v11582_v31  ;;  %4057 = vmatpush1.msra.mxu1 %v8028_v23  ;;  %v11590_v31 = vld [vmem:[#allocation77_spill] sm:$0xff]  ;;  %v11591_v23 = vld [vmem:[#allocation34_spill] sm:$0xff] }
 0x23d   :  { %3867 = vmatprep.subr.mxu0 %v11583_v44  ;;  %4059 = vmatprep.subr.mxu1 %v11584_v56  ;;  %v11592_v44 = vld [vmem:[#allocation81_spill] sm:$0xff]  ;;  %v11593_v56 = vld [vmem:[#allocation40_spill] sm:$0xff] }
 0x23e   :  { %3870 = vmatpush1.msra.mxu0 %v11585_v54  ;;  %4061 = vmatpush1.msra.mxu1 %v8068_v35  ;;  %v11594_v54 = vld [vmem:[#allocation92_spill] sm:$0xff]  ;;  %v11595_v35 = vld [vmem:[#allocation13_spill] sm:$0xff] }
 0x23f   :  { %3873 = vmatprep.subr.mxu0 %v11586_v21  ;;  %4063 = vmatprep.subr.mxu1 %v8105_v16  ;;  %v11596_v21 = vld [vmem:[#allocation87_spill] sm:$0xff] }
 0x240   :  { %3876 = vmatpush1.msra.mxu0 %v11587_v57  ;;  %4065 = vmatpush1.msra.mxu1 %v11588_v63  ;;  %v11597_v57 = vld [vmem:[#allocation46_spill] sm:$0xff]  ;;  %v11598_v63 = vld [vmem:[#allocation64_spill] sm:$0xff] }
 0x241   :  { %3879 = vmatprep.subr.mxu0 %v11589_v38  ;;  %4067 = vmatprep.subr.mxu1 %v11590_v31  ;;  %v11599_v31 = vld [vmem:[#allocation50_spill] sm:$0xff] }
 0x242   :  { %3882 = vmatpush1.msra.mxu0 %v11591_v23  ;;  %4069 = vmatpush1.msra.mxu1 %v11592_v44  ;;  %v11600_v23 = vld [vmem:[#allocation48_spill] sm:$0xff]  ;;  %v11601_v44 = vld [vmem:[#allocation17_spill] sm:$0xff] }
 0x243   :  { %3885 = vmatprep.subr.mxu0 %v11593_v56  ;;  %4071 = vmatprep.subr.mxu1 %v11594_v54  ;;  %v11602_v56 = vld [vmem:[#allocation26_spill] sm:$0xff] }
 0x244   :  { %3888 = vmatpush1.msra.mxu0 %v11595_v35  ;;  %4073 = vmatpush1.msra.mxu1 %v11596_v21  ;;  %v11603_v35 = vld [vmem:[#allocation20_spill] sm:$0xff]  ;;  %v11604_v21 = vld [vmem:[#allocation19_spill] sm:$0xff] }
 0x245   :  { %3891 = vmatprep.subr.mxu0 %v8438_v18  ;;  %4075 = vmatprep.subr.mxu1 %v11597_v57  ;;  %v11605_v18 = vld [vmem:[#allocation7_spill] sm:$0xff] }
 0x246   :  { %3894 = vmatpush2.msra.mxu0 %v11598_v63  ;;  %4077 = vmatpush1.msra.mxu1 %v8215_v13  ;;  %v11606_v63 = vld [vmem:[#allocation36_spill] sm:$0xff] }
 0x247   :  { %3897 = vmatprep.subr.mxu0 %v11599_v31  ;;  %4079 = vmatprep.subr.mxu1 %v11600_v23  ;;  %v11607_v31 = vld [vmem:[#allocation23_spill] sm:$0xff]  ;;  %v11608_v23 = vld [vmem:[#allocation29_spill] sm:$0xff] }
 0x248   :  { %3900 = vmatpush2.msra.mxu0 %v11601_v44  ;;  %4081 = vmatpush1.msra.mxu1 %v11602_v56  ;;  %v11609_v44 = vld [vmem:[#allocation60_spill] sm:$0xff] }
 0x249   :  { %3903 = vmatprep.subr.mxu0 %v8513_v3  ;;  %4083 = vmatprep.subr.mxu1 %v11603_v35  ;;  %v11610_v56 = vld [vmem:[#allocation88_spill] sm:$0xff]  ;;  %v11611_v3 = vld [vmem:[#allocation27_spill] sm:$0xff] }
 0x24a   :  { %3906 = vmatpush2.msra.mxu0 %v11604_v21  ;;  %4085 = vmatpush1.msra.mxu1 %v11605_v18  ;;  %v11612_v35 = vld [vmem:[#allocation68_spill] sm:$0xff]  ;;  %v11613_v21 = vld [vmem:[#allocation31_spill] sm:$0xff] }
 0x24b   :  { %3909 = vmatprep.subr.mxu0 %v8528_v45  ;;  %4087 = vmatprep.subr.mxu1 %v11606_v63  ;;  %v11614_v45 = vld [vmem:[#allocation42_spill] sm:$0xff] }
 0x24c   :  { %3912 = vmatpush2.msra.mxu0 %v8534_v25  ;;  %4089 = vmatpush1.msra.mxu1 %v11607_v31  ;;  %v11615_v63 = vld [vmem:[#allocation70_spill] sm:$0xff]  ;;  %v11616_v25 = vld [vmem:[#allocation33_spill] sm:$0xff] }
 0x24d   :  { %3915 = vmatprep.subr.mxu0 %v11608_v23  ;;  %4091 = vmatprep.subr.mxu1 %v11609_v44  ;;  %v11617_v31 = vld [vmem:[#allocation86_spill] sm:$0xff]  ;;  %v11618_v23 = vld [vmem:[#allocation35_spill] sm:$0xff]  ;;  %v11619_v44 = vld [vmem:[#allocation104_spill] sm:$0xff] }
 0x24e   :  { %3918 = vmatpush2.msra.mxu0 %v11610_v56  ;;  %4093 = vmatpush2.msra.mxu1 %v11611_v3  ;;  %v11620_v56 = vld [vmem:[#allocation76_spill] sm:$0xff]  ;;  %v11621_v3 = vld [vmem:[#allocation74_spill] sm:$0xff] }
 0x24f   :  { %3921 = vmatprep.subr.mxu0 %v11612_v35  ;;  %4095 = vmatprep.subr.mxu1 %v11613_v21  ;;  %v11622_v35 = vld [vmem:[#allocation80_spill] sm:$0xff]  ;;  %v11623_v21 = vld [vmem:[#allocation111_spill] sm:$0xff] }
 0x250   :  { %3924 = vmatpush2.msra.mxu0 %v8593_v58  ;;  %4097 = vmatpush2.msra.mxu1 %v11614_v45  ;;  %v11624_v58 = vld [vmem:[#allocation43_spill] sm:$0xff]  ;;  %v11625_v45 = vld [vmem:[#allocation37_spill] sm:$0xff] }
 0x251   :  { %3927 = vmatprep.subr.mxu0 %v11615_v63  ;;  %4099 = vmatprep.subr.mxu1 %v11616_v25  ;;  %v11626_v63 = vld [vmem:[#allocation54_spill] sm:$0xff]  ;;  %v11627_v25 = vld [vmem:[#allocation93_spill] sm:$0xff] }
 0x252   :  { %3930 = vmatpush2.msra.mxu0 %v11617_v31  ;;  %4101 = vmatpush2.msra.mxu1 %v11618_v23  ;;  %v11628_v31 = vld [vmem:[#allocation78_spill] sm:$0xff]  ;;  %v11629_v23 = vld [vmem:[#allocation108_spill] sm:$0xff] }
 0x253   :  { %3933 = vmatprep.subr.mxu0 %v11619_v44  ;;  %4103 = vmatprep.subr.mxu1 %v11620_v56  ;;  %v11630_v44 = vld [vmem:[#allocation25_spill] sm:$0xff] }
 0x254   :  { %3936 = vmatpush2.msra.mxu0 %v11621_v3  ;;  %4105 = vmatpush2.msra.mxu1 %v11622_v35  ;;  %v11631_v3 = vld [vmem:[#allocation49_spill] sm:$0xff] }
 0x255   :  { %3939 = vmatprep.subr.mxu0 %v11623_v21  ;;  %4107 = vmatprep.subr.mxu1 %v11624_v58  ;;  %v11632_v21 = vld [vmem:[#allocation62_spill] sm:$0xff] }
 0x256   :  { %3942 = vmatpush2.msra.mxu0 %v11625_v45  ;;  %4109 = vmatpush2.msra.mxu1 %v11626_v63  ;;  %v11633_v45 = vld [vmem:[#allocation39_spill] sm:$0xff] }
 0x257   :  { %3945 = vmatprep.subr.mxu0 %v11627_v25  ;;  %4111 = vmatprep.subr.mxu1 %v11628_v31  ;;  %v11634_v25 = vld [vmem:[#allocation61_spill] sm:$0xff] }
 0x258   :  { %3948 = vmatpush2.msra.mxu0 %v11629_v23  ;;  %4113 = vmatpush2.msra.mxu1 %v11630_v44  ;;  %v11635_v23 = vld [vmem:[#allocation89_spill] sm:$0xff] }
 0x259   :  { %3951 = vmatprep.subr.mxu0 %v8842_v1  ;;  %4115 = vmatprep.subr.mxu1 %v11631_v3  ;;  %v11636_v1 = vld [vmem:[#allocation90_spill] sm:$0xff] }
 0x25a   :  { %3954 = vmatpush2.msra.mxu0 %v8776_v42  ;;  %4117 = vmatpush2.msra.mxu1 %v11632_v21  ;;  %v11637_v42 = vld [vmem:[#allocation45_spill] sm:$0xff] }
 0x25b   :  { %3957 = vmatprep.subr.mxu0 %v8867_v14  ;;  %4119 = vmatprep.subr.mxu1 %v11633_v45  ;;  %v11638_v14 = vld [vmem:[#allocation84_spill] sm:$0xff] }
 0x25c   :  { %3960 = vmatpush2.msra.mxu0 %v8812_v52  ;;  %4121 = vmatpush2.msra.mxu1 %v11634_v25  ;;  %v11639_v52 = vld [vmem:[#allocation102_spill] sm:$0xff] }
 0x25d   :  { %3963 = vmatprep.subr.mxu0 %v8896_v32  ;;  %4123 = vmatprep.subr.mxu1 %v11635_v23 }
 0x25e   :  { %3966 = vmatpush2.msra.mxu0 %v8826_v39  ;;  %4125 = vmatpush2.msra.mxu1 %v11636_v1 }
 0x25f   :  { %3969 = vmatprep.subr.mxu0 %v8960_v29  ;;  %4127 = vmatprep.subr.mxu1 %v11637_v42  ;;  %v11640_v29 = vld [vmem:[#allocation123_spill] sm:$0xff]  ;;  %v11641_v42 = vld [vmem:[#allocation53_spill] sm:$0xff] }
 0x260   :  { %3972 = vmatpush2.msra.mxu0 %v8889_v50  ;;  %4129 = vmatpush2.msra.mxu1 %v11638_v14  ;;  %v11642_v14 = vld [vmem:[#allocation100_spill] sm:$0xff] }
 0x261   :  { %3975 = vmatprep.subr.mxu0 %v8996_v20  ;;  %4131 = vmatprep.subr.mxu1 %v11639_v52  ;;  %v11643_v52 = vand.u32 4294901760, %v7812_v33  ;;  %v11648_v33 = vld [vmem:[#allocation112_spill] sm:$0xff] }
 0x262   :  { %3978 = vmatpush2.msra.mxu0 %v8939_v51  ;;  %4133 = vmatpush2.msra.mxu1 %v8721_v61  ;;  %v11644_v51 = vld [vmem:[#allocation115_spill] sm:$0xff]  ;;  %v11645_v61 = vand.u32 4294901760, %v7805_v5  ;;  %v11650_v5 = vld [vmem:[#allocation121_spill] sm:$0xff] }
 0x263   :  { %3981 = vmatprep.subr.mxu0 %v9012_v55  ;;  %4135 = vmatprep.subr.mxu1 %v8778_v46 }
 0x264   :  { %3984 = vmatpush2.msra.mxu0 %v9000_v17  ;;  %3987 = vmatprep.mubr.f32.mxu0 %v11640_v29  ;;  %v11646_v17 = vand.u32 4294901760, %v11548_v27  ;;  %v11653_v27 = vand.u32 4294901760, %v11552_v49  ;;  %v11659_v49 = vand.u32 4294901760, %v11556_v7  ;;  %v11665_v7 = vld [vmem:[#allocation85_spill] sm:$0xff] }
 0x265   :  { %4137 = vmatpush2.msra.mxu1 %v11641_v42  ;;  %3990 = vmatmul.mubr.f32.vlgmr.msra.gmra.mxu0 %v8933_v10  ;;  %v11647_v42 = vand.u32 4294901760, %v11549_v53  ;;  %v11655_v53 = vand.u32 4294901760, %v11640_v29  ;;  %v11660_v29 = vand.u32 4294901760, %v11558_v48 }
 0x266   :  { %4139 = vmatprep.subr.mxu1 %v11642_v14  ;;  %4206 = vmatprep.subr.mxu0 %v11643_v52  ;;  %v11649_v52 = vand.u32 4294901760, %v11550_v28  ;;  %v11656_v28 = vand.u32 4294901760, %v11553_v60  ;;  %v11662_v60 = vand.u32 4294901760, %v11560_v8 }
 0x267   :  { %4141 = vmatpush2.msra.mxu1 %v11644_v51  ;;  %4210 = vmatpush1.msra.mxu0 %v11645_v61  ;;  %v11651_v61 = vand.u32 4294901760, %v11551_v0  ;;  %v11658_v0 = vand.u32 4294901760, %v11554_v15  ;;  %v11663_v15 = vand.u32 4294901760, %v8992_v19 }
 0x268   :  { %4143 = vmatprep.subr.mxu1 %v8851_v30  ;;  %4214 = vmatprep.subr.mxu0 %v11646_v17  ;;  %v11652_v17 = vld [vmem:[#allocation128_spill] sm:$0xff] }
 0x269   :  { %3997 = vmatprep.mubr.f32.mxu0 %v8969_v62  ;;  %4145 = vmatpush2.msra.mxu1 %v8833_v26 }
 0x26a   :  { %4218 = vmatpush1.msra.mxu0 %v11647_v42  ;;  %4147 = vmatprep.subr.mxu1 %v11648_v33  ;;  %v11654_v42 = vld [vmem:[#allocation131_spill] sm:$0xff] }
 0x26b   :  { %4000 = vmatmul.mubr.f32.gmra.mxu0 %v8992_v19  ;;  %4222 = vmatprep.subr.mxu0 %v11649_v52  ;;  %v11657_v52 = vand.u32 4294901760, %v8933_v10  ;;  %v11661_v10 = vand.u32 4294901760, %v8969_v62  ;;  %v11668_v62 = vld [vmem:[#allocation94_spill] sm:$0xff]  ;;  %v11672_v19 = vld [vmem:[#allocation65_spill] sm:$0xff] }
 0x26c   :  { %4149 = vmatpush2.msra.mxu1 %v11650_v5  ;;  %4226 = vmatpush1.msra.mxu0 %v11651_v61  ;;  %v11673_v61 = vand.u32 4294901760, %v11672_v19  ;;  %v11704_v19 = vld [vmem:[#allocation9_spill] sm:$0xff] }
 0x26d   :  { %4151 = vmatprep.subr.mxu1 %v11652_v17  ;;  %4230 = vmatprep.subr.mxu0 %v11653_v27  ;;  %v11675_v27 = vld [vmem:[#allocation10_spill] sm:$0xff] }
 0x26e   :  { %4007 = vmatprep.mubr.f32.mxu0 %v9025_v47  ;;  %4153 = vmatpush2.msra.mxu1 %v11654_v42 }
 0x26f   :  { %4157 = vmatprep.mubr.f32.mxu1 %v11655_v53  ;;  %4234 = vmatpush1.msra.mxu0 %v11656_v28  ;;  %v11676_v53 = vand.u32 4294901760, %v11675_v27  ;;  %v11677_v28 = vld [vmem:[#allocation8_spill] sm:$0xff]  ;;  %v11707_v27 = vand.u32 4294901760, %v11589_v38 }
 0x270   :  { %4161 = vmatmul.mubr.f32.vlgmr.msra.gmra.mxu1 %v11657_v52  ;;  %4010 = vmatmul.mubr.f32.gmra.mxu0 %v9051_v41  ;;  %v11678_v52 = vand.u32 4294901760, %v11572_v36  ;;  %v11686_v36 = vand.u32 4294901760, %v11578_v22 }
 0x271   :  { %4238 = vmatprep.subr.mxu0 %v11658_v0  ;;  %4493 = vmatprep.subr.mxu1 %v11555_v12  ;;  %v11664_v12 = vand.u32 4294901760, %v11562_v4  ;;  %v11674_v4 = vand.u32 4294901760, %v9051_v41  ;;  %v11681_v0 = vld [vmem:[#allocation101_spill] sm:$0xff]  ;;  %v11683_v41 = vand.u32 4294901760, %v11576_v2  ;;  %v11692_v2 = vld [vmem:[#allocation103_spill] sm:$0xff] }
 0x272   :  { %4242 = vmatpush1.msra.mxu0 %v11659_v49  ;;  %4495 = vmatpush1.msra.mxu1 %v11557_v6  ;;  %v11666_v6 = vld [vmem:[#allocation110_spill] sm:$0xff]  ;;  %v11684_v49 = vld [vmem:[#allocation51_spill] sm:$0xff] }
 0x273   :  { %4246 = vmatprep.subr.mxu0 %v11660_v29  ;;  %4497 = vmatprep.subr.mxu1 %v11559_v34  ;;  %v11667_v48 = vand.u32 4294901760, %v11666_v6  ;;  %v11669_v34 = vld [vmem:[#allocation130_spill] sm:$0xff]  ;;  %v11685_v29 = vand.u32 4294901760, %v9083_v59  ;;  %v11696_v6 = vld [vmem:[#allocation52_spill] sm:$0xff] }
 0x274   :  { %4017 = vmatprep.mubr.f32.mxu0 %v9073_v37  ;;  %4169 = vmatprep.mubr.f32.mxu1 %v11661_v10  ;;  %v11670_v8 = vand.u32 4294901760, %v11669_v34  ;;  %v11688_v10 = vand.u32 4294901760, %v11580_v11  ;;  %v11697_v22 = vand.u32 4294901760, %v11696_v6  ;;  %v11701_v34 = vld [vmem:[#allocation122_spill] sm:$0xff] }
 0x275   :  { %4250 = vmatpush1.msra.mxu0 %v11662_v60  ;;  %4499 = vmatpush1.msra.mxu1 %v11561_v9  ;;  %v11671_v9 = vand.u32 4294901760, %v9025_v47  ;;  %v11679_v47 = vld [vmem:[#allocation15_spill] sm:$0xff]  ;;  %v11689_v60 = vld [vmem:[#allocation109_spill] sm:$0xff] }
 0x276   :  { %4020 = vmatmul.mubr.f32.gmra.mxu0 %v9083_v59  ;;  %4173 = vmatmul.mubr.f32.gmra.mxu1 %v11663_v15  ;;  %v11695_v59 = vld [vmem:[#allocation107_spill] sm:$0xff] }
 0x277   :  { %4254 = vmatprep.subr.mxu0 %v11664_v12  ;;  %4501 = vmatprep.subr.mxu1 %v11665_v7  ;;  %v11693_v12 = vld [vmem:[#allocation5_spill] sm:$0xff] }
 0x278   :  { %4258 = vmatpush1.msra.mxu0 %v11667_v48  ;;  %4503 = vmatpush1.msra.mxu1 %v11668_v62  ;;  %v11694_v7 = vand.u32 4294901760, %v11693_v12  ;;  %v11698_v48 = vld [vmem:[#allocation119_spill] sm:$0xff]  ;;  %v11699_v62 = vld [vmem:[#allocation30_spill] sm:$0xff] }
 0x279   :  { %4262 = vmatprep.subr.mxu0 %v11670_v8  ;;  %4505 = vmatprep.subr.mxu1 %v11567_v40  ;;  %v11680_v40 = vand.u32 4294901760, %v11679_v47  ;;  %v11700_v11 = vand.u32 4294901760, %v11699_v62  ;;  %v11702_v8 = vld [vmem:[#allocation56_spill] sm:$0xff]  ;;  %v11711_v47 = vld [vmem:[#allocation81_spill] sm:$0xff] }
 0x27a   :  { %4181 = vmatprep.mubr.f32.mxu1 %v11671_v9  ;;  %4266 = vmatpush1.msra.mxu0 %v11673_v61  ;;  %v11703_v9 = vand.u32 4294901760, %v11702_v8  ;;  %v11705_v61 = vand.u32 4294901760, %v11704_v19  ;;  %v11741_v19 = vld [vmem:[#allocation88_spill] sm:$0xff] }
 0x27b   :  { %4507 = vmatpush1.msra.mxu1 %v11569_v43  ;;  %4270 = vmatprep.subr.mxu0 %v11676_v53  ;;  %v11682_v43 = vand.u32 4294901760, %v9073_v37  ;;  %v11690_v37 = vld [vmem:[#allocation18_spill] sm:$0xff]  ;;  %v11708_v53 = vld [vmem:[#allocation77_spill] sm:$0xff] }
 0x27c   :  { %4185 = vmatmul.mubr.f32.gmra.mxu1 %v11674_v4  ;;  %4509 = vmatprep.subr.mxu1 %v11677_v28  ;;  %v11691_v15 = vand.u32 4294901760, %v11690_v37  ;;  %v11706_v4 = vld [vmem:[#allocation67_spill] sm:$0xff]  ;;  %v11709_v28 = vld [vmem:[#allocation34_spill] sm:$0xff] }
 0x27d   :  { %4274 = vmatpush1.msra.mxu0 %v11678_v52  ;;  %4511 = vmatpush1.msra.mxu1 %v11573_v24  ;;  %v11687_v24 = vld [vmem:[#allocation59_spill] sm:$0xff]  ;;  %v11710_v52 = vand.u32 4294901760, %v11709_v28 }
 0x27e   :  { %4278 = vmatprep.subr.mxu0 %v11680_v40  ;;  %4513 = vmatprep.subr.mxu1 %v11681_v0  ;;  %v11712_v40 = vld [vmem:[#allocation40_spill] sm:$0xff]  ;;  %v11747_v28 = vld [vmem:[#allocation55_spill] sm:$0xff] }
 0x27f   :  { %4193 = vmatprep.mubr.f32.mxu1 %v11682_v43  ;;  %4282 = vmatpush1.msra.mxu0 %v11683_v41  ;;  %v11713_v0 = vand.u32 4294901760, %v11712_v40  ;;  %v11716_v41 = vld [vmem:[#allocation87_spill] sm:$0xff]  ;;  %v11750_v40 = vld [vmem:[#allocation70_spill] sm:$0xff] }
 0x280   :  { %4515 = vmatpush1.msra.mxu1 %v11684_v49  ;;  %4286 = vmatprep.subr.mxu0 %v11686_v36  ;;  %v11717_v49 = vld [vmem:[#allocation16_spill] sm:$0xff] }
 0x281   :  { %4197 = vmatmul.mubr.f32.gmra.mxu1 %v11685_v29  ;;  %4517 = vmatprep.subr.mxu1 %v11687_v24  ;;  %v11718_v38 = vand.u32 4294901760, %v11717_v49  ;;  %v11719_v29 = vld [vmem:[#allocation64_spill] sm:$0xff]  ;;  %v11721_v24 = vld [vmem:[#allocation50_spill] sm:$0xff]  ;;  %v11755_v49 = vld [vmem:[#allocation35_spill] sm:$0xff] }
 0x282   :  { %4290 = vmatpush1.msra.mxu0 %v11688_v10  ;;  %4519 = vmatpush1.msra.mxu1 %v11689_v60  ;;  %v11720_v36 = vand.u32 4294901760, %v11719_v29  ;;  %v11722_v10 = vand.u32 4294901760, %v11721_v24  ;;  %v11723_v60 = vld [vmem:[#allocation48_spill] sm:$0xff] }
 0x283   :  { %4294 = vmatprep.subr.mxu0 %v11691_v15  ;;  %4521 = vmatprep.subr.mxu1 %v11692_v2  ;;  %v11726_v15 = vld [vmem:[#allocation26_spill] sm:$0xff]  ;;  %v11727_v2 = vld [vmem:[#allocation21_spill] sm:$0xff] }
 0x284   :  { %4298 = vmatpush1.msra.mxu0 %v11694_v7  ;;  %4523 = vmatpush1.msra.mxu1 %v11695_v59  ;;  %v11728_v12 = vand.u32 4294901760, %v11727_v2  ;;  %v11729_v7 = vld [vmem:[#allocation20_spill] sm:$0xff] }
 0x285   :  { %4302 = vmatprep.subr.mxu0 %v11697_v22  ;;  %4525 = vmatprep.subr.mxu1 %v11698_v48  ;;  %v11734_v22 = vld [vmem:[#allocation36_spill] sm:$0xff]  ;;  %v11735_v48 = vld [vmem:[#allocation58_spill] sm:$0xff] }
 0x286   :  { %4306 = vmatpush1.msra.mxu0 %v11700_v11  ;;  %4527 = vmatpush1.msra.mxu1 %v11701_v34  ;;  %v11736_v62 = vand.u32 4294901760, %v11735_v48  ;;  %v11737_v11 = vld [vmem:[#allocation23_spill] sm:$0xff]  ;;  %v11738_v34 = vld [vmem:[#allocation29_spill] sm:$0xff]  ;;  %v11782_v48 = vld [vmem:[#allocation84_spill] sm:$0xff] }
 0x287   :  { %4310 = vmatprep.subr.mxu0 %v11703_v9  ;;  %4529 = vmatprep.subr.mxu1 %v8105_v16  ;;  %v11714_v16 = vld [vmem:[#allocation13_spill] sm:$0xff]  ;;  %v11739_v8 = vand.u32 4294901760, %v11738_v34  ;;  %v11740_v9 = vld [vmem:[#allocation60_spill] sm:$0xff]  ;;  %v11791_v34 = vld [vmem:[#allocation126_spill] sm:$0xff] }
 0x288   :  { %4314 = vmatpush1.msra.mxu0 %v11705_v61  ;;  %4531 = vmatpush1.msra.mxu1 %v11706_v4  ;;  %v11715_v43 = vand.u32 4294901760, %v11714_v16  ;;  %v11742_v61 = vand.u32 4294901760, %v11741_v19  ;;  %v11743_v4 = vld [vmem:[#allocation27_spill] sm:$0xff]  ;;  %v11752_v16 = vld [vmem:[#allocation33_spill] sm:$0xff] }
 0x289   :  { %4318 = vmatprep.subr.mxu0 %v11707_v27  ;;  %4533 = vmatprep.subr.mxu1 %v11708_v53  ;;  %v11746_v53 = vld [vmem:[#allocation31_spill] sm:$0xff] }
 0x28a   :  { %4322 = vmatpush1.msra.mxu0 %v11710_v52  ;;  %4535 = vmatpush1.msra.mxu1 %v11711_v47  ;;  %v11748_v52 = vand.u32 4294901760, %v11747_v28  ;;  %v11749_v47 = vld [vmem:[#allocation42_spill] sm:$0xff] }
 0x28b   :  { %4326 = vmatprep.subr.mxu0 %v11713_v0  ;;  %4537 = vmatprep.subr.mxu1 %v11594_v54  ;;  %v11724_v54 = vld [vmem:[#allocation17_spill] sm:$0xff]  ;;  %v11751_v0 = vand.u32 4294901760, %v11750_v40 }
 0x28c   :  { %4330 = vmatpush1.msra.mxu0 %v11715_v43  ;;  %4539 = vmatpush1.msra.mxu1 %v11716_v41  ;;  %v11725_v37 = vand.u32 4294901760, %v11724_v54  ;;  %v11753_v43 = vld [vmem:[#allocation86_spill] sm:$0xff]  ;;  %v11762_v54 = vld [vmem:[#allocation37_spill] sm:$0xff] }
 0x28d   :  { %4334 = vmatprep.subr.mxu0 %v11718_v38  ;;  %4541 = vmatprep.subr.mxu1 %v11597_v57  ;;  %v11730_v57 = vld [vmem:[#allocation19_spill] sm:$0xff]  ;;  %v11754_v41 = vand.u32 4294901760, %v11753_v43  ;;  %v11756_v38 = vld [vmem:[#allocation104_spill] sm:$0xff] }
 0x28e   :  { %4338 = vmatpush2.msra.mxu0 %v11720_v36  ;;  %4543 = vmatpush1.msra.mxu1 %v8215_v13  ;;  %v11731_v59 = vand.u32 4294901760, %v11730_v57  ;;  %v11732_v13 = vld [vmem:[#allocation82_spill] sm:$0xff]  ;;  %v11757_v29 = vand.u32 4294901760, %v11756_v38 }
 0x28f   :  { %4342 = vmatprep.subr.mxu0 %v11722_v10  ;;  %4545 = vmatprep.subr.mxu1 %v11723_v60  ;;  %v11733_v6 = vand.u32 4294901760, %v11732_v13  ;;  %v11758_v36 = vld [vmem:[#allocation74_spill] sm:$0xff]  ;;  %v11760_v10 = vld [vmem:[#allocation111_spill] sm:$0xff] }
 0x290   :  { %4346 = vmatpush2.msra.mxu0 %v11725_v37  ;;  %4547 = vmatpush1.msra.mxu1 %v11726_v15  ;;  %v11759_v24 = vand.u32 4294901760, %v11758_v36  ;;  %v11761_v60 = vand.u32 4294901760, %v11760_v10  ;;  %v11763_v37 = vand.u32 4294901760, %v11762_v54  ;;  %v11764_v15 = vld [vmem:[#allocation93_spill] sm:$0xff] }
 0x291   :  { %4350 = vmatprep.subr.mxu0 %v11728_v12  ;;  %4549 = vmatprep.subr.mxu1 %v11729_v7  ;;  %v11765_v2 = vand.u32 4294901760, %v11764_v15 }
 0x292   :  { %4354 = vmatpush2.msra.mxu0 %v11731_v59  ;;  %4551 = vmatpush1.msra.mxu1 %v11605_v18  ;;  %v11744_v18 = vld [vmem:[#allocation68_spill] sm:$0xff] }
 0x293   :  { %4358 = vmatprep.subr.mxu0 %v11733_v6  ;;  %4553 = vmatprep.subr.mxu1 %v11734_v22  ;;  %v11745_v27 = vand.u32 4294901760, %v11744_v18  ;;  %v11780_v22 = vld [vmem:[#allocation45_spill] sm:$0xff] }
 0x294   :  { %4362 = vmatpush2.msra.mxu0 %v11736_v62  ;;  %4555 = vmatpush1.msra.mxu1 %v11737_v11  ;;  %v11787_v62 = vld [vmem:[#allocation47_spill] sm:$0xff]  ;;  %v11789_v11 = vld [vmem:[#allocation134_spill] sm:$0xff] }
 0x295   :  { %4366 = vmatprep.subr.mxu0 %v11739_v8  ;;  %4557 = vmatprep.subr.mxu1 %v11740_v9  ;;  %v11792_v8 = vld [vmem:[#allocation53_spill] sm:$0xff] }
 0x296   :  { %4370 = vmatpush2.msra.mxu0 %v11742_v61  ;;  %4559 = vmatpush2.msra.mxu1 %v11743_v4  ;;  %v11794_v9 = vld [vmem:[#allocation125_spill] sm:$0xff] }
 0x297   :  { %4374 = vmatprep.subr.mxu0 %v11745_v27  ;;  %4561 = vmatprep.subr.mxu1 %v11746_v53 }
 0x298   :  { %4378 = vmatpush2.msra.mxu0 %v11748_v52  ;;  %4563 = vmatpush2.msra.mxu1 %v11749_v47 }
 0x299   :  { %4382 = vmatprep.subr.mxu0 %v11751_v0  ;;  %4565 = vmatprep.subr.mxu1 %v11752_v16 }
 0x29a   :  { %4386 = vmatpush2.msra.mxu0 %v11754_v41  ;;  %4567 = vmatpush2.msra.mxu1 %v11755_v49 }
 0x29b   :  { %4390 = vmatprep.subr.mxu0 %v11757_v29  ;;  %4569 = vmatprep.subr.mxu1 %v11620_v56  ;;  %v11766_v56 = vld [vmem:[#allocation108_spill] sm:$0xff] }
 0x29c   :  { %4394 = vmatpush2.msra.mxu0 %v11759_v24  ;;  %4571 = vmatpush2.msra.mxu1 %v11622_v35  ;;  %v11767_v12 = vand.u32 4294901760, %v11766_v56  ;;  %v11768_v35 = vld [vmem:[#allocation124_spill] sm:$0xff] }
 0x29d   :  { %4398 = vmatprep.subr.mxu0 %v11761_v60  ;;  %4573 = vmatprep.subr.mxu1 %v11624_v58  ;;  %v11769_v7 = vand.u32 4294901760, %v11768_v35  ;;  %v11770_v58 = vld [vmem:[#allocation117_spill] sm:$0xff] }
 0x29e   :  { %4402 = vmatpush2.msra.mxu0 %v11763_v37  ;;  %4575 = vmatpush2.msra.mxu1 %v11626_v63  ;;  %v11771_v57 = vand.u32 4294901760, %v11770_v58  ;;  %v11772_v63 = vld [vmem:[#allocation116_spill] sm:$0xff] }
 0x29f   :  { %4406 = vmatprep.subr.mxu0 %v11765_v2  ;;  %4577 = vmatprep.subr.mxu1 %v11628_v31  ;;  %v11773_v59 = vand.u32 4294901760, %v11772_v63  ;;  %v11774_v31 = vld [vmem:[#allocation114_spill] sm:$0xff] }
 0x2a0   :  { %4410 = vmatpush2.msra.mxu0 %v11767_v12  ;;  %4579 = vmatpush2.msra.mxu1 %v11630_v44  ;;  %v11775_v13 = vand.u32 4294901760, %v11774_v31  ;;  %v11776_v44 = vand.u32 4294901760, %v8896_v32  ;;  %v11784_v32 = vld [vmem:[#allocation102_spill] sm:$0xff] }
 0x2a1   :  { %4414 = vmatprep.subr.mxu0 %v11769_v7  ;;  %4581 = vmatprep.subr.mxu1 %v11631_v3  ;;  %v11777_v3 = vand.u32 4294901760, %v8826_v39 }
 0x2a2   :  { %4418 = vmatpush2.msra.mxu0 %v11771_v57  ;;  %4583 = vmatpush2.msra.mxu1 %v11632_v21  ;;  %v11778_v21 = vld [vmem:[#allocation132_spill] sm:$0xff] }
 0x2a3   :  { %4422 = vmatprep.subr.mxu0 %v11773_v59  ;;  %4585 = vmatprep.subr.mxu1 %v11633_v45  ;;  %v11779_v6 = vand.u32 4294901760, %v11778_v21  ;;  %v11781_v45 = vand.u32 4294901760, %v8889_v50  ;;  %v11790_v50 = vand.u32 4294901760, %v11789_v11 }
 0x2a4   :  { %4426 = vmatpush2.msra.mxu0 %v11775_v13  ;;  %4587 = vmatpush2.msra.mxu1 %v11634_v25  ;;  %v11783_v25 = vand.u32 4294901760, %v8996_v20  ;;  %v11793_v20 = vld [vmem:[#allocation118_spill] sm:$0xff] }
 0x2a5   :  { %4430 = vmatprep.subr.mxu0 %v11776_v44  ;;  %4589 = vmatprep.subr.mxu1 %v11635_v23  ;;  %v11785_v23 = vld [vmem:[#allocation127_spill] sm:$0xff] }
 0x2a6   :  { %4434 = vmatpush2.msra.mxu0 %v11777_v3  ;;  %4591 = vmatpush2.msra.mxu1 %v11636_v1  ;;  %v11786_v39 = vand.u32 4294901760, %v11785_v23  ;;  %v11788_v1 = vand.u32 4294901760, %v9012_v55  ;;  %v11796_v55 = vld [vmem:[#allocation133_spill] sm:$0xff] }
 0x2a7   :  { %4438 = vmatprep.subr.mxu0 %v11779_v6  ;;  %4593 = vmatprep.subr.mxu1 %v11780_v22 }
 0x2a8   :  { %4442 = vmatpush2.msra.mxu0 %v11781_v45  ;;  %4595 = vmatpush2.msra.mxu1 %v11782_v48 }
 0x2a9   :  { %4446 = vmatprep.subr.mxu0 %v11783_v25  ;;  %4597 = vmatprep.subr.mxu1 %v11784_v32 }
 0x2aa   :  { %4450 = vmatpush2.msra.mxu0 %v11786_v39  ;;  %4599 = vmatpush2.msra.mxu1 %v11787_v62 }
 0x2ab   :  { %4454 = vmatprep.subr.mxu0 %v11788_v1  ;;  %4601 = vmatprep.subr.mxu1 %v8778_v46  ;;  %v11795_v46 = vld [vmem:[#allocation129_spill] sm:$0xff] }
 0x2ac   :  { %4458 = vmatpush2.msra.mxu0 %v11790_v50  ;;  %4460 = vmatprep.mubr.f32.mxu0 %v11791_v34 }
 0x2ad   :  { %4603 = vmatpush2.msra.mxu1 %v11792_v8  ;;  %4462 = vmatmul.mubr.f32.vlgmr.msra.gmra.mxu0 %v11793_v20 }
 0x2ae   :  { %4605 = vmatprep.subr.mxu1 %v11642_v14  ;;  %4468 = vmatprep.mubr.f32.mxu0 %v11794_v9  ;;  %v11797_v14 = vld [vmem:[#allocation135_spill] sm:$0xff] }
 0x2af   :  { %4607 = vmatpush2.msra.mxu1 %v11644_v51  ;;  %4621 = vmatprep.mubr.f32.mxu1 %v11791_v34  ;;  %v9467_v51 = vpop.f32.mrf.mxu0 }
 0x2b0   :  { %4609 = vmatprep.subr.mxu1 %v8851_v30  ;;  %v11798_v30 = vld [vmem:[#allocation136_spill] sm:$0xff] }
 0x2b1   :  { %4611 = vmatpush2.msra.mxu1 %v8833_v26  ;;  %4470 = vmatmul.mubr.f32.gmra.mxu0 %v11795_v46  ;;  %v11799_v26 = vld [vmem:[#allocation137_spill] sm:$0xff] }
 0x2b2   :  { %4613 = vmatprep.subr.mxu1 %v11648_v33  ;;  %4476 = vmatprep.mubr.f32.mxu0 %v11796_v55  ;;  %v9469_v33 = vpop.f32.mrf.mxu0 }
 0x2b3   :  { %4615 = vmatpush2.msra.mxu1 %v11650_v5 }
 0x2b4   :  { %4617 = vmatprep.subr.mxu1 %v11652_v17  ;;  %v9471_v5 = vpop.f32.mrf.mxu0  ;;  %v9473_v17 = vpop.f32.mrf.mxu1 }
 0x2b5   :  { %4619 = vmatpush2.msra.mxu1 %v11654_v42  ;;  %4478 = vmatmul.mubr.f32.gmra.mxu0 %v11797_v14 }
 0x2b6   :  { %4623 = vmatmul.mubr.f32.vlgmr.msra.gmra.mxu1 %v11793_v20  ;;  %4484 = vmatprep.mubr.f32.mxu0 %v11798_v30  ;;  %v9475_v42 = vpop.f32.mrf.mxu0  ;;  %v9477_v19 = vpop.f32.mrf.mxu1 }
 0x2b7   :  { %4629 = vmatprep.mubr.f32.mxu1 %v11794_v9 }
 0x2b8   :  { %v9479_v61 = vpop.f32.mrf.mxu0  ;;  %v9481_v4 = vpop.f32.mrf.mxu1 }
 0x2b9   :  { %4486 = vmatmul.mubr.f32.gmra.mxu0 %v11799_v26 }
 0x2ba   :  { %4631 = vmatmul.mubr.f32.gmra.mxu1 %v11795_v46  ;;  %v9483_v18 = vpop.f32.mrf.mxu0  ;;  %v9485_v27 = vpop.f32.mrf.mxu1 }
 0x2bb   :  { %4637 = vmatprep.mubr.f32.mxu1 %v11796_v55 }
 0x2bc   :  { %v9487_v53 = vpop.f32.mrf.mxu0  ;;  %v9489_v28 = vpop.f32.mrf.mxu1 }
 0x2be   :  { %4639 = vmatmul.mubr.f32.gmra.mxu1 %v11797_v14  ;;  %v9491_v52 = vpop.f32.mrf.mxu0  ;;  %v9493_v47 = vpop.f32.mrf.mxu1 }
 0x2bf   :  { %4645 = vmatprep.mubr.f32.mxu1 %v11798_v30 }
 0x2c0   :  { %v9495_v40 = vpop.f32.mrf.mxu0  ;;  %v9497_v0 = vpop.f32.mrf.mxu1 }
 0x2c2   :  { %4647 = vmatmul.mubr.f32.gmra.mxu1 %v11799_v26  ;;  %v9499_v16 = vpop.f32.mrf.mxu0  ;;  %v9501_v43 = vpop.f32.mrf.mxu1 }
 0x2c4   :  { %v9503_v41 = vpop.f32.mrf.mxu0  ;;  %v9505_v49 = vpop.f32.mrf.mxu1 }
 0x2c6   :  { %v9507_v38 = vpop.f32.mrf.mxu0  ;;  %v9509_v29 = vpop.f32.mrf.mxu1 }
 0x2c8   :  { %v9511_v36 = vpop.f32.mrf.mxu0  ;;  %v9513_v24 = vpop.f32.mrf.mxu1 }
 0x2ca   :  { %v9515_v10 = vpop.f32.mrf.mxu0  ;;  %v9517_v60 = vpop.f32.mrf.mxu1 }
 0x2cc   :  { %v9519_v54 = vpop.f32.mrf.mxu0  ;;  %v9521_v37 = vpop.f32.mrf.mxu1 }
 0x2ce   :  { %v9523_v15 = vpop.f32.mrf.mxu0  ;;  %v9525_v2 = vpop.f32.mrf.mxu1 }
 0x2d0   :  { %v2993_v56 = vpop.f32.mrf.mxu0  ;;  %v9527_v12 = vpop.f32.mrf.mxu1 }
 0x2d2   :  { %v9529_v35 = vpop.f32.mrf.mxu0  ;;  %v9531_v7 = vpop.f32.mrf.mxu1 }
 0x2d3   :  { %11800 = vst [vmem:[#allocation83_spill] sm:$0xff] %v9531_v7  ;;  %v11824_v7 = vld [vmem:[#allocation57_spill] sm:$0xff] }
 0x2d4   :  { %v9533_v58 = vpop.f32.mrf.mxu0  ;;  %v3154_v57 = vpop.f32.mrf.mxu1 }
 0x2d6   :  { %v9535_v63 = vpop.f32.mrf.mxu0  ;;  %v9537_v59 = vpop.f32.mrf.mxu1 }
 0x2d8   :  { %v9539_v31 = vpop.f32.mrf.mxu0  ;;  %v9541_v13 = vpop.f32.mrf.mxu1 }
 0x2da   :  { %v9543_v44 = vpop.f32.mrf.mxu0  ;;  %v9545_v3 = vpop.f32.mrf.mxu1 }
 0x2dc   :  { %v9547_v21 = vpop.f32.mrf.mxu0  ;;  %v9549_v6 = vpop.f32.mrf.mxu1 }
 0x2dd   :  { %11801 = vst [vmem:[#allocation96_spill] sm:$0xff] %v9547_v21 }
 0x2de   :  { %v9551_v22 = vpop.f32.mrf.mxu0  ;;  %v9553_v45 = vpop.f32.mrf.mxu1 }
 0x2df   :  { %11802 = vst [vmem:[#allocation91_spill] sm:$0xff] %v9551_v22  ;;  %11803 = vst [vmem:[#allocation6_spill] sm:$0xff] %v9553_v45 }
 0x2e0   :  { %v3323_v48 = vpop.f32.mrf.mxu0  ;;  %v9555_v25 = vpop.f32.mrf.mxu1 }
 0x2e1   :  { %11804 = vst [vmem:[#allocation72_spill] sm:$0xff] %v9555_v25 }
 0x2e2   :  { %v9557_v32 = vpop.f32.mrf.mxu0  ;;  %v9559_v23 = vpop.f32.mrf.mxu1 }
 0x2e3   :  { %11805 = vst [vmem:[#allocation98_spill] sm:$0xff] %v9559_v23 }
 0x2e4   :  { %v9561_v39 = vpop.f32.mrf.mxu0 }
 0x2e6   :  { %v9565_v1 = vpop.f32.mrf.mxu0 }
 0x2e8   :  { %v9563_v62 = vpop.f32.mrf.mxu1  ;;  %v9569_v50 = vpop.f32.mrf.mxu0 }
 0x2e9   :  { %11806 = vst [vmem:[#allocation41_spill] sm:$0xff] %v9569_v50 }
 0x2ea   :  { %v9567_v11 = vpop.f32.mrf.mxu1  ;;  %v9573_v8 = vpop.f32.mrf.mxu0 }
 0x2eb   :  { %11807 = vst [vmem:[#allocation69_spill] sm:$0xff] %v9573_v8 }
 0x2ee   :  { %v9571_v34 = vpop.f32.mrf.mxu1  ;;  %v9577_v9 = vpop.f32.mrf.mxu0 }
 0x2ef   :  { %11809 = vst [vmem:[#allocation73_spill] sm:$0xff] %v9577_v9 }
 0x2f0   :  { %v9575_v20 = vpop.f32.mrf.mxu1  ;;  %v9581_v55 = vpop.f32.mrf.mxu0 }
 0x2f1   :  { %11808 = vst [vmem:[#allocation106_spill] sm:$0xff] %v9575_v20  ;;  %11811 = vst [vmem:[#allocation79_spill] sm:$0xff] %v9581_v55 }
 0x2f4   :  { %v9579_v46 = vpop.f32.mrf.mxu1 }
 0x2f5   :  { %11810 = vst [vmem:[#allocation63_spill] sm:$0xff] %v9579_v46 }
 0x2f6   :  { %v9583_v14 = vpop.f32.mrf.mxu1 }
 0x2f7   :  { %11812 = vst [vmem:[#allocation99_spill] sm:$0xff] %v9583_v14  ;;  %v11821_v14 = vld [vmem:[#allocation97_spill] sm:$0xff] }
 0x2f8   :  { %v1854_v50 = vadd.f32 %v9467_v51, %v11821_v14 }
 0x2f9   :  { %v9585_v26 = vpop.f32.mrf.mxu1 }
 0x2fa   :  { %11813 = vst [vmem:[#allocation75_spill] sm:$0xff] %v9585_v26  ;;  %v11822_v26 = vld [vmem:[#allocation66_spill] sm:$0xff] }
 0x2fb   :  { %v9589_v25 = vpop.f32.mrf.mxu1  ;;  %v1856_v45 = vadd.f32 %v9469_v33, %v11822_v26 }
 0x2fc   :  { %11814 = vst [vmem:[#allocation113_spill] sm:$0xff] %v9589_v25  ;;  %v2295_v25 = vadd.f32 %v9473_v17, %v1854_v50  ;;  %v11826_v50 = vld [vmem:[#allocation120_spill] sm:$0xff] }
 0x2fd   :  { %v1886_v14 = vadd.f32 %v9479_v61, %v11826_v50 }
 0x325   :  { %v3991_v30 = vpop.f32.mrf.mxu0 }
 0x327   :  { %v9587_v23 = vpop.f32.mrf.mxu0 }
 0x32b   :  { %v9591_v22 = vpop.f32.mrf.mxu0 }
 0x32c   :  { %11815 = vst [vmem:[#allocation24_spill] sm:$0xff] %v9591_v22 }
 0x32d   :  { %v9595_v20 = vpop.f32.mrf.mxu0 }
 0x32e   :  { %11817 = vst [vmem:[#allocation71_spill] sm:$0xff] %v9595_v20  ;;  %v1870_v20 = vadd.f32 %v9471_v5, %v11824_v7  ;;  %v11827_v7 = vld [vmem:[#allocation32_spill] sm:$0xff] }
 0x330   :  { %v9593_v8 = vpop.f32.mrf.mxu1  ;;  %v9599_v46 = vpop.f32.mrf.mxu0  ;;  %v2303_v51 = vadd.f32 %v9481_v4, %v1870_v20  ;;  %v1888_v4 = vadd.f32 %v9483_v18, %v11827_v7  ;;  %v11828_v20 = vld [vmem:[#allocation12_spill] sm:$0xff] }
 0x331   :  { %11816 = vst [vmem:[#allocation95_spill] sm:$0xff] %v9593_v8  ;;  %11819 = vst [vmem:[#allocation11_spill] sm:$0xff] %v9599_v46  ;;  %v2522_v46 = vadd.f32 %v9495_v40, %v2295_v25 }
 0x332   :  { %v9597_v9 = vpop.f32.mrf.mxu1  ;;  %v9608_v21 = vpop.f32.mrf.mxu0 }
 0x333   :  { %11818 = vst [vmem:[#allocation28_spill] sm:$0xff] %v9597_v9  ;;  %11823 = vst [vmem:[#allocation44_spill] sm:$0xff] %v9608_v21  ;;  %v2297_v9 = vadd.f32 %v9477_v19, %v1856_v45  ;;  %v2693_v17 = vadd.f32 %v9505_v49, %v2522_v46  ;;  %v2532_v19 = vadd.f32 %v9503_v41, %v2303_v51 }
 0x334   :  { %v2313_v41 = vadd.f32 %v9493_v47, %v1888_v4  ;;  %v11836_v4 = vld [vmem:[#allocation24_spill] sm:$0xff] }
 0x335   :  { %v2524_v33 = vadd.f32 %v9499_v16, %v2297_v9  ;;  %v2311_v16 = vadd.f32 %v9489_v28, %v1886_v14  ;;  %v2705_v61 = vadd.f32 %v9513_v24, %v2532_v19  ;;  %v11831_v14 = vld [vmem:[#allocation83_spill] sm:$0xff] }
 0x336   :  { %v9601_v55 = vpop.f32.mrf.mxu1  ;;  %v9623_v26 = vpop.f32.mrf.mxu0  ;;  %v2544_v47 = vadd.f32 %v9515_v10, %v2313_v41  ;;  %v11841_v41 = vld [vmem:[#allocation63_spill] sm:$0xff] }
 0x337   :  { %11820 = vst [vmem:[#allocation22_spill] sm:$0xff] %v9601_v55  ;;  %v11825_v55 = vld [vmem:[#allocation105_spill] sm:$0xff]  ;;  %v2695_v40 = vadd.f32 %v9509_v29, %v2524_v33  ;;  %v2542_v29 = vadd.f32 %v9511_v36, %v2311_v16  ;;  %v3002_v28 = vadd.f32 %v9533_v58, %v2705_v61 }
 0x338   :  { %v9610_v22 = vpop.f32.mrf.mxu1  ;;  %v1872_v8 = vadd.f32 %v9475_v42, %v11825_v55  ;;  %v2994_v42 = vadd.f32 %v2993_v56, %v2693_v17  ;;  %v9640_v56 = vpop.f32.mrf.mxu0  ;;  %v11830_v50 = vld [vmem:[#allocation95_spill] sm:$0xff] }
 0x339   :  { %v2996_v45 = vadd.f32 %v9529_v35, %v2695_v40  ;;  %v11829_v35 = vld [vmem:[#allocation14_spill] sm:$0xff]  ;;  %v2717_v36 = vadd.f32 %v9521_v37, %v2542_v29  ;;  %v3163_v55 = vadd.f32 %v9541_v13, %v3002_v28 }
 0x33a   :  { %v2305_v5 = vadd.f32 %v9485_v27, %v1872_v8  ;;  %v3155_v25 = vadd.f32 %v3154_v57, %v2994_v42  ;;  %v1902_v27 = vadd.f32 %v9487_v53, %v11828_v20  ;;  %v1904_v57 = vadd.f32 %v9491_v52, %v11829_v35  ;;  %v11837_v16 = vld [vmem:[#allocation28_spill] sm:$0xff]  ;;  %v11840_v20 = vld [vmem:[#allocation69_spill] sm:$0xff] }
 0x33b   :  { %v2719_v52 = vadd.f32 %v9525_v2, %v2544_v47 }
 0x33c   :  { %v9625_v21 = vpop.f32.mrf.mxu1  ;;  %v2534_v49 = vadd.f32 %v9507_v38, %v2305_v5  ;;  %v3157_v38 = vadd.f32 %v9537_v59, %v2996_v45  ;;  %v3324_v24 = vadd.f32 %v3323_v48, %v3155_v25  ;;  %v2319_v53 = vadd.f32 %v9497_v0, %v1902_v27  ;;  %v11839_v45 = vld [vmem:[#allocation72_spill] sm:$0xff] }
 0x33d   :  { %v2321_v59 = vadd.f32 %v9501_v43, %v1904_v57  ;;  %v3010_v0 = vadd.f32 %v9539_v31, %v2717_v36  ;;  %v11844_v36 = vld [vmem:[#allocation98_spill] sm:$0xff] }
 0x33e   :  { %v9642_v8 = vpop.f32.mrf.mxu1  ;;  %v2707_v18 = vadd.f32 %v9517_v60, %v2534_v49  ;;  %v3326_v60 = vadd.f32 %v9557_v32, %v3157_v38  ;;  %v3765_v58 = vadd.f32 %v9563_v62, %v3324_v24  ;;  %v2552_v48 = vadd.f32 %v9519_v54, %v2319_v53  ;;  %v11842_v38 = vld [vmem:[#allocation71_spill] sm:$0xff]  ;;  %v11843_v35 = vld [vmem:[#allocation22_spill] sm:$0xff] }
 0x33f   :  { %v2554_v62 = vadd.f32 %v9523_v15, %v2321_v59  ;;  %v3012_v54 = vadd.f32 %v9543_v44, %v2719_v52  ;;  %v3171_v2 = vadd.f32 %v9549_v6, %v3010_v0  ;;  %v11833_v15 = vld [vmem:[#allocation6_spill] sm:$0xff]  ;;  %v11847_v52 = vld [vmem:[#allocation11_spill] sm:$0xff] }
 0x340   :  { %v3004_v46 = vadd.f32 %v9535_v63, %v2707_v18  ;;  %v3340_v63 = vadd.f32 %v9561_v39, %v3163_v55  ;;  %v3767_v13 = vadd.f32 %v9567_v11, %v3326_v60  ;;  %v3992_v32 = vadd.f32 %v3991_v30, %v3765_v58  ;;  %v11832_v30 = vld [vmem:[#allocation96_spill] sm:$0xff]  ;;  %v11835_v6 = vld [vmem:[#allocation106_spill] sm:$0xff]  ;;  %v11845_v55 = vld [vmem:[#allocation73_spill] sm:$0xff] }
 0x341   :  { %v9660_v10 = vpop.f32.mrf.mxu1  ;;  %v2729_v43 = vadd.f32 %v9527_v12, %v2552_v48  ;;  %v2731_v11 = vadd.f32 %v11831_v14, %v2554_v62  ;;  %v3173_v19 = vadd.f32 %v11833_v15, %v3012_v54  ;;  %v11834_v12 = vld [vmem:[#allocation41_spill] sm:$0xff]  ;;  %v11846_v60 = vld [vmem:[#allocation99_spill] sm:$0xff] }
 0x342   :  { %v3165_v51 = vadd.f32 %v9545_v3, %v3004_v46  ;;  %v3773_v17 = vadd.f32 %v9571_v34, %v3340_v63  ;;  %v3994_v3 = vadd.f32 %v9587_v23, %v3767_v13  ;;  %v4163_v39 = vadd.f32 %v11830_v50, %v3992_v32  ;;  %v11838_v23 = vld [vmem:[#allocation91_spill] sm:$0xff] }
 0x343   :  { %v3018_v5 = vadd.f32 %v11832_v30, %v2729_v43  ;;  %v3356_v40 = vadd.f32 %v11834_v12, %v3171_v2  ;;  %v4200_v44 = vpop.f32.mrf.mxu1  ;;  %v3020_v61 = vadd.f32 %v11838_v23, %v2731_v11  ;;  %v3358_v27 = vadd.f32 %v11840_v20, %v3173_v19  ;;  %v11848_v32 = vld [vmem:[#allocation79_spill] sm:$0xff]  ;;  %v11850_v2 = vld [vmem:[#allocation44_spill] sm:$0xff] }
 0x344   :  { %v3342_v31 = vadd.f32 %v9565_v1, %v3165_v51  ;;  %v4002_v1 = vadd.f32 %v11836_v4, %v3773_v17  ;;  %v4165_v34 = vadd.f32 %v11837_v16, %v3994_v3 }
 0x345   :  { %v3179_v25 = vadd.f32 %v11839_v45, %v3018_v5  ;;  %v3781_v29 = vadd.f32 %v11841_v41, %v3356_v40  ;;  %v3181_v46 = vadd.f32 %v11844_v36, %v3020_v61  ;;  %v3783_v58 = vadd.f32 %v11846_v60, %v3358_v27 }
 0x346   :  { %v3775_v7 = vadd.f32 %v11835_v6, %v3342_v31  ;;  %v4175_v57 = vadd.f32 %v11843_v35, %v4002_v1 }
 0x347   :  { %v4012_v0 = vadd.f32 %v11847_v52, %v3781_v29  ;;  %v3374_v62 = vadd.f32 %v11848_v32, %v3181_v46  ;;  %v4014_v31 = vadd.f32 %v11850_v2, %v3783_v58 }
 0x348   :  { %v4004_v24 = vadd.f32 %v11842_v38, %v3775_v7 }
 0x349   :  { %v4187_v17 = vadd.f32 %v9625_v21, %v4012_v0  ;;  %v4189_v30 = vadd.f32 %v9642_v8, %v4014_v31 }
 0x34a   :  { %v4177_v51 = vadd.f32 %v9610_v22, %v4004_v24 }
 0x36d   :  { %v4463_v9 = vpop.f32.mrf.mxu0 }
 0x36e   :  { %v4464_v49 = vadd.f32 %v4463_v9, %v4163_v39  ;;  %v3372_v9 = vadd.f32 %v11845_v55, %v3179_v25  ;;  %v11851_v39 = vld [vmem:[#allocation113_spill] sm:$0xff] }
 0x36f   :  { %v4465_v37 = vpop.f32.mrf.mxu0  ;;  %v3791_v14 = vadd.f32 %v11851_v39, %v3374_v62 }
 0x370   :  { %v4466_v53 = vadd.f32 %v4465_v37, %v4165_v34  ;;  %v11849_v37 = vld [vmem:[#allocation75_spill] sm:$0xff] }
 0x371   :  { %v4471_v33 = vpop.f32.mrf.mxu0  ;;  %v3789_v43 = vadd.f32 %v11849_v37, %v3372_v9  ;;  %v4024_v12 = vadd.f32 %v9640_v56, %v3791_v14 }
 0x372   :  { %v4472_v63 = vadd.f32 %v4471_v33, %v4175_v57 }
 0x373   :  { %v4473_v42 = vpop.f32.mrf.mxu0  ;;  %v4022_v33 = vadd.f32 %v9623_v26, %v3789_v43  ;;  %v4201_v4 = vadd.f32 %v4200_v44, %v4024_v12 }
 0x374   :  { %v4474_v3 = vadd.f32 %v4473_v42, %v4177_v51 }
 0x375   :  { %v4479_v18 = vpop.f32.mrf.mxu0  ;;  %v4199_v21 = vadd.f32 %v9660_v10, %v4022_v33 }
 0x376   :  { %v4624_v28 = vpop.f32.mrf.mxu1  ;;  %v4480_v5 = vadd.f32 %v4479_v18, %v4187_v17 }
 0x377   :  { %v4625_v47 = vadd.f32 %v4624_v28, %v4464_v49  ;;  %v4481_v59 = vpop.f32.mrf.mxu0 }
 0x378   :  { %v4626_v48 = vpop.f32.mrf.mxu1  ;;  %v4482_v40 = vadd.f32 %v4481_v59, %v4189_v30 }
 0x379   :  { %4653 = vst [vmem:[#allocation2] sm:$0xff] %v4625_v47  ;;  %v4627_v13 = vadd.f32 %v4626_v48, %v4466_v53  ;;  %v4487_v11 = vpop.f32.mrf.mxu0 }
 0x37a   :  { %v4632_v54 = vpop.f32.mrf.mxu1  ;;  %v4488_v1 = vadd.f32 %v4487_v11, %v4199_v21 }
 0x37b   :  { %4655 = vst.msk [vmem:[#allocation2 + $0x8] sm:$0xff] %vm4654_vm0, %v4627_v13  ;;  %v4633_v50 = vadd.f32 %v4632_v54, %v4472_v63  ;;  %v4489_v6 = vpop.f32.mrf.mxu0 }
 0x37c   :  { %v4634_v22 = vpop.f32.mrf.mxu1  ;;  %v4490_v16 = vadd.f32 %v4489_v6, %v4201_v4 }
 0x37d   :  { %4656 = vst [vmem:[#allocation2 + $0x10] sm:$0xff] %v4633_v50  ;;  %v4635_v15 = vadd.f32 %v4634_v22, %v4474_v3 }
 0x37e   :  { %v4640_v19 = vpop.f32.mrf.mxu1 }
 0x37f   :  { %4657 = vst.msk [vmem:[#allocation2 + $0x18] sm:$0xff] %vm4654_vm0, %v4635_v15  ;;  %v4641_v42 = vadd.f32 %v4640_v19, %v4480_v5 }
 0x380   :  { %v4642_v7 = vpop.f32.mrf.mxu1 }
 0x381   :  { %4658 = vst [vmem:[#allocation2 + $0x20] sm:$0xff] %v4641_v42  ;;  %v4643_v26 = vadd.f32 %v4642_v7, %v4482_v40 }
 0x382   :  { %v4648_v8 = vpop.f32.mrf.mxu1 }
 0x383   :  { %4659 = vst.msk [vmem:[#allocation2 + $0x28] sm:$0xff] %vm4654_vm0, %v4643_v26  ;;  %v4649_v34 = vadd.f32 %v4648_v8, %v4488_v1 }
 0x384   :  { %v4650_v56 = vpop.f32.mrf.mxu1 }
 0x385   :  { %4660 = vst [vmem:[#allocation2 + $0x30] sm:$0xff] %v4649_v34  ;;  %v4651_v10 = vadd.f32 %v4650_v56, %v4490_v16 }
 0x387   :  { %4661 = vst.msk [vmem:[#allocation2 + $0x38] sm:$0xff] %vm4654_vm0, %v4651_v10 }
 0x388   :  { %4692 = shalt.err (!%p4689_p4)
}
 0x389   :  { %s4704_s9 = smov 256   ;;  %s4705_s2 = smov 16  }
 0x38a   :  { %4673 = dma.vmem_to_hbm [thread:$0]  %s4668_s7, 1024, %s9710_s3, [#allocation3], %s4704_s9, %s4704_s9, %s4705_s2  }
 0x38b   :  { %4701 = dma.done.wait [#allocation3], 1024  }
 0x38c   :  { %4702 = vsyncadd [#allocation3], 4294966272 }
 0x38d   :  { %4677 = vsyncpa [#allocation3], 1 }

</bundles_post_ra>
